<compile_context>
chip_gen: v7x
topology: tpu7x:2x2x1
jax: 0.10.0
libtpu: 0.0.40
codegen_flags: <defaults>
</compile_context>

<pallas_src>
import jax
import jax.numpy as jnp
import numpy as np
from jax.experimental import pallas as pl
from jax.experimental.pallas import tpu as pltpu

EPS = 1e-5
VMEM_LIMIT = 48 * 1024 * 1024   # explicit scoped-VMEM limit (safe on v5e/v6e/v7x)


# --------------------------------------------------------------------------- #
# Tiling helpers
# --------------------------------------------------------------------------- #
def _choose_th(H, W, Cin, Cout, target_rows=1024, vmem_budget=6 * 1024 * 1024):
    """Row-tile height: divides H, targets ~target_rows matmul rows per grid step,
    keeps double-buffered bf16 tiles + f32 accumulator under a VMEM budget."""
    best = 0
    for th in range(1, H + 1):
        if H % th:
            continue
        rows = th * W
        x_bytes = 2 * (th + 2) * (W + 2) * Cin * 2    # double-buffered bf16 input tile
        y_bytes = 2 * rows * Cout * 2                 # double-buffered bf16 output tile
        acc_bytes = rows * Cout * 4                   # f32 accumulator
        if best and (x_bytes + y_bytes + acc_bytes > vmem_budget):
            break
        best = th
        if rows >= target_rows:
            break
    return max(best, 1)


def _row_tile(R, cap=1024):
    """Largest row-tile dividing R: R itself if small, else a multiple-of-8 divisor."""
    if R <= cap:
        return R
    best = 1
    for d in range(8, cap + 1, 8):
        if R % d == 0:
            best = d
    return best if best > 1 else R


def _flat_lane_view(M, Cout, max_lane=4096):
    """Pick a lane-dense (R, L) flattening for an (M, Cout) per-channel affine op."""
    total = M * Cout
    if Cout % 128 == 0:
        return M, Cout, False                      # already lane-dense
    if Cout <= 128 and 128 % Cout == 0 and total % 128 == 0:
        L = 128
        while L * 2 <= max_lane and total % (L * 2) == 0:
            L *= 2
        return total // L, L, True
    return M, Cout, False                          # fallback: masked stores (correct)


def _halo_row_tiles(x_nhwc, th):
    """(N, H, W, C) -> (N*nt, th+2, W+2, C): zero 'same' padding + 1-row halo per
    row-tile.  Pure XLA gather; fuses with whatever elementwise op produced x."""
    N, H, W, C = x_nhwc.shape
    nt = H // th
    xp = jnp.pad(x_nhwc, ((0, 0), (1, 1), (1, 1), (0, 0)))
    row_idx = jnp.arange(nt)[:, None] * th + jnp.arange(th + 2)[None, :]
    tiles = xp[:, row_idx]                         # (N, nt, th+2, W+2, C)
    return tiles.reshape(N * nt, th + 2, W + 2, C)


# --------------------------------------------------------------------------- #
# Pallas kernels
# --------------------------------------------------------------------------- #
def _conv3x3_stats(tiles_bf16, w9_bf16, *, th, W, Cin, Cout):
    """3x3 'same' conv (no bias) over halo row-tiles + per-tile BN partial stats.

    tiles: (G, th+2, W+2, Cin) bf16;  w9: (9, Cin, Cout) bf16.
    Returns y (G, th*W, Cout) bf16 and stats (G, 2, Cout) f32 holding [sum, sumsq].
    """
    G = tiles_bf16.shape[0]
    rows = th * W

    def kernel(x_ref, w_ref, y_ref, st_ref):
        acc = jnp.zeros((rows, Cout), jnp.float32)
        k = 0
        for dy in range(3):
            for dx in range(3):
                patch = x_ref[0, dy:dy + th, dx:dx + W, :].reshape(rows, Cin)
                acc = acc + jnp.dot(patch, w_ref[k],
                                    preferred_element_type=jnp.float32)
                k += 1
        y_ref[...] = acc[None].astype(y_ref.dtype)
        # Channel reductions on the MXU (ones @ acc): MXU has slack here; keeps the
        # cross-sublane reductions off the VPU/XLU slots.  Stats stay in f32.
        ones = jnp.ones((1, rows), jnp.float32)
        st_ref[0, 0:1, :] = jnp.dot(ones, acc, preferred_element_type=jnp.float32)
        st_ref[0, 1:2, :] = jnp.dot(ones, acc * acc,
                                    preferred_element_type=jnp.float32)

    y, stats = pl.pallas_call(
        kernel,
        out_shape=(
            jax.ShapeDtypeStruct((G, rows, Cout), jnp.bfloat16),
            jax.ShapeDtypeStruct((G, 2, Cout), jnp.float32),
        ),
        grid_spec=pltpu.PrefetchScalarGridSpec(
            num_scalar_prefetch=0,
            grid=(G,),
            in_specs=[
                pl.BlockSpec((1, th + 2, W + 2, Cin), lambda g: (g, 0, 0, 0)),
                pl.BlockSpec((9, Cin, Cout), lambda g: (0, 0, 0)),  # resident weights
            ],
            out_specs=(
                pl.BlockSpec((1, rows, Cout), lambda g: (g, 0, 0)),
                pl.BlockSpec((1, 2, Cout), lambda g: (g, 0, 0)),    # per-tile partials
            ),
        ),
        compiler_params=pltpu.CompilerParams(
            dimension_semantics=("parallel",),        # no resident accumulator -> v7x OK
            vmem_limit_bytes=VMEM_LIMIT),
    )(tiles_bf16, w9_bf16)
    return y, stats


def _bn_relu_kernel(y_ref, sc_ref, sh_ref, o_ref):
    y = y_ref[...].astype(jnp.float32)
    o_ref[...] = jnp.maximum(y * sc_ref[...] + sh_ref[...], 0.0)


def _bn_relu(y2d, scale, shift):
    """Folded-BatchNorm affine + ReLU on (M, Cout), run on a lane-dense flat view.

    (No input_output_aliases: y is bf16 while the final output is f32.)"""
    M, Cout = y2d.shape
    R, L, tile_channels = _flat_lane_view(M, Cout)
    if tile_channels:
        y_v = y2d.reshape(R, L)
        sc = jnp.tile(scale, L // Cout).reshape(1, L).astype(jnp.float32)
        sh = jnp.tile(shift, L // Cout).reshape(1, L).astype(jnp.float32)
    else:
        y_v = y2d
        sc = scale.reshape(1, L).astype(jnp.float32)
        sh = shift.reshape(1, L).astype(jnp.float32)
    tr = _row_tile(R)
    out = pl.pallas_call(
        _bn_relu_kernel,
        out_shape=jax.ShapeDtypeStruct((R, L), jnp.float32),
        grid_spec=pltpu.PrefetchScalarGridSpec(
            num_scalar_prefetch=0,
            grid=(R // tr,),
            in_specs=[
                pl.BlockSpec((tr, L), lambda i: (i, 0)),
                pl.BlockSpec((1, L), lambda i: (0, 0)),
                pl.BlockSpec((1, L), lambda i: (0, 0)),
            ],
            out_specs=pl.BlockSpec((tr, L), lambda i: (i, 0)),
        ),
        compiler_params=pltpu.CompilerParams(
            dimension_semantics=("parallel",),
            vmem_limit_bytes=VMEM_LIMIT),
    )(y_v, sc, sh)
    return out.reshape(M, Cout)


# --------------------------------------------------------------------------- #
# Forward pass
# --------------------------------------------------------------------------- #
def unet_conv2_forward(x_nchw, params):
    """unetConv2 forward: n blocks of [Conv3x3(same) -> BatchNorm(train) -> ReLU]."""
    x = jnp.transpose(x_nchw, (0, 2, 3, 1)).astype(jnp.float32)     # NCHW -> NHWC
    N, H, W, _ = x.shape
    M = N * H * W

    y = None                 # previous block's pre-BN conv output, (N,H,W,Cout) bf16
    scale = shift = None
    Cout = None
    for idx, (w, b, gamma, beta) in enumerate(params):
        del b  # bias before training-mode BatchNorm cancels exactly in mean subtraction
        Cin, Cout = w.shape[2], w.shape[3]
        th = _choose_th(H, W, Cin, Cout)
        if idx == 0:
            act = x
        else:
            # Fuse the previous block's BN+ReLU into this block's tile-forming pass:
            # XLA fuses the affine + relu + bf16 cast into the halo gather below, so
            # the activation makes a single extra HBM round trip per block.
            act = jnp.maximum(y.astype(jnp.float32) * scale + shift, 0.0)
        tiles = _halo_row_tiles(act, th).astype(jnp.bfloat16)
        w9 = w.reshape(9, Cin, Cout).astype(jnp.bfloat16)

        y_t, stats = _conv3x3_stats(tiles, w9, th=th, W=W, Cin=Cin, Cout=Cout)
        y = y_t.reshape(N, H, W, Cout)

        # Training-mode BatchNorm: biased batch statistics over (N, H, W).
        # TODO(synk): E[y^2]-E[y]^2 in f32 can lose precision for very large M.
        tot = stats.sum(axis=0)                     # (2, Cout) f32
        mean = tot[0] / M
        var = jnp.maximum(tot[1] / M - mean * mean, 0.0)
        scale = gamma / jnp.sqrt(var + EPS)
        shift = beta - mean * scale

    # Last block's BN+ReLU has no following conv to fuse into -> lane-dense kernel.
    out = _bn_relu(y.reshape(M, Cout), scale, shift).reshape(N, H, W, Cout)
    return jnp.transpose(out, (0, 3, 1, 2))                          # NHWC -> NCHW


# --------------------------------------------------------------------------- #
# Pure-JAX reference and parameter init
# --------------------------------------------------------------------------- #
def _reference_forward(x_nchw, params):
    x = jnp.transpose(x_nchw, (0, 2, 3, 1)).astype(jnp.float32)
    for (w, b, g, beta) in params:
        y = jax.lax.conv_general_dilated(
            x, w, window_strides=(1, 1), padding="SAME",
            dimension_numbers=("NHWC", "HWIO", "NHWC")) + b
        mean = y.mean(axis=(0, 1, 2))
        var = y.var(axis=(0, 1, 2))
        y = (y - mean) / jnp.sqrt(var + EPS) * g + beta
        x = jnp.maximum(y, 0.0)
    return jnp.transpose(x, (0, 3, 1, 2))


def init_params(key, in_size, out_size, n=2, ks=3):
    """Deterministic synthetic parameters (conv W/b in HWIO, BN gamma/beta)."""
    params = []
    c_in = in_size
    for _ in range(n):
        key, kw, kb, kg = jax.random.split(key, 4)
        fan_in = c_in * ks * ks
        w = jax.random.normal(kw, (ks, ks, c_in, out_size), jnp.float32) * jnp.sqrt(2.0 / fan_in)
        b = jax.random.uniform(kb, (out_size,), jnp.float32,
                               minval=-1.0, maxval=1.0) / jnp.sqrt(fan_in)
        gamma = 1.0 + 0.02 * jax.random.normal(kg, (out_size,), jnp.float32)
        beta = jnp.zeros((out_size,), jnp.float32)
        params.append((w, b, gamma, beta))
        c_in = out_size
    return params


if __name__ == "__main__":
    key = jax.random.PRNGKey(0)
    kx, kp = jax.random.split(key)

    N, Cin, H, W = 2, 4, 16, 16      # PyTorch NCHW input, like unetConv2(4, 8, True)
    Cout = 8
    x = jax.random.normal(kx, (N, Cin, H, W), jnp.float32)
    params = init_params(kp, Cin, Cout)

    fwd = jax.jit(unet_conv2_forward)
    out = jax.block_until_ready(fwd(x, params))
    assert out.shape == (N, Cout, H, W), out.shape

    ref = _reference_forward(x, params)
    if not np.allclose(np.asarray(out), np.asarray(ref), atol=5e-2, rtol=5e-2):
        err = float(np.max(np.abs(np.asarray(out) - np.asarray(ref))))
        raise AssertionError(f"Pallas output mismatch vs JAX reference (max abs err {err})")

    print("KERNEL_OK")
</pallas_src>

<mosaic_0001>
module attributes {stable_mosaic.version = 11 : i64} {
  func.func @kernel(%arg0: i32, %arg1: memref<1x18x18x4xbf16, #tpu.memory_space<vmem>>, %arg2: memref<9x4x8xbf16, #tpu.memory_space<vmem>>, %arg3: memref<1x256x8xbf16, #tpu.memory_space<vmem>>, %arg4: memref<1x2x8xf32, #tpu.memory_space<vmem>>) attributes {dimension_semantics = [#tpu.dimension_semantics<parallel>], iteration_bounds = array<i64: 2>, scalar_prefetch = 0 : i64, scratch_operands = 0 : i64, tpu.core_type = #tpu.core_type<tc>, window_params = [{transform_indices = @transform_0, window_bounds = array<i64: 1, 18, 18, 4>}, {pipeline_mode = #tpu.pipeline_mode<synchronous>, transform_indices = @transform_1, window_bounds = array<i64: 9, 4, 8>}, {transform_indices = @transform_2, window_bounds = array<i64: 1, 256, 8>}, {transform_indices = @transform_3, window_bounds = array<i64: 1, 2, 8>}]} {
    %cst = arith.constant 0.000000e+00 : f32
    %0 = vector.broadcast %cst : f32 to vector<256x8xf32>
    %c0 = arith.constant 0 : index
    %c0_0 = arith.constant 0 : index
    %c0_1 = arith.constant 0 : index
    %c0_2 = arith.constant 0 : index
    %1 = vector.load %arg1[%c0, %c0_0, %c0_1, %c0_2] : memref<1x18x18x4xbf16, #tpu.memory_space<vmem>>, vector<1x16x16x4xbf16>
    %2 = vector.shape_cast %1 : vector<1x16x16x4xbf16> to vector<16x16x4xbf16>
    %3 = vector.shape_cast %2 : vector<16x16x4xbf16> to vector<256x4xbf16>
    %c0_3 = arith.constant 0 : index
    %c0_4 = arith.constant 0 : index
    %c0_5 = arith.constant 0 : index
    %4 = vector.load %arg2[%c0_3, %c0_4, %c0_5] : memref<9x4x8xbf16, #tpu.memory_space<vmem>>, vector<1x4x8xbf16>
    %5 = vector.shape_cast %4 : vector<1x4x8xbf16> to vector<4x8xbf16>
    %cst_6 = arith.constant dense<0.000000e+00> : vector<256x8xf32>
    %6 = tpu.matmul %3, %5, %cst_6 {dimension_numbers = #tpu.dot_dimension_numbers<[1], [0], [0], [1], [0, 0, 1, 1], [], []>} : vector<256x4xbf16>, vector<4x8xbf16>, vector<256x8xf32> -> vector<256x8xf32>
    %7 = arith.addf %0, %6 : vector<256x8xf32>
    %c0_7 = arith.constant 0 : index
    %c0_8 = arith.constant 0 : index
    %c1 = arith.constant 1 : index
    %c0_9 = arith.constant 0 : index
    %8 = vector.load %arg1[%c0_7, %c0_8, %c1, %c0_9] : memref<1x18x18x4xbf16, #tpu.memory_space<vmem>>, vector<1x16x16x4xbf16>
    %9 = vector.shape_cast %8 : vector<1x16x16x4xbf16> to vector<16x16x4xbf16>
    %10 = vector.shape_cast %9 : vector<16x16x4xbf16> to vector<256x4xbf16>
    %c1_10 = arith.constant 1 : index
    %c0_11 = arith.constant 0 : index
    %c0_12 = arith.constant 0 : index
    %11 = vector.load %arg2[%c1_10, %c0_11, %c0_12] : memref<9x4x8xbf16, #tpu.memory_space<vmem>>, vector<1x4x8xbf16>
    %12 = vector.shape_cast %11 : vector<1x4x8xbf16> to vector<4x8xbf16>
    %cst_13 = arith.constant dense<0.000000e+00> : vector<256x8xf32>
    %13 = tpu.matmul %10, %12, %cst_13 {dimension_numbers = #tpu.dot_dimension_numbers<[1], [0], [0], [1], [0, 0, 1, 1], [], []>} : vector<256x4xbf16>, vector<4x8xbf16>, vector<256x8xf32> -> vector<256x8xf32>
    %14 = arith.addf %7, %13 : vector<256x8xf32>
    %c0_14 = arith.constant 0 : index
    %c0_15 = arith.constant 0 : index
    %c2 = arith.constant 2 : index
    %c0_16 = arith.constant 0 : index
    %15 = vector.load %arg1[%c0_14, %c0_15, %c2, %c0_16] : memref<1x18x18x4xbf16, #tpu.memory_space<vmem>>, vector<1x16x16x4xbf16>
    %16 = vector.shape_cast %15 : vector<1x16x16x4xbf16> to vector<16x16x4xbf16>
    %17 = vector.shape_cast %16 : vector<16x16x4xbf16> to vector<256x4xbf16>
    %c2_17 = arith.constant 2 : index
    %c0_18 = arith.constant 0 : index
    %c0_19 = arith.constant 0 : index
    %18 = vector.load %arg2[%c2_17, %c0_18, %c0_19] : memref<9x4x8xbf16, #tpu.memory_space<vmem>>, vector<1x4x8xbf16>
    %19 = vector.shape_cast %18 : vector<1x4x8xbf16> to vector<4x8xbf16>
    %cst_20 = arith.constant dense<0.000000e+00> : vector<256x8xf32>
    %20 = tpu.matmul %17, %19, %cst_20 {dimension_numbers = #tpu.dot_dimension_numbers<[1], [0], [0], [1], [0, 0, 1, 1], [], []>} : vector<256x4xbf16>, vector<4x8xbf16>, vector<256x8xf32> -> vector<256x8xf32>
    %21 = arith.addf %14, %20 : vector<256x8xf32>
    %c0_21 = arith.constant 0 : index
    %c1_22 = arith.constant 1 : index
    %c0_23 = arith.constant 0 : index
    %c0_24 = arith.constant 0 : index
    %22 = vector.load %arg1[%c0_21, %c1_22, %c0_23, %c0_24] : memref<1x18x18x4xbf16, #tpu.memory_space<vmem>>, vector<1x16x16x4xbf16>
    %23 = vector.shape_cast %22 : vector<1x16x16x4xbf16> to vector<16x16x4xbf16>
    %24 = vector.shape_cast %23 : vector<16x16x4xbf16> to vector<256x4xbf16>
    %c3 = arith.constant 3 : index
    %c0_25 = arith.constant 0 : index
    %c0_26 = arith.constant 0 : index
    %25 = vector.load %arg2[%c3, %c0_25, %c0_26] : memref<9x4x8xbf16, #tpu.memory_space<vmem>>, vector<1x4x8xbf16>
    %26 = vector.shape_cast %25 : vector<1x4x8xbf16> to vector<4x8xbf16>
    %cst_27 = arith.constant dense<0.000000e+00> : vector<256x8xf32>
    %27 = tpu.matmul %24, %26, %cst_27 {dimension_numbers = #tpu.dot_dimension_numbers<[1], [0], [0], [1], [0, 0, 1, 1], [], []>} : vector<256x4xbf16>, vector<4x8xbf16>, vector<256x8xf32> -> vector<256x8xf32>
    %28 = arith.addf %21, %27 : vector<256x8xf32>
    %c0_28 = arith.constant 0 : index
    %c1_29 = arith.constant 1 : index
    %c1_30 = arith.constant 1 : index
    %c0_31 = arith.constant 0 : index
    %29 = vector.load %arg1[%c0_28, %c1_29, %c1_30, %c0_31] : memref<1x18x18x4xbf16, #tpu.memory_space<vmem>>, vector<1x16x16x4xbf16>
    %30 = vector.shape_cast %29 : vector<1x16x16x4xbf16> to vector<16x16x4xbf16>
    %31 = vector.shape_cast %30 : vector<16x16x4xbf16> to vector<256x4xbf16>
    %c4 = arith.constant 4 : index
    %c0_32 = arith.constant 0 : index
    %c0_33 = arith.constant 0 : index
    %32 = vector.load %arg2[%c4, %c0_32, %c0_33] : memref<9x4x8xbf16, #tpu.memory_space<vmem>>, vector<1x4x8xbf16>
    %33 = vector.shape_cast %32 : vector<1x4x8xbf16> to vector<4x8xbf16>
    %cst_34 = arith.constant dense<0.000000e+00> : vector<256x8xf32>
    %34 = tpu.matmul %31, %33, %cst_34 {dimension_numbers = #tpu.dot_dimension_numbers<[1], [0], [0], [1], [0, 0, 1, 1], [], []>} : vector<256x4xbf16>, vector<4x8xbf16>, vector<256x8xf32> -> vector<256x8xf32>
    %35 = arith.addf %28, %34 : vector<256x8xf32>
    %c0_35 = arith.constant 0 : index
    %c1_36 = arith.constant 1 : index
    %c2_37 = arith.constant 2 : index
    %c0_38 = arith.constant 0 : index
    %36 = vector.load %arg1[%c0_35, %c1_36, %c2_37, %c0_38] : memref<1x18x18x4xbf16, #tpu.memory_space<vmem>>, vector<1x16x16x4xbf16>
    %37 = vector.shape_cast %36 : vector<1x16x16x4xbf16> to vector<16x16x4xbf16>
    %38 = vector.shape_cast %37 : vector<16x16x4xbf16> to vector<256x4xbf16>
    %c5 = arith.constant 5 : index
    %c0_39 = arith.constant 0 : index
    %c0_40 = arith.constant 0 : index
    %39 = vector.load %arg2[%c5, %c0_39, %c0_40] : memref<9x4x8xbf16, #tpu.memory_space<vmem>>, vector<1x4x8xbf16>
    %40 = vector.shape_cast %39 : vector<1x4x8xbf16> to vector<4x8xbf16>
    %cst_41 = arith.constant dense<0.000000e+00> : vector<256x8xf32>
    %41 = tpu.matmul %38, %40, %cst_41 {dimension_numbers = #tpu.dot_dimension_numbers<[1], [0], [0], [1], [0, 0, 1, 1], [], []>} : vector<256x4xbf16>, vector<4x8xbf16>, vector<256x8xf32> -> vector<256x8xf32>
    %42 = arith.addf %35, %41 : vector<256x8xf32>
    %c0_42 = arith.constant 0 : index
    %c2_43 = arith.constant 2 : index
    %c0_44 = arith.constant 0 : index
    %c0_45 = arith.constant 0 : index
    %43 = vector.load %arg1[%c0_42, %c2_43, %c0_44, %c0_45] : memref<1x18x18x4xbf16, #tpu.memory_space<vmem>>, vector<1x16x16x4xbf16>
    %44 = vector.shape_cast %43 : vector<1x16x16x4xbf16> to vector<16x16x4xbf16>
    %45 = vector.shape_cast %44 : vector<16x16x4xbf16> to vector<256x4xbf16>
    %c6 = arith.constant 6 : index
    %c0_46 = arith.constant 0 : index
    %c0_47 = arith.constant 0 : index
    %46 = vector.load %arg2[%c6, %c0_46, %c0_47] : memref<9x4x8xbf16, #tpu.memory_space<vmem>>, vector<1x4x8xbf16>
    %47 = vector.shape_cast %46 : vector<1x4x8xbf16> to vector<4x8xbf16>
    %cst_48 = arith.constant dense<0.000000e+00> : vector<256x8xf32>
    %48 = tpu.matmul %45, %47, %cst_48 {dimension_numbers = #tpu.dot_dimension_numbers<[1], [0], [0], [1], [0, 0, 1, 1], [], []>} : vector<256x4xbf16>, vector<4x8xbf16>, vector<256x8xf32> -> vector<256x8xf32>
    %49 = arith.addf %42, %48 : vector<256x8xf32>
    %c0_49 = arith.constant 0 : index
    %c2_50 = arith.constant 2 : index
    %c1_51 = arith.constant 1 : index
    %c0_52 = arith.constant 0 : index
    %50 = vector.load %arg1[%c0_49, %c2_50, %c1_51, %c0_52] : memref<1x18x18x4xbf16, #tpu.memory_space<vmem>>, vector<1x16x16x4xbf16>
    %51 = vector.shape_cast %50 : vector<1x16x16x4xbf16> to vector<16x16x4xbf16>
    %52 = vector.shape_cast %51 : vector<16x16x4xbf16> to vector<256x4xbf16>
    %c7 = arith.constant 7 : index
    %c0_53 = arith.constant 0 : index
    %c0_54 = arith.constant 0 : index
    %53 = vector.load %arg2[%c7, %c0_53, %c0_54] : memref<9x4x8xbf16, #tpu.memory_space<vmem>>, vector<1x4x8xbf16>
    %54 = vector.shape_cast %53 : vector<1x4x8xbf16> to vector<4x8xbf16>
    %cst_55 = arith.constant dense<0.000000e+00> : vector<256x8xf32>
    %55 = tpu.matmul %52, %54, %cst_55 {dimension_numbers = #tpu.dot_dimension_numbers<[1], [0], [0], [1], [0, 0, 1, 1], [], []>} : vector<256x4xbf16>, vector<4x8xbf16>, vector<256x8xf32> -> vector<256x8xf32>
    %56 = arith.addf %49, %55 : vector<256x8xf32>
    %c0_56 = arith.constant 0 : index
    %c2_57 = arith.constant 2 : index
    %c2_58 = arith.constant 2 : index
    %c0_59 = arith.constant 0 : index
    %57 = vector.load %arg1[%c0_56, %c2_57, %c2_58, %c0_59] : memref<1x18x18x4xbf16, #tpu.memory_space<vmem>>, vector<1x16x16x4xbf16>
    %58 = vector.shape_cast %57 : vector<1x16x16x4xbf16> to vector<16x16x4xbf16>
    %59 = vector.shape_cast %58 : vector<16x16x4xbf16> to vector<256x4xbf16>
    %c8 = arith.constant 8 : index
    %c0_60 = arith.constant 0 : index
    %c0_61 = arith.constant 0 : index
    %60 = vector.load %arg2[%c8, %c0_60, %c0_61] : memref<9x4x8xbf16, #tpu.memory_space<vmem>>, vector<1x4x8xbf16>
    %61 = vector.shape_cast %60 : vector<1x4x8xbf16> to vector<4x8xbf16>
    %cst_62 = arith.constant dense<0.000000e+00> : vector<256x8xf32>
    %62 = tpu.matmul %59, %61, %cst_62 {dimension_numbers = #tpu.dot_dimension_numbers<[1], [0], [0], [1], [0, 0, 1, 1], [], []>} : vector<256x4xbf16>, vector<4x8xbf16>, vector<256x8xf32> -> vector<256x8xf32>
    %63 = arith.addf %56, %62 : vector<256x8xf32>
    %64 = vector.shape_cast %63 : vector<256x8xf32> to vector<1x256x8xf32>
    %65 = arith.truncf %64 : vector<1x256x8xf32> to vector<1x256x8xbf16>
    %c0_63 = arith.constant 0 : index
    %c0_64 = arith.constant 0 : index
    %c0_65 = arith.constant 0 : index
    %66 = vector.load %arg3[%c0_63, %c0_64, %c0_65] : memref<1x256x8xbf16, #tpu.memory_space<vmem>>, vector<1x256x8xbf16>
    tpu.vector_store %arg3[%c0_63, %c0_64, %c0_65], %65 {strides = array<i32>} : memref<1x256x8xbf16, #tpu.memory_space<vmem>>, vector<1x256x8xbf16>,
    %cst_66 = arith.constant 1.000000e+00 : f32
    %67 = vector.broadcast %cst_66 : f32 to vector<1x256xf32>
    %cst_67 = arith.constant dense<0.000000e+00> : vector<1x8xf32>
    %68 = tpu.matmul %67, %63, %cst_67 {dimension_numbers = #tpu.dot_dimension_numbers<[1], [0], [0], [1], [0, 0, 1, 1], [], []>} : vector<1x256xf32>, vector<256x8xf32>, vector<1x8xf32> -> vector<1x8xf32>
    %c0_68 = arith.constant 0 : index
    %c0_69 = arith.constant 0 : index
    %c0_70 = arith.constant 0 : index
    %69 = vector.load %arg4[%c0_68, %c0_69, %c0_70] : memref<1x2x8xf32, #tpu.memory_space<vmem>>, vector<1x1x8xf32>
    %70 = vector.shape_cast %69 : vector<1x1x8xf32> to vector<1x8xf32>
    %71 = vector.shape_cast %68 : vector<1x8xf32> to vector<1x1x8xf32>
    tpu.vector_store %arg4[%c0_68, %c0_69, %c0_70], %71 {strides = array<i32>} : memref<1x2x8xf32, #tpu.memory_space<vmem>>, vector<1x1x8xf32>,
    %72 = arith.mulf %63, %63 : vector<256x8xf32>
    %cst_71 = arith.constant dense<0.000000e+00> : vector<1x8xf32>
    %73 = tpu.matmul %67, %72, %cst_71 {dimension_numbers = #tpu.dot_dimension_numbers<[1], [0], [0], [1], [0, 0, 1, 1], [], []>} : vector<1x256xf32>, vector<256x8xf32>, vector<1x8xf32> -> vector<1x8xf32>
    %c0_72 = arith.constant 0 : index
    %c1_73 = arith.constant 1 : index
    %c0_74 = arith.constant 0 : index
    %74 = vector.load %arg4[%c0_72, %c1_73, %c0_74] : memref<1x2x8xf32, #tpu.memory_space<vmem>>, vector<1x1x8xf32>
    %75 = vector.shape_cast %74 : vector<1x1x8xf32> to vector<1x8xf32>
    %76 = vector.shape_cast %73 : vector<1x8xf32> to vector<1x1x8xf32>
    tpu.vector_store %arg4[%c0_72, %c1_73, %c0_74], %76 {strides = array<i32>} : memref<1x2x8xf32, #tpu.memory_space<vmem>>, vector<1x1x8xf32>,
    return
  }
  func.func @transform_0(%arg0: i32) -> (i32, i32, i32, i32) {
    %c0_i32 = arith.constant 0 : i32
    %c0_i32_0 = arith.constant 0 : i32
    %c0_i32_1 = arith.constant 0 : i32
    %c0_i32_2 = arith.constant 0 : i32
    return %arg0, %c0_i32, %c0_i32_0, %c0_i32_1 : i32, i32, i32, i32
  }
  func.func @transform_1(%arg0: i32) -> (i32, i32, i32) {
    %c0_i32 = arith.constant 0 : i32
    %c0_i32_0 = arith.constant 0 : i32
    %c0_i32_1 = arith.constant 0 : i32
    %c0_i32_2 = arith.constant 0 : i32
    return %c0_i32, %c0_i32_0, %c0_i32_1 : i32, i32, i32
  }
  func.func @transform_2(%arg0: i32) -> (i32, i32, i32) {
    %c0_i32 = arith.constant 0 : i32
    %c0_i32_0 = arith.constant 0 : i32
    %c0_i32_1 = arith.constant 0 : i32
    return %arg0, %c0_i32, %c0_i32_0 : i32, i32, i32
  }
  func.func @transform_3(%arg0: i32) -> (i32, i32, i32) {
    %c0_i32 = arith.constant 0 : i32
    %c0_i32_0 = arith.constant 0 : i32
    %c0_i32_1 = arith.constant 0 : i32
    return %arg0, %c0_i32, %c0_i32_0 : i32, i32, i32
  }
}

module attributes {stable_mosaic.version = 11 : i64} {
  func.func @kernel(%arg0: i32, %arg1: memref<1x18x18x8xbf16, #tpu.memory_space<vmem>>, %arg2: memref<9x8x8xbf16, #tpu.memory_space<vmem>>, %arg3: memref<1x256x8xbf16, #tpu.memory_space<vmem>>, %arg4: memref<1x2x8xf32, #tpu.memory_space<vmem>>) attributes {dimension_semantics = [#tpu.dimension_semantics<parallel>], iteration_bounds = array<i64: 2>, scalar_prefetch = 0 : i64, scratch_operands = 0 : i64, tpu.core_type = #tpu.core_type<tc>, window_params = [{transform_indices = @transform_0, window_bounds = array<i64: 1, 18, 18, 8>}, {pipeline_mode = #tpu.pipeline_mode<synchronous>, transform_indices = @transform_1, window_bounds = array<i64: 9, 8, 8>}, {transform_indices = @transform_2, window_bounds = array<i64: 1, 256, 8>}, {transform_indices = @transform_3, window_bounds = array<i64: 1, 2, 8>}]} {
    %cst = arith.constant 0.000000e+00 : f32
    %0 = vector.broadcast %cst : f32 to vector<256x8xf32>
    %c0 = arith.constant 0 : index
    %c0_0 = arith.constant 0 : index
    %c0_1 = arith.constant 0 : index
    %c0_2 = arith.constant 0 : index
    %1 = vector.load %arg1[%c0, %c0_0, %c0_1, %c0_2] : memref<1x18x18x8xbf16, #tpu.memory_space<vmem>>, vector<1x16x16x8xbf16>
    %2 = vector.shape_cast %1 : vector<1x16x16x8xbf16> to vector<16x16x8xbf16>
    %3 = vector.shape_cast %2 : vector<16x16x8xbf16> to vector<256x8xbf16>
    %c0_3 = arith.constant 0 : index
    %c0_4 = arith.constant 0 : index
    %c0_5 = arith.constant 0 : index
    %4 = vector.load %arg2[%c0_3, %c0_4, %c0_5] : memref<9x8x8xbf16, #tpu.memory_space<vmem>>, vector<1x8x8xbf16>
    %5 = vector.shape_cast %4 : vector<1x8x8xbf16> to vector<8x8xbf16>
    %cst_6 = arith.constant dense<0.000000e+00> : vector<256x8xf32>
    %6 = tpu.matmul %3, %5, %cst_6 {dimension_numbers = #tpu.dot_dimension_numbers<[1], [0], [0], [1], [0, 0, 1, 1], [], []>} : vector<256x8xbf16>, vector<8x8xbf16>, vector<256x8xf32> -> vector<256x8xf32>
    %7 = arith.addf %0, %6 : vector<256x8xf32>
    %c0_7 = arith.constant 0 : index
    %c0_8 = arith.constant 0 : index
    %c1 = arith.constant 1 : index
    %c0_9 = arith.constant 0 : index
    %8 = vector.load %arg1[%c0_7, %c0_8, %c1, %c0_9] : memref<1x18x18x8xbf16, #tpu.memory_space<vmem>>, vector<1x16x16x8xbf16>
    %9 = vector.shape_cast %8 : vector<1x16x16x8xbf16> to vector<16x16x8xbf16>
    %10 = vector.shape_cast %9 : vector<16x16x8xbf16> to vector<256x8xbf16>
    %c1_10 = arith.constant 1 : index
    %c0_11 = arith.constant 0 : index
    %c0_12 = arith.constant 0 : index
    %11 = vector.load %arg2[%c1_10, %c0_11, %c0_12] : memref<9x8x8xbf16, #tpu.memory_space<vmem>>, vector<1x8x8xbf16>
    %12 = vector.shape_cast %11 : vector<1x8x8xbf16> to vector<8x8xbf16>
    %cst_13 = arith.constant dense<0.000000e+00> : vector<256x8xf32>
    %13 = tpu.matmul %10, %12, %cst_13 {dimension_numbers = #tpu.dot_dimension_numbers<[1], [0], [0], [1], [0, 0, 1, 1], [], []>} : vector<256x8xbf16>, vector<8x8xbf16>, vector<256x8xf32> -> vector<256x8xf32>
    %14 = arith.addf %7, %13 : vector<256x8xf32>
    %c0_14 = arith.constant 0 : index
    %c0_15 = arith.constant 0 : index
    %c2 = arith.constant 2 : index
    %c0_16 = arith.constant 0 : index
    %15 = vector.load %arg1[%c0_14, %c0_15, %c2, %c0_16] : memref<1x18x18x8xbf16, #tpu.memory_space<vmem>>, vector<1x16x16x8xbf16>
    %16 = vector.shape_cast %15 : vector<1x16x16x8xbf16> to vector<16x16x8xbf16>
    %17 = vector.shape_cast %16 : vector<16x16x8xbf16> to vector<256x8xbf16>
    %c2_17 = arith.constant 2 : index
    %c0_18 = arith.constant 0 : index
    %c0_19 = arith.constant 0 : index
    %18 = vector.load %arg2[%c2_17, %c0_18, %c0_19] : memref<9x8x8xbf16, #tpu.memory_space<vmem>>, vector<1x8x8xbf16>
    %19 = vector.shape_cast %18 : vector<1x8x8xbf16> to vector<8x8xbf16>
    %cst_20 = arith.constant dense<0.000000e+00> : vector<256x8xf32>
    %20 = tpu.matmul %17, %19, %cst_20 {dimension_numbers = #tpu.dot_dimension_numbers<[1], [0], [0], [1], [0, 0, 1, 1], [], []>} : vector<256x8xbf16>, vector<8x8xbf16>, vector<256x8xf32> -> vector<256x8xf32>
    %21 = arith.addf %14, %20 : vector<256x8xf32>
    %c0_21 = arith.constant 0 : index
    %c1_22 = arith.constant 1 : index
    %c0_23 = arith.constant 0 : index
    %c0_24 = arith.constant 0 : index
    %22 = vector.load %arg1[%c0_21, %c1_22, %c0_23, %c0_24] : memref<1x18x18x8xbf16, #tpu.memory_space<vmem>>, vector<1x16x16x8xbf16>
    %23 = vector.shape_cast %22 : vector<1x16x16x8xbf16> to vector<16x16x8xbf16>
    %24 = vector.shape_cast %23 : vector<16x16x8xbf16> to vector<256x8xbf16>
    %c3 = arith.constant 3 : index
    %c0_25 = arith.constant 0 : index
    %c0_26 = arith.constant 0 : index
    %25 = vector.load %arg2[%c3, %c0_25, %c0_26] : memref<9x8x8xbf16, #tpu.memory_space<vmem>>, vector<1x8x8xbf16>
    %26 = vector.shape_cast %25 : vector<1x8x8xbf16> to vector<8x8xbf16>
    %cst_27 = arith.constant dense<0.000000e+00> : vector<256x8xf32>
    %27 = tpu.matmul %24, %26, %cst_27 {dimension_numbers = #tpu.dot_dimension_numbers<[1], [0], [0], [1], [0, 0, 1, 1], [], []>} : vector<256x8xbf16>, vector<8x8xbf16>, vector<256x8xf32> -> vector<256x8xf32>
    %28 = arith.addf %21, %27 : vector<256x8xf32>
    %c0_28 = arith.constant 0 : index
    %c1_29 = arith.constant 1 : index
    %c1_30 = arith.constant 1 : index
    %c0_31 = arith.constant 0 : index
    %29 = vector.load %arg1[%c0_28, %c1_29, %c1_30, %c0_31] : memref<1x18x18x8xbf16, #tpu.memory_space<vmem>>, vector<1x16x16x8xbf16>
    %30 = vector.shape_cast %29 : vector<1x16x16x8xbf16> to vector<16x16x8xbf16>
    %31 = vector.shape_cast %30 : vector<16x16x8xbf16> to vector<256x8xbf16>
    %c4 = arith.constant 4 : index
    %c0_32 = arith.constant 0 : index
    %c0_33 = arith.constant 0 : index
    %32 = vector.load %arg2[%c4, %c0_32, %c0_33] : memref<9x8x8xbf16, #tpu.memory_space<vmem>>, vector<1x8x8xbf16>
    %33 = vector.shape_cast %32 : vector<1x8x8xbf16> to vector<8x8xbf16>
    %cst_34 = arith.constant dense<0.000000e+00> : vector<256x8xf32>
    %34 = tpu.matmul %31, %33, %cst_34 {dimension_numbers = #tpu.dot_dimension_numbers<[1], [0], [0], [1], [0, 0, 1, 1], [], []>} : vector<256x8xbf16>, vector<8x8xbf16>, vector<256x8xf32> -> vector<256x8xf32>
    %35 = arith.addf %28, %34 : vector<256x8xf32>
    %c0_35 = arith.constant 0 : index
    %c1_36 = arith.constant 1 : index
    %c2_37 = arith.constant 2 : index
    %c0_38 = arith.constant 0 : index
    %36 = vector.load %arg1[%c0_35, %c1_36, %c2_37, %c0_38] : memref<1x18x18x8xbf16, #tpu.memory_space<vmem>>, vector<1x16x16x8xbf16>
    %37 = vector.shape_cast %36 : vector<1x16x16x8xbf16> to vector<16x16x8xbf16>
    %38 = vector.shape_cast %37 : vector<16x16x8xbf16> to vector<256x8xbf16>
    %c5 = arith.constant 5 : index
    %c0_39 = arith.constant 0 : index
    %c0_40 = arith.constant 0 : index
    %39 = vector.load %arg2[%c5, %c0_39, %c0_40] : memref<9x8x8xbf16, #tpu.memory_space<vmem>>, vector<1x8x8xbf16>
    %40 = vector.shape_cast %39 : vector<1x8x8xbf16> to vector<8x8xbf16>
    %cst_41 = arith.constant dense<0.000000e+00> : vector<256x8xf32>
    %41 = tpu.matmul %38, %40, %cst_41 {dimension_numbers = #tpu.dot_dimension_numbers<[1], [0], [0], [1], [0, 0, 1, 1], [], []>} : vector<256x8xbf16>, vector<8x8xbf16>, vector<256x8xf32> -> vector<256x8xf32>
    %42 = arith.addf %35, %41 : vector<256x8xf32>
    %c0_42 = arith.constant 0 : index
    %c2_43 = arith.constant 2 : index
    %c0_44 = arith.constant 0 : index
    %c0_45 = arith.constant 0 : index
    %43 = vector.load %arg1[%c0_42, %c2_43, %c0_44, %c0_45] : memref<1x18x18x8xbf16, #tpu.memory_space<vmem>>, vector<1x16x16x8xbf16>
    %44 = vector.shape_cast %43 : vector<1x16x16x8xbf16> to vector<16x16x8xbf16>
    %45 = vector.shape_cast %44 : vector<16x16x8xbf16> to vector<256x8xbf16>
    %c6 = arith.constant 6 : index
    %c0_46 = arith.constant 0 : index
    %c0_47 = arith.constant 0 : index
    %46 = vector.load %arg2[%c6, %c0_46, %c0_47] : memref<9x8x8xbf16, #tpu.memory_space<vmem>>, vector<1x8x8xbf16>
    %47 = vector.shape_cast %46 : vector<1x8x8xbf16> to vector<8x8xbf16>
    %cst_48 = arith.constant dense<0.000000e+00> : vector<256x8xf32>
    %48 = tpu.matmul %45, %47, %cst_48 {dimension_numbers = #tpu.dot_dimension_numbers<[1], [0], [0], [1], [0, 0, 1, 1], [], []>} : vector<256x8xbf16>, vector<8x8xbf16>, vector<256x8xf32> -> vector<256x8xf32>
    %49 = arith.addf %42, %48 : vector<256x8xf32>
    %c0_49 = arith.constant 0 : index
    %c2_50 = arith.constant 2 : index
    %c1_51 = arith.constant 1 : index
    %c0_52 = arith.constant 0 : index
    %50 = vector.load %arg1[%c0_49, %c2_50, %c1_51, %c0_52] : memref<1x18x18x8xbf16, #tpu.memory_space<vmem>>, vector<1x16x16x8xbf16>
    %51 = vector.shape_cast %50 : vector<1x16x16x8xbf16> to vector<16x16x8xbf16>
    %52 = vector.shape_cast %51 : vector<16x16x8xbf16> to vector<256x8xbf16>
    %c7 = arith.constant 7 : index
    %c0_53 = arith.constant 0 : index
    %c0_54 = arith.constant 0 : index
    %53 = vector.load %arg2[%c7, %c0_53, %c0_54] : memref<9x8x8xbf16, #tpu.memory_space<vmem>>, vector<1x8x8xbf16>
    %54 = vector.shape_cast %53 : vector<1x8x8xbf16> to vector<8x8xbf16>
    %cst_55 = arith.constant dense<0.000000e+00> : vector<256x8xf32>
    %55 = tpu.matmul %52, %54, %cst_55 {dimension_numbers = #tpu.dot_dimension_numbers<[1], [0], [0], [1], [0, 0, 1, 1], [], []>} : vector<256x8xbf16>, vector<8x8xbf16>, vector<256x8xf32> -> vector<256x8xf32>
    %56 = arith.addf %49, %55 : vector<256x8xf32>
    %c0_56 = arith.constant 0 : index
    %c2_57 = arith.constant 2 : index
    %c2_58 = arith.constant 2 : index
    %c0_59 = arith.constant 0 : index
    %57 = vector.load %arg1[%c0_56, %c2_57, %c2_58, %c0_59] : memref<1x18x18x8xbf16, #tpu.memory_space<vmem>>, vector<1x16x16x8xbf16>
    %58 = vector.shape_cast %57 : vector<1x16x16x8xbf16> to vector<16x16x8xbf16>
    %59 = vector.shape_cast %58 : vector<16x16x8xbf16> to vector<256x8xbf16>
    %c8 = arith.constant 8 : index
    %c0_60 = arith.constant 0 : index
    %c0_61 = arith.constant 0 : index
    %60 = vector.load %arg2[%c8, %c0_60, %c0_61] : memref<9x8x8xbf16, #tpu.memory_space<vmem>>, vector<1x8x8xbf16>
    %61 = vector.shape_cast %60 : vector<1x8x8xbf16> to vector<8x8xbf16>
    %cst_62 = arith.constant dense<0.000000e+00> : vector<256x8xf32>
    %62 = tpu.matmul %59, %61, %cst_62 {dimension_numbers = #tpu.dot_dimension_numbers<[1], [0], [0], [1], [0, 0, 1, 1], [], []>} : vector<256x8xbf16>, vector<8x8xbf16>, vector<256x8xf32> -> vector<256x8xf32>
    %63 = arith.addf %56, %62 : vector<256x8xf32>
    %64 = vector.shape_cast %63 : vector<256x8xf32> to vector<1x256x8xf32>
    %65 = arith.truncf %64 : vector<1x256x8xf32> to vector<1x256x8xbf16>
    %c0_63 = arith.constant 0 : index
    %c0_64 = arith.constant 0 : index
    %c0_65 = arith.constant 0 : index
    %66 = vector.load %arg3[%c0_63, %c0_64, %c0_65] : memref<1x256x8xbf16, #tpu.memory_space<vmem>>, vector<1x256x8xbf16>
    tpu.vector_store %arg3[%c0_63, %c0_64, %c0_65], %65 {strides = array<i32>} : memref<1x256x8xbf16, #tpu.memory_space<vmem>>, vector<1x256x8xbf16>,
    %cst_66 = arith.constant 1.000000e+00 : f32
    %67 = vector.broadcast %cst_66 : f32 to vector<1x256xf32>
    %cst_67 = arith.constant dense<0.000000e+00> : vector<1x8xf32>
    %68 = tpu.matmul %67, %63, %cst_67 {dimension_numbers = #tpu.dot_dimension_numbers<[1], [0], [0], [1], [0, 0, 1, 1], [], []>} : vector<1x256xf32>, vector<256x8xf32>, vector<1x8xf32> -> vector<1x8xf32>
    %c0_68 = arith.constant 0 : index
    %c0_69 = arith.constant 0 : index
    %c0_70 = arith.constant 0 : index
    %69 = vector.load %arg4[%c0_68, %c0_69, %c0_70] : memref<1x2x8xf32, #tpu.memory_space<vmem>>, vector<1x1x8xf32>
    %70 = vector.shape_cast %69 : vector<1x1x8xf32> to vector<1x8xf32>
    %71 = vector.shape_cast %68 : vector<1x8xf32> to vector<1x1x8xf32>
    tpu.vector_store %arg4[%c0_68, %c0_69, %c0_70], %71 {strides = array<i32>} : memref<1x2x8xf32, #tpu.memory_space<vmem>>, vector<1x1x8xf32>,
    %72 = arith.mulf %63, %63 : vector<256x8xf32>
    %cst_71 = arith.constant dense<0.000000e+00> : vector<1x8xf32>
    %73 = tpu.matmul %67, %72, %cst_71 {dimension_numbers = #tpu.dot_dimension_numbers<[1], [0], [0], [1], [0, 0, 1, 1], [], []>} : vector<1x256xf32>, vector<256x8xf32>, vector<1x8xf32> -> vector<1x8xf32>
    %c0_72 = arith.constant 0 : index
    %c1_73 = arith.constant 1 : index
    %c0_74 = arith.constant 0 : index
    %74 = vector.load %arg4[%c0_72, %c1_73, %c0_74] : memref<1x2x8xf32, #tpu.memory_space<vmem>>, vector<1x1x8xf32>
    %75 = vector.shape_cast %74 : vector<1x1x8xf32> to vector<1x8xf32>
    %76 = vector.shape_cast %73 : vector<1x8xf32> to vector<1x1x8xf32>
    tpu.vector_store %arg4[%c0_72, %c1_73, %c0_74], %76 {strides = array<i32>} : memref<1x2x8xf32, #tpu.memory_space<vmem>>, vector<1x1x8xf32>,
    return
  }
  func.func @transform_0(%arg0: i32) -> (i32, i32, i32, i32) {
    %c0_i32 = arith.constant 0 : i32
    %c0_i32_0 = arith.constant 0 : i32
    %c0_i32_1 = arith.constant 0 : i32
    %c0_i32_2 = arith.constant 0 : i32
    return %arg0, %c0_i32, %c0_i32_0, %c0_i32_1 : i32, i32, i32, i32
  }
  func.func @transform_1(%arg0: i32) -> (i32, i32, i32) {
    %c0_i32 = arith.constant 0 : i32
    %c0_i32_0 = arith.constant 0 : i32
    %c0_i32_1 = arith.constant 0 : i32
    %c0_i32_2 = arith.constant 0 : i32
    return %c0_i32, %c0_i32_0, %c0_i32_1 : i32, i32, i32
  }
  func.func @transform_2(%arg0: i32) -> (i32, i32, i32) {
    %c0_i32 = arith.constant 0 : i32
    %c0_i32_0 = arith.constant 0 : i32
    %c0_i32_1 = arith.constant 0 : i32
    return %arg0, %c0_i32, %c0_i32_0 : i32, i32, i32
  }
  func.func @transform_3(%arg0: i32) -> (i32, i32, i32) {
    %c0_i32 = arith.constant 0 : i32
    %c0_i32_0 = arith.constant 0 : i32
    %c0_i32_1 = arith.constant 0 : i32
    return %arg0, %c0_i32, %c0_i32_0 : i32, i32, i32
  }
}

module attributes {stable_mosaic.version = 11 : i64} {
  func.func @_bn_relu_kernel(%arg0: i32, %arg1: memref<1x4096xbf16, #tpu.memory_space<vmem>>, %arg2: memref<1x4096xf32, #tpu.memory_space<vmem>>, %arg3: memref<1x4096xf32, #tpu.memory_space<vmem>>, %arg4: memref<1x4096xf32, #tpu.memory_space<vmem>>) attributes {dimension_semantics = [#tpu.dimension_semantics<parallel>], iteration_bounds = array<i64: 1>, scalar_prefetch = 0 : i64, scratch_operands = 0 : i64, tpu.core_type = #tpu.core_type<tc>, window_params = [{transform_indices = @transform_0, window_bounds = array<i64: 1, 4096>}, {pipeline_mode = #tpu.pipeline_mode<synchronous>, transform_indices = @transform_1, window_bounds = array<i64: 1, 4096>}, {pipeline_mode = #tpu.pipeline_mode<synchronous>, transform_indices = @transform_2, window_bounds = array<i64: 1, 4096>}, {transform_indices = @transform_3, window_bounds = array<i64: 1, 4096>}]} {
    %c0 = arith.constant 0 : index
    %c0_0 = arith.constant 0 : index
    %0 = vector.load %arg1[%c0, %c0_0] : memref<1x4096xbf16, #tpu.memory_space<vmem>>, vector<1x4096xbf16>
    %1 = arith.extf %0 : vector<1x4096xbf16> to vector<1x4096xf32>
    %c0_1 = arith.constant 0 : index
    %c0_2 = arith.constant 0 : index
    %2 = vector.load %arg2[%c0_1, %c0_2] : memref<1x4096xf32, #tpu.memory_space<vmem>>, vector<1x4096xf32>
    %3 = arith.mulf %1, %2 : vector<1x4096xf32>
    %c0_3 = arith.constant 0 : index
    %c0_4 = arith.constant 0 : index
    %4 = vector.load %arg3[%c0_3, %c0_4] : memref<1x4096xf32, #tpu.memory_space<vmem>>, vector<1x4096xf32>
    %5 = arith.addf %3, %4 : vector<1x4096xf32>
    %cst = arith.constant 0.000000e+00 : f32
    %6 = vector.broadcast %cst : f32 to vector<1x4096xf32>
    %7 = arith.maximumf %5, %6 : vector<1x4096xf32>
    %c0_5 = arith.constant 0 : index
    %c0_6 = arith.constant 0 : index
    %8 = vector.load %arg4[%c0_5, %c0_6] : memref<1x4096xf32, #tpu.memory_space<vmem>>, vector<1x4096xf32>
    tpu.vector_store %arg4[%c0_5, %c0_6], %7 {strides = array<i32>} : memref<1x4096xf32, #tpu.memory_space<vmem>>, vector<1x4096xf32>,
    return
  }
  func.func @transform_0(%arg0: i32) -> (i32, i32) {
    %c0_i32 = arith.constant 0 : i32
    %c0_i32_0 = arith.constant 0 : i32
    return %arg0, %c0_i32 : i32, i32
  }
  func.func @transform_1(%arg0: i32) -> (i32, i32) {
    %c0_i32 = arith.constant 0 : i32
    %c0_i32_0 = arith.constant 0 : i32
    %c0_i32_1 = arith.constant 0 : i32
    return %c0_i32, %c0_i32_0 : i32, i32
  }
  func.func @transform_2(%arg0: i32) -> (i32, i32) {
    %c0_i32 = arith.constant 0 : i32
    %c0_i32_0 = arith.constant 0 : i32
    %c0_i32_1 = arith.constant 0 : i32
    return %c0_i32, %c0_i32_0 : i32, i32
  }
  func.func @transform_3(%arg0: i32) -> (i32, i32) {
    %c0_i32 = arith.constant 0 : i32
    %c0_i32_0 = arith.constant 0 : i32
    return %arg0, %c0_i32 : i32, i32
  }
}

</mosaic_0001>

<bundles_post_ra>
// kernel: tile.13
= control target key start
LH: loop header
LB: loop body
LE: loop exit
PB: predicated region body
PF: predicated region fallthrough
CT: control target
= control target key end

     0   :  { %s466_s0 = inlined_call_operand.vmem [shape: f32[8], index: 0, kind: input, shape index: {}]   ;;  %s467_s1 = inlined_call_operand.vmem [shape: f32[512,8], index: 1, kind: output, shape index: {}]  }
   0x1   :  { %v208_v0 = vld [vmem:[%s466_s0] ss:$0 sm:$0xff] }
   0x2   :  { %5 = vst [vmem:[%s467_s1] sm:$0xff] %v208_v0  ;;  %132 = vst [vmem:[%s467_s1 + $0x8] sm:$0xff] %v208_v0 }
   0x3   :  { %133 = vst [vmem:[%s467_s1 + $0x10] sm:$0xff] %v208_v0  ;;  %134 = vst [vmem:[%s467_s1 + $0x18] sm:$0xff] %v208_v0 }
   0x4   :  { %135 = vst [vmem:[%s467_s1 + $0x20] sm:$0xff] %v208_v0  ;;  %136 = vst [vmem:[%s467_s1 + $0x28] sm:$0xff] %v208_v0 }
   0x5   :  { %137 = vst [vmem:[%s467_s1 + $0x30] sm:$0xff] %v208_v0  ;;  %138 = vst [vmem:[%s467_s1 + $0x38] sm:$0xff] %v208_v0 }
   0x6   :  { %139 = vst [vmem:[%s467_s1 + $0x40] sm:$0xff] %v208_v0  ;;  %140 = vst [vmem:[%s467_s1 + $0x48] sm:$0xff] %v208_v0 }
   0x7   :  { %141 = vst [vmem:[%s467_s1 + $0x50] sm:$0xff] %v208_v0  ;;  %142 = vst [vmem:[%s467_s1 + $0x58] sm:$0xff] %v208_v0 }
   0x8   :  { %143 = vst [vmem:[%s467_s1 + $0x60] sm:$0xff] %v208_v0  ;;  %144 = vst [vmem:[%s467_s1 + $0x68] sm:$0xff] %v208_v0 }
   0x9   :  { %145 = vst [vmem:[%s467_s1 + $0x70] sm:$0xff] %v208_v0  ;;  %146 = vst [vmem:[%s467_s1 + $0x78] sm:$0xff] %v208_v0 }
   0xa   :  { %147 = vst [vmem:[%s467_s1 + $0x80] sm:$0xff] %v208_v0  ;;  %148 = vst [vmem:[%s467_s1 + $0x88] sm:$0xff] %v208_v0 }
   0xb   :  { %149 = vst [vmem:[%s467_s1 + $0x90] sm:$0xff] %v208_v0  ;;  %150 = vst [vmem:[%s467_s1 + $0x98] sm:$0xff] %v208_v0 }
   0xc   :  { %151 = vst [vmem:[%s467_s1 + $0xa0] sm:$0xff] %v208_v0  ;;  %152 = vst [vmem:[%s467_s1 + $0xa8] sm:$0xff] %v208_v0 }
   0xd   :  { %153 = vst [vmem:[%s467_s1 + $0xb0] sm:$0xff] %v208_v0  ;;  %154 = vst [vmem:[%s467_s1 + $0xb8] sm:$0xff] %v208_v0 }
   0xe   :  { %155 = vst [vmem:[%s467_s1 + $0xc0] sm:$0xff] %v208_v0  ;;  %156 = vst [vmem:[%s467_s1 + $0xc8] sm:$0xff] %v208_v0 }
   0xf   :  { %157 = vst [vmem:[%s467_s1 + $0xd0] sm:$0xff] %v208_v0  ;;  %158 = vst [vmem:[%s467_s1 + $0xd8] sm:$0xff] %v208_v0 }
  0x10   :  { %159 = vst [vmem:[%s467_s1 + $0xe0] sm:$0xff] %v208_v0  ;;  %160 = vst [vmem:[%s467_s1 + $0xe8] sm:$0xff] %v208_v0 }
  0x11   :  { %161 = vst [vmem:[%s467_s1 + $0xf0] sm:$0xff] %v208_v0  ;;  %162 = vst [vmem:[%s467_s1 + $0xf8] sm:$0xff] %v208_v0 }
  0x12   :  { %163 = vst [vmem:[%s467_s1 + $0x100] sm:$0xff] %v208_v0  ;;  %164 = vst [vmem:[%s467_s1 + $0x108] sm:$0xff] %v208_v0 }
  0x13   :  { %165 = vst [vmem:[%s467_s1 + $0x110] sm:$0xff] %v208_v0  ;;  %166 = vst [vmem:[%s467_s1 + $0x118] sm:$0xff] %v208_v0 }
  0x14   :  { %167 = vst [vmem:[%s467_s1 + $0x120] sm:$0xff] %v208_v0  ;;  %168 = vst [vmem:[%s467_s1 + $0x128] sm:$0xff] %v208_v0 }
  0x15   :  { %169 = vst [vmem:[%s467_s1 + $0x130] sm:$0xff] %v208_v0  ;;  %170 = vst [vmem:[%s467_s1 + $0x138] sm:$0xff] %v208_v0 }
  0x16   :  { %171 = vst [vmem:[%s467_s1 + $0x140] sm:$0xff] %v208_v0  ;;  %172 = vst [vmem:[%s467_s1 + $0x148] sm:$0xff] %v208_v0 }
  0x17   :  { %173 = vst [vmem:[%s467_s1 + $0x150] sm:$0xff] %v208_v0  ;;  %174 = vst [vmem:[%s467_s1 + $0x158] sm:$0xff] %v208_v0 }
  0x18   :  { %175 = vst [vmem:[%s467_s1 + $0x160] sm:$0xff] %v208_v0  ;;  %176 = vst [vmem:[%s467_s1 + $0x168] sm:$0xff] %v208_v0 }
  0x19   :  { %177 = vst [vmem:[%s467_s1 + $0x170] sm:$0xff] %v208_v0  ;;  %178 = vst [vmem:[%s467_s1 + $0x178] sm:$0xff] %v208_v0 }
  0x1a   :  { %179 = vst [vmem:[%s467_s1 + $0x180] sm:$0xff] %v208_v0  ;;  %180 = vst [vmem:[%s467_s1 + $0x188] sm:$0xff] %v208_v0 }
  0x1b   :  { %181 = vst [vmem:[%s467_s1 + $0x190] sm:$0xff] %v208_v0  ;;  %182 = vst [vmem:[%s467_s1 + $0x198] sm:$0xff] %v208_v0 }
  0x1c   :  { %183 = vst [vmem:[%s467_s1 + $0x1a0] sm:$0xff] %v208_v0  ;;  %184 = vst [vmem:[%s467_s1 + $0x1a8] sm:$0xff] %v208_v0 }
  0x1d   :  { %185 = vst [vmem:[%s467_s1 + $0x1b0] sm:$0xff] %v208_v0  ;;  %186 = vst [vmem:[%s467_s1 + $0x1b8] sm:$0xff] %v208_v0 }
  0x1e   :  { %187 = vst [vmem:[%s467_s1 + $0x1c0] sm:$0xff] %v208_v0  ;;  %188 = vst [vmem:[%s467_s1 + $0x1c8] sm:$0xff] %v208_v0 }
  0x1f   :  { %189 = vst [vmem:[%s467_s1 + $0x1d0] sm:$0xff] %v208_v0  ;;  %190 = vst [vmem:[%s467_s1 + $0x1d8] sm:$0xff] %v208_v0 }
  0x20   :  { %191 = vst [vmem:[%s467_s1 + $0x1e0] sm:$0xff] %v208_v0  ;;  %192 = vst [vmem:[%s467_s1 + $0x1e8] sm:$0xff] %v208_v0 }
  0x21   :  { %193 = vst [vmem:[%s467_s1 + $0x1f0] sm:$0xff] %v208_v0  ;;  %194 = vst [vmem:[%s467_s1 + $0x1f8] sm:$0xff] %v208_v0 }

// kernel: tile.14
= control target key start
LH: loop header
LB: loop body
LE: loop exit
PB: predicated region body
PF: predicated region fallthrough
CT: control target
= control target key end

     0   :  { %vm6_vm0 = vcmask 1043458   ;;  %s137_s6 = smov 3  ;;  %vm10_vm1 = vcmask 1045508   ;;  %vm14_vm2 = vcmask 1047558   ;;  %s140_s9 = smov 12  ;;  %vm16_vm3 = vcmask 64512   ;;  %s3322_s0 = inlined_call_operand.vmem [shape: f32[512,8], index: 0, kind: input, shape index: {}]   ;;  %s3323_s1 = inlined_call_operand.vmem [shape: f32[1,4096], index: 1, kind: output, shape index: {}]  }
   0x1   :  { %v1799_v0 = vld [vmem:[%s3322_s0 + $0x10f] ss:$16 sm:%s137_s6]   ;;  %s145_s10 = smov 48  ;;  %s150_s15 = smov 192  ;;  %vm108_vm4 = vcmask 1048512   ;;  %vm206_vm5 = vcmask 982912  }
   0x2   :  { %v1800_v1 = vld [vmem:[%s3322_s0 + $0x10f] ss:$16 sm:%s140_s9]   ;;  %s89_s16 = smov 3  ;;  %s92_s21 = smov 12  ;;  %vm304_vm6 = vcmask 917312   ;;  %vm402_vm7 = vcmask 851712  }
   0x3   :  { %v1801_v2 = vld [vmem:[%s3322_s0 + $0x10f] ss:$16 sm:%s145_s10]   ;;  %v143_v3 = vsel %vm6_vm0, %v1800_v1, %v1799_v0  ;;  %s97_s22 = smov 48  ;;  %s102_s27 = smov 192  ;;  %vm500_vm8 = vcmask 786112   ;;  %vm598_vm9 = vcmask 720512  }
   0x4   :  { %v1802_v4 = vld [vmem:[%s3322_s0 + $0x10f] ss:$16 sm:%s150_s15]   ;;  %v148_v6 = vsel %vm10_vm1, %v1801_v2, %v143_v3  ;;  %s162_s28 = smov 3  ;;  %s165_s4 = smov 12  ;;  %vm696_vm10 = vcmask 654912   ;;  %vm794_vm11 = vcmask 589312  }
   0x5   :  { %v1791_v5 = vld [vmem:[%s3322_s0 + $0xf] ss:$16 sm:%s89_s16]   ;;  %v153_v9 = vsel %vm14_vm2, %v1802_v4, %v148_v6  ;;  %s170_s5 = smov 48  ;;  %s2077_s6 = smov 120   ;;  %vm892_vm12 = vcmask 523712   ;;  %vm990_vm13 = vcmask 458112  }
   0x6   :  { %v1792_v7 = vld [vmem:[%s3322_s0 + $0xf] ss:$16 sm:%s92_s21]   ;;  %154 = vrot.lane.b32.xlu1 %v153_v9, %s2077_s6  ;;  %s175_s9 = smov 192  ;;  %s112_s10 = smov 3  ;;  %vm1088_vm14 = vcmask 392512   ;;  %vm1186_vm15 = vcmask 326912  }
   0x7   :  { %v1793_v8 = vld [vmem:[%s3322_s0 + $0xf] ss:$16 sm:%s97_s22]   ;;  %v95_v10 = vsel %vm6_vm0, %v1792_v7, %v1791_v5  ;;  %s115_s15 = smov 12  ;;  %s120_s16 = smov 48 }
   0x8   :  { %v1794_v11 = vld [vmem:[%s3322_s0 + $0xf] ss:$16 sm:%s102_s27]   ;;  %v100_v13 = vsel %vm10_vm1, %v1793_v8, %v95_v10  ;;  %s125_s19 = smov 192  ;;  %s210_s24 = smov 3 }
   0x9   :  { %v1803_v12 = vld [vmem:[%s3322_s0 + $0x18f] ss:$16 sm:%s162_s28]   ;;  %v105_v15 = vsel %vm14_vm2, %v1794_v11, %v100_v13  ;;  %s213_s25 = smov 12  ;;  %s218_s28 = smov 48  ;;  %v1811_v27 = vld [vmem:[%s3322_s0 + $0x8e] ss:$16 sm:%s210_s24]  }
   0xa   :  { %v1804_v14 = vld [vmem:[%s3322_s0 + $0x18f] ss:$16 sm:%s165_s4]   ;;  %106 = vrot.lane.b32.xlu0 %v105_v15, %s2077_s6  ;;  %s223_s29 = smov 192  ;;  %s190_s7 = smov 12 }
   0xb   :  { %v168_v16 = vsel %vm6_vm0, %v1804_v14, %v1803_v12  ;;  %v1805_v17 = vld [vmem:[%s3322_s0 + $0x18f] ss:$16 sm:%s170_s5]   ;;  %v1812_v28 = vld [vmem:[%s3322_s0 + $0x8e] ss:$16 sm:%s213_s25]   ;;  %s187_s5 = smov 3  ;;  %s195_s12 = smov 48 }
   0xc   :  { %v1806_v18 = vld [vmem:[%s3322_s0 + $0x18f] ss:$16 sm:%s175_s9]   ;;  %v173_v19 = vsel %vm10_vm1, %v1805_v17, %v168_v16  ;;  %v216_v30 = vsel %vm6_vm0, %v1812_v28, %v1811_v27  ;;  %v1813_v31 = vld [vmem:[%s3322_s0 + $0x8e] ss:$16 sm:%s218_s28]   ;;  %s200_s13 = smov 192  ;;  %s268_s21 = smov 48 }
   0xd   :  { %v1795_v20 = vld [vmem:[%s3322_s0 + $0x8f] ss:$16 sm:%s112_s10]   ;;  %v178_v21 = vsel %vm14_vm2, %v1806_v18, %v173_v19  ;;  %v1814_v32 = vld [vmem:[%s3322_s0 + $0x8e] ss:$16 sm:%s223_s29]   ;;  %v221_v33 = vsel %vm10_vm1, %v1813_v31, %v216_v30  ;;  %s273_s22 = smov 192  ;;  %s2078_s23 = smov 112  }
   0xe   :  { %v1796_v22 = vld [vmem:[%s3322_s0 + $0x8f] ss:$16 sm:%s115_s15]   ;;  %179 = vrot.lane.b32.xlu1 %v178_v21, %s2077_s6  ;;  %s260_s15 = smov 3  ;;  %v226_v35 = vsel %vm14_vm2, %v1814_v32, %v221_v33  ;;  %s235_s26 = smov 3 }
   0xf   :  { %v1797_v23 = vld [vmem:[%s3322_s0 + $0x8f] ss:$16 sm:%s120_s16]   ;;  %v118_v24 = vsel %vm6_vm0, %v1796_v22, %v1795_v20  ;;  %v1807_v34 = vld [vmem:[%s3322_s0 + $0xe] ss:$16 sm:%s187_s5]   ;;  %s263_s16 = smov 12  ;;  %s238_s2 = smov 12 }
  0x10   :  { %v1798_v25 = vld [vmem:[%s3322_s0 + $0x8f] ss:$16 sm:%s125_s19]   ;;  %v123_v26 = vsel %vm10_vm1, %v1797_v23, %v118_v24  ;;  %v1808_v36 = vld [vmem:[%s3322_s0 + $0xe] ss:$16 sm:%s190_s7]   ;;  %s243_s3 = smov 48  ;;  %s248_s9 = smov 192 }
  0x11   :  { %v128_v29 = vsel %vm14_vm2, %v1798_v25, %v123_v26  ;;  %v1809_v37 = vld [vmem:[%s3322_s0 + $0xe] ss:$16 sm:%s195_s12]   ;;  %v193_v38 = vsel %vm6_vm0, %v1808_v36, %v1807_v34  ;;  %s308_s12 = smov 3  ;;  %s316_s17 = smov 48 }
  0x12   :  { %129 = vrot.lane.b32.xlu0 %v128_v29, %s2077_s6  ;;  %227 = vrot.lane.b32.xlu1 %v226_v35, %s2078_s23  ;;  %v1810_v39 = vld [vmem:[%s3322_s0 + $0xe] ss:$16 sm:%s200_s13]   ;;  %v198_v40 = vsel %vm10_vm1, %v1809_v37, %v193_v38  ;;  %s311_s13 = smov 12  ;;  %s321_s18 = smov 192 }
  0x13   :  { %v1819_v41 = vld [vmem:[%s3322_s0 + $0x18e] ss:$16 sm:%s260_s15]   ;;  %v203_v43 = vsel %vm14_vm2, %v1810_v39, %v198_v40  ;;  %v1827_v55 = vld [vmem:[%s3322_s0 + $0x8d] ss:$16 sm:%s308_s12]   ;;  %s288_s27 = smov 12  ;;  %s293_s28 = smov 48 }
  0x14   :  { %v1820_v42 = vld [vmem:[%s3322_s0 + $0x18e] ss:$16 sm:%s263_s16]   ;;  %v1828_v56 = vld [vmem:[%s3322_s0 + $0x8d] ss:$16 sm:%s311_s13]   ;;  %s298_s4 = smov 192  ;;  %s358_s7 = smov 3 }
  0x15   :  { %v266_v44 = vsel %vm6_vm0, %v1820_v42, %v1819_v41  ;;  %v1821_v45 = vld [vmem:[%s3322_s0 + $0x18e] ss:$16 sm:%s268_s21]   ;;  %s285_s21 = smov 3  ;;  %v314_v58 = vsel %vm6_vm0, %v1828_v56, %v1827_v55  ;;  %v1829_v59 = vld [vmem:[%s3322_s0 + $0x8d] ss:$16 sm:%s316_s17]   ;;  %s361_s8 = smov 12 }
  0x16   :  { %v1822_v46 = vld [vmem:[%s3322_s0 + $0x18e] ss:$16 sm:%s273_s22]   ;;  %204 = vrot.lane.b32.xlu0 %v203_v43, %s2078_s23  ;;  %v271_v47 = vsel %vm10_vm1, %v1821_v45, %v266_v44  ;;  %v319_v61 = vsel %vm10_vm1, %v1829_v59, %v314_v58  ;;  %s366_s13 = smov 48  ;;  %s371_s6 = smov 192 }
  0x17   :  { %v1815_v48 = vld [vmem:[%s3322_s0 + $0x10e] ss:$16 sm:%s235_s26]   ;;  %v276_v49 = vsel %vm14_vm2, %v1822_v46, %v271_v47  ;;  %v1830_v60 = vld [vmem:[%s3322_s0 + $0x8d] ss:$16 sm:%s321_s18]   ;;  %s2079_s14 = smov 104   ;;  %s333_s17 = smov 3 }
  0x18   :  { %v1816_v50 = vld [vmem:[%s3322_s0 + $0x10e] ss:$16 sm:%s238_s2]   ;;  %277 = vrot.lane.b32.xlu1 %v276_v49, %s2078_s23  ;;  %v324_v63 = vsel %vm14_vm2, %v1830_v60, %v319_v61  ;;  %s336_s22 = smov 12  ;;  %s341_s24 = smov 48 }
  0x19   :  { %v1817_v51 = vld [vmem:[%s3322_s0 + $0x10e] ss:$16 sm:%s243_s3]   ;;  %v241_v52 = vsel %vm6_vm0, %v1816_v50, %v1815_v48  ;;  %v1823_v62 = vld [vmem:[%s3322_s0 + $0xd] ss:$16 sm:%s285_s21]   ;;  %s346_s29 = smov 192  ;;  %s406_s3 = smov 3 }
  0x1a   :  { %v1818_v53 = vld [vmem:[%s3322_s0 + $0x10e] ss:$16 sm:%s248_s9]   ;;  %v246_v54 = vsel %vm10_vm1, %v1817_v51, %v241_v52  ;;  %v1824_v0 = vld [vmem:[%s3322_s0 + $0xd] ss:$16 sm:%s288_s27]   ;;  %s414_s9 = smov 48  ;;  %s419_s10 = smov 192 }
  0x1b   :  { %v251_v57 = vsel %vm14_vm2, %v1818_v53, %v246_v54  ;;  %v1825_v1 = vld [vmem:[%s3322_s0 + $0xd] ss:$16 sm:%s293_s28]   ;;  %v291_v2 = vsel %vm6_vm0, %v1824_v0, %v1823_v62  ;;  %v1843_v19 = vld [vmem:[%s3322_s0 + $0x8c] ss:$16 sm:%s406_s3]   ;;  %s386_s18 = smov 12  ;;  %s391_s19 = smov 48 }
  0x1c   :  { %252 = vrot.lane.b32.xlu0 %v251_v57, %s2078_s23  ;;  %325 = vrot.lane.b32.xlu1 %v324_v63, %s2079_s14  ;;  %v1826_v3 = vld [vmem:[%s3322_s0 + $0xd] ss:$16 sm:%s298_s4]   ;;  %v296_v4 = vsel %vm10_vm1, %v1825_v1, %v291_v2  ;;  %s409_s4 = smov 12  ;;  %s396_s25 = smov 192 }
  0x1d   :  { %v1835_v5 = vld [vmem:[%s3322_s0 + $0x18d] ss:$16 sm:%s358_s7]   ;;  %v301_v7 = vsel %vm14_vm2, %v1826_v3, %v296_v4  ;;  %v1844_v20 = vld [vmem:[%s3322_s0 + $0x8c] ss:$16 sm:%s409_s4]   ;;  %s456_s27 = smov 3  ;;  %s459_s28 = smov 12 }
  0x1e   :  { %v1836_v6 = vld [vmem:[%s3322_s0 + $0x18d] ss:$16 sm:%s361_s8]   ;;  %v412_v22 = vsel %vm6_vm0, %v1844_v20, %v1843_v19  ;;  %v1845_v23 = vld [vmem:[%s3322_s0 + $0x8c] ss:$16 sm:%s414_s9]   ;;  %s464_s4 = smov 48  ;;  %s469_s23 = smov 192 }
  0x1f   :  { %v364_v8 = vsel %vm6_vm0, %v1836_v6, %v1835_v5  ;;  %v1837_v9 = vld [vmem:[%s3322_s0 + $0x18d] ss:$16 sm:%s366_s13]   ;;  %s383_s13 = smov 3  ;;  %v1846_v24 = vld [vmem:[%s3322_s0 + $0x8c] ss:$16 sm:%s419_s10]   ;;  %v417_v25 = vsel %vm10_vm1, %v1845_v23, %v412_v22  ;;  %s2080_s5 = smov 96  }
  0x20   :  { %v1838_v10 = vld [vmem:[%s3322_s0 + $0x18d] ss:$16 sm:%s371_s6]   ;;  %302 = vrot.lane.b32.xlu0 %v301_v7, %s2079_s14  ;;  %v369_v11 = vsel %vm10_vm1, %v1837_v9, %v364_v8  ;;  %v422_v27 = vsel %vm14_vm2, %v1846_v24, %v417_v25  ;;  %s431_s9 = smov 3  ;;  %s434_s6 = smov 12 }
  0x21   :  { %v1831_v12 = vld [vmem:[%s3322_s0 + $0x10d] ss:$16 sm:%s333_s17]   ;;  %v374_v13 = vsel %vm14_vm2, %v1838_v10, %v369_v11  ;;  %v1839_v26 = vld [vmem:[%s3322_s0 + $0xc] ss:$16 sm:%s383_s13]   ;;  %s439_s15 = smov 48  ;;  %s444_s20 = smov 192 }
  0x22   :  { %v1832_v14 = vld [vmem:[%s3322_s0 + $0x10d] ss:$16 sm:%s336_s22]   ;;  %375 = vrot.lane.b32.xlu1 %v374_v13, %s2079_s14  ;;  %s517_s30 = smov 192  ;;  %s484_s10 = smov 12 }
  0x23   :  { %v1833_v15 = vld [vmem:[%s3322_s0 + $0x10d] ss:$16 sm:%s341_s24]   ;;  %v339_v16 = vsel %vm6_vm0, %v1832_v14, %v1831_v12  ;;  %v1840_v28 = vld [vmem:[%s3322_s0 + $0xc] ss:$16 sm:%s386_s18]   ;;  %s504_s24 = smov 3  ;;  %s489_s11 = smov 48 }
  0x24   :  { %v1834_v17 = vld [vmem:[%s3322_s0 + $0x10d] ss:$16 sm:%s346_s29]   ;;  %v344_v18 = vsel %vm10_vm1, %v1833_v15, %v339_v16  ;;  %v1841_v29 = vld [vmem:[%s3322_s0 + $0xc] ss:$16 sm:%s391_s19]   ;;  %v389_v30 = vsel %vm6_vm0, %v1840_v28, %v1839_v26  ;;  %s512_s29 = smov 48  ;;  %s494_s16 = smov 192 }
  0x25   :  { %v349_v21 = vsel %vm14_vm2, %v1834_v17, %v344_v18  ;;  %v1842_v31 = vld [vmem:[%s3322_s0 + $0xc] ss:$16 sm:%s396_s25]   ;;  %v394_v32 = vsel %vm10_vm1, %v1841_v29, %v389_v30  ;;  %s507_s25 = smov 12  ;;  %v1859_v47 = vld [vmem:[%s3322_s0 + $0x8b] ss:$16 sm:%s504_s24]   ;;  %s554_s18 = smov 3 }
  0x26   :  { %350 = vrot.lane.b32.xlu0 %v349_v21, %s2079_s14  ;;  %423 = vrot.lane.b32.xlu1 %v422_v27, %s2080_s5  ;;  %v1851_v33 = vld [vmem:[%s3322_s0 + $0x18c] ss:$16 sm:%s456_s27]   ;;  %v399_v35 = vsel %vm14_vm2, %v1842_v31, %v394_v32  ;;  %s557_s19 = smov 12  ;;  %s567_s14 = smov 192 }
  0x27   :  { %v1852_v34 = vld [vmem:[%s3322_s0 + $0x18c] ss:$16 sm:%s459_s28]   ;;  %v1860_v48 = vld [vmem:[%s3322_s0 + $0x8b] ss:$16 sm:%s507_s25]   ;;  %s562_s25 = smov 48  ;;  %s2081_s26 = smov 88  }
  0x28   :  { %v462_v36 = vsel %vm6_vm0, %v1852_v34, %v1851_v33  ;;  %v1853_v37 = vld [vmem:[%s3322_s0 + $0x18c] ss:$16 sm:%s464_s4]   ;;  %s481_s4 = smov 3  ;;  %v510_v50 = vsel %vm6_vm0, %v1860_v48, %v1859_v47  ;;  %v1861_v51 = vld [vmem:[%s3322_s0 + $0x8b] ss:$16 sm:%s512_s29]   ;;  %s529_s29 = smov 3 }
  0x29   :  { %v1854_v38 = vld [vmem:[%s3322_s0 + $0x18c] ss:$16 sm:%s469_s23]   ;;  %v467_v39 = vsel %vm10_vm1, %v1853_v37, %v462_v36  ;;  %v1862_v52 = vld [vmem:[%s3322_s0 + $0x8b] ss:$16 sm:%s517_s30]   ;;  %v515_v53 = vsel %vm10_vm1, %v1861_v51, %v510_v50  ;;  %s532_s23 = smov 12  ;;  %s537_s7 = smov 48 }
  0x2a   :  { %400 = vrot.lane.b32.xlu0 %v399_v35, %s2080_s5  ;;  %v1847_v40 = vld [vmem:[%s3322_s0 + $0x10c] ss:$16 sm:%s431_s9]   ;;  %v472_v41 = vsel %vm14_vm2, %v1854_v38, %v467_v39  ;;  %v520_v55 = vsel %vm14_vm2, %v1862_v52, %v515_v53  ;;  %s542_s12 = smov 192  ;;  %s615_s21 = smov 192 }
  0x2b   :  { %v1848_v42 = vld [vmem:[%s3322_s0 + $0x10c] ss:$16 sm:%s434_s6]   ;;  %473 = vrot.lane.b32.xlu1 %v472_v41, %s2080_s5  ;;  %s582_s30 = smov 12  ;;  %s587_s2 = smov 48 }
  0x2c   :  { %v1849_v43 = vld [vmem:[%s3322_s0 + $0x10c] ss:$16 sm:%s439_s15]   ;;  %v437_v44 = vsel %vm6_vm0, %v1848_v42, %v1847_v40  ;;  %v1855_v54 = vld [vmem:[%s3322_s0 + $0xb] ss:$16 sm:%s481_s4]   ;;  %s602_s15 = smov 3  ;;  %s592_s8 = smov 192 }
  0x2d   :  { %v1850_v45 = vld [vmem:[%s3322_s0 + $0x10c] ss:$16 sm:%s444_s20]   ;;  %v442_v46 = vsel %vm10_vm1, %v1849_v43, %v437_v44  ;;  %v1856_v56 = vld [vmem:[%s3322_s0 + $0xb] ss:$16 sm:%s484_s10]   ;;  %s610_s20 = smov 48  ;;  %s652_s10 = smov 3 }
  0x2e   :  { %v447_v49 = vsel %vm14_vm2, %v1850_v45, %v442_v46  ;;  %v1857_v57 = vld [vmem:[%s3322_s0 + $0xb] ss:$16 sm:%s489_s11]   ;;  %v487_v58 = vsel %vm6_vm0, %v1856_v56, %v1855_v54  ;;  %v1875_v11 = vld [vmem:[%s3322_s0 + $0x8a] ss:$16 sm:%s602_s15]   ;;  %s655_s11 = smov 12  ;;  %s2082_s17 = smov 80  }
  0x2f   :  { %448 = vrot.lane.b32.xlu0 %v447_v49, %s2080_s5  ;;  %521 = vrot.lane.b32.xlu1 %v520_v55, %s2081_s26  ;;  %v1858_v59 = vld [vmem:[%s3322_s0 + $0xb] ss:$16 sm:%s494_s16]   ;;  %v492_v60 = vsel %vm10_vm1, %v1857_v57, %v487_v58  ;;  %s605_s16 = smov 12  ;;  %s665_s5 = smov 192 }
  0x30   :  { %v1867_v61 = vld [vmem:[%s3322_s0 + $0x18b] ss:$16 sm:%s554_s18]   ;;  %v497_v63 = vsel %vm14_vm2, %v1858_v59, %v492_v60  ;;  %v1876_v12 = vld [vmem:[%s3322_s0 + $0x8a] ss:$16 sm:%s605_s16]   ;;  %s660_s16 = smov 48  ;;  %s635_s27 = smov 48 }
  0x31   :  { %v1868_v62 = vld [vmem:[%s3322_s0 + $0x18b] ss:$16 sm:%s557_s19]   ;;  %v608_v14 = vsel %vm6_vm0, %v1876_v12, %v1875_v11  ;;  %v1877_v15 = vld [vmem:[%s3322_s0 + $0x8a] ss:$16 sm:%s610_s20]   ;;  %s627_s20 = smov 3  ;;  %s640_s3 = smov 192 }
  0x32   :  { %v560_v0 = vsel %vm6_vm0, %v1868_v62, %v1867_v61  ;;  %v1869_v1 = vld [vmem:[%s3322_s0 + $0x18b] ss:$16 sm:%s562_s25]   ;;  %s579_s25 = smov 3  ;;  %v1878_v16 = vld [vmem:[%s3322_s0 + $0x8a] ss:$16 sm:%s615_s21]   ;;  %v613_v17 = vsel %vm10_vm1, %v1877_v15, %v608_v14  ;;  %s713_s13 = smov 192 }
  0x33   :  { %v1870_v2 = vld [vmem:[%s3322_s0 + $0x18b] ss:$16 sm:%s567_s14]   ;;  %498 = vrot.lane.b32.xlu0 %v497_v63, %s2081_s26  ;;  %v565_v3 = vsel %vm10_vm1, %v1869_v1, %v560_v0  ;;  %v618_v19 = vsel %vm14_vm2, %v1878_v16, %v613_v17  ;;  %s630_s14 = smov 12  ;;  %s680_s21 = smov 12 }
  0x34   :  { %v1863_v4 = vld [vmem:[%s3322_s0 + $0x10b] ss:$16 sm:%s529_s29]   ;;  %v570_v5 = vsel %vm14_vm2, %v1870_v2, %v565_v3  ;;  %v1871_v18 = vld [vmem:[%s3322_s0 + $0xa] ss:$16 sm:%s579_s25]   ;;  %s685_s22 = smov 48  ;;  %s690_s28 = smov 192 }
  0x35   :  { %v1864_v6 = vld [vmem:[%s3322_s0 + $0x10b] ss:$16 sm:%s532_s23]   ;;  %571 = vrot.lane.b32.xlu1 %v570_v5, %s2081_s26  ;;  %s2083_s9 = smov 72   ;;  %s733_s18 = smov 48 }
  0x36   :  { %v1865_v7 = vld [vmem:[%s3322_s0 + $0x10b] ss:$16 sm:%s537_s7]   ;;  %v535_v8 = vsel %vm6_vm0, %v1864_v6, %v1863_v4  ;;  %v1872_v20 = vld [vmem:[%s3322_s0 + $0xa] ss:$16 sm:%s582_s30]   ;;  %s700_s7 = smov 3  ;;  %s750_s30 = smov 3 }
  0x37   :  { %v1866_v9 = vld [vmem:[%s3322_s0 + $0x10b] ss:$16 sm:%s542_s12]   ;;  %v540_v10 = vsel %vm10_vm1, %v1865_v7, %v535_v8  ;;  %v1873_v21 = vld [vmem:[%s3322_s0 + $0xa] ss:$16 sm:%s587_s2]   ;;  %v585_v22 = vsel %vm6_vm0, %v1872_v20, %v1871_v18  ;;  %s708_s12 = smov 48  ;;  %s753_s2 = smov 12 }
  0x38   :  { %v545_v13 = vsel %vm14_vm2, %v1866_v9, %v540_v10  ;;  %v1874_v23 = vld [vmem:[%s3322_s0 + $0xa] ss:$16 sm:%s592_s8]   ;;  %v590_v24 = vsel %vm10_vm1, %v1873_v21, %v585_v22  ;;  %s703_s8 = smov 12  ;;  %v1891_v39 = vld [vmem:[%s3322_s0 + $0x89] ss:$16 sm:%s700_s7]   ;;  %s738_s24 = smov 192 }
  0x39   :  { %546 = vrot.lane.b32.xlu0 %v545_v13, %s2081_s26  ;;  %619 = vrot.lane.b32.xlu1 %v618_v19, %s2082_s17  ;;  %v1883_v25 = vld [vmem:[%s3322_s0 + $0x18a] ss:$16 sm:%s652_s10]   ;;  %v595_v27 = vsel %vm14_vm2, %v1874_v23, %v590_v24  ;;  %s763_s26 = smov 192  ;;  %s811_s4 = smov 192 }
  0x3a   :  { %v1884_v26 = vld [vmem:[%s3322_s0 + $0x18a] ss:$16 sm:%s655_s11]   ;;  %v1892_v40 = vld [vmem:[%s3322_s0 + $0x89] ss:$16 sm:%s703_s8]   ;;  %s758_s8 = smov 48  ;;  %s783_s6 = smov 48 }
  0x3b   :  { %v658_v28 = vsel %vm6_vm0, %v1884_v26, %v1883_v25  ;;  %v1885_v29 = vld [vmem:[%s3322_s0 + $0x18a] ss:$16 sm:%s660_s16]   ;;  %s677_s16 = smov 3  ;;  %v706_v42 = vsel %vm6_vm0, %v1892_v40, %v1891_v39  ;;  %v1893_v43 = vld [vmem:[%s3322_s0 + $0x89] ss:$16 sm:%s708_s12]   ;;  %s725_s12 = smov 3 }
  0x3c   :  { %v1886_v30 = vld [vmem:[%s3322_s0 + $0x18a] ss:$16 sm:%s665_s5]   ;;  %v663_v31 = vsel %vm10_vm1, %v1885_v29, %v658_v28  ;;  %v1894_v44 = vld [vmem:[%s3322_s0 + $0x89] ss:$16 sm:%s713_s13]   ;;  %v711_v45 = vsel %vm10_vm1, %v1893_v43, %v706_v42  ;;  %s728_s5 = smov 12  ;;  %s778_s13 = smov 12 }
  0x3d   :  { %596 = vrot.lane.b32.xlu0 %v595_v27, %s2082_s17  ;;  %v1879_v32 = vld [vmem:[%s3322_s0 + $0x10a] ss:$16 sm:%s627_s20]   ;;  %v668_v33 = vsel %vm14_vm2, %v1886_v30, %v663_v31  ;;  %v716_v47 = vsel %vm14_vm2, %v1894_v44, %v711_v45  ;;  %s788_s19 = smov 192  ;;  %s2084_s29 = smov 64  }
  0x3e   :  { %v1880_v34 = vld [vmem:[%s3322_s0 + $0x10a] ss:$16 sm:%s630_s14]   ;;  %669 = vrot.lane.b32.xlu1 %v668_v33, %s2082_s17  ;;  %s831_s10 = smov 48  ;;  %s836_s15 = smov 192 }
  0x3f   :  { %v1881_v35 = vld [vmem:[%s3322_s0 + $0x10a] ss:$16 sm:%s635_s27]   ;;  %v633_v36 = vsel %vm6_vm0, %v1880_v34, %v1879_v32  ;;  %v1887_v46 = vld [vmem:[%s3322_s0 + $0x9] ss:$16 sm:%s677_s16]   ;;  %s798_s27 = smov 3  ;;  %s909_s25 = smov 192 }
  0x40   :  { %v1882_v37 = vld [vmem:[%s3322_s0 + $0x10a] ss:$16 sm:%s640_s3]   ;;  %v638_v38 = vsel %vm10_vm1, %v1881_v35, %v633_v36  ;;  %v1888_v48 = vld [vmem:[%s3322_s0 + $0x9] ss:$16 sm:%s680_s21]   ;;  %s806_s3 = smov 48  ;;  %s848_s21 = smov 3 }
  0x41   :  { %v643_v41 = vsel %vm14_vm2, %v1882_v37, %v638_v38  ;;  %v1889_v49 = vld [vmem:[%s3322_s0 + $0x9] ss:$16 sm:%s685_s22]   ;;  %v683_v50 = vsel %vm6_vm0, %v1888_v48, %v1887_v46  ;;  %v1907_v3 = vld [vmem:[%s3322_s0 + $0x88] ss:$16 sm:%s798_s27]   ;;  %s851_s22 = smov 12  ;;  %s881_s23 = smov 48 }
  0x42   :  { %644 = vrot.lane.b32.xlu0 %v643_v41, %s2082_s17  ;;  %717 = vrot.lane.b32.xlu1 %v716_v47, %s2083_s9  ;;  %v1890_v51 = vld [vmem:[%s3322_s0 + $0x9] ss:$16 sm:%s690_s28]   ;;  %v688_v52 = vsel %vm10_vm1, %v1889_v49, %v683_v50  ;;  %s801_s28 = smov 12  ;;  %s861_s17 = smov 192 }
  0x43   :  { %v1899_v53 = vld [vmem:[%s3322_s0 + $0x189] ss:$16 sm:%s750_s30]   ;;  %v693_v55 = vsel %vm14_vm2, %v1890_v51, %v688_v52  ;;  %v1908_v4 = vld [vmem:[%s3322_s0 + $0x88] ss:$16 sm:%s801_s28]   ;;  %s856_s28 = smov 48  ;;  %s886_s11 = smov 192 }
  0x44   :  { %v1900_v54 = vld [vmem:[%s3322_s0 + $0x189] ss:$16 sm:%s753_s2]   ;;  %v804_v6 = vsel %vm6_vm0, %v1908_v4, %v1907_v3  ;;  %v1909_v7 = vld [vmem:[%s3322_s0 + $0x88] ss:$16 sm:%s806_s3]   ;;  %s823_s3 = smov 3  ;;  %s2085_s20 = smov 56  }
  0x45   :  { %v756_v56 = vsel %vm6_vm0, %v1900_v54, %v1899_v53  ;;  %v1901_v57 = vld [vmem:[%s3322_s0 + $0x189] ss:$16 sm:%s758_s8]   ;;  %s775_s8 = smov 3  ;;  %v1910_v8 = vld [vmem:[%s3322_s0 + $0x88] ss:$16 sm:%s811_s4]   ;;  %v809_v9 = vsel %vm10_vm1, %v1909_v7, %v804_v6  ;;  %s876_s4 = smov 12 }
  0x46   :  { %v1902_v58 = vld [vmem:[%s3322_s0 + $0x189] ss:$16 sm:%s763_s26]   ;;  %694 = vrot.lane.b32.xlu0 %v693_v55, %s2083_s9  ;;  %v761_v59 = vsel %vm10_vm1, %v1901_v57, %v756_v56  ;;  %v814_v11 = vsel %vm14_vm2, %v1910_v8, %v809_v9  ;;  %s826_s26 = smov 12  ;;  %s929_s30 = smov 48 }
  0x47   :  { %v1895_v60 = vld [vmem:[%s3322_s0 + $0x109] ss:$16 sm:%s725_s12]   ;;  %v766_v61 = vsel %vm14_vm2, %v1902_v58, %v761_v59  ;;  %v1903_v10 = vld [vmem:[%s3322_s0 + $0x8] ss:$16 sm:%s775_s8]   ;;  %s934_s7 = smov 192  ;;  %s1007_s16 = smov 192 }
  0x48   :  { %v1896_v62 = vld [vmem:[%s3322_s0 + $0x109] ss:$16 sm:%s728_s5]   ;;  %767 = vrot.lane.b32.xlu1 %v766_v61, %s2083_s9  ;;  %s979_s14 = smov 48  ;;  %s984_s2 = smov 192 }
  0x49   :  { %v1897_v63 = vld [vmem:[%s3322_s0 + $0x109] ss:$16 sm:%s733_s18]   ;;  %v731_v0 = vsel %vm6_vm0, %v1896_v62, %v1895_v60  ;;  %v1904_v12 = vld [vmem:[%s3322_s0 + $0x8] ss:$16 sm:%s778_s13]   ;;  %s896_s18 = smov 3  ;;  %s946_s13 = smov 3 }
  0x4a   :  { %v1898_v1 = vld [vmem:[%s3322_s0 + $0x109] ss:$16 sm:%s738_s24]   ;;  %v736_v2 = vsel %vm10_vm1, %v1897_v63, %v731_v0  ;;  %v1905_v13 = vld [vmem:[%s3322_s0 + $0x8] ss:$16 sm:%s783_s6]   ;;  %v781_v14 = vsel %vm6_vm0, %v1904_v12, %v1903_v10  ;;  %s904_s24 = smov 48  ;;  %s949_s6 = smov 12 }
  0x4b   :  { %v741_v5 = vsel %vm14_vm2, %v1898_v1, %v736_v2  ;;  %v1906_v15 = vld [vmem:[%s3322_s0 + $0x8] ss:$16 sm:%s788_s19]   ;;  %v786_v16 = vsel %vm10_vm1, %v1905_v13, %v781_v14  ;;  %s899_s19 = smov 12  ;;  %v1923_v31 = vld [vmem:[%s3322_s0 + $0x87] ss:$16 sm:%s896_s18]   ;;  %s2086_s12 = smov 48  }
  0x4c   :  { %742 = vrot.lane.b32.xlu0 %v741_v5, %s2083_s9  ;;  %815 = vrot.lane.b32.xlu1 %v814_v11, %s2084_s29  ;;  %v1915_v17 = vld [vmem:[%s3322_s0 + $0x188] ss:$16 sm:%s848_s21]   ;;  %v791_v19 = vsel %vm14_vm2, %v1906_v15, %v786_v16  ;;  %s959_s9 = smov 192  ;;  %s1027_s21 = smov 48 }
  0x4d   :  { %v1916_v18 = vld [vmem:[%s3322_s0 + $0x188] ss:$16 sm:%s851_s22]   ;;  %v1924_v32 = vld [vmem:[%s3322_s0 + $0x87] ss:$16 sm:%s899_s19]   ;;  %s954_s19 = smov 48  ;;  %s1032_s27 = smov 192 }
  0x4e   :  { %v854_v20 = vsel %vm6_vm0, %v1916_v18, %v1915_v17  ;;  %v1917_v21 = vld [vmem:[%s3322_s0 + $0x188] ss:$16 sm:%s856_s28]   ;;  %s873_s28 = smov 3  ;;  %v902_v34 = vsel %vm6_vm0, %v1924_v32, %v1923_v31  ;;  %v1925_v35 = vld [vmem:[%s3322_s0 + $0x87] ss:$16 sm:%s904_s24]   ;;  %s921_s24 = smov 3 }
  0x4f   :  { %v1918_v22 = vld [vmem:[%s3322_s0 + $0x188] ss:$16 sm:%s861_s17]   ;;  %v859_v23 = vsel %vm10_vm1, %v1917_v21, %v854_v20  ;;  %v1926_v36 = vld [vmem:[%s3322_s0 + $0x87] ss:$16 sm:%s909_s25]   ;;  %v907_v37 = vsel %vm10_vm1, %v1925_v35, %v902_v34  ;;  %s924_s17 = smov 12  ;;  %s974_s25 = smov 12 }
  0x50   :  { %792 = vrot.lane.b32.xlu0 %v791_v19, %s2084_s29  ;;  %v1911_v24 = vld [vmem:[%s3322_s0 + $0x108] ss:$16 sm:%s823_s3]   ;;  %v864_v25 = vsel %vm14_vm2, %v1918_v22, %v859_v23  ;;  %v912_v39 = vsel %vm14_vm2, %v1926_v36, %v907_v37  ;;  %s1105_s8 = smov 192  ;;  %s1077_s5 = smov 48 }
  0x51   :  { %v1912_v26 = vld [vmem:[%s3322_s0 + $0x108] ss:$16 sm:%s826_s26]   ;;  %865 = vrot.lane.b32.xlu1 %v864_v25, %s2084_s29  ;;  %s1082_s22 = smov 192  ;;  %s2087_s3 = smov 40  }
  0x52   :  { %v1913_v27 = vld [vmem:[%s3322_s0 + $0x108] ss:$16 sm:%s831_s10]   ;;  %v829_v28 = vsel %vm6_vm0, %v1912_v26, %v1911_v24  ;;  %v1919_v38 = vld [vmem:[%s3322_s0 + $0x7] ss:$16 sm:%s873_s28]   ;;  %s994_s10 = smov 3  ;;  %s1130_s18 = smov 192 }
  0x53   :  { %v1914_v29 = vld [vmem:[%s3322_s0 + $0x108] ss:$16 sm:%s836_s15]   ;;  %v834_v30 = vsel %vm10_vm1, %v1913_v27, %v829_v28  ;;  %v1920_v40 = vld [vmem:[%s3322_s0 + $0x7] ss:$16 sm:%s876_s4]   ;;  %s1002_s15 = smov 48  ;;  %s1044_s4 = smov 3 }
  0x54   :  { %v839_v33 = vsel %vm14_vm2, %v1914_v29, %v834_v30  ;;  %v1921_v41 = vld [vmem:[%s3322_s0 + $0x7] ss:$16 sm:%s881_s23]   ;;  %v879_v42 = vsel %vm6_vm0, %v1920_v40, %v1919_v38  ;;  %v1939_v59 = vld [vmem:[%s3322_s0 + $0x86] ss:$16 sm:%s994_s10]   ;;  %s1047_s23 = smov 12  ;;  %s1203_s28 = smov 192 }
  0x55   :  { %840 = vrot.lane.b32.xlu0 %v839_v33, %s2084_s29  ;;  %913 = vrot.lane.b32.xlu1 %v912_v39, %s2085_s20  ;;  %v1922_v43 = vld [vmem:[%s3322_s0 + $0x7] ss:$16 sm:%s886_s11]   ;;  %v884_v44 = vsel %vm10_vm1, %v1921_v41, %v879_v42  ;;  %s997_s11 = smov 12  ;;  %s1057_s29 = smov 192 }
  0x56   :  { %v1931_v45 = vld [vmem:[%s3322_s0 + $0x187] ss:$16 sm:%s946_s13]   ;;  %v889_v47 = vsel %vm14_vm2, %v1922_v43, %v884_v44  ;;  %v1940_v60 = vld [vmem:[%s3322_s0 + $0x86] ss:$16 sm:%s997_s11]   ;;  %s1052_s11 = smov 48  ;;  %s1125_s13 = smov 48 }
  0x57   :  { %v1932_v46 = vld [vmem:[%s3322_s0 + $0x187] ss:$16 sm:%s949_s6]   ;;  %v1000_v62 = vsel %vm6_vm0, %v1940_v60, %v1939_v59  ;;  %v1941_v63 = vld [vmem:[%s3322_s0 + $0x86] ss:$16 sm:%s1002_s15]   ;;  %s1019_s15 = smov 3  ;;  %s1175_s26 = smov 48 }
  0x58   :  { %v952_v48 = vsel %vm6_vm0, %v1932_v46, %v1931_v45  ;;  %v1933_v49 = vld [vmem:[%s3322_s0 + $0x187] ss:$16 sm:%s954_s19]   ;;  %s971_s19 = smov 3  ;;  %v1942_v0 = vld [vmem:[%s3322_s0 + $0x86] ss:$16 sm:%s1007_s16]   ;;  %v1005_v1 = vsel %vm10_vm1, %v1941_v63, %v1000_v62  ;;  %s1072_s16 = smov 12 }
  0x59   :  { %v1934_v50 = vld [vmem:[%s3322_s0 + $0x187] ss:$16 sm:%s959_s9]   ;;  %890 = vrot.lane.b32.xlu0 %v889_v47, %s2085_s20  ;;  %v957_v51 = vsel %vm10_vm1, %v1933_v49, %v952_v48  ;;  %v1010_v3 = vsel %vm14_vm2, %v1942_v0, %v1005_v1  ;;  %s1022_s9 = smov 12  ;;  %s1180_s6 = smov 192 }
  0x5a   :  { %v1927_v52 = vld [vmem:[%s3322_s0 + $0x107] ss:$16 sm:%s921_s24]   ;;  %v962_v53 = vsel %vm14_vm2, %v1934_v50, %v957_v51  ;;  %v1935_v2 = vld [vmem:[%s3322_s0 + $0x6] ss:$16 sm:%s971_s19]   ;;  %s2088_s24 = smov 32   ;;  %s1228_s10 = smov 192 }
  0x5b   :  { %v1928_v54 = vld [vmem:[%s3322_s0 + $0x107] ss:$16 sm:%s924_s17]   ;;  %963 = vrot.lane.b32.xlu1 %v962_v53, %s2085_s20  ;;  %s1301_s19 = smov 192  ;;  %s1273_s17 = smov 48 }
  0x5c   :  { %v1929_v55 = vld [vmem:[%s3322_s0 + $0x107] ss:$16 sm:%s929_s30]   ;;  %v927_v56 = vsel %vm6_vm0, %v1928_v54, %v1927_v52  ;;  %v1936_v4 = vld [vmem:[%s3322_s0 + $0x6] ss:$16 sm:%s974_s25]   ;;  %s1092_s30 = smov 3  ;;  %s1142_s25 = smov 3 }
  0x5d   :  { %v1930_v57 = vld [vmem:[%s3322_s0 + $0x107] ss:$16 sm:%s934_s7]   ;;  %v932_v58 = vsel %vm10_vm1, %v1929_v55, %v927_v56  ;;  %v1937_v5 = vld [vmem:[%s3322_s0 + $0x6] ss:$16 sm:%s979_s14]   ;;  %v977_v6 = vsel %vm6_vm0, %v1936_v4, %v1935_v2  ;;  %s1100_s7 = smov 48  ;;  %s1145_s14 = smov 12 }
  0x5e   :  { %v937_v61 = vsel %vm14_vm2, %v1930_v57, %v932_v58  ;;  %v1938_v7 = vld [vmem:[%s3322_s0 + $0x6] ss:$16 sm:%s984_s2]   ;;  %v982_v8 = vsel %vm10_vm1, %v1937_v5, %v977_v6  ;;  %s1095_s2 = smov 12  ;;  %v1955_v23 = vld [vmem:[%s3322_s0 + $0x85] ss:$16 sm:%s1092_s30]   ;;  %s1326_s30 = smov 192 }
  0x5f   :  { %938 = vrot.lane.b32.xlu0 %v937_v61, %s2085_s20  ;;  %1011 = vrot.lane.b32.xlu1 %v1010_v3, %s2086_s12  ;;  %v1947_v9 = vld [vmem:[%s3322_s0 + $0x186] ss:$16 sm:%s1044_s4]   ;;  %v987_v11 = vsel %vm14_vm2, %v1938_v7, %v982_v8  ;;  %s1155_s20 = smov 192  ;;  %s1223_s4 = smov 48 }
  0x60   :  { %v1948_v10 = vld [vmem:[%s3322_s0 + $0x186] ss:$16 sm:%s1047_s23]   ;;  %v1956_v24 = vld [vmem:[%s3322_s0 + $0x85] ss:$16 sm:%s1095_s2]   ;;  %s1150_s2 = smov 48  ;;  %s1278_s23 = smov 192 }
  0x61   :  { %v1050_v12 = vsel %vm6_vm0, %v1948_v10, %v1947_v9  ;;  %v1949_v13 = vld [vmem:[%s3322_s0 + $0x186] ss:$16 sm:%s1052_s11]   ;;  %s1069_s11 = smov 3  ;;  %v1098_v26 = vsel %vm6_vm0, %v1956_v24, %v1955_v23  ;;  %v1957_v27 = vld [vmem:[%s3322_s0 + $0x85] ss:$16 sm:%s1100_s7]   ;;  %s1117_s7 = smov 3 }
  0x62   :  { %v1950_v14 = vld [vmem:[%s3322_s0 + $0x186] ss:$16 sm:%s1057_s29]   ;;  %v1055_v15 = vsel %vm10_vm1, %v1949_v13, %v1050_v12  ;;  %v1958_v28 = vld [vmem:[%s3322_s0 + $0x85] ss:$16 sm:%s1105_s8]   ;;  %v1103_v29 = vsel %vm10_vm1, %v1957_v27, %v1098_v26  ;;  %s1120_s29 = smov 12  ;;  %s1170_s8 = smov 12 }
  0x63   :  { %988 = vrot.lane.b32.xlu0 %v987_v11, %s2086_s12  ;;  %v1943_v16 = vld [vmem:[%s3322_s0 + $0x106] ss:$16 sm:%s1019_s15]   ;;  %v1060_v17 = vsel %vm14_vm2, %v1950_v14, %v1055_v15  ;;  %v1108_v31 = vsel %vm14_vm2, %v1958_v28, %v1103_v29  ;;  %s2089_s15 = smov 24  }
  0x64   :  { %v1944_v18 = vld [vmem:[%s3322_s0 + $0x106] ss:$16 sm:%s1022_s9]   ;;  %1061 = vrot.lane.b32.xlu1 %v1060_v17, %s2086_s12  ;;  %s1371_s9 = smov 48 }
  0x65   :  { %v1945_v19 = vld [vmem:[%s3322_s0 + $0x106] ss:$16 sm:%s1027_s21]   ;;  %v1025_v20 = vsel %vm6_vm0, %v1944_v18, %v1943_v16  ;;  %v1951_v30 = vld [vmem:[%s3322_s0 + $0x5] ss:$16 sm:%s1069_s11]   ;;  %s1190_s21 = smov 3  ;;  %s1399_s11 = smov 192 }
  0x66   :  { %v1946_v21 = vld [vmem:[%s3322_s0 + $0x106] ss:$16 sm:%s1032_s27]   ;;  %v1030_v22 = vsel %vm10_vm1, %v1945_v19, %v1025_v20  ;;  %v1952_v32 = vld [vmem:[%s3322_s0 + $0x5] ss:$16 sm:%s1072_s16]   ;;  %s1198_s27 = smov 48  ;;  %s1240_s16 = smov 3 }
  0x67   :  { %v1035_v25 = vsel %vm14_vm2, %v1946_v21, %v1030_v22  ;;  %v1953_v33 = vld [vmem:[%s3322_s0 + $0x5] ss:$16 sm:%s1077_s5]   ;;  %v1075_v34 = vsel %vm6_vm0, %v1952_v32, %v1951_v30  ;;  %v1971_v51 = vld [vmem:[%s3322_s0 + $0x84] ss:$16 sm:%s1190_s21]   ;;  %s1243_s5 = smov 12  ;;  %s1424_s21 = smov 192 }
  0x68   :  { %1036 = vrot.lane.b32.xlu0 %v1035_v25, %s2086_s12  ;;  %1109 = vrot.lane.b32.xlu1 %v1108_v31, %s2087_s3  ;;  %v1954_v35 = vld [vmem:[%s3322_s0 + $0x5] ss:$16 sm:%s1082_s22]   ;;  %v1080_v36 = vsel %vm10_vm1, %v1953_v33, %v1075_v34  ;;  %s1193_s22 = smov 12  ;;  %s1253_s12 = smov 192 }
  0x69   :  { %v1963_v37 = vld [vmem:[%s3322_s0 + $0x185] ss:$16 sm:%s1142_s25]   ;;  %v1085_v39 = vsel %vm14_vm2, %v1954_v35, %v1080_v36  ;;  %v1972_v52 = vld [vmem:[%s3322_s0 + $0x84] ss:$16 sm:%s1193_s22]   ;;  %s1248_s22 = smov 48  ;;  %s1321_s25 = smov 48 }
  0x6a   :  { %v1964_v38 = vld [vmem:[%s3322_s0 + $0x185] ss:$16 sm:%s1145_s14]   ;;  %v1196_v54 = vsel %vm6_vm0, %v1972_v52, %v1971_v51  ;;  %v1973_v55 = vld [vmem:[%s3322_s0 + $0x84] ss:$16 sm:%s1198_s27]   ;;  %s1215_s27 = smov 3  ;;  %s1376_s14 = smov 192 }
  0x6b   :  { %v1148_v40 = vsel %vm6_vm0, %v1964_v38, %v1963_v37  ;;  %v1965_v41 = vld [vmem:[%s3322_s0 + $0x185] ss:$16 sm:%s1150_s2]   ;;  %s1167_s2 = smov 3  ;;  %v1974_v56 = vld [vmem:[%s3322_s0 + $0x84] ss:$16 sm:%s1203_s28]   ;;  %v1201_v57 = vsel %vm10_vm1, %v1973_v55, %v1196_v54  ;;  %s1268_s28 = smov 12 }
  0x6c   :  { %v1966_v42 = vld [vmem:[%s3322_s0 + $0x185] ss:$16 sm:%s1155_s20]   ;;  %1086 = vrot.lane.b32.xlu0 %v1085_v39, %s2087_s3  ;;  %v1153_v43 = vsel %vm10_vm1, %v1965_v41, %v1148_v40  ;;  %v1206_v59 = vsel %vm14_vm2, %v1974_v56, %v1201_v57  ;;  %s1218_s20 = smov 12 }
  0x6d   :  { %v1959_v44 = vld [vmem:[%s3322_s0 + $0x105] ss:$16 sm:%s1117_s7]   ;;  %v1158_v45 = vsel %vm14_vm2, %v1966_v42, %v1153_v43  ;;  %v1967_v58 = vld [vmem:[%s3322_s0 + $0x4] ss:$16 sm:%s1167_s2]   ;;  %s2090_s7 = smov 16   ;;  %s1497_s2 = smov 192 }
  0x6e   :  { %v1960_v46 = vld [vmem:[%s3322_s0 + $0x105] ss:$16 sm:%s1120_s29]   ;;  %1159 = vrot.lane.b32.xlu1 %v1158_v45, %s2087_s3  ;;  %s1469_s29 = smov 48 }
  0x6f   :  { %v1961_v47 = vld [vmem:[%s3322_s0 + $0x105] ss:$16 sm:%s1125_s13]   ;;  %v1123_v48 = vsel %vm6_vm0, %v1960_v46, %v1959_v44  ;;  %v1968_v60 = vld [vmem:[%s3322_s0 + $0x4] ss:$16 sm:%s1170_s8]   ;;  %s1288_s13 = smov 3  ;;  %s1338_s8 = smov 3 }
  0x70   :  { %v1962_v49 = vld [vmem:[%s3322_s0 + $0x105] ss:$16 sm:%s1130_s18]   ;;  %v1128_v50 = vsel %vm10_vm1, %v1961_v47, %v1123_v48  ;;  %v1969_v61 = vld [vmem:[%s3322_s0 + $0x4] ss:$16 sm:%s1175_s26]   ;;  %v1173_v62 = vsel %vm6_vm0, %v1968_v60, %v1967_v58  ;;  %s1296_s18 = smov 48  ;;  %s1341_s26 = smov 12 }
  0x71   :  { %v1133_v53 = vsel %vm14_vm2, %v1962_v49, %v1128_v50  ;;  %v1970_v63 = vld [vmem:[%s3322_s0 + $0x4] ss:$16 sm:%s1180_s6]   ;;  %v1178_v0 = vsel %vm10_vm1, %v1969_v61, %v1173_v62  ;;  %s1291_s6 = smov 12  ;;  %v1987_v16 = vld [vmem:[%s3322_s0 + $0x83] ss:$16 sm:%s1288_s13]   ;;  %s4_s13 = smov 12 }
  0x72   :  { %1134 = vrot.lane.b32.xlu0 %v1133_v53, %s2087_s3  ;;  %1207 = vrot.lane.b32.xlu1 %v1206_v59, %s2088_s24  ;;  %v1979_v1 = vld [vmem:[%s3322_s0 + $0x184] ss:$16 sm:%s1240_s16]   ;;  %v1183_v3 = vsel %vm14_vm2, %v1970_v63, %v1178_v0  ;;  %s1351_s3 = smov 192  ;;  %s1419_s16 = smov 48 }
  0x73   :  { %v1980_v2 = vld [vmem:[%s3322_s0 + $0x184] ss:$16 sm:%s1243_s5]   ;;  %v1988_v17 = vld [vmem:[%s3322_s0 + $0x83] ss:$16 sm:%s1291_s6]   ;;  %s1346_s6 = smov 48  ;;  %s1474_s5 = smov 192 }
  0x74   :  { %v1246_v4 = vsel %vm6_vm0, %v1980_v2, %v1979_v1  ;;  %v1981_v5 = vld [vmem:[%s3322_s0 + $0x184] ss:$16 sm:%s1248_s22]   ;;  %s1265_s22 = smov 3  ;;  %v1294_v19 = vsel %vm6_vm0, %v1988_v17, %v1987_v16  ;;  %v1989_v20 = vld [vmem:[%s3322_s0 + $0x83] ss:$16 sm:%s1296_s18]   ;;  %s1313_s18 = smov 3 }
  0x75   :  { %v1982_v6 = vld [vmem:[%s3322_s0 + $0x184] ss:$16 sm:%s1253_s12]   ;;  %v1251_v7 = vsel %vm10_vm1, %v1981_v5, %v1246_v4  ;;  %v1990_v21 = vld [vmem:[%s3322_s0 + $0x83] ss:$16 sm:%s1301_s19]   ;;  %v1299_v23 = vsel %vm10_vm1, %v1989_v20, %v1294_v19  ;;  %s1316_s12 = smov 12  ;;  %s1366_s19 = smov 12 }
  0x76   :  { %1184 = vrot.lane.b32.xlu0 %v1183_v3, %s2088_s24  ;;  %v1975_v8 = vld [vmem:[%s3322_s0 + $0x104] ss:$16 sm:%s1215_s27]   ;;  %v1256_v9 = vsel %vm14_vm2, %v1982_v6, %v1251_v7  ;;  %v1304_v25 = vsel %vm14_vm2, %v1990_v21, %v1299_v23  ;;  %s2091_s27 = smov 8  }
  0x77   :  { %v1976_v10 = vld [vmem:[%s3322_s0 + $0x104] ss:$16 sm:%s1218_s20]   ;;  %1257 = vrot.lane.b32.xlu1 %v1256_v9, %s2088_s24 }
  0x78   :  { %v1977_v11 = vld [vmem:[%s3322_s0 + $0x104] ss:$16 sm:%s1223_s4]   ;;  %v1221_v12 = vsel %vm6_vm0, %v1976_v10, %v1975_v8  ;;  %v2867_v14 = vpop.permute.xlu1 %154   ;;  %v1983_v24 = vld [vmem:[%s3322_s0 + $0x3] ss:$16 sm:%s1265_s22]   ;;  %s1386_s4 = smov 3  ;;  %s1547_s22 = smov 192 }
  0x79   :  { %v1978_v13 = vld [vmem:[%s3322_s0 + $0x104] ss:$16 sm:%s1228_s10]   ;;  %v1226_v15 = vsel %vm10_vm1, %v1977_v11, %v1221_v12  ;;  %v1984_v26 = vld [vmem:[%s3322_s0 + $0x3] ss:$16 sm:%s1268_s28]   ;;  %s1394_s10 = smov 48  ;;  %s1436_s28 = smov 3 }
  0x7a   :  { %v1231_v18 = vsel %vm14_vm2, %v1978_v13, %v1226_v15  ;;  %v1985_v27 = vld [vmem:[%s3322_s0 + $0x3] ss:$16 sm:%s1273_s17]   ;;  %v1271_v29 = vsel %vm6_vm0, %v1984_v26, %v1983_v24  ;;  %v2003_v48 = vld [vmem:[%s3322_s0 + $0x82] ss:$16 sm:%s1386_s4]   ;;  %s1439_s17 = smov 12  ;;  %s33_s4 = smov 192 }
  0x7b   :  { %1232 = vrot.lane.b32.xlu0 %v1231_v18, %s2088_s24  ;;  %1305 = vrot.lane.b32.xlu1 %v1304_v25, %s2089_s15  ;;  %v1986_v30 = vld [vmem:[%s3322_s0 + $0x3] ss:$16 sm:%s1278_s23]   ;;  %v1276_v31 = vsel %vm10_vm1, %v1985_v27, %v1271_v29  ;;  %s1389_s23 = smov 12  ;;  %s1449_s24 = smov 192 }
  0x7c   :  { %v2884_v22 = vpop.permute.xlu0 %106   ;;  %v1995_v32 = vld [vmem:[%s3322_s0 + $0x183] ss:$16 sm:%s1338_s8]   ;;  %v1281_v34 = vsel %vm14_vm2, %v1986_v30, %v1276_v31  ;;  %v2004_v49 = vld [vmem:[%s3322_s0 + $0x82] ss:$16 sm:%s1389_s23]   ;;  %s1444_s23 = smov 48  ;;  %s2_s8 = smov 3 }
  0x7d   :  { %v1996_v33 = vld [vmem:[%s3322_s0 + $0x183] ss:$16 sm:%s1341_s26]   ;;  %v1392_v51 = vsel %vm6_vm0, %v2004_v49, %v2003_v48  ;;  %v2005_v52 = vld [vmem:[%s3322_s0 + $0x82] ss:$16 sm:%s1394_s10]   ;;  %s1411_s10 = smov 3 }
  0x7e   :  { %v1344_v35 = vsel %vm6_vm0, %v1996_v33, %v1995_v32  ;;  %v1997_v36 = vld [vmem:[%s3322_s0 + $0x183] ss:$16 sm:%s1346_s6]   ;;  %s1363_s6 = smov 3  ;;  %v2006_v53 = vld [vmem:[%s3322_s0 + $0x82] ss:$16 sm:%s1399_s11]   ;;  %v1397_v55 = vsel %vm10_vm1, %v2005_v52, %v1392_v51  ;;  %s1464_s11 = smov 12 }
  0x7f   :  { %v1998_v37 = vld [vmem:[%s3322_s0 + $0x183] ss:$16 sm:%s1351_s3]   ;;  %1282 = vrot.lane.b32.xlu0 %v1281_v34, %s2089_s15  ;;  %v1349_v39 = vsel %vm10_vm1, %v1997_v36, %v1344_v35  ;;  %v1402_v57 = vsel %vm14_vm2, %v2006_v53, %v1397_v55  ;;  %s1414_s3 = smov 12 }
  0x80   :  { %v2898_v28 = vpop.permute.xlu1 %179   ;;  %v1991_v40 = vld [vmem:[%s3322_s0 + $0x103] ss:$16 sm:%s1313_s18]   ;;  %v1354_v41 = vsel %vm14_vm2, %v1998_v37, %v1349_v39  ;;  %v1999_v56 = vld [vmem:[%s3322_s0 + $0x2] ss:$16 sm:%s1363_s6]   ;;  %s1534_s6 = smov 3  ;;  %s79_s18 = smov 192 }
  0x81   :  { %v1992_v42 = vld [vmem:[%s3322_s0 + $0x103] ss:$16 sm:%s1316_s12]   ;;  %1355 = vrot.lane.b32.xlu1 %v1354_v41, %s2089_s15  ;;  %s1509_s12 = smov 3 }
  0x82   :  { %v1993_v43 = vld [vmem:[%s3322_s0 + $0x103] ss:$16 sm:%s1321_s25]   ;;  %v1319_v45 = vsel %vm6_vm0, %v1992_v42, %v1991_v40  ;;  %v2000_v58 = vld [vmem:[%s3322_s0 + $0x2] ss:$16 sm:%s1366_s19]   ;;  %s1484_s25 = smov 3  ;;  %s43_s19 = smov 3 }
  0x83   :  { %v1994_v46 = vld [vmem:[%s3322_s0 + $0x103] ss:$16 sm:%s1326_s30]   ;;  %v1324_v47 = vsel %vm10_vm1, %v1993_v43, %v1319_v45  ;;  %v2001_v59 = vld [vmem:[%s3322_s0 + $0x2] ss:$16 sm:%s1371_s9]   ;;  %v1369_v61 = vsel %vm6_vm0, %v2000_v58, %v1999_v56  ;;  %s1492_s30 = smov 48  ;;  %s46_s9 = smov 12 }
  0x84   :  { %v2920_v38 = vpop.permute.xlu0 %129   ;;  %v2934_v44 = vpop.permute.xlu1 %227   ;;  %v1329_v50 = vsel %vm14_vm2, %v1994_v46, %v1324_v47  ;;  %v2002_v62 = vld [vmem:[%s3322_s0 + $0x2] ss:$16 sm:%s1376_s14]   ;;  %v1374_v63 = vsel %vm10_vm1, %v2001_v59, %v1369_v61  ;;  %s1487_s14 = smov 12  ;;  %v2019_v17 = vld [vmem:[%s3322_s0 + $0x81] ss:$16 sm:%s1484_s25]  }
  0x85   :  { %1330 = vrot.lane.b32.xlu0 %v1329_v50, %s2089_s15  ;;  %1403 = vrot.lane.b32.xlu1 %v1402_v57, %s2090_s7  ;;  %v2011_v0 = vld [vmem:[%s3322_s0 + $0x182] ss:$16 sm:%s1436_s28]   ;;  %v1379_v2 = vsel %vm14_vm2, %v2002_v62, %v1374_v63  ;;  %s56_s15 = smov 192  ;;  %s28_s28 = smov 48 }
  0x86   :  { %v2012_v1 = vld [vmem:[%s3322_s0 + $0x182] ss:$16 sm:%s1439_s17]   ;;  %v2020_v18 = vld [vmem:[%s3322_s0 + $0x81] ss:$16 sm:%s1487_s14]   ;;  %s51_s14 = smov 48  ;;  %s1512_s17 = smov 12 }
  0x87   :  { %v1442_v3 = vsel %vm6_vm0, %v2012_v1, %v2011_v0  ;;  %v2013_v4 = vld [vmem:[%s3322_s0 + $0x182] ss:$16 sm:%s1444_s23]   ;;  %s1461_s23 = smov 3  ;;  %v1490_v20 = vsel %vm6_vm0, %v2020_v18, %v2019_v17  ;;  %v2021_v21 = vld [vmem:[%s3322_s0 + $0x81] ss:$16 sm:%s1492_s30]   ;;  %s8_s30 = smov 48 }
  0x88   :  { %v2956_v54 = vpop.permute.xlu0 %204   ;;  %v2014_v5 = vld [vmem:[%s3322_s0 + $0x182] ss:$16 sm:%s1449_s24]   ;;  %v1447_v7 = vsel %vm10_vm1, %v2013_v4, %v1442_v3  ;;  %v2022_v23 = vld [vmem:[%s3322_s0 + $0x81] ss:$16 sm:%s1497_s2]   ;;  %v1495_v25 = vsel %vm10_vm1, %v2021_v21, %v1490_v20  ;;  %s12_s24 = smov 192 }
  0x89   :  { %1380 = vrot.lane.b32.xlu0 %v1379_v2, %s2090_s7  ;;  %v2007_v8 = vld [vmem:[%s3322_s0 + $0x102] ss:$16 sm:%s1411_s10]   ;;  %v1452_v9 = vsel %vm14_vm2, %v2014_v5, %v1447_v7  ;;  %v1500_v27 = vsel %vm14_vm2, %v2022_v23, %v1495_v25 }
  0x8a   :  { %v2970_v60 = vpop.permute.xlu1 %277   ;;  %v2008_v10 = vld [vmem:[%s3322_s0 + $0x102] ss:$16 sm:%s1414_s3]   ;;  %1453 = vrot.lane.b32.xlu1 %v1452_v9, %s2090_s7 }
  0x8b   :  { %v2009_v11 = vld [vmem:[%s3322_s0 + $0x102] ss:$16 sm:%s1419_s16]   ;;  %v1417_v13 = vsel %vm6_vm0, %v2008_v10, %v2007_v8  ;;  %v2015_v26 = vld [vmem:[%s3322_s0 + $0x1] ss:$16 sm:%s1461_s23]  }
  0x8c   :  { %v2010_v15 = vld [vmem:[%s3322_s0 + $0x102] ss:$16 sm:%s1424_s21]   ;;  %v1422_v16 = vsel %vm10_vm1, %v2009_v11, %v1417_v13  ;;  %v2016_v29 = vld [vmem:[%s3322_s0 + $0x1] ss:$16 sm:%s1464_s11]  }
  0x8d   :  { %v1427_v19 = vsel %vm14_vm2, %v2010_v15, %v1422_v16  ;;  %v2017_v30 = vld [vmem:[%s3322_s0 + $0x1] ss:$16 sm:%s1469_s29]   ;;  %v1467_v32 = vsel %vm6_vm0, %v2016_v29, %v2015_v26  ;;  %v1783_v35 = vld [vmem:[%s3322_s0 + $0x100] ss:$16 sm:%s43_s19]  }
  0x8e   :  { %v2992_v6 = vpop.permute.xlu0 %252   ;;  %v3006_v12 = vpop.permute.xlu1 %325   ;;  %1428 = vrot.lane.b32.xlu0 %v1427_v19, %s2090_s7  ;;  %1501 = vrot.lane.b32.xlu1 %v1500_v27, %s2091_s27  ;;  %v2018_v33 = vld [vmem:[%s3322_s0 + $0x1] ss:$16 sm:%s1474_s5]   ;;  %v1472_v34 = vsel %vm10_vm1, %v2017_v30, %v1467_v32  ;;  %s1537_s5 = smov 12  ;;  %s1542_s7 = smov 48 }
  0x8f   :  { %v1784_v36 = vld [vmem:[%s3322_s0 + $0x100] ss:$16 sm:%s46_s9]   ;;  %v1477_v37 = vsel %vm14_vm2, %v2018_v33, %v1472_v34  ;;  %v2027_v51 = vld [vmem:[%s3322_s0 + $0x181] ss:$16 sm:%s1534_s6]  }
  0x90   :  { %v1785_v39 = vld [vmem:[%s3322_s0 + $0x100] ss:$16 sm:%s51_s14]   ;;  %v49_v41 = vsel %vm6_vm0, %v1784_v36, %v1783_v35  ;;  %v2028_v52 = vld [vmem:[%s3322_s0 + $0x181] ss:$16 sm:%s1537_s5]  }
  0x91   :  { %v1786_v40 = vld [vmem:[%s3322_s0 + $0x100] ss:$16 sm:%s56_s15]   ;;  %v54_v43 = vsel %vm10_vm1, %v1785_v39, %v49_v41  ;;  %v2029_v53 = vld [vmem:[%s3322_s0 + $0x181] ss:$16 sm:%s1542_s7]   ;;  %v1540_v56 = vsel %vm6_vm0, %v2028_v52, %v2027_v51  ;;  %s74_s7 = smov 48  ;;  %s23_s15 = smov 12 }
  0x92   :  { %v3028_v24 = vpop.permute.xlu0 %302   ;;  %1478 = vrot.lane.b32.xlu0 %v1477_v37, %s2091_s27  ;;  %v9_v45 = vld [vmem:[%s3322_s0] ss:$16 sm:%s8_s30]   ;;  %v59_v46 = vsel %vm14_vm2, %v1786_v40, %v54_v43  ;;  %s1517_s30 = smov 48  ;;  %v1545_v62 = vsel %vm10_vm1, %v2029_v53, %v1540_v56 }
  0x93   :  { %v13_v47 = vld [vmem:[%s3322_s0] ss:$16 sm:%s12_s24]   ;;  %62 = vst.msk [vmem:[#allocation0 + $0x80] ss:$8 sm:$0xf] %vm16_vm3, %v59_v46   ;;  %s1522_s24 = smov 192 }
  0x94   :  { %v3042_v31 = vpop.permute.xlu1 %375   ;;  %v3_v48 = vld [vmem:[%s3322_s0] ss:$16 sm:%s2_s8]   ;;  %64 = vst.msk [vmem:[#allocation0 + $0x80] ss:$8 sm:$0xf0] %vm16_vm3, %v59_v46   ;;  %s66_s8 = smov 3 }
  0x95   :  { %v5_v50 = vld [vmem:[%s3322_s0] ss:$16 sm:%s4_s13]   ;;  %158 = vst.msk [vmem:[#allocation0 + $0x80] ss:$8 sm:$0xf] %vm108_vm4, %v2867_v14   ;;  %s69_s13 = smov 12 }
  0x96   :  { %160 = vst.msk [vmem:[#allocation0 + $0x80] ss:$8 sm:$0xf0] %vm108_vm4, %v2867_v14   ;;  %v7_v14 = vsel %vm6_vm0, %v5_v50, %v3_v48  ;;  %v2030_v57 = vld [vmem:[%s3322_s0 + $0x181] ss:$16 sm:%s1547_s22]  }
  0x97   :  { %v11_v55 = vsel %vm10_vm1, %v9_v45, %v7_v14  ;;  %v2023_v58 = vld [vmem:[%s3322_s0 + $0x101] ss:$16 sm:%s1509_s12]   ;;  %256 = vst.msk [vmem:[#allocation0 + $0x80] ss:$8 sm:$0xf] %vm206_vm5, %v2992_v6   ;;  %v1550_v1 = vsel %vm14_vm2, %v2030_v57, %v1545_v62  ;;  %s20_s12 = smov 3 }
  0x98   :  { %v351_v42 = vpop.permute.xlu0 %350   ;;  %v3076_v49 = vpop.permute.xlu1 %423   ;;  %258 = vst.msk [vmem:[#allocation0 + $0x80] ss:$8 sm:$0xf0] %vm206_vm5, %v2992_v6   ;;  %v15_v61 = vsel %vm14_vm2, %v13_v47, %v11_v55  ;;  %v2024_v63 = vld [vmem:[%s3322_s0 + $0x101] ss:$16 sm:%s1512_s17]   ;;  %1551 = vrot.lane.b32.xlu1 %v1550_v1, %s2091_s27 }
  0x99   :  { %v2025_v0 = vld [vmem:[%s3322_s0 + $0x101] ss:$16 sm:%s1517_s30]   ;;  %354 = vst.msk [vmem:[#allocation0 + $0x80] ss:$8 sm:$0xf] %vm304_vm6, %v351_v42   ;;  %v1515_v2 = vsel %vm6_vm0, %v2024_v63, %v2023_v58 }
  0x9a   :  { %356 = vst.msk [vmem:[#allocation0 + $0x80] ss:$8 sm:$0xf0] %vm304_vm6, %v351_v42   ;;  %v2026_v3 = vld [vmem:[%s3322_s0 + $0x101] ss:$16 sm:%s1522_s24]  }
  0x9b   :  { %17 = vst.msk [vmem:[#allocation0] ss:$8 sm:$0xf] %vm16_vm3, %v15_v61   ;;  %18 = vst.msk [vmem:[#allocation0] ss:$8 sm:$0xf0] %vm16_vm3, %v15_v61  }
  0x9c   :  { %v401_v59 = vpop.permute.xlu0 %400   ;;  %v1787_v4 = vld [vmem:[%s3322_s0 + $0x180] ss:$16 sm:%s66_s8]   ;;  %109 = vst.msk [vmem:[#allocation0] ss:$8 sm:$0xf] %vm108_vm4, %v2884_v22  }
  0x9d   :  { %v474_v5 = vpop.permute.xlu1 %473   ;;  %110 = vst.msk [vmem:[#allocation0] ss:$8 sm:$0xf0] %vm108_vm4, %v2884_v22   ;;  %v1520_v22 = vsel %vm10_vm1, %v2025_v0, %v1515_v2  ;;  %v1788_v6 = vld [vmem:[%s3322_s0 + $0x180] ss:$16 sm:%s69_s13]  }
  0x9e   :  { %v1525_v7 = vsel %vm14_vm2, %v2026_v3, %v1520_v22  ;;  %v1789_v8 = vld [vmem:[%s3322_s0 + $0x180] ss:$16 sm:%s74_s7]   ;;  %v72_v10 = vsel %vm6_vm0, %v1788_v6, %v1787_v4  ;;  %207 = vst.msk [vmem:[#allocation0] ss:$8 sm:$0xf] %vm206_vm5, %v2956_v54  }
  0x9f   :  { %v1790_v9 = vld [vmem:[%s3322_s0 + $0x180] ss:$16 sm:%s79_s18]   ;;  %208 = vst.msk [vmem:[#allocation0] ss:$8 sm:$0xf0] %vm206_vm5, %v2956_v54   ;;  %1526 = vrot.lane.b32.xlu0 %v1525_v7, %s2091_s27  ;;  %v77_v54 = vsel %vm10_vm1, %v1789_v8, %v72_v10 }
  0xa0   :  { %v1779_v11 = vld [vmem:[%s3322_s0 + $0x80] ss:$16 sm:%s20_s12]   ;;  %305 = vst.msk [vmem:[#allocation0] ss:$8 sm:$0xf] %vm304_vm6, %v3028_v24   ;;  %v82_v15 = vsel %vm14_vm2, %v1790_v9, %v77_v54 }
  0xa1   :  { %306 = vst.msk [vmem:[#allocation0] ss:$8 sm:$0xf0] %vm304_vm6, %v3028_v24   ;;  %v449_v13 = vpop.permute.xlu0 %448   ;;  %v1780_v16 = vld [vmem:[%s3322_s0 + $0x80] ss:$16 sm:%s23_s15]   ;;  %v522_v20 = vpop.permute.xlu1 %521  }
  0xa2   :  { %v1781_v17 = vld [vmem:[%s3322_s0 + $0x80] ss:$16 sm:%s28_s28]   ;;  %403 = vst.msk [vmem:[#allocation0] ss:$8 sm:$0xf] %vm402_vm7, %v401_v59   ;;  %v26_v19 = vsel %vm6_vm0, %v1780_v16, %v1779_v11  ;;  %vm1284_vm0 = vcmask 261312  }
  0xa3   :  { %404 = vst.msk [vmem:[#allocation0] ss:$8 sm:$0xf0] %vm402_vm7, %v401_v59   ;;  %452 = vst.msk [vmem:[#allocation0 + $0x80] ss:$8 sm:$0xf] %vm402_vm7, %v449_v13  }
  0xa4   :  { %454 = vst.msk [vmem:[#allocation0 + $0x80] ss:$8 sm:$0xf0] %vm402_vm7, %v449_v13   ;;  %v1782_v18 = vld [vmem:[%s3322_s0 + $0x80] ss:$16 sm:%s33_s4]  }
  0xa5   :  { %85 = vst.msk [vmem:[#allocation0 + $0xc0] ss:$8 sm:$0xf] %vm16_vm3, %v82_v15   ;;  %87 = vst.msk [vmem:[#allocation0 + $0xc0] ss:$8 sm:$0xf0] %vm16_vm3, %v82_v15  }
  0xa6   :  { %183 = vst.msk [vmem:[#allocation0 + $0xc0] ss:$8 sm:$0xf] %vm108_vm4, %v2898_v28   ;;  %185 = vst.msk [vmem:[#allocation0 + $0xc0] ss:$8 sm:$0xf0] %vm108_vm4, %v2898_v28   ;;  %v31_v28 = vsel %vm10_vm1, %v1781_v17, %v26_v19 }
  0xa7   :  { %v36_v21 = vsel %vm14_vm2, %v1782_v18, %v31_v28  ;;  %281 = vst.msk [vmem:[#allocation0 + $0xc0] ss:$8 sm:$0xf] %vm206_vm5, %v2970_v60   ;;  %283 = vst.msk [vmem:[#allocation0 + $0xc0] ss:$8 sm:$0xf0] %vm206_vm5, %v2970_v60   ;;  %v499_v60 = vpop.permute.xlu0 %498  }
  0xa8   :  { %39 = vst.msk [vmem:[#allocation0 + $0x40] ss:$8 sm:$0xf] %vm16_vm3, %v36_v21   ;;  %41 = vst.msk [vmem:[#allocation0 + $0x40] ss:$8 sm:$0xf0] %vm16_vm3, %v36_v21  }
  0xa9   :  { %379 = vst.msk [vmem:[#allocation0 + $0xc0] ss:$8 sm:$0xf] %vm304_vm6, %v3042_v31   ;;  %381 = vst.msk [vmem:[#allocation0 + $0xc0] ss:$8 sm:$0xf0] %vm304_vm6, %v3042_v31  }
  0xaa   :  { %133 = vst.msk [vmem:[#allocation0 + $0x40] ss:$8 sm:$0xf] %vm108_vm4, %v2920_v38   ;;  %135 = vst.msk [vmem:[#allocation0 + $0x40] ss:$8 sm:$0xf0] %vm108_vm4, %v2920_v38   ;;  %v572_v38 = vpop.permute.xlu1 %571  }
  0xab   :  { %477 = vst.msk [vmem:[#allocation0 + $0xc0] ss:$8 sm:$0xf] %vm402_vm7, %v474_v5   ;;  %479 = vst.msk [vmem:[#allocation0 + $0xc0] ss:$8 sm:$0xf0] %vm402_vm7, %v474_v5  }
  0xac   :  { %501 = vst.msk [vmem:[#allocation0] ss:$8 sm:$0xf] %vm500_vm8, %v499_v60   ;;  %502 = vst.msk [vmem:[#allocation0] ss:$8 sm:$0xf0] %vm500_vm8, %v499_v60  }
  0xad   :  { %231 = vst.msk [vmem:[#allocation0 + $0x40] ss:$8 sm:$0xf] %vm206_vm5, %v2934_v44   ;;  %233 = vst.msk [vmem:[#allocation0 + $0x40] ss:$8 sm:$0xf0] %vm206_vm5, %v2934_v44   ;;  %v547_v44 = vpop.permute.xlu0 %546  }
  0xae   :  { %329 = vst.msk [vmem:[#allocation0 + $0x40] ss:$8 sm:$0xf] %vm304_vm6, %v3006_v12   ;;  %331 = vst.msk [vmem:[#allocation0 + $0x40] ss:$8 sm:$0xf0] %vm304_vm6, %v3006_v12   ;;  %v620_v12 = vpop.permute.xlu1 %619  }
  0xaf   :  { %575 = vst.msk [vmem:[#allocation0 + $0xc0] ss:$8 sm:$0xf] %vm500_vm8, %v572_v38   ;;  %577 = vst.msk [vmem:[#allocation0 + $0xc0] ss:$8 sm:$0xf0] %vm500_vm8, %v572_v38  }
  0xb0   :  { %427 = vst.msk [vmem:[#allocation0 + $0x40] ss:$8 sm:$0xf] %vm402_vm7, %v3076_v49   ;;  %429 = vst.msk [vmem:[#allocation0 + $0x40] ss:$8 sm:$0xf0] %vm402_vm7, %v3076_v49  }
  0xb1   :  { %525 = vst.msk [vmem:[#allocation0 + $0x40] ss:$8 sm:$0xf] %vm500_vm8, %v522_v20   ;;  %527 = vst.msk [vmem:[#allocation0 + $0x40] ss:$8 sm:$0xf0] %vm500_vm8, %v522_v20   ;;  %v597_v23 = vpop.permute.xlu0 %596  }
  0xb2   :  { %550 = vst.msk [vmem:[#allocation0 + $0x80] ss:$8 sm:$0xf] %vm500_vm8, %v547_v44   ;;  %552 = vst.msk [vmem:[#allocation0 + $0x80] ss:$8 sm:$0xf0] %vm500_vm8, %v547_v44   ;;  %v670_v24 = vpop.permute.xlu1 %669  }
  0xb3   :  { %623 = vst.msk [vmem:[#allocation0 + $0x40] ss:$8 sm:$0xf] %vm598_vm9, %v620_v12   ;;  %625 = vst.msk [vmem:[#allocation0 + $0x40] ss:$8 sm:$0xf0] %vm598_vm9, %v620_v12  }
  0xb4   :  { %599 = vst.msk [vmem:[#allocation0] ss:$8 sm:$0xf] %vm598_vm9, %v597_v23   ;;  %600 = vst.msk [vmem:[#allocation0] ss:$8 sm:$0xf0] %vm598_vm9, %v597_v23  }
  0xb5   :  { %673 = vst.msk [vmem:[#allocation0 + $0xc0] ss:$8 sm:$0xf] %vm598_vm9, %v670_v24   ;;  %675 = vst.msk [vmem:[#allocation0 + $0xc0] ss:$8 sm:$0xf0] %vm598_vm9, %v670_v24   ;;  %v645_v25 = vpop.permute.xlu0 %644  }
  0xb6   :  { %648 = vst.msk [vmem:[#allocation0 + $0x80] ss:$8 sm:$0xf] %vm598_vm9, %v645_v25   ;;  %650 = vst.msk [vmem:[#allocation0 + $0x80] ss:$8 sm:$0xf0] %vm598_vm9, %v645_v25   ;;  %v718_v26 = vpop.permute.xlu1 %717  }
  0xb7   :  { %721 = vst.msk [vmem:[#allocation0 + $0x40] ss:$8 sm:$0xf] %vm696_vm10, %v718_v26   ;;  %723 = vst.msk [vmem:[#allocation0 + $0x40] ss:$8 sm:$0xf0] %vm696_vm10, %v718_v26  }
  0xb8   :  { %vm1382_vm1 = vcmask 195712   ;;  %vm1480_vm2 = vcmask 130112  }
  0xb9   :  { %v695_v27 = vpop.permute.xlu0 %694  }
  0xba   :  { %697 = vst.msk [vmem:[#allocation0] ss:$8 sm:$0xf] %vm696_vm10, %v695_v27   ;;  %698 = vst.msk [vmem:[#allocation0] ss:$8 sm:$0xf0] %vm696_vm10, %v695_v27   ;;  %v768_v29 = vpop.permute.xlu1 %767  }
  0xbb   :  { %771 = vst.msk [vmem:[#allocation0 + $0xc0] ss:$8 sm:$0xf] %vm696_vm10, %v768_v29   ;;  %773 = vst.msk [vmem:[#allocation0 + $0xc0] ss:$8 sm:$0xf0] %vm696_vm10, %v768_v29  }
  0xbe   :  { %v743_v30 = vpop.permute.xlu0 %742   ;;  %v816_v31 = vpop.permute.xlu1 %815  }
  0xbf   :  { %746 = vst.msk [vmem:[#allocation0 + $0x80] ss:$8 sm:$0xf] %vm696_vm10, %v743_v30   ;;  %748 = vst.msk [vmem:[#allocation0 + $0x80] ss:$8 sm:$0xf0] %vm696_vm10, %v743_v30  }
  0xc0   :  { %819 = vst.msk [vmem:[#allocation0 + $0x40] ss:$8 sm:$0xf] %vm794_vm11, %v816_v31   ;;  %821 = vst.msk [vmem:[#allocation0 + $0x40] ss:$8 sm:$0xf0] %vm794_vm11, %v816_v31  }
  0xc2   :  { %v793_v32 = vpop.permute.xlu0 %792  }
  0xc3   :  { %795 = vst.msk [vmem:[#allocation0] ss:$8 sm:$0xf] %vm794_vm11, %v793_v32   ;;  %796 = vst.msk [vmem:[#allocation0] ss:$8 sm:$0xf0] %vm794_vm11, %v793_v32   ;;  %v866_v33 = vpop.permute.xlu1 %865  }
  0xc4   :  { %869 = vst.msk [vmem:[#allocation0 + $0xc0] ss:$8 sm:$0xf] %vm794_vm11, %v866_v33   ;;  %871 = vst.msk [vmem:[#allocation0 + $0xc0] ss:$8 sm:$0xf0] %vm794_vm11, %v866_v33  }
  0xc7   :  { %v841_v34 = vpop.permute.xlu0 %840   ;;  %v914_v35 = vpop.permute.xlu1 %913  }
  0xc8   :  { %844 = vst.msk [vmem:[#allocation0 + $0x80] ss:$8 sm:$0xf] %vm794_vm11, %v841_v34   ;;  %846 = vst.msk [vmem:[#allocation0 + $0x80] ss:$8 sm:$0xf0] %vm794_vm11, %v841_v34  }
  0xc9   :  { %917 = vst.msk [vmem:[#allocation0 + $0x40] ss:$8 sm:$0xf] %vm892_vm12, %v914_v35   ;;  %919 = vst.msk [vmem:[#allocation0 + $0x40] ss:$8 sm:$0xf0] %vm892_vm12, %v914_v35  }
  0xcb   :  { %v891_v36 = vpop.permute.xlu0 %890  }
  0xcc   :  { %893 = vst.msk [vmem:[#allocation0] ss:$8 sm:$0xf] %vm892_vm12, %v891_v36   ;;  %894 = vst.msk [vmem:[#allocation0] ss:$8 sm:$0xf0] %vm892_vm12, %v891_v36  }
  0xcd   :  { %v964_v37 = vpop.permute.xlu1 %963  }
  0xce   :  { %967 = vst.msk [vmem:[#allocation0 + $0xc0] ss:$8 sm:$0xf] %vm892_vm12, %v964_v37   ;;  %969 = vst.msk [vmem:[#allocation0 + $0xc0] ss:$8 sm:$0xf0] %vm892_vm12, %v964_v37  }
  0xd1   :  { %v939_v39 = vpop.permute.xlu0 %938   ;;  %v1012_v40 = vpop.permute.xlu1 %1011  }
  0xd2   :  { %942 = vst.msk [vmem:[#allocation0 + $0x80] ss:$8 sm:$0xf] %vm892_vm12, %v939_v39   ;;  %944 = vst.msk [vmem:[#allocation0 + $0x80] ss:$8 sm:$0xf0] %vm892_vm12, %v939_v39  }
  0xd3   :  { %1015 = vst.msk [vmem:[#allocation0 + $0x40] ss:$8 sm:$0xf] %vm990_vm13, %v1012_v40   ;;  %1017 = vst.msk [vmem:[#allocation0 + $0x40] ss:$8 sm:$0xf0] %vm990_vm13, %v1012_v40  }
  0xd5   :  { %v989_v41 = vpop.permute.xlu0 %988  }
  0xd6   :  { %991 = vst.msk [vmem:[#allocation0] ss:$8 sm:$0xf] %vm990_vm13, %v989_v41   ;;  %992 = vst.msk [vmem:[#allocation0] ss:$8 sm:$0xf0] %vm990_vm13, %v989_v41   ;;  %v1062_v42 = vpop.permute.xlu1 %1061  }
  0xd7   :  { %1065 = vst.msk [vmem:[#allocation0 + $0xc0] ss:$8 sm:$0xf] %vm990_vm13, %v1062_v42   ;;  %1067 = vst.msk [vmem:[#allocation0 + $0xc0] ss:$8 sm:$0xf0] %vm990_vm13, %v1062_v42  }
  0xda   :  { %v1037_v43 = vpop.permute.xlu0 %1036   ;;  %v1110_v45 = vpop.permute.xlu1 %1109  }
  0xdb   :  { %1040 = vst.msk [vmem:[#allocation0 + $0x80] ss:$8 sm:$0xf] %vm990_vm13, %v1037_v43   ;;  %1042 = vst.msk [vmem:[#allocation0 + $0x80] ss:$8 sm:$0xf0] %vm990_vm13, %v1037_v43  }
  0xdc   :  { %1113 = vst.msk [vmem:[#allocation0 + $0x40] ss:$8 sm:$0xf] %vm1088_vm14, %v1110_v45   ;;  %1115 = vst.msk [vmem:[#allocation0 + $0x40] ss:$8 sm:$0xf0] %vm1088_vm14, %v1110_v45  }
  0xde   :  { %v1087_v46 = vpop.permute.xlu0 %1086  }
  0xdf   :  { %1089 = vst.msk [vmem:[#allocation0] ss:$8 sm:$0xf] %vm1088_vm14, %v1087_v46   ;;  %1090 = vst.msk [vmem:[#allocation0] ss:$8 sm:$0xf0] %vm1088_vm14, %v1087_v46  }
  0xe0   :  { %v1160_v47 = vpop.permute.xlu1 %1159  }
  0xe1   :  { %1163 = vst.msk [vmem:[#allocation0 + $0xc0] ss:$8 sm:$0xf] %vm1088_vm14, %v1160_v47   ;;  %1165 = vst.msk [vmem:[#allocation0 + $0xc0] ss:$8 sm:$0xf0] %vm1088_vm14, %v1160_v47  }
  0xe4   :  { %v1135_v48 = vpop.permute.xlu0 %1134   ;;  %v1208_v49 = vpop.permute.xlu1 %1207  }
  0xe5   :  { %1138 = vst.msk [vmem:[#allocation0 + $0x80] ss:$8 sm:$0xf] %vm1088_vm14, %v1135_v48   ;;  %1140 = vst.msk [vmem:[#allocation0 + $0x80] ss:$8 sm:$0xf0] %vm1088_vm14, %v1135_v48  }
  0xe6   :  { %1211 = vst.msk [vmem:[#allocation0 + $0x40] ss:$8 sm:$0xf] %vm1186_vm15, %v1208_v49   ;;  %1213 = vst.msk [vmem:[#allocation0 + $0x40] ss:$8 sm:$0xf0] %vm1186_vm15, %v1208_v49  }
  0xe8   :  { %v1185_v50 = vpop.permute.xlu0 %1184  }
  0xe9   :  { %1187 = vst.msk [vmem:[#allocation0] ss:$8 sm:$0xf] %vm1186_vm15, %v1185_v50   ;;  %1188 = vst.msk [vmem:[#allocation0] ss:$8 sm:$0xf0] %vm1186_vm15, %v1185_v50   ;;  %v1258_v51 = vpop.permute.xlu1 %1257  }
  0xea   :  { %1261 = vst.msk [vmem:[#allocation0 + $0xc0] ss:$8 sm:$0xf] %vm1186_vm15, %v1258_v51   ;;  %1263 = vst.msk [vmem:[#allocation0 + $0xc0] ss:$8 sm:$0xf0] %vm1186_vm15, %v1258_v51  }
  0xed   :  { %v1233_v14 = vpop.permute.xlu0 %1232   ;;  %v1306_v52 = vpop.permute.xlu1 %1305  }
  0xee   :  { %1236 = vst.msk [vmem:[#allocation0 + $0x80] ss:$8 sm:$0xf] %vm1186_vm15, %v1233_v14   ;;  %1238 = vst.msk [vmem:[#allocation0 + $0x80] ss:$8 sm:$0xf0] %vm1186_vm15, %v1233_v14  }
  0xef   :  { %1309 = vst.msk [vmem:[#allocation0 + $0x40] ss:$8 sm:$0xf] %vm1284_vm0, %v1306_v52   ;;  %1311 = vst.msk [vmem:[#allocation0 + $0x40] ss:$8 sm:$0xf0] %vm1284_vm0, %v1306_v52  }
  0xf1   :  { %v1283_v53 = vpop.permute.xlu0 %1282  }
  0xf2   :  { %1285 = vst.msk [vmem:[#allocation0] ss:$8 sm:$0xf] %vm1284_vm0, %v1283_v53   ;;  %1286 = vst.msk [vmem:[#allocation0] ss:$8 sm:$0xf0] %vm1284_vm0, %v1283_v53  }
  0xf3   :  { %v1356_v55 = vpop.permute.xlu1 %1355  }
  0xf4   :  { %1359 = vst.msk [vmem:[#allocation0 + $0xc0] ss:$8 sm:$0xf] %vm1284_vm0, %v1356_v55   ;;  %1361 = vst.msk [vmem:[#allocation0 + $0xc0] ss:$8 sm:$0xf0] %vm1284_vm0, %v1356_v55  }
  0xf7   :  { %v1331_v56 = vpop.permute.xlu0 %1330   ;;  %v1404_v57 = vpop.permute.xlu1 %1403  }
  0xf8   :  { %1334 = vst.msk [vmem:[#allocation0 + $0x80] ss:$8 sm:$0xf] %vm1284_vm0, %v1331_v56   ;;  %1336 = vst.msk [vmem:[#allocation0 + $0x80] ss:$8 sm:$0xf0] %vm1284_vm0, %v1331_v56  }
  0xf9   :  { %1407 = vst.msk [vmem:[#allocation0 + $0x40] ss:$8 sm:$0xf] %vm1382_vm1, %v1404_v57   ;;  %1409 = vst.msk [vmem:[#allocation0 + $0x40] ss:$8 sm:$0xf0] %vm1382_vm1, %v1404_v57  }
  0xfb   :  { %v1381_v58 = vpop.permute.xlu0 %1380  }
  0xfc   :  { %1383 = vst.msk [vmem:[#allocation0] ss:$8 sm:$0xf] %vm1382_vm1, %v1381_v58   ;;  %1384 = vst.msk [vmem:[#allocation0] ss:$8 sm:$0xf0] %vm1382_vm1, %v1381_v58   ;;  %v1454_v59 = vpop.permute.xlu1 %1453  }
  0xfd   :  { %1457 = vst.msk [vmem:[#allocation0 + $0xc0] ss:$8 sm:$0xf] %vm1382_vm1, %v1454_v59   ;;  %1459 = vst.msk [vmem:[#allocation0 + $0xc0] ss:$8 sm:$0xf0] %vm1382_vm1, %v1454_v59  }
 0x100   :  { %v1429_v61 = vpop.permute.xlu0 %1428   ;;  %v1502_v62 = vpop.permute.xlu1 %1501  }
 0x101   :  { %1432 = vst.msk [vmem:[#allocation0 + $0x80] ss:$8 sm:$0xf] %vm1382_vm1, %v1429_v61   ;;  %1434 = vst.msk [vmem:[#allocation0 + $0x80] ss:$8 sm:$0xf0] %vm1382_vm1, %v1429_v61  }
 0x102   :  { %1505 = vst.msk [vmem:[#allocation0 + $0x40] ss:$8 sm:$0xf] %vm1480_vm2, %v1502_v62   ;;  %1507 = vst.msk [vmem:[#allocation0 + $0x40] ss:$8 sm:$0xf0] %vm1480_vm2, %v1502_v62  }
 0x104   :  { %v1479_v63 = vpop.permute.xlu0 %1478  }
 0x105   :  { %1481 = vst.msk [vmem:[#allocation0] ss:$8 sm:$0xf] %vm1480_vm2, %v1479_v63   ;;  %1482 = vst.msk [vmem:[#allocation0] ss:$8 sm:$0xf0] %vm1480_vm2, %v1479_v63  }
 0x109   :  { %v1606_v0 = vld [vmem:[#allocation0 + $0x40] sm:$0x1]  ;;  %v1612_v1 = vld [vmem:[#allocation0 + $0x48] sm:$0x1]  ;;  %v1618_v2 = vld [vmem:[#allocation0 + $0x50] sm:$0x1] }
 0x10a   :  { %2038 = vst [vmem:[%s3323_s1 + $0x8] sm:$0x1] %v1606_v0  ;;  %2039 = vst [vmem:[%s3323_s1 + $0x9] sm:$0x1] %v1612_v1  ;;  %v1624_v3 = vld [vmem:[#allocation0 + $0x58] sm:$0x1]  ;;  %v1552_v7 = vpop.permute.xlu1 %1551  }
 0x10b   :  { %2040 = vst [vmem:[%s3323_s1 + $0xa] sm:$0x1] %v1618_v2  ;;  %v1630_v4 = vld [vmem:[#allocation0 + $0x60] sm:$0x1]  ;;  %v1636_v5 = vld [vmem:[#allocation0 + $0x68] sm:$0x1] }
 0x10c   :  { %2041 = vst [vmem:[%s3323_s1 + $0xb] sm:$0x1] %v1624_v3  ;;  %2042 = vst [vmem:[%s3323_s1 + $0xc] sm:$0x1] %v1630_v4  ;;  %v1642_v22 = vld [vmem:[#allocation0 + $0x70] sm:$0x1] }
 0x10d   :  { %2043 = vst [vmem:[%s3323_s1 + $0xd] sm:$0x1] %v1636_v5  ;;  %v1648_v6 = vld [vmem:[#allocation0 + $0x78] sm:$0x1]  ;;  %2044 = vst [vmem:[%s3323_s1 + $0xe] sm:$0x1] %v1642_v22 }
 0x10e   :  { %2045 = vst [vmem:[%s3323_s1 + $0xf] sm:$0x1] %v1648_v6  ;;  %v1561_v8 = vld [vmem:[#allocation0] sm:$0x1]  ;;  %v1565_v9 = vld [vmem:[#allocation0 + $0x8] sm:$0x1] }
 0x10f   :  { %v1570_v10 = vld [vmem:[#allocation0 + $0x10] sm:$0x1]  ;;  %1555 = vst.msk [vmem:[#allocation0 + $0xc0] ss:$8 sm:$0xf] %vm1480_vm2, %v1552_v7   ;;  %1563 = vst [vmem:[%s3323_s1] sm:$0x1] %v1561_v8 }
 0x110   :  { %1557 = vst.msk [vmem:[#allocation0 + $0xc0] ss:$8 sm:$0xf0] %vm1480_vm2, %v1552_v7   ;;  %2031 = vst [vmem:[%s3323_s1 + $0x1] sm:$0x1] %v1565_v9 }
 0x111   :  { %2032 = vst [vmem:[%s3323_s1 + $0x2] sm:$0x1] %v1570_v10  ;;  %v1576_v54 = vld [vmem:[#allocation0 + $0x18] sm:$0x1]  ;;  %v1582_v11 = vld [vmem:[#allocation0 + $0x20] sm:$0x1]  ;;  %v1527_v15 = vpop.permute.xlu0 %1526  }
 0x112   :  { %v1588_v13 = vld [vmem:[#allocation0 + $0x28] sm:$0x1]  ;;  %2033 = vst [vmem:[%s3323_s1 + $0x3] sm:$0x1] %v1576_v54  ;;  %2034 = vst [vmem:[%s3323_s1 + $0x4] sm:$0x1] %v1582_v11 }
 0x113   :  { %2035 = vst [vmem:[%s3323_s1 + $0x5] sm:$0x1] %v1588_v13  ;;  %v1594_v16 = vld [vmem:[#allocation0 + $0x30] sm:$0x1]  ;;  %v1600_v17 = vld [vmem:[#allocation0 + $0x38] sm:$0x1] }
 0x114   :  { %1530 = vst.msk [vmem:[#allocation0 + $0x80] ss:$8 sm:$0xf] %vm1480_vm2, %v1527_v15   ;;  %1532 = vst.msk [vmem:[#allocation0 + $0x80] ss:$8 sm:$0xf0] %vm1480_vm2, %v1527_v15  }
 0x115   :  { %2036 = vst [vmem:[%s3323_s1 + $0x6] sm:$0x1] %v1594_v16  ;;  %2037 = vst [vmem:[%s3323_s1 + $0x7] sm:$0x1] %v1600_v17 }
 0x116   :  { %v1702_v18 = vld [vmem:[#allocation0 + $0xc0] sm:$0x1]  ;;  %v1708_v19 = vld [vmem:[#allocation0 + $0xc8] sm:$0x1]  ;;  %v1714_v20 = vld [vmem:[#allocation0 + $0xd0] sm:$0x1] }
 0x117   :  { %2054 = vst [vmem:[%s3323_s1 + $0x18] sm:$0x1] %v1702_v18  ;;  %2055 = vst [vmem:[%s3323_s1 + $0x19] sm:$0x1] %v1708_v19  ;;  %v1720_v28 = vld [vmem:[#allocation0 + $0xd8] sm:$0x1] }
 0x118   :  { %2056 = vst [vmem:[%s3323_s1 + $0x1a] sm:$0x1] %v1714_v20  ;;  %v1726_v21 = vld [vmem:[#allocation0 + $0xe0] sm:$0x1]  ;;  %v1732_v60 = vld [vmem:[#allocation0 + $0xe8] sm:$0x1] }
 0x119   :  { %2057 = vst [vmem:[%s3323_s1 + $0x1b] sm:$0x1] %v1720_v28  ;;  %2058 = vst [vmem:[%s3323_s1 + $0x1c] sm:$0x1] %v1726_v21  ;;  %v1738_v38 = vld [vmem:[#allocation0 + $0xf0] sm:$0x1] }
 0x11a   :  { %2059 = vst [vmem:[%s3323_s1 + $0x1d] sm:$0x1] %v1732_v60  ;;  %v1744_v44 = vld [vmem:[#allocation0 + $0xf8] sm:$0x1]  ;;  %2060 = vst [vmem:[%s3323_s1 + $0x1e] sm:$0x1] %v1738_v38 }
 0x11b   :  { %v1654_v12 = vld [vmem:[#allocation0 + $0x80] sm:$0x1]  ;;  %2061 = vst [vmem:[%s3323_s1 + $0x1f] sm:$0x1] %v1744_v44  ;;  %v1660_v23 = vld [vmem:[#allocation0 + $0x88] sm:$0x1] }
 0x11c   :  { %2046 = vst [vmem:[%s3323_s1 + $0x10] sm:$0x1] %v1654_v12  ;;  %v1666_v24 = vld [vmem:[#allocation0 + $0x90] sm:$0x1]  ;;  %v1672_v25 = vld [vmem:[#allocation0 + $0x98] sm:$0x1] }
 0x11d   :  { %2047 = vst [vmem:[%s3323_s1 + $0x11] sm:$0x1] %v1660_v23  ;;  %2048 = vst [vmem:[%s3323_s1 + $0x12] sm:$0x1] %v1666_v24  ;;  %v1678_v26 = vld [vmem:[#allocation0 + $0xa0] sm:$0x1] }
 0x11e   :  { %2049 = vst [vmem:[%s3323_s1 + $0x13] sm:$0x1] %v1672_v25  ;;  %v1684_v27 = vld [vmem:[#allocation0 + $0xa8] sm:$0x1]  ;;  %v1690_v29 = vld [vmem:[#allocation0 + $0xb0] sm:$0x1] }
 0x11f   :  { %2050 = vst [vmem:[%s3323_s1 + $0x14] sm:$0x1] %v1678_v26  ;;  %2051 = vst [vmem:[%s3323_s1 + $0x15] sm:$0x1] %v1684_v27  ;;  %v1696_v30 = vld [vmem:[#allocation0 + $0xb8] sm:$0x1] }
 0x120   :  { %2052 = vst [vmem:[%s3323_s1 + $0x16] sm:$0x1] %v1690_v29  ;;  %2053 = vst [vmem:[%s3323_s1 + $0x17] sm:$0x1] %v1696_v30 }

// kernel: unet_conv2_forward.5
= control target key start
LH: loop header
LB: loop body
LE: loop exit
PB: predicated region body
PF: predicated region fallthrough
CT: control target
= control target key end

     0   :  { %v37_v0 = vlaneseq  ;;  %v277_v2 = vmov 857870592   ;;  %v278_v4 = vmov 2003195204   ;;  %v279_v6 = vmov 1966171168   ;;  %s348_s0 = inlined_call_operand.vmem [shape: bf16[1,4096], index: 0, kind: input, shape index: {}]   ;;  %s349_s1 = inlined_call_operand.vmem [shape: f32[1,4096], index: 1, kind: input, shape index: {}]   ;;  %s350_s2 = inlined_call_operand.vmem [shape: f32[1,4096], index: 2, kind: input, shape index: {}]   ;;  %s351_s3 = inlined_call_operand.vmem [shape: f32[1,4096], index: 3, kind: output, shape index: {}]  }
   0x1   :  { %v14_v1 = vld [vmem:[%s348_s0] sm:$0xff]  ;;  %v35_v3 = vunpack.c.l.s4 %v277_v2  ;;  %v42_v5 = vunpack.c.l.s4 %v278_v4  ;;  %v203_v7 = vunpack.c.l.s4 %v279_v6  ;;  %v15_v9 = vld [vmem:[%s348_s0 + $0x8] sm:$0xff]  ;;  %v16_v13 = vld [vmem:[%s348_s0 + $0x10] sm:$0xff] }
   0x2   :  { %v38_v8 = vshrl.u32 %v37_v0, 7  ;;  %v18_v14 = vunpack.c.l.bf16 %v14_v1  ;;  %v19_v15 = vunpack.c.h.bf16 %v14_v1  ;;  %v26_v16 = vld [vmem:[%s349_s1] sm:$0xff]  ;;  %v20_v18 = vunpack.c.l.bf16 %v15_v9  ;;  %v17_v19 = vld [vmem:[%s348_s0 + $0x18] sm:$0xff]  ;;  %v27_v23 = vld [vmem:[%s349_s1 + $0x8] sm:$0xff] }
   0x3   :  { %v36_v10 = vunpack.c.0.s8 %v35_v3  ;;  %v43_v11 = vunpack.c.0.s8 %v42_v5  ;;  %v204_v12 = vunpack.c.0.s8 %v203_v7  ;;  %v106_v17 = vld [vmem:[%s350_s2] sm:$0xff]  ;;  %v21_v22 = vunpack.c.h.bf16 %v15_v9  ;;  %v107_v24 = vld [vmem:[%s350_s2 + $0x8] sm:$0xff]  ;;  %v28_v28 = vld [vmem:[%s349_s1 + $0x10] sm:$0xff] }
   0x4   :  { %v22_v25 = vunpack.c.l.bf16 %v16_v13  ;;  %v23_v27 = vunpack.c.h.bf16 %v16_v13  ;;  %v24_v29 = vunpack.c.l.bf16 %v17_v19  ;;  %v25_v30 = vunpack.c.h.bf16 %v17_v19  ;;  %v108_v35 = vld [vmem:[%s350_s2 + $0x10] sm:$0xff]  ;;  %v29_v44 = vld [vmem:[%s349_s1 + $0x18] sm:$0xff] }
   0x5   :  { %v39_v20 = vsub.s32 %v36_v10, %v38_v8  ;;  %v46_v21 = vsub.s32 %v43_v11, %v38_v8  ;;  %v207_v26 = vsub.s32 %v204_v12, %v38_v8  ;;  %v109_v61 = vld [vmem:[%s350_s2 + $0x18] sm:$0xff] }
   0x7   :  { %v40_v31 = vrot.slane %v26_v16, %v39_v20  ;;  %v47_v32 = vrot.slane %v26_v16, %v46_v21  ;;  %v120_v33 = vrot.slane %v106_v17, %v39_v20  ;;  %v127_v34 = vrot.slane %v106_v17, %v46_v21 }
   0x8   :  { %v54_v36 = vrot.slane %v27_v23, %v39_v20  ;;  %v61_v37 = vrot.slane %v27_v23, %v46_v21  ;;  %v134_v38 = vrot.slane %v107_v24, %v39_v20  ;;  %v141_v39 = vrot.slane %v107_v24, %v46_v21 }
   0x9   :  { %v98_v40 = vmul.f32 %v40_v31, %v18_v14  ;;  %v99_v41 = vmul.f32 %v47_v32, %v19_v15  ;;  %v68_v42 = vrot.slane %v28_v28, %v39_v20  ;;  %v75_v43 = vrot.slane %v28_v28, %v46_v21 }
   0xa   :  { %v100_v45 = vmul.f32 %v54_v36, %v20_v18  ;;  %v101_v46 = vmul.f32 %v61_v37, %v21_v22  ;;  %v148_v47 = vrot.slane %v108_v35, %v39_v20  ;;  %v155_v48 = vrot.slane %v108_v35, %v46_v21 }
   0xb   :  { %v178_v49 = vadd.f32 %v120_v33, %v98_v40  ;;  %v179_v50 = vadd.f32 %v127_v34, %v99_v41  ;;  %v102_v51 = vmul.f32 %v68_v42, %v22_v25  ;;  %v103_v52 = vmul.f32 %v75_v43, %v23_v27 }
   0xc   :  { %v180_v53 = vadd.f32 %v134_v38, %v100_v45  ;;  %v181_v54 = vadd.f32 %v141_v39, %v101_v46  ;;  %v82_v55 = vrot.slane %v29_v44, %v39_v20  ;;  %v89_v56 = vrot.slane %v29_v44, %v46_v21 }
   0xd   :  { %v186_v57 = vmax.f32 %v178_v49, 0.0  ;;  %v187_v58 = vmax.f32 %v179_v50, 0.0  ;;  %v182_v59 = vadd.f32 %v148_v47, %v102_v51  ;;  %v183_v60 = vadd.f32 %v155_v48, %v103_v52 }
   0xe   :  { %v188_v62 = vmax.f32 %v180_v53, 0.0  ;;  %v189_v63 = vmax.f32 %v181_v54, 0.0  ;;  %v104_v0 = vmul.f32 %v82_v55, %v24_v29  ;;  %v105_v1 = vmul.f32 %v89_v56, %v25_v30 }
   0xf   :  { %v208_v2 = vrot.slane %v186_v57, %v207_v26  ;;  %v215_v3 = vrot.slane %v187_v58, %v207_v26  ;;  %v190_v4 = vmax.f32 %v182_v59, 0.0  ;;  %v191_v5 = vmax.f32 %v183_v60, 0.0 }
  0x10   :  { %v223_v6 = vrot.slane %v188_v62, %v207_v26  ;;  %v230_v7 = vrot.slane %v189_v63, %v207_v26  ;;  %v162_v8 = vrot.slane %v109_v61, %v39_v20  ;;  %v169_v9 = vrot.slane %v109_v61, %v46_v21 }
  0x11   :  { %v216_v10 = vcombine.low %v208_v2, %v215_v3  ;;  %v238_v11 = vrot.slane %v190_v4, %v207_v26  ;;  %v245_v12 = vrot.slane %v191_v5, %v207_v26 }
  0x12   :  { %v231_v13 = vcombine.low %v223_v6, %v230_v7  ;;  %v184_v14 = vadd.f32 %v162_v8, %v104_v0  ;;  %v185_v15 = vadd.f32 %v169_v9, %v105_v1 }
  0x13   :  { %266 = vst [vmem:[%s351_s3] sm:$0xff] %v216_v10  ;;  %v246_v16 = vcombine.low %v238_v11, %v245_v12 }
  0x14   :  { %267 = vst [vmem:[%s351_s3 + $0x8] sm:$0xff] %v231_v13  ;;  %v192_v17 = vmax.f32 %v184_v14, 0.0  ;;  %v193_v18 = vmax.f32 %v185_v15, 0.0 }
  0x15   :  { %268 = vst [vmem:[%s351_s3 + $0x10] sm:$0xff] %v246_v16 }
  0x16   :  { %v253_v19 = vrot.slane %v192_v17, %v207_v26  ;;  %v260_v20 = vrot.slane %v193_v18, %v207_v26 }
  0x18   :  { %v261_v21 = vcombine.low %v253_v19, %v260_v20 }
  0x1a   :  { %269 = vst [vmem:[%s351_s3 + $0x18] sm:$0xff] %v261_v21 }

// kernel: unet_conv2_forward.3
= control target key start
LH: loop header
LB: loop body
LE: loop exit
PB: predicated region body
PF: predicated region fallthrough
CT: control target
= control target key end

     0   :  { %s6772_s12 = smov 0   ;;  %s8908_s0 = inlined_call_operand.vmem [shape: bf16[2,18,18,4], index: 0, kind: input, shape index: {}]   ;;  %s8909_s1 = inlined_call_operand.vmem [shape: bf16[9,4,8], index: 1, kind: input, shape index: {}]   ;;  %s8910_s2 = inlined_call_operand.vmem [shape: bf16[2,256,8], index: 2, kind: output, shape index: {0}]   ;;  %s8911_s3 = inlined_call_operand.vmem [shape: f32[2,2,8], index: 3, kind: output, shape index: {1}]  }
   0x1 LB: > { %s5164_s13 = sadd.s32 4294967295, %s6749_s12   ;;  %p5168_p0 = scmp.ge.s32.totalorder %s6749_s12, 1  ;;  %s6749_s12 = sphi %s6772_s12, %s14_s12  }
   0x2   : > { %p140_p1 = scmp.lt.s32.totalorder %s6749_s12, 3 }
   0x4   : > { %p141_p2 = pnand %p5168_p0, %p140_p1 }
   0x6   : > { %144 = sbr.rel (%p141_p2) target bundleno = 893 (0x37d), region = 28 }
   0xd   : > { %v5173_v0 = vld [vmem:[%s8909_s1 + $0x2] sm:$0x3]  ;;  %vm718_vm0 = vcmask 1041408   ;;  %v5400_v1 = vld [vmem:[%s8909_s1 + $0x8] sm:$0x3]  ;;  %p168_p3 = scmp.lt.s32.totalorder %s5164_s13, 1 }
   0xe   : > { %6625 = vmatprep.subr.msk.bf16.mxu1 %vm718_vm0, %v5173_v0  ;;  %6629 = vmatprep.subr.msk.bf16.mxu0 %vm718_vm0, %v5400_v1  ;;  %v720_v2 = vsel %vm718_vm0, %v5173_v0, 0  ;;  %v2522_v3 = vsel %vm718_vm0, %v5400_v1, 0  ;;  %v6795_v4 = vld [vmem:[%s8909_s1 + $0xa] sm:$0x3]  ;;  %vm232_vm1 = vsmask.f32 3328 }
   0xf   : > { %6000 = vmatpush3.bf16.msra.mxu1 %v720_v2  ;;  %6136 = vmatpush3.bf16.msra.mxu0 %v2522_v3  ;;  %s9011_s13 = smov (!%p168_p3, %s5164_s13), 1  ;;  %vm233_vm2 = vsmask.f32 7440  ;;  %v8931_v29 = vmov 0  ;;  %vm669_vm4 = vcmask 31744   ;;  %v6844_v60 = vsel %vm718_vm0, %v6795_v4, 0 }
  0x10   : > { %6630 = vmatprep.subr.msk.bf16.mxu0 %vm718_vm0, %v6795_v4  ;;  %s6634_s20 = smul.u32 216, %s9011_s13  ;;  %vm6821_vm3 = vmor %vm232_vm1, %vm233_vm2  ;;  %vm1223_vm5 = vcmask 1042432   ;;  %vm1224_vm6 = vcmask 1046532   ;;  %s5743_s9 = sshll.u32 %s9011_s13, 7  ;;  %vm4870_vm8 = vcmask 60416   ;;  %vm4973_vm9 = vcmask 57344  }
  0x11   : > { %v8932_v29 = vsel %vm6821_vm3, 4294967295, %v8931_v29  ;;  %vm7230_vm7 = vmor %vm1223_vm5, %vm1224_vm6  ;;  %s8566_s14 = scalar_lea.vmem %s8910_s2, %s5743_s9  ;;  %s5172_s15 = sshll.u32 %s9011_s13, 1 }
  0x12   : > { %s6803_s23 = scalar_lea.vmem %s8908_s0, %s6634_s20  ;;  %8933 = vst [vmem:[#allocation2_spill] sm:$0xff] %v8932_v29  ;;  %s181_s18 = scalar_lea.vmem %s8911_s3, %s5172_s15 }
  0x13   : > { %v183_v5 = vld [vmem:[%s6803_s23] sm:$0xf]  ;;  %v184_v6 = vld [vmem:[%s6803_s23 + $0x4] sm:$0xf]  ;;  %v216_v7 = vld [vmem:[%s6803_s23 + $0x8] sm:$0x1] }
  0x14   : > { %v236_v8 = vshrl.u32 %v183_v5, 16  ;;  %v239_v9 = vshll.u32 %v183_v5, 16  ;;  %v245_v10 = vshll.u32 %v184_v6, 16  ;;  %v249_v11 = vshrl.u32 %v184_v6, 16  ;;  %v5352_v12 = vld [vmem:[%s6803_s23 + $0xc] sm:$0xf] }
  0x15   : > { %v255_v13 = vshll.u32 %v216_v7, 16  ;;  %v6810_v14 = vld [vmem:[%s6803_s23 + $0x10] sm:$0xf]  ;;  %v6813_v15 = vld [vmem:[%s6803_s23 + $0x14] sm:$0x1]  ;;  %v2040_v21 = vshrl.u32 %v5352_v12, 16 }
  0x16   : > { %v238_v16 = vrot.slane %v236_v8, 4  ;;  %v241_v17 = vrot.slane %v239_v9, 5  ;;  %v247_v18 = vrot.slane %v245_v10, 5  ;;  %v251_v19 = vrot.slane %v249_v11, 4  ;;  %v185_v28 = vld [vmem:[%s6803_s23 + $0xc] sm:$0xf] }
  0x17   : > { %v257_v20 = vrot.slane %v255_v13, 5  ;;  %v2043_v22 = vshll.u32 %v5352_v12, 16  ;;  %v2049_v23 = vshll.u32 %v6810_v14, 16  ;;  %v2053_v26 = vshrl.u32 %v6810_v14, 16  ;;  %v186_v33 = vld [vmem:[%s6803_s23 + $0x10] sm:$0xf] }
  0x18   : > { %v242_v24 = vor.u32 %v241_v17, %v238_v16  ;;  %v252_v25 = vor.u32 %v251_v19, %v247_v18  ;;  %v2059_v27 = vshll.u32 %v6813_v15, 16  ;;  %v2042_v30 = vrot.slane %v2040_v21, 4  ;;  %v217_v39 = vld [vmem:[%s6803_s23 + $0x14] sm:$0x1]  ;;  %v5355_v50 = vld [vmem:[%s6803_s23 + $0x18] sm:$0xf] }
  0x19   : > { %v2045_v31 = vrot.slane %v2043_v22, 5  ;;  %v2051_v32 = vrot.slane %v2049_v23, 5  ;;  %v2055_v36 = vrot.slane %v2053_v26, 4  ;;  %v260_v40 = vshrl.u32 %v185_v28, 16  ;;  %v6833_v55 = vld [vmem:[%s6803_s23 + $0x1c] sm:$0xf] }
  0x1a   : > { %v243_v34 = vrot.slane %v242_v24, 4  ;;  %v253_v35 = vrot.slane %v252_v25, 4  ;;  %v2061_v38 = vrot.slane %v2059_v27, 5  ;;  %v263_v41 = vshll.u32 %v185_v28, 16  ;;  %v6840_v59 = vld [vmem:[%s6803_s23 + $0x20] sm:$0x1] }
  0x1b   : > { %v2046_v37 = vor.u32 %v2045_v31, %v2042_v30  ;;  %v2056_v44 = vor.u32 %v2055_v36, %v2051_v32  ;;  %v269_v45 = vshll.u32 %v186_v33, 16  ;;  %v262_v48 = vrot.slane %v260_v40, 4  ;;  %v187_v9 = vld [vmem:[%s6803_s23 + $0x18] sm:$0xf]  ;;  %v188_v16 = vld [vmem:[%s6803_s23 + $0x1c] sm:$0xf] }
  0x1c   : > { %v248_v42 = vsel %vm6821_vm3, %v243_v34, %v247_v18  ;;  %v258_v43 = vsel %vm6821_vm3, %v253_v35, %v257_v20  ;;  %v265_v49 = vrot.slane %v263_v41, 5  ;;  %v273_v53 = vshrl.u32 %v186_v33, 16  ;;  %v218_v23 = vld [vmem:[%s6803_s23 + $0x20] sm:$0x1]  ;;  %v5358_v31 = vld [vmem:[%s6803_s23 + $0x24] sm:$0xf] }
  0x1d   : > { %v5174_v46 = vcombine.low %v248_v42, %v258_v43  ;;  %v2047_v47 = vrot.slane %v2046_v37, 4  ;;  %v2057_v51 = vrot.slane %v2056_v44, 4  ;;  %v271_v52 = vrot.slane %v269_v45, 5  ;;  %v5359_v36 = vld [vmem:[%s6803_s23 + $0x28] sm:$0xf] }
  0x1e   : > { %v279_v54 = vshll.u32 %v217_v39, 16  ;;  %v2783_v57 = vrot.slane %v6810_v14, 5  ;;  %v266_v58 = vor.u32 %v265_v49, %v262_v48  ;;  %v275_v62 = vrot.slane %v273_v53, 4  ;;  %v5360_v43 = vld [vmem:[%s6803_s23 + $0x2c] sm:$0x1] }
  0x1f   : > { %6001 = vmatprep.mubr.msk.bf16.mxu1 %vm669_vm4, %v5174_v46  ;;  %v2052_v56 = vsel %vm6821_vm3, %v2047_v47, %v2051_v32  ;;  %v2062_v61 = vsel %vm6821_vm3, %v2057_v51, %v2061_v38  ;;  %v2064_v0 = vshrl.u32 %v5355_v50, 16  ;;  %v2067_v3 = vshll.u32 %v5355_v50, 16  ;;  %v189_v50 = vld [vmem:[%s6803_s23 + $0x24] sm:$0xf] }
  0x20   : > { %v281_v63 = vrot.slane %v279_v54, 5  ;;  %v5401_v1 = vcombine.low %v2052_v56, %v2062_v61  ;;  %v267_v2 = vrot.slane %v266_v58, 4  ;;  %v2073_v5 = vshll.u32 %v6833_v55, 16  ;;  %v190_v56 = vld [vmem:[%s6803_s23 + $0x28] sm:$0xf] }
  0x21   : > { %v276_v6 = vor.u32 %v275_v62, %v271_v52  ;;  %v2066_v7 = vrot.slane %v2064_v0, 4  ;;  %v2077_v8 = vshrl.u32 %v6833_v55, 16  ;;  %v2083_v4 = vshll.u32 %v6840_v59, 16 }
  0x22   : > { %6137 = vmatprep.mubr.msk.bf16.mxu0 %vm669_vm4, %v5401_v1  ;;  %v272_v11 = vsel %vm6821_vm3, %v267_v2, %v271_v52  ;;  %v2069_v12 = vrot.slane %v2067_v3, 5  ;;  %v2075_v13 = vrot.slane %v2073_v5, 5  ;;  %v2790_v20 = vrot.slane %v6833_v55, 5  ;;  %v219_v2 = vld [vmem:[%s6803_s23 + $0x2c] sm:$0x1] }
  0x23   : > { %v277_v17 = vrot.slane %v276_v6, 4  ;;  %v2079_v18 = vrot.slane %v2077_v8, 4  ;;  %v2085_v19 = vrot.slane %v2083_v4, 5  ;;  %v284_v24 = vshrl.u32 %v187_v9, 16 }
  0x24   : > { %v2070_v21 = vor.u32 %v2069_v12, %v2066_v7  ;;  %v287_v25 = vshll.u32 %v187_v9, 16  ;;  %v293_v28 = vshll.u32 %v188_v16, 16  ;;  %v297_v30 = vshrl.u32 %v188_v16, 16  ;;  %v5361_v9 = vld [vmem:[%s6803_s23 + $0x30] sm:$0xf] }
  0x25   : > { %v282_v26 = vsel %vm6821_vm3, %v277_v17, %v281_v63  ;;  %v2080_v27 = vor.u32 %v2079_v18, %v2075_v13  ;;  %v286_v34 = vrot.slane %v284_v24, 4  ;;  %v303_v40 = vshll.u32 %v218_v23, 16  ;;  %v5362_v17 = vld [vmem:[%s6803_s23 + $0x34] sm:$0xf] }
  0x26   : > { %v5175_v32 = vcombine.low %v272_v11, %v282_v26  ;;  %v2071_v33 = vrot.slane %v2070_v21, 4  ;;  %v289_v35 = vrot.slane %v287_v25, 5  ;;  %v295_v38 = vrot.slane %v293_v28, 5  ;;  %v5363_v26 = vld [vmem:[%s6803_s23 + $0x38] sm:$0x1] }
  0x27   : > { %v2081_v37 = vrot.slane %v2080_v27, 4  ;;  %v299_v39 = vrot.slane %v297_v30, 4  ;;  %v2088_v44 = vshrl.u32 %v5358_v31, 16  ;;  %v2091_v45 = vshll.u32 %v5358_v31, 16 }
  0x28   : > { %6002 = vmatmul.mubr.msk.bf16.vlgmr.msra.gmra.mrb[0].mxu1 %vm669_vm4, %v5175_v32  ;;  %v2076_v41 = vsel %vm6821_vm3, %v2071_v33, %v2075_v13  ;;  %v290_v42 = vor.u32 %v289_v35, %v286_v34  ;;  %v305_v48 = vrot.slane %v303_v40, 5  ;;  %v2097_v49 = vshll.u32 %v5359_v36, 16 }
  0x29   : > { %v2086_v46 = vsel %vm6821_vm3, %v2081_v37, %v2085_v19  ;;  %v300_v47 = vor.u32 %v299_v39, %v295_v38  ;;  %v2090_v53 = vrot.slane %v2088_v44, 4  ;;  %v2093_v54 = vrot.slane %v2091_v45, 5  ;;  %v191_v37 = vld [vmem:[%s6803_s23 + $0x30] sm:$0xf] }
  0x2a   : > { %v5402_v51 = vcombine.low %v2076_v41, %v2086_v46  ;;  %v291_v52 = vrot.slane %v290_v42, 4  ;;  %v2099_v61 = vrot.slane %v2097_v49, 5  ;;  %v2101_v62 = vshrl.u32 %v5359_v36, 16  ;;  %v192_v42 = vld [vmem:[%s6803_s23 + $0x34] sm:$0xf] }
  0x2b   : > { %v301_v58 = vrot.slane %v300_v47, 4  ;;  %v2107_v63 = vshll.u32 %v5360_v43, 16  ;;  %v2094_v1 = vor.u32 %v2093_v54, %v2090_v53  ;;  %v308_v3 = vshrl.u32 %v189_v50, 16  ;;  %v220_v47 = vld [vmem:[%s6803_s23 + $0x38] sm:$0x1] }
  0x2c   : > { %6138 = vmatmul.mubr.msk.bf16.vlgmr.msra.gmra.mrb[0].mxu0 %vm669_vm4, %v5402_v51  ;;  %v296_v0 = vsel %vm6821_vm3, %v291_v52, %v295_v38  ;;  %v311_v5 = vshll.u32 %v189_v50, 16  ;;  %v2103_v7 = vrot.slane %v2101_v62, 4  ;;  %v317_v4 = vshll.u32 %v190_v56, 16 }
  0x2d   : > { %v306_v6 = vsel %vm6821_vm3, %v301_v58, %v305_v48  ;;  %v2109_v8 = vrot.slane %v2107_v63, 5  ;;  %6170 = vmatpush3.bf16.msra.mxu0 %v6844_v60  ;;  %v2095_v12 = vrot.slane %v2094_v1, 4  ;;  %v310_v13 = vrot.slane %v308_v3, 4  ;;  %v5364_v58 = vld [vmem:[%s6803_s23 + $0x3c] sm:$0xf] }
  0x2e   : > { %v5176_v11 = vcombine.low %v296_v0, %v306_v6  ;;  %v313_v16 = vrot.slane %v311_v5, 5  ;;  %v2104_v18 = vor.u32 %v2103_v7, %v2099_v61  ;;  %v319_v19 = vrot.slane %v317_v4, 5  ;;  %v5365_v1 = vld [vmem:[%s6803_s23 + $0x40] sm:$0xf] }
  0x2f   : > { %v321_v21 = vshrl.u32 %v190_v56, 16  ;;  %v327_v23 = vshll.u32 %v219_v2, 16  ;;  %v2100_v24 = vsel %vm6821_vm3, %v2095_v12, %v2099_v61  ;;  %v2112_v27 = vshrl.u32 %v5361_v9, 16 }
  0x30   : > { %6005 = vmatprep.mubr.msk.bf16.mxu1 %vm669_vm4, %v5176_v11  ;;  %v314_v25 = vor.u32 %v313_v16, %v310_v13  ;;  %v2115_v60 = vshll.u32 %v5361_v9, 16  ;;  %v2105_v28 = vrot.slane %v2104_v18, 4  ;;  %v2121_v32 = vshll.u32 %v5362_v17, 16  ;;  %v5366_v9 = vld [vmem:[%s6803_s23 + $0x44] sm:$0x1] }
  0x31   : > { %v323_v30 = vrot.slane %v321_v21, 4  ;;  %v329_v31 = vrot.slane %v327_v23, 5  ;;  %v2114_v34 = vrot.slane %v2112_v27, 4  ;;  %v2125_v36 = vshrl.u32 %v5362_v17, 16  ;;  %v193_v18 = vld [vmem:[%s6803_s23 + $0x3c] sm:$0xf] }
  0x32   : > { %v315_v33 = vrot.slane %v314_v25, 4  ;;  %v2117_v35 = vrot.slane %v2115_v60, 5  ;;  %v2110_v38 = vsel %vm6821_vm3, %v2105_v28, %v2109_v8  ;;  %v2123_v40 = vrot.slane %v2121_v32, 5  ;;  %v194_v25 = vld [vmem:[%s6803_s23 + $0x40] sm:$0xf] }
  0x33   : > { %v324_v39 = vor.u32 %v323_v30, %v319_v19  ;;  %v2131_v41 = vshll.u32 %v5363_v26, 16  ;;  %v5403_v43 = vcombine.low %v2100_v24, %v2110_v38  ;;  %v2127_v46 = vrot.slane %v2125_v36, 4 }
  0x34   : > { %v320_v44 = vsel %vm6821_vm3, %v315_v33, %v319_v19  ;;  %v2118_v45 = vor.u32 %v2117_v35, %v2114_v34  ;;  %v332_v50 = vshrl.u32 %v191_v37, 16  ;;  %v335_v51 = vshll.u32 %v191_v37, 16  ;;  %v221_v37 = vld [vmem:[%s6803_s23 + $0x44] sm:$0x1] }
  0x35   : > { %v325_v48 = vrot.slane %v324_v39, 4  ;;  %v2133_v49 = vrot.slane %v2131_v41, 5  ;;  %6141 = vmatprep.mubr.msk.bf16.mxu0 %vm669_vm4, %v5403_v43  ;;  %v2128_v53 = vor.u32 %v2127_v46, %v2123_v40  ;;  %v341_v54 = vshll.u32 %v192_v42, 16  ;;  %v5367_v39 = vld [vmem:[%s6803_s23 + $0x48] sm:$0xf] }
  0x36   : > { %v2119_v52 = vrot.slane %v2118_v45, 4  ;;  %v345_v56 = vshrl.u32 %v192_v42, 16  ;;  %v334_v62 = vrot.slane %v332_v50, 4  ;;  %v337_v63 = vrot.slane %v335_v51, 5 }
  0x37   : > { %v330_v61 = vsel %vm6821_vm3, %v325_v48, %v329_v31  ;;  %v351_v0 = vshll.u32 %v220_v47, 16  ;;  %v2129_v5 = vrot.slane %v2128_v53, 4  ;;  %v343_v6 = vrot.slane %v341_v54, 5 }
  0x38   : > { %v5177_v2 = vcombine.low %v320_v44, %v330_v61  ;;  %v2124_v3 = vsel %vm6821_vm3, %v2119_v52, %v2123_v40  ;;  %v338_v7 = vor.u32 %v337_v63, %v334_v62  ;;  %v347_v8 = vrot.slane %v345_v56, 4  ;;  %v5368_v44 = vld [vmem:[%s6803_s23 + $0x4c] sm:$0xf]  ;;  %v5369_v56 = vld [vmem:[%s6803_s23 + $0x50] sm:$0x1] }
  0x39   : > { %v353_v4 = vrot.slane %v351_v0, 5  ;;  %v2136_v11 = vshrl.u32 %v5364_v58, 16  ;;  %v2134_v12 = vsel %vm6821_vm3, %v2129_v5, %v2133_v49  ;;  %v2139_v13 = vshll.u32 %v5364_v58, 16  ;;  %v195_v62 = vld [vmem:[%s6803_s23 + $0x48] sm:$0xf] }
  0x3a   : > { %6006 = vmatmul.mubr.msk.bf16.gmra.mrb[4].mxu1 %vm669_vm4, %v5177_v2  ;;  %v2145_v16 = vshll.u32 %v5365_v1, 16  ;;  %v2149_v17 = vshrl.u32 %v5365_v1, 16  ;;  %v5404_v19 = vcombine.low %v2124_v3, %v2134_v12  ;;  %v339_v21 = vrot.slane %v338_v7, 4  ;;  %v196_v3 = vld [vmem:[%s6803_s23 + $0x4c] sm:$0xf] }
  0x3b   : > { %v348_v23 = vor.u32 %v347_v8, %v343_v6  ;;  %v2138_v24 = vrot.slane %v2136_v11, 4  ;;  %v2141_v26 = vrot.slane %v2139_v13, 5  ;;  %v2155_v28 = vshll.u32 %v5366_v9, 16  ;;  %v222_v12 = vld [vmem:[%s6803_s23 + $0x50] sm:$0x1] }
  0x3c   : > { %v2147_v27 = vrot.slane %v2145_v16, 5  ;;  %v2151_v60 = vrot.slane %v2149_v17, 4  ;;  %6142 = vmatmul.mubr.msk.bf16.gmra.mrb[4].mxu0 %vm669_vm4, %v5404_v19  ;;  %v344_v30 = vsel %vm6821_vm3, %v339_v21, %v343_v6  ;;  %v356_v32 = vshrl.u32 %v193_v18, 16  ;;  %v5370_v21 = vld [vmem:[%s6803_s23 + $0x54] sm:$0xf] }
  0x3d   : > { %v349_v31 = vrot.slane %v348_v23, 4  ;;  %v359_v33 = vshll.u32 %v193_v18, 16  ;;  %v2142_v34 = vor.u32 %v2141_v26, %v2138_v24  ;;  %v2157_v36 = vrot.slane %v2155_v28, 5 }
  0x3e   : > { %v2152_v35 = vor.u32 %v2151_v60, %v2147_v27  ;;  %v365_v38 = vshll.u32 %v194_v25, 16  ;;  %v358_v41 = vrot.slane %v356_v32, 4  ;;  %v369_v43 = vshrl.u32 %v194_v25, 16 }
  0x3f   : > { %v354_v40 = vsel %vm6821_vm3, %v349_v31, %v353_v4  ;;  %v361_v42 = vrot.slane %v359_v33, 5  ;;  %v2143_v46 = vrot.slane %v2142_v34, 4  ;;  %v375_v51 = vshll.u32 %v221_v37, 16  ;;  %v5371_v31 = vld [vmem:[%s6803_s23 + $0x58] sm:$0xf] }
  0x40   : > { %v5178_v45 = vcombine.low %v344_v30, %v354_v40  ;;  %v2153_v47 = vrot.slane %v2152_v35, 4  ;;  %v367_v48 = vrot.slane %v365_v38, 5  ;;  %v371_v50 = vrot.slane %v369_v43, 4 }
  0x41   : > { %v362_v49 = vor.u32 %v361_v42, %v358_v41  ;;  %v2160_v52 = vshrl.u32 %v5367_v39, 16  ;;  %v2148_v53 = vsel %vm6821_vm3, %v2143_v46, %v2147_v27  ;;  %v2163_v58 = vshll.u32 %v5367_v39, 16  ;;  %v5372_v39 = vld [vmem:[%s6803_s23 + $0x5c] sm:$0x1] }
  0x42   : > { %6009 = vmatprep.mubr.msk.bf16.mxu1 %vm669_vm4, %v5178_v45  ;;  %v2158_v54 = vsel %vm6821_vm3, %v2153_v47, %v2157_v36  ;;  %v2169_v61 = vshll.u32 %v5368_v44, 16  ;;  %v372_v1 = vor.u32 %v371_v50, %v367_v48  ;;  %v377_v2 = vrot.slane %v375_v51, 5  ;;  %v197_v45 = vld [vmem:[%s6803_s23 + $0x54] sm:$0xf]  ;;  %v198_v50 = vld [vmem:[%s6803_s23 + $0x58] sm:$0xf] }
  0x43   : > { %v5405_v63 = vcombine.low %v2148_v53, %v2158_v54  ;;  %v363_v0 = vrot.slane %v362_v49, 4  ;;  %v2162_v5 = vrot.slane %v2160_v52, 4  ;;  %v2165_v6 = vrot.slane %v2163_v58, 5 }
  0x44   : > { %v2171_v7 = vrot.slane %v2169_v61, 5  ;;  %v2173_v8 = vshrl.u32 %v5368_v44, 16  ;;  %v373_v9 = vrot.slane %v372_v1, 4  ;;  %v2179_v11 = vshll.u32 %v5369_v56, 16 }
  0x45   : > { %6145 = vmatprep.mubr.msk.bf16.mxu0 %vm669_vm4, %v5405_v63  ;;  %v368_v4 = vsel %vm6821_vm3, %v363_v0, %v367_v48  ;;  %v380_v13 = vshrl.u32 %v195_v62, 16  ;;  %v2166_v16 = vor.u32 %v2165_v6, %v2162_v5  ;;  %v383_v18 = vshll.u32 %v195_v62, 16  ;;  %v223_v62 = vld [vmem:[%s6803_s23 + $0x5c] sm:$0x1]  ;;  %v5373_v5 = vld [vmem:[%s6803_s23 + $0x60] sm:$0xf] }
  0x46   : > { %v2175_v17 = vrot.slane %v2173_v8, 4  ;;  %v389_v19 = vshll.u32 %v196_v3, 16  ;;  %v378_v23 = vsel %vm6821_vm3, %v373_v9, %v377_v2  ;;  %v2181_v24 = vrot.slane %v2179_v11, 5  ;;  %v5374_v9 = vld [vmem:[%s6803_s23 + $0x64] sm:$0xf] }
  0x47   : > { %v382_v25 = vrot.slane %v380_v13, 4  ;;  %v393_v26 = vshrl.u32 %v196_v3, 16  ;;  %v5179_v27 = vcombine.low %v368_v4, %v378_v23  ;;  %v2167_v60 = vrot.slane %v2166_v16, 4 }
  0x48   : > { %v2176_v28 = vor.u32 %v2175_v17, %v2171_v7  ;;  %v385_v30 = vrot.slane %v383_v18, 5  ;;  %v391_v32 = vrot.slane %v389_v19, 5  ;;  %v399_v34 = vshll.u32 %v222_v12, 16  ;;  %v5375_v19 = vld [vmem:[%s6803_s23 + $0x68] sm:$0x1] }
  0x49   : > { %v395_v33 = vrot.slane %v393_v26, 4  ;;  %v2184_v35 = vshrl.u32 %v5370_v21, 16  ;;  %6010 = vmatmul.mubr.msk.bf16.gmra.mrb[8].mxu1 %vm669_vm4, %v5179_v27  ;;  %v2172_v36 = vsel %vm6821_vm3, %v2167_v60, %v2171_v7  ;;  %v2187_v40 = vshll.u32 %v5370_v21, 16  ;;  %v199_v60 = vld [vmem:[%s6803_s23 + $0x60] sm:$0xf] }
  0x4a   : > { %v2177_v37 = vrot.slane %v2176_v28, 4  ;;  %v386_v38 = vor.u32 %v385_v30, %v382_v25  ;;  %v401_v42 = vrot.slane %v399_v34, 5  ;;  %v2193_v44 = vshll.u32 %v5371_v31, 16 }
  0x4b   : > { %v396_v41 = vor.u32 %v395_v33, %v391_v32  ;;  %v2186_v43 = vrot.slane %v2184_v35, 4  ;;  %v2189_v48 = vrot.slane %v2187_v40, 5  ;;  %v2197_v49 = vshrl.u32 %v5371_v31, 16  ;;  %v200_v33 = vld [vmem:[%s6803_s23 + $0x64] sm:$0xf] }
  0x4c   : > { %v2182_v46 = vsel %vm6821_vm3, %v2177_v37, %v2181_v24  ;;  %v387_v47 = vrot.slane %v386_v38, 4  ;;  %v2195_v53 = vrot.slane %v2193_v44, 5  ;;  %v2203_v54 = vshll.u32 %v5372_v39, 16  ;;  %v224_v44 = vld [vmem:[%s6803_s23 + $0x68] sm:$0x1] }
  0x4d   : > { %v5406_v51 = vcombine.low %v2172_v36, %v2182_v46  ;;  %v397_v52 = vrot.slane %v396_v41, 4  ;;  %v2190_v58 = vor.u32 %v2189_v48, %v2186_v43  ;;  %v2199_v61 = vrot.slane %v2197_v49, 4 }
  0x4e   : > { %v392_v56 = vsel %vm6821_vm3, %v387_v47, %v391_v32  ;;  %v404_v63 = vshrl.u32 %v197_v45, 16  ;;  %v2205_v1 = vrot.slane %v2203_v54, 5  ;;  %v407_v2 = vshll.u32 %v197_v45, 16 }
  0x4f   : > { %6146 = vmatmul.mubr.msk.bf16.gmra.mrb[8].mxu0 %vm669_vm4, %v5406_v51  ;;  %v402_v0 = vsel %vm6821_vm3, %v397_v52, %v401_v42  ;;  %v413_v3 = vshll.u32 %v198_v50, 16  ;;  %v2191_v7 = vrot.slane %v2190_v58, 4  ;;  %v2200_v8 = vor.u32 %v2199_v61, %v2195_v53  ;;  %v5376_v51 = vld [vmem:[%s6803_s23 + $0x6c] sm:$0xf]  ;;  %v6961_v58 = vld [vmem:[%s6803_s23 + $0x70] sm:$0xf] }
  0x50   : > { %v5180_v6 = vcombine.low %v392_v56, %v402_v0  ;;  %v406_v4 = vrot.slane %v404_v63, 4  ;;  %v409_v11 = vrot.slane %v407_v2, 5  ;;  %v417_v13 = vshrl.u32 %v198_v50, 16 }
  0x51   : > { %v415_v12 = vrot.slane %v413_v3, 5  ;;  %v423_v16 = vshll.u32 %v223_v62, 16  ;;  %v2196_v17 = vsel %vm6821_vm3, %v2191_v7, %v2195_v53  ;;  %v2201_v18 = vrot.slane %v2200_v8, 4 }
  0x52   : > { %6013 = vmatprep.mubr.msk.bf16.mxu1 %vm669_vm4, %v5180_v6  ;;  %v2208_v21 = vshrl.u32 %v5373_v5, 16  ;;  %v2211_v23 = vshll.u32 %v5373_v5, 16  ;;  %v410_v24 = vor.u32 %v409_v11, %v406_v4  ;;  %v419_v25 = vrot.slane %v417_v13, 4  ;;  %v6971_v5 = vld [vmem:[%s6803_s23 + $0x74] sm:$0x1] }
  0x53   : > { %v425_v26 = vrot.slane %v423_v16, 5  ;;  %v2217_v27 = vshll.u32 %v5374_v9, 16  ;;  %v2206_v28 = vsel %vm6821_vm3, %v2201_v18, %v2205_v1  ;;  %v2221_v32 = vshrl.u32 %v5374_v9, 16  ;;  %v6968_v1 = vld [vmem:[%s8909_s1] sm:$0x3] }
  0x54   : > { %v2210_v30 = vrot.slane %v2208_v21, 4  ;;  %v2213_v31 = vrot.slane %v2211_v23, 5  ;;  %v5407_v34 = vcombine.low %v2196_v17, %v2206_v28  ;;  %v411_v35 = vrot.slane %v410_v24, 4  ;;  %6626 = vmatprep.subr.msk.bf16.mxu1 %vm718_vm0, %v6968_v1 }
  0x55   : > { %v420_v36 = vor.u32 %v419_v25, %v415_v12  ;;  %v2219_v37 = vrot.slane %v2217_v27, 5  ;;  %v2223_v39 = vrot.slane %v2221_v32, 4  ;;  %v2227_v40 = vshll.u32 %v5375_v19, 16  ;;  %v202_v19 = vld [vmem:[%s6803_s23 + $0x70] sm:$0xf] }
  0x56   : > { %v2214_v38 = vor.u32 %v2213_v31, %v2210_v30  ;;  %v428_v41 = vshrl.u32 %v199_v60, 16  ;;  %6149 = vmatprep.mubr.msk.bf16.mxu0 %vm669_vm4, %v5407_v34  ;;  %v416_v42 = vsel %vm6821_vm3, %v411_v35, %v415_v12  ;;  %v431_v45 = vshll.u32 %v199_v60, 16  ;;  %v201_v12 = vld [vmem:[%s6803_s23 + $0x6c] sm:$0xf]  ;;  %v5379_v35 = vld [vmem:[%s6803_s23 + $0x78] sm:$0xf] }
  0x57   : > { %v421_v43 = vrot.slane %v420_v36, 4  ;;  %v437_v46 = vshll.u32 %v200_v33, 16  ;;  %v2224_v48 = vor.u32 %v2223_v39, %v2219_v37  ;;  %v2229_v49 = vrot.slane %v2227_v40, 5  ;;  %v6991_v40 = vld [vmem:[%s6803_s23 + $0x7c] sm:$0xf] }
  0x58   : > { %v2215_v47 = vrot.slane %v2214_v38, 4  ;;  %v430_v50 = vrot.slane %v428_v41, 4  ;;  %v433_v53 = vrot.slane %v431_v45, 5  ;;  %v441_v56 = vshrl.u32 %v200_v33, 16  ;;  %v225_v33 = vld [vmem:[%s6803_s23 + $0x74] sm:$0x1] }
  0x59   : > { %v426_v52 = vsel %vm6821_vm3, %v421_v43, %v425_v26  ;;  %v439_v54 = vrot.slane %v437_v46, 5  ;;  %v2225_v63 = vrot.slane %v2224_v48, 4  ;;  %v447_v0 = vshll.u32 %v224_v44, 16  ;;  %v6996_v45 = vld [vmem:[%s8909_s1 + $0xc] sm:$0x3] }
  0x5a   : > { %v5181_v61 = vcombine.low %v416_v42, %v426_v52  ;;  %v2220_v62 = vsel %vm6821_vm3, %v2215_v47, %v2219_v37  ;;  %v434_v2 = vor.u32 %v433_v53, %v430_v50  ;;  %v443_v3 = vrot.slane %v441_v56, 4  ;;  %6631 = vmatprep.subr.msk.bf16.mxu0 %vm718_vm0, %v6996_v45  ;;  %v7006_v52 = vld [vmem:[%s6803_s23 + $0x80] sm:$0x1]  ;;  %v7010_v56 = vld [vmem:[%s6803_s23 + $0x78] sm:$0xf] }
  0x5b   : > { %v2232_v6 = vshrl.u32 %v5376_v51, 16  ;;  %v2235_v7 = vshll.u32 %v5376_v51, 16  ;;  %v2230_v8 = vsel %vm6821_vm3, %v2225_v63, %v2229_v49  ;;  %v449_v4 = vrot.slane %v447_v0, 5 }
  0x5c   : > { %6014 = vmatmul.mubr.msk.bf16.gmra.mrb[12].mxu1 %vm669_vm4, %v5181_v61  ;;  %v2241_v9 = vshll.u32 %v6961_v58, 16  ;;  %v2245_v11 = vshrl.u32 %v6961_v58, 16  ;;  %v5408_v13 = vcombine.low %v2220_v62, %v2230_v8  ;;  %v435_v16 = vrot.slane %v434_v2, 4  ;;  %v7013_v2 = vld [vmem:[%s6803_s23 + $0x7c] sm:$0xf] }
  0x5d   : > { %v444_v17 = vor.u32 %v443_v3, %v439_v54  ;;  %v2234_v18 = vrot.slane %v2232_v6, 4  ;;  %v2237_v21 = vrot.slane %v2235_v7, 5  ;;  %v2251_v25 = vshll.u32 %v6971_v5, 16 }
  0x5e   : > { %v2243_v23 = vrot.slane %v2241_v9, 5  ;;  %v2247_v24 = vrot.slane %v2245_v11, 4  ;;  %6150 = vmatmul.mubr.msk.bf16.gmra.mrb[12].mxu0 %vm669_vm4, %v5408_v13  ;;  %v440_v26 = vsel %vm6821_vm3, %v435_v16, %v439_v54  ;;  %v452_v60 = vshrl.u32 %v201_v12, 16 }
  0x5f   : > { %v445_v27 = vrot.slane %v444_v17, 4  ;;  %v455_v28 = vshll.u32 %v201_v12, 16  ;;  %v2238_v30 = vor.u32 %v2237_v21, %v2234_v18  ;;  %v2253_v32 = vrot.slane %v2251_v25, 5  ;;  %v226_v12 = vld [vmem:[%s6803_s23 + $0x80] sm:$0x1] }
  0x60   : > { %v2248_v31 = vor.u32 %v2247_v24, %v2243_v23  ;;  %v461_v34 = vshll.u32 %v202_v19, 16  ;;  %v454_v37 = vrot.slane %v452_v60, 4  ;;  %v465_v39 = vshrl.u32 %v202_v19, 16  ;;  %v5382_v21 = vld [vmem:[%s6803_s23 + $0x84] sm:$0xf] }
  0x61   : > { %v450_v36 = vsel %vm6821_vm3, %v445_v27, %v449_v4  ;;  %v457_v38 = vrot.slane %v455_v28, 5  ;;  %v2239_v42 = vrot.slane %v2238_v30, 4  ;;  %v471_v48 = vshll.u32 %v225_v33, 16  ;;  %v7029_v27 = vld [vmem:[%s6803_s23 + $0x88] sm:$0xf] }
  0x62   : > { %v5182_v41 = vcombine.low %v440_v26, %v450_v36  ;;  %v2249_v43 = vrot.slane %v2248_v31, 4  ;;  %v463_v44 = vrot.slane %v461_v34, 5  ;;  %v467_v47 = vrot.slane %v465_v39, 4 }
  0x63   : > { %v458_v46 = vor.u32 %v457_v38, %v454_v37  ;;  %v2256_v49 = vshrl.u32 %v5379_v35, 16  ;;  %v2244_v50 = vsel %vm6821_vm3, %v2239_v42, %v2243_v23  ;;  %v2259_v53 = vshll.u32 %v5379_v35, 16  ;;  %v7035_v37 = vld [vmem:[%s6803_s23 + $0x84] sm:$0xf] }
  0x64   : > { %6017 = vmatprep.mubr.msk.bf16.mxu1 %vm669_vm4, %v5182_v41  ;;  %v2254_v51 = vsel %vm6821_vm3, %v2249_v43, %v2253_v32  ;;  %v2265_v54 = vshll.u32 %v6991_v40, 16  ;;  %v468_v63 = vor.u32 %v467_v47, %v463_v44  ;;  %v473_v0 = vrot.slane %v471_v48, 5  ;;  %v7032_v32 = vld [vmem:[%s6803_s23 + $0x8c] sm:$0x1]  ;;  %v7042_v48 = vld [vmem:[%s6803_s23 + $0x88] sm:$0xf] }
  0x65   : > { %v5409_v61 = vcombine.low %v2244_v50, %v2254_v51  ;;  %v459_v62 = vrot.slane %v458_v46, 4  ;;  %v2258_v3 = vrot.slane %v2256_v49, 4  ;;  %v2261_v6 = vrot.slane %v2259_v53, 5 }
  0x66   : > { %v2267_v7 = vrot.slane %v2265_v54, 5  ;;  %v2269_v8 = vshrl.u32 %v6991_v40, 16  ;;  %v469_v9 = vrot.slane %v468_v63, 4  ;;  %v2275_v11 = vshll.u32 %v7006_v52, 16  ;;  %v227_v54 = vld [vmem:[%s6803_s23 + $0x8c] sm:$0x1] }
  0x67   : > { %6153 = vmatprep.mubr.msk.bf16.mxu0 %vm669_vm4, %v5409_v61  ;;  %v464_v4 = vsel %vm6821_vm3, %v459_v62, %v463_v44  ;;  %v476_v13 = vshrl.u32 %v7010_v56, 16  ;;  %v2262_v16 = vor.u32 %v2261_v6, %v2258_v3  ;;  %v479_v18 = vshll.u32 %v7010_v56, 16  ;;  %v5385_v3 = vld [vmem:[%s6803_s23 + $0x90] sm:$0xf] }
  0x68   : > { %v2271_v17 = vrot.slane %v2269_v8, 4  ;;  %v485_v19 = vshll.u32 %v7013_v2, 16  ;;  %v474_v23 = vsel %vm6821_vm3, %v469_v9, %v473_v0  ;;  %v2277_v24 = vrot.slane %v2275_v11, 5  ;;  %v7054_v9 = vld [vmem:[%s6803_s23 + $0x94] sm:$0xf] }
  0x69   : > { %v478_v25 = vrot.slane %v476_v13, 4  ;;  %v489_v26 = vshrl.u32 %v7013_v2, 16  ;;  %v5183_v60 = vcombine.low %v464_v4, %v474_v23  ;;  %v2263_v28 = vrot.slane %v2262_v16, 4 }
  0x6a   : > { %v2272_v30 = vor.u32 %v2271_v17, %v2267_v7  ;;  %v481_v31 = vrot.slane %v479_v18, 5  ;;  %v487_v33 = vrot.slane %v485_v19, 5  ;;  %v495_v35 = vshll.u32 %v226_v12, 16 }
  0x6b   : > { %v491_v34 = vrot.slane %v489_v26, 4  ;;  %v2280_v36 = vshrl.u32 %v5382_v21, 16  ;;  %6018 = vmatmul.mubr.msk.bf16.gmra.mrb[16].mxu1 %vm669_vm4, %v5183_v60  ;;  %v2268_v38 = vsel %vm6821_vm3, %v2263_v28, %v2267_v7  ;;  %v2283_v42 = vshll.u32 %v5382_v21, 16  ;;  %v7063_v60 = vld [vmem:[%s6803_s23 + $0x98] sm:$0x1] }
  0x6c   : > { %v2273_v39 = vrot.slane %v2272_v30, 4  ;;  %v482_v41 = vor.u32 %v481_v31, %v478_v25  ;;  %v497_v44 = vrot.slane %v495_v35, 5  ;;  %v2289_v47 = vshll.u32 %v7029_v27, 16  ;;  %v7066_v28 = vld [vmem:[%s6803_s23 + $0x90] sm:$0xf] }
  0x6d   : > { %v492_v43 = vor.u32 %v491_v34, %v487_v33  ;;  %v2282_v46 = vrot.slane %v2280_v36, 4  ;;  %v2285_v51 = vrot.slane %v2283_v42, 5  ;;  %v2293_v53 = vshrl.u32 %v7029_v27, 16  ;;  %v7072_v35 = vld [vmem:[%s6803_s23 + $0x94] sm:$0xf] }
  0x6e   : > { %v2278_v49 = vsel %vm6821_vm3, %v2273_v39, %v2277_v24  ;;  %v483_v50 = vrot.slane %v482_v41, 4  ;;  %v2291_v63 = vrot.slane %v2289_v47, 5  ;;  %v2299_v0 = vshll.u32 %v7032_v32, 16 }
  0x6f   : > { %v5410_v61 = vcombine.low %v2268_v38, %v2278_v49  ;;  %v493_v62 = vrot.slane %v492_v43, 4  ;;  %v2286_v7 = vor.u32 %v2285_v51, %v2282_v46  ;;  %v2295_v8 = vrot.slane %v2293_v53, 4  ;;  %v228_v53 = vld [vmem:[%s6803_s23 + $0x98] sm:$0x1] }
  0x70   : > { %v488_v6 = vsel %vm6821_vm3, %v483_v50, %v487_v33  ;;  %v500_v4 = vshrl.u32 %v7035_v37, 16  ;;  %v2301_v12 = vrot.slane %v2299_v0, 5  ;;  %v503_v13 = vshll.u32 %v7035_v37, 16  ;;  %v5388_v0 = vld [vmem:[%s6803_s23 + $0x9c] sm:$0xf] }
  0x71   : > { %6154 = vmatmul.mubr.msk.bf16.gmra.mrb[16].mxu0 %vm669_vm4, %v5410_v61  ;;  %v498_v11 = vsel %vm6821_vm3, %v493_v62, %v497_v44  ;;  %v509_v16 = vshll.u32 %v7042_v48, 16  ;;  %v2287_v18 = vrot.slane %v2286_v7, 4  ;;  %v2296_v19 = vor.u32 %v2295_v8, %v2291_v63 }
  0x72   : > { %v5184_v17 = vcombine.low %v488_v6, %v498_v11  ;;  %v502_v21 = vrot.slane %v500_v4, 4  ;;  %v505_v23 = vrot.slane %v503_v13, 5  ;;  %v513_v25 = vshrl.u32 %v7042_v48, 16  ;;  %v7088_v4 = vld [vmem:[%s6803_s23 + $0xa0] sm:$0xf] }
  0x73   : > { %v511_v24 = vrot.slane %v509_v16, 5  ;;  %v519_v26 = vshll.u32 %v227_v54, 16  ;;  %v2292_v30 = vsel %vm6821_vm3, %v2287_v18, %v2291_v63  ;;  %v2297_v31 = vrot.slane %v2296_v19, 4 }
  0x74   : > { %6021 = vmatprep.mubr.msk.bf16.mxu1 %vm669_vm4, %v5184_v17  ;;  %v2304_v33 = vshrl.u32 %v5385_v3, 16  ;;  %v2307_v34 = vshll.u32 %v5385_v3, 16  ;;  %v506_v36 = vor.u32 %v505_v23, %v502_v21  ;;  %v515_v38 = vrot.slane %v513_v25, 4  ;;  %v7094_v23 = vld [vmem:[%s6803_s23 + $0xa4] sm:$0x1] }
  0x75   : > { %v521_v39 = vrot.slane %v519_v26, 5  ;;  %v2313_v41 = vshll.u32 %v7054_v9, 16  ;;  %v2302_v42 = vsel %vm6821_vm3, %v2297_v31, %v2301_v12  ;;  %v2317_v46 = vshrl.u32 %v7054_v9, 16  ;;  %v7099_v31 = vld [vmem:[%s6803_s23 + $0x9c] sm:$0xf] }
  0x76   : > { %v2306_v43 = vrot.slane %v2304_v33, 4  ;;  %v2309_v44 = vrot.slane %v2307_v34, 5  ;;  %v5411_v47 = vcombine.low %v2292_v30, %v2302_v42  ;;  %v507_v49 = vrot.slane %v506_v36, 4 }
  0x77   : > { %v516_v50 = vor.u32 %v515_v38, %v511_v24  ;;  %v2315_v51 = vrot.slane %v2313_v41, 5  ;;  %v2319_v61 = vrot.slane %v2317_v46, 4  ;;  %v2323_v62 = vshll.u32 %v7063_v60, 16 }
  0x78   : > { %v2310_v54 = vor.u32 %v2309_v44, %v2306_v43  ;;  %v524_v63 = vshrl.u32 %v7066_v28, 16  ;;  %6157 = vmatprep.mubr.msk.bf16.mxu0 %vm669_vm4, %v5411_v47  ;;  %v512_v3 = vsel %vm6821_vm3, %v507_v49, %v511_v24  ;;  %v527_v7 = vshll.u32 %v7066_v28, 16 }
  0x79   : > { %v517_v6 = vrot.slane %v516_v50, 4  ;;  %v533_v8 = vshll.u32 %v7072_v35, 16  ;;  %v2320_v12 = vor.u32 %v2319_v61, %v2315_v51  ;;  %v2325_v13 = vrot.slane %v2323_v62, 5  ;;  %v7111_v62 = vld [vmem:[%s6803_s23 + $0xa4] sm:$0x1] }
  0x7a   : > { %v2311_v11 = vrot.slane %v2310_v54, 4  ;;  %v526_v16 = vrot.slane %v524_v63, 4  ;;  %v529_v18 = vrot.slane %v527_v7, 5  ;;  %v537_v21 = vshrl.u32 %v7072_v35, 16  ;;  %8934 = vst [vmem:[#allocation3_spill] sm:$0xff] %v7111_v62 }
  0x7b   : > { %v522_v17 = vsel %vm6821_vm3, %v517_v6, %v521_v39  ;;  %v535_v19 = vrot.slane %v533_v8, 5  ;;  %v2321_v26 = vrot.slane %v2320_v12, 4  ;;  %v543_v30 = vshll.u32 %v228_v53, 16  ;;  %v7102_v39 = vld [vmem:[%s6803_s23 + $0xa0] sm:$0xf] }
  0x7c   : > { %v5185_v24 = vcombine.low %v512_v3, %v522_v17  ;;  %v2316_v25 = vsel %vm6821_vm3, %v2311_v11, %v2315_v51  ;;  %v530_v33 = vor.u32 %v529_v18, %v526_v16  ;;  %v539_v34 = vrot.slane %v537_v21, 4  ;;  %v5391_v63 = vld [vmem:[%s6803_s23 + $0xa8] sm:$0xf]  ;;  %v7124_v21 = vld [vmem:[%s6803_s23 + $0xac] sm:$0xf] }
  0x7d   : > { %v2328_v36 = vshrl.u32 %v5388_v0, 16  ;;  %v2331_v38 = vshll.u32 %v5388_v0, 16  ;;  %v2326_v41 = vsel %vm6821_vm3, %v2321_v26, %v2325_v13  ;;  %v545_v42 = vrot.slane %v543_v30, 5 }
  0x7e   : > { %6022 = vmatmul.mubr.msk.bf16.gmra.mrb[20].mxu1 %vm669_vm4, %v5185_v24  ;;  %v2337_v43 = vshll.u32 %v7088_v4, 16  ;;  %v2341_v44 = vshrl.u32 %v7088_v4, 16  ;;  %v5412_v46 = vcombine.low %v2316_v25, %v2326_v41  ;;  %v531_v47 = vrot.slane %v530_v33, 4  ;;  %v7127_v33 = vld [vmem:[%s6803_s23 + $0xb0] sm:$0x1] }
  0x7f   : > { %v540_v49 = vor.u32 %v539_v34, %v535_v19  ;;  %v2330_v50 = vrot.slane %v2328_v36, 4  ;;  %v2333_v51 = vrot.slane %v2331_v38, 5  ;;  %v2347_v61 = vshll.u32 %v7094_v23, 16  ;;  %v7130_v34 = vld [vmem:[%s6803_s23 + $0xa8] sm:$0xf] }
  0x80   : > { %v2339_v53 = vrot.slane %v2337_v43, 5  ;;  %v2343_v54 = vrot.slane %v2341_v44, 4  ;;  %6158 = vmatmul.mubr.msk.bf16.gmra.mrb[20].mxu0 %vm669_vm4, %v5412_v46  ;;  %v536_v0 = vsel %vm6821_vm3, %v531_v47, %v535_v19  ;;  %v548_v6 = vshrl.u32 %v7099_v31, 16  ;;  %v7134_v43 = vld [vmem:[%s6803_s23 + $0xac] sm:$0xf] }
  0x81   : > { %v541_v3 = vrot.slane %v540_v49, 4  ;;  %v551_v7 = vshll.u32 %v7099_v31, 16  ;;  %v2334_v8 = vor.u32 %v2333_v51, %v2330_v50  ;;  %v2349_v12 = vrot.slane %v2347_v61, 5 }
  0x82   : > { %v2344_v11 = vor.u32 %v2343_v54, %v2339_v53  ;;  %v557_v13 = vshll.u32 %v7102_v39, 16  ;;  %v550_v17 = vrot.slane %v548_v6, 4  ;;  %v561_v19 = vshrl.u32 %v7102_v39, 16 }
  0x83   : > { %v546_v16 = vsel %vm6821_vm3, %v541_v3, %v545_v42  ;;  %v553_v18 = vrot.slane %v551_v7, 5  ;;  %v2335_v25 = vrot.slane %v2334_v8, 4  ;;  %v567_v41 = vshll.u32 %v7111_v62, 16  ;;  %v7144_v8 = vld [vmem:[%s6803_s23 + $0xb0] sm:$0x1] }
  0x84   : > { %v5186_v24 = vcombine.low %v536_v0, %v546_v16  ;;  %v2345_v26 = vrot.slane %v2344_v11, 4  ;;  %v559_v30 = vrot.slane %v557_v13, 5  ;;  %v563_v38 = vrot.slane %v561_v19, 4  ;;  %8935 = vst [vmem:[#allocation4_spill] sm:$0xff] %v7144_v8  ;;  %v5394_v11 = vld [vmem:[%s6803_s23 + $0xb4] sm:$0xf] }
  0x85   : > { %v554_v36 = vor.u32 %v553_v18, %v550_v17  ;;  %v2352_v42 = vshrl.u32 %v5391_v63, 16  ;;  %v2340_v44 = vsel %vm6821_vm3, %v2335_v25, %v2339_v53  ;;  %v2355_v47 = vshll.u32 %v5391_v63, 16  ;;  %v5446_v62 = vld [vmem:[%s6803_s23 + $0xa8] sm:$0xe] }
  0x86   : > { %6025 = vmatprep.mubr.msk.bf16.mxu1 %vm669_vm4, %v5186_v24  ;;  %v2350_v46 = vsel %vm6821_vm3, %v2345_v26, %v2349_v12  ;;  %v2361_v49 = vshll.u32 %v7124_v21, 16  ;;  %v564_v54 = vor.u32 %v563_v38, %v559_v30  ;;  %v569_v61 = vrot.slane %v567_v41, 5 }
  0x87   : > { %v5413_v50 = vcombine.low %v2340_v44, %v2350_v46  ;;  %v555_v51 = vrot.slane %v554_v36, 4  ;;  %v2354_v0 = vrot.slane %v2352_v42, 4  ;;  %v2357_v3 = vrot.slane %v2355_v47, 5  ;;  %v7158_v36 = vld [vmem:[%s6803_s23 + $0xb8] sm:$0xf] }
  0x88   : > { %v2363_v6 = vrot.slane %v2361_v49, 5  ;;  %v2365_v7 = vshrl.u32 %v7124_v21, 16  ;;  %v565_v63 = vrot.slane %v564_v54, 4  ;;  %v2371_v12 = vshll.u32 %v7127_v33, 16  ;;  %v7161_v46 = vld [vmem:[%s6803_s23 + $0xbc] sm:$0x1] }
  0x89   : > { %6161 = vmatprep.mubr.msk.bf16.mxu0 %vm669_vm4, %v5413_v50  ;;  %v560_v53 = vsel %vm6821_vm3, %v555_v51, %v559_v30  ;;  %v572_v13 = vshrl.u32 %v7130_v34, 16  ;;  %v2358_v16 = vor.u32 %v2357_v3, %v2354_v0  ;;  %v575_v18 = vshll.u32 %v7130_v34, 16  ;;  %v7165_v54 = vld [vmem:[%s6803_s23 + $0xb4] sm:$0xf] }
  0x8a   : > { %v2367_v17 = vrot.slane %v2365_v7, 4  ;;  %v581_v19 = vshll.u32 %v7134_v43, 16  ;;  %v570_v24 = vsel %vm6821_vm3, %v565_v63, %v569_v61  ;;  %v2373_v25 = vrot.slane %v2371_v12, 5 }
  0x8b   : > { %v574_v26 = vrot.slane %v572_v13, 4  ;;  %v585_v30 = vshrl.u32 %v7134_v43, 16  ;;  %v5187_v38 = vcombine.low %v560_v53, %v570_v24  ;;  %v2359_v41 = vrot.slane %v2358_v16, 4  ;;  %v7171_v53 = vld [vmem:[%s6803_s23 + $0xb8] sm:$0xf] }
  0x8c   : > { %v2368_v42 = vor.u32 %v2367_v17, %v2363_v6  ;;  %v577_v44 = vrot.slane %v575_v18, 5  ;;  %v583_v47 = vrot.slane %v581_v19, 5  ;;  %v591_v50 = vshll.u32 %v7144_v8, 16 }
  0x8d   : > { %v587_v49 = vrot.slane %v585_v30, 4  ;;  %v2376_v51 = vshrl.u32 %v5394_v11, 16  ;;  %6026 = vmatmul.mubr.msk.bf16.gmra.mrb[24].mxu1 %vm669_vm4, %v5187_v38  ;;  %v2364_v61 = vsel %vm6821_vm3, %v2359_v41, %v2363_v6  ;;  %v2379_v7 = vshll.u32 %v5394_v11, 16  ;;  %v7178_v30 = vld [vmem:[%s6803_s23 + $0xbc] sm:$0x1] }
  0x8e   : > { %v2369_v0 = vrot.slane %v2368_v42, 4  ;;  %v578_v3 = vor.u32 %v577_v44, %v574_v26  ;;  %v593_v12 = vrot.slane %v591_v50, 5  ;;  %v2385_v16 = vshll.u32 %v7158_v36, 16  ;;  %8936 = vst [vmem:[#allocation5_spill] sm:$0xff] %v7178_v30 }
  0x8f   : > { %v588_v63 = vor.u32 %v587_v49, %v583_v47  ;;  %v2378_v13 = vrot.slane %v2376_v51, 4  ;;  %v2381_v19 = vrot.slane %v2379_v7, 5  ;;  %v2389_v24 = vshrl.u32 %v7158_v36, 16 }
  0x90   : > { %v2374_v17 = vsel %vm6821_vm3, %v2369_v0, %v2373_v25  ;;  %v579_v18 = vrot.slane %v578_v3, 4  ;;  %v2387_v11 = vrot.slane %v2385_v16, 5  ;;  %v2395_v38 = vshll.u32 %v7161_v46, 16  ;;  %v5397_v0 = vld [vmem:[%s6803_s23 + $0xc0] sm:$0xf] }
  0x91   : > { %v5414_v6 = vcombine.low %v2364_v61, %v2374_v17  ;;  %v589_v26 = vrot.slane %v588_v63, 4  ;;  %v2382_v42 = vor.u32 %v2381_v19, %v2378_v13  ;;  %v2391_v44 = vrot.slane %v2389_v24, 4  ;;  %v7191_v13 = vld [vmem:[%s6803_s23 + $0xc4] sm:$0xf] }
  0x92   : > { %v584_v41 = vsel %vm6821_vm3, %v579_v18, %v583_v47  ;;  %v596_v25 = vshrl.u32 %v7165_v54, 16  ;;  %v2397_v50 = vrot.slane %v2395_v38, 5  ;;  %v599_v51 = vshll.u32 %v7165_v54, 16 }
  0x93   : > { %6162 = vmatmul.mubr.msk.bf16.gmra.mrb[24].mxu0 %vm669_vm4, %v5414_v6  ;;  %v594_v49 = vsel %vm6821_vm3, %v589_v26, %v593_v12  ;;  %v605_v61 = vshll.u32 %v7171_v53, 16  ;;  %v2383_v7 = vrot.slane %v2382_v42, 4  ;;  %v2392_v63 = vor.u32 %v2391_v44, %v2387_v11  ;;  %v7196_v12 = vld [vmem:[%s6803_s23 + $0xc8] sm:$0x1] }
  0x94   : > { %v5188_v3 = vcombine.low %v584_v41, %v594_v49  ;;  %v598_v47 = vrot.slane %v596_v25, 4  ;;  %v601_v16 = vrot.slane %v599_v51, 5  ;;  %v609_v18 = vshrl.u32 %v7171_v53, 16  ;;  %v7205_v49 = vld [vmem:[%s8909_s1 + $0x4] sm:$0x3] }
  0x95   : > { %v607_v17 = vrot.slane %v605_v61, 5  ;;  %v615_v19 = vshll.u32 %v7178_v30, 16  ;;  %v2388_v24 = vsel %vm6821_vm3, %v2383_v7, %v2387_v11  ;;  %v2393_v6 = vrot.slane %v2392_v63, 4  ;;  %v5433_v7 = vld [vmem:[%s6803_s23 + $0xc] sm:$0xe] }
  0x96   : > { %6029 = vmatprep.mubr.msk.bf16.mxu1 %vm669_vm4, %v5188_v3  ;;  %v2400_v26 = vshrl.u32 %v5397_v0, 16  ;;  %v2403_v38 = vshll.u32 %v5397_v0, 16  ;;  %v602_v41 = vor.u32 %v601_v16, %v598_v47  ;;  %v611_v42 = vrot.slane %v609_v18, 4  ;;  %v5445_v30 = vld [vmem:[%s6803_s23 + $0x9c] sm:$0xe] }
  0x97   : > { %v617_v44 = vrot.slane %v615_v19, 5  ;;  %v2409_v25 = vshll.u32 %v7191_v13, 16  ;;  %v2398_v51 = vsel %vm6821_vm3, %v2393_v6, %v2397_v50  ;;  %v2413_v11 = vshrl.u32 %v7191_v13, 16 }
  0x98   : > { %v2402_v61 = vrot.slane %v2400_v26, 4  ;;  %v2405_v3 = vrot.slane %v2403_v38, 5  ;;  %v5415_v0 = vcombine.low %v2388_v24, %v2398_v51  ;;  %v603_v63 = vrot.slane %v602_v41, 4  ;;  %v5434_v26 = vld [vmem:[%s6803_s23 + $0x18] sm:$0xe] }
  0x99   : > { %v612_v47 = vor.u32 %v611_v42, %v607_v17  ;;  %v2411_v16 = vrot.slane %v2409_v25, 5  ;;  %v2415_v19 = vrot.slane %v2413_v11, 4  ;;  %v2419_v22 = vshll.u32 %v7196_v12, 16  ;;  %v5435_v25 = vld [vmem:[%s6803_s23 + $0x24] sm:$0xe] }
  0x9a   : > { %v2406_v18 = vor.u32 %v2405_v3, %v2402_v61  ;;  %v1012_v10 = vsel %vm718_vm0, %v6968_v1, 0  ;;  %v2792_v50 = vrot.slane %v2790_v20, 4  ;;  %6165 = vmatprep.mubr.msk.bf16.mxu0 %vm669_vm4, %v5415_v0  ;;  %v608_v24 = vsel %vm6821_vm3, %v603_v63, %v607_v17  ;;  %v6692_v51 = vld [vmem:[%s6803_s23] sm:$0xf]  ;;  %v7227_v61 = vld [vmem:[%s6803_s23 + $0x4] sm:$0xf] }
  0x9b   : > { %v613_v6 = vrot.slane %v612_v47, 4  ;;  %6034 = vmatpush3.bf16.msra.mxu1 %v1012_v10  ;;  %v2416_v41 = vor.u32 %v2415_v19, %v2411_v16  ;;  %v2421_v42 = vrot.slane %v2419_v22, 5  ;;  %v5206_v17 = vcombine.low %v6692_v51, %v7227_v61  ;;  %v7266_v51 = vld [vmem:[%s6803_s23 + $0x10] sm:$0xf] }
  0x9c   : > { %v2407_v38 = vrot.slane %v2406_v18, 4  ;;  %6627 = vmatprep.subr.msk.bf16.mxu1 %vm718_vm0, %v7205_v49  ;;  %v5449_v3 = vrot.slane %v5433_v7, 9  ;;  %v2785_v22 = vrot.slane %v2783_v57, 4  ;;  %v5450_v63 = vrot.slane %v5434_v26, 9 }
  0x9d   : > { %v618_v1 = vsel %vm6821_vm3, %v613_v6, %v617_v44  ;;  %v2417_v44 = vrot.slane %v2416_v41, 4  ;;  %v8939_v18 = vrot.slane %v6813_v15, 5  ;;  %v8940_v19 = vrot.slane %v6840_v59, 5  ;;  %v6694_v6 = vld [vmem:[%s6803_s23 + $0x28] sm:$0xf] }
  0x9e   : > { %v5189_v11 = vcombine.low %v608_v24, %v618_v1  ;;  %v2412_v0 = vsel %vm6821_vm3, %v2407_v38, %v2411_v16  ;;  %v2784_v47 = vsel %vm7230_vm7, %v5449_v3, %v2783_v57  ;;  %v2791_v15 = vsel %vm7230_vm7, %v5450_v63, %v2790_v20  ;;  %v6695_v38 = vld [vmem:[%s6803_s23 + $0x2c] sm:$0x1]  ;;  %v6696_v20 = vld [vmem:[%s6803_s23 + $0x34] sm:$0xf]  ;;  %v5437_v3 = vld [vmem:[%s6803_s23 + $0x3c] sm:$0xe] }
  0x9f   : > { %v2787_v7 = vsel %vm7230_vm7, %v2785_v22, %v8939_v18  ;;  %v2794_v24 = vsel %vm7230_vm7, %v2792_v50, %v8940_v19  ;;  %v2422_v14 = vsel %vm6821_vm3, %v2417_v44, %v2421_v42  ;;  %v5451_v57 = vrot.slane %v5435_v25, 9  ;;  %v5436_v42 = vld [vmem:[%s6803_s23 + $0x30] sm:$0xe]  ;;  %v6697_v1 = vld [vmem:[%s6803_s23 + $0xc] sm:$0xf] }
  0xa0   : > { %6030 = vmatmul.mubr.msk.bf16.gmra.mrb[28].mxu1 %vm669_vm4, %v5189_v11  ;;  %v5466_v16 = vcombine.low %v2784_v47, %v2787_v7  ;;  %v5416_v59 = vcombine.low %v2412_v0, %v2422_v14  ;;  %v5467_v50 = vcombine.low %v2791_v15, %v2794_v24  ;;  %v2797_v26 = vrot.slane %v6694_v6, 5  ;;  %v6699_v22 = vld [vmem:[%s6803_s23 + $0x40] sm:$0xf]  ;;  %v5438_v0 = vld [vmem:[%s6803_s23 + $0x48] sm:$0xe] }
  0xa1   : > { %6035 = vmatprep.mubr.msk.bf16.mxu1 %vm669_vm4, %v5206_v17  ;;  %v2800_v41 = vrot.slane %v6695_v38, 5  ;;  %v2804_v25 = vrot.slane %v6696_v20, 5  ;;  %v5207_v17 = vcombine.low %v6697_v1, %v7266_v51  ;;  %v2811_v11 = vrot.slane %v6699_v22, 5  ;;  %v6700_v44 = vld [vmem:[%s6803_s23 + $0x18] sm:$0xf] }
  0xa2   : > { %6166 = vmatmul.mubr.msk.bf16.gmra.mrb[28].mxu0 %vm669_vm4, %v5416_v59  ;;  %v2799_v55 = vrot.slane %v2797_v26, 4  ;;  %v7274_v63 = vld [vmem:[%s6803_s23 + $0x1c] sm:$0xf]  ;;  %v2798_v18 = vsel %vm7230_vm7, %v5451_v57, %v2797_v26  ;;  %v6702_v19 = vld [vmem:[%s6803_s23 + $0x4c] sm:$0xf]  ;;  %v5452_v14 = vrot.slane %v5436_v42, 9 }
  0xa3   : > { %6171 = vmatprep.mubr.msk.bf16.mxu0 %vm669_vm4, %v5466_v16  ;;  %v5208_v47 = vcombine.low %v6700_v44, %v7274_v63  ;;  %v2818_v24 = vrot.slane %v6702_v19, 5  ;;  %v2806_v16 = vrot.slane %v2804_v25, 4  ;;  %v6703_v15 = vld [vmem:[%s6803_s23 + $0x38] sm:$0x1]  ;;  %v5453_v6 = vrot.slane %v5437_v3, 9 }
  0xa4   : > { %v2801_v7 = vsel %vm7230_vm7, %v2799_v55, %v2800_v41  ;;  %v2807_v59 = vrot.slane %v6703_v15, 5  ;;  %v6704_v38 = vld [vmem:[%s6803_s23 + $0x44] sm:$0x1]  ;;  %v2813_v26 = vrot.slane %v2811_v11, 4  ;;  %v5454_v41 = vrot.slane %v5438_v0, 9 }
  0xa5   : > { %v2814_v20 = vrot.slane %v6704_v38, 5  ;;  %v5468_v57 = vcombine.low %v2798_v18, %v2801_v7  ;;  %v2820_v55 = vrot.slane %v2818_v24, 4  ;;  %v6705_v42 = vld [vmem:[%s6803_s23 + $0x50] sm:$0x1]  ;;  %v5439_v22 = vld [vmem:[%s6803_s23 + $0x54] sm:$0xe]  ;;  %v2805_v0 = vsel %vm7230_vm7, %v5452_v14, %v2804_v25 }
  0xa6   : > { %v2821_v1 = vrot.slane %v6705_v42, 5  ;;  %v6706_v44 = vld [vmem:[%s6803_s23 + $0x58] sm:$0xf]  ;;  %v6707_v3 = vld [vmem:[%s6803_s23 + $0x24] sm:$0xf]  ;;  %v2812_v38 = vsel %vm7230_vm7, %v5453_v6, %v2811_v11  ;;  %v7311_v25 = vsel %vm7230_vm7, %v5454_v41, %v2818_v24  ;;  %v2860_v8 = vrot.slane %v7054_v9, 5 }
  0xa7   : > { %v2825_v19 = vrot.slane %v6706_v44, 5  ;;  %v7292_v15 = vld [vmem:[%s6803_s23 + $0x28] sm:$0xf]  ;;  %v6709_v18 = vld [vmem:[%s6803_s23 + $0x30] sm:$0xf] }
  0xa8   : > { %6036 = vmatmul.mubr.msk.bf16.vlgmr.msra.gmra.mrb[0].mxu1 %vm669_vm4, %v5207_v17  ;;  %v5209_v17 = vcombine.low %v6707_v3, %v7292_v15  ;;  %v7302_v7 = vld [vmem:[%s6803_s23 + $0x34] sm:$0xf]  ;;  %v7315_v14 = vsel %vm7230_vm7, %v2820_v55, %v2821_v1  ;;  %v6711_v42 = vld [vmem:[%s6803_s23 + $0x5c] sm:$0x1]  ;;  %v5440_v3 = vld [vmem:[%s6803_s23 + $0x60] sm:$0xe] }
  0xa9   : > { %6039 = vmatprep.mubr.msk.bf16.mxu1 %vm669_vm4, %v5208_v47  ;;  %v2808_v47 = vsel %vm7230_vm7, %v2806_v16, %v2807_v59  ;;  %v5455_v16 = vrot.slane %v5439_v22, 9  ;;  %v2827_v59 = vrot.slane %v2825_v19, 4  ;;  %v2828_v44 = vrot.slane %v6711_v42, 5  ;;  %v7322_v11 = vld [vmem:[%s8909_s1 + $0xe] sm:$0x3] }
  0xaa   : > { %6172 = vmatmul.mubr.msk.bf16.vlgmr.msra.gmra.mrb[0].mxu0 %vm669_vm4, %v5467_v50  ;;  %v5210_v50 = vcombine.low %v6709_v18, %v7302_v7  ;;  %8941 = vst [vmem:[#allocation6_spill] sm:$0xff] %v7322_v11  ;;  %v5469_v24 = vcombine.low %v2805_v0, %v2808_v47  ;;  %v6712_v6 = vld [vmem:[%s6803_s23 + $0x3c] sm:$0xf]  ;;  %v6714_v41 = vld [vmem:[%s6803_s23 + $0x48] sm:$0xf]  ;;  %v3351_v22 = vsel %vm718_vm0, %v6996_v45, 0  ;;  %v5471_v47 = vcombine.low %v7311_v25, %v7315_v14 }
  0xab   : > { %6175 = vmatprep.mubr.msk.bf16.mxu0 %vm669_vm4, %v5468_v57  ;;  %v2815_v57 = vsel %vm7230_vm7, %v2813_v26, %v2814_v20  ;;  %v7326_v20 = vld [vmem:[%s6803_s23 + $0x40] sm:$0xf]  ;;  %v7331_v55 = vld [vmem:[%s6803_s23 + $0x4c] sm:$0xf]  ;;  %v5444_v18 = vld [vmem:[%s6803_s23 + $0x90] sm:$0xe]  ;;  %6204 = vmatpush3.bf16.msra.mxu0 %v3351_v22  ;;  %v2826_v45 = vsel %vm7230_vm7, %v5455_v16, %v2825_v19  ;;  %v2829_v29 = vsel %vm7230_vm7, %v2827_v59, %v2828_v44 }
  0xac   : > { %v5211_v26 = vcombine.low %v6712_v6, %v7326_v20  ;;  %v5212_v1 = vcombine.low %v6714_v41, %v7331_v55  ;;  %v5470_v0 = vcombine.low %v2812_v38, %v2815_v57  ;;  %v7341_v42 = vld [vmem:[%s6803_s23 + $0x54] sm:$0xf]  ;;  %v7344_v6 = vld [vmem:[%s6803_s23 + $0x58] sm:$0xf]  ;;  %v7349_v41 = vld [vmem:[%s6803_s23 + $0x6c] sm:$0xe]  ;;  %6632 = vmatprep.subr.msk.bf16.mxu0 %vm718_vm0, %v7322_v11 }
  0xad   : > { %v6718_v38 = vld [vmem:[%s6803_s23 + $0x64] sm:$0xf]  ;;  %v6719_v25 = vld [vmem:[%s6803_s23 + $0x68] sm:$0x1]  ;;  %v5460_v22 = vrot.slane %v5444_v18, 9  ;;  %v2839_v59 = vrot.slane %v6961_v58, 5 }
  0xae   : > { %v2832_v57 = vrot.slane %v6718_v38, 5  ;;  %v2835_v14 = vrot.slane %v6719_v25, 5  ;;  %v7366_v19 = vld [vmem:[%s6803_s23 + $0x60] sm:$0xf]  ;;  %v7369_v16 = vld [vmem:[%s6803_s23 + $0x64] sm:$0xf]  ;;  %v5472_v25 = vcombine.low %v2826_v45, %v2829_v29 }
  0xaf   : > { %v5457_v38 = vrot.slane %v7349_v41, 9  ;;  %v2842_v44 = vrot.slane %v6971_v5, 5  ;;  %v7379_v9 = vsel %vm7230_vm7, %v5460_v22, %v2860_v8  ;;  %v2867_v18 = vrot.slane %v7088_v4, 5  ;;  %v5447_v11 = vld [vmem:[%s6803_s23 + $0xb4] sm:$0xe] }
  0xb0   : > { %6040 = vmatmul.mubr.msk.bf16.gmra.mrb[4].mxu1 %vm669_vm4, %v5209_v17  ;;  %v5456_v17 = vrot.slane %v5440_v3, 9  ;;  %v2870_v41 = vrot.slane %v7094_v23, 5  ;;  %v5462_v58 = vrot.slane %v5446_v62, 9  ;;  %v2834_v5 = vrot.slane %v2832_v57, 4  ;;  %v5448_v62 = vld [vmem:[%s6803_s23 + $0xc0] sm:$0xe] }
  0xb1   : > { %6043 = vmatprep.mubr.msk.bf16.mxu1 %vm669_vm4, %v5210_v50  ;;  %v2863_v50 = vrot.slane %v7063_v60, 5  ;;  %v2862_v60 = vrot.slane %v2860_v8, 4  ;;  %v2841_v22 = vrot.slane %v2839_v59, 4  ;;  %v2874_v4 = vrot.slane %v7124_v21, 5 }
  0xb2   : > { %6176 = vmatmul.mubr.msk.bf16.gmra.mrb[4].mxu0 %vm669_vm4, %v5469_v24  ;;  %v5461_v24 = vrot.slane %v5445_v30, 9  ;;  %v2833_v3 = vsel %vm7230_vm7, %v5456_v17, %v2832_v57  ;;  %v2869_v30 = vrot.slane %v2867_v18, 4  ;;  %v2877_v23 = vrot.slane %v7127_v33, 5 }
  0xb3   : > { %6179 = vmatprep.mubr.msk.bf16.mxu0 %vm669_vm4, %v5470_v0  ;;  %v7388_v0 = vsel %vm7230_vm7, %v2862_v60, %v2863_v50  ;;  %v5463_v17 = vrot.slane %v5447_v11, 9  ;;  %v2881_v57 = vrot.slane %v7158_v36, 5  ;;  %v2884_v50 = vrot.slane %v7161_v46, 5 }
  0xb4   : > { %v7392_v8 = vsel %vm7230_vm7, %v5461_v24, %v2867_v18  ;;  %v5477_v29 = vcombine.low %v7379_v9, %v7388_v0  ;;  %v7402_v45 = vsel %vm7230_vm7, %v2869_v30, %v2870_v41  ;;  %v2846_v60 = vrot.slane %v6991_v40, 5  ;;  %v7422_v40 = vld [vmem:[%s8909_s1 + $0x6] sm:$0x3]  ;;  %v1177_v0 = vld [vmem:[%s6803_s23 + $0x18] sm:$0xe] }
  0xb5   : > { %v5478_v21 = vcombine.low %v7392_v8, %v7402_v45  ;;  %v7412_v33 = vsel %vm7230_vm7, %v5462_v58, %v2874_v4  ;;  %v7416_v24 = vsel %vm7230_vm7, %v5463_v17, %v2881_v57  ;;  %v2883_v11 = vrot.slane %v2881_v57, 4 }
  0xb6   : > { %v5464_v36 = vrot.slane %v5448_v62, 9  ;;  %v2888_v46 = vrot.slane %v7191_v13, 5  ;;  %v2891_v41 = vrot.slane %v7196_v12, 5  ;;  %v1437_v13 = vsel %vm718_vm0, %v7205_v49, 0 }
  0xb7   : > { %6068 = vmatpush3.bf16.msra.mxu1 %v1437_v13  ;;  %v2840_v12 = vsel %vm7230_vm7, %v5457_v38, %v2839_v59  ;;  %v2843_v49 = vsel %vm7230_vm7, %v2841_v22, %v2842_v44  ;;  %v2853_v8 = vrot.slane %v7029_v27, 5  ;;  %v8942_v27 = vcombine.low %v7341_v42, %v7344_v6  ;;  %v6722_v42 = vld [vmem:[%s6803_s23 + $0x6c] sm:$0xf]  ;;  %v1175_v13 = vld [vmem:[%s6803_s23] sm:$0xe] }
  0xb8   : > { %6044 = vmatmul.mubr.msk.bf16.gmra.mrb[8].mxu1 %vm669_vm4, %v5211_v26  ;;  %v2876_v26 = vrot.slane %v2874_v4, 4  ;;  %6628 = vmatprep.subr.msk.bf16.mxu1 %vm718_vm0, %v7422_v40  ;;  %v5443_v4 = vld [vmem:[%s6803_s23 + $0x84] sm:$0xe]  ;;  %v5474_v44 = vcombine.low %v2840_v12, %v2843_v49  ;;  %v2848_v62 = vrot.slane %v2846_v60, 4  ;;  %v2849_v45 = vrot.slane %v7006_v52, 5 }
  0xb9   : > { %6047 = vmatprep.mubr.msk.bf16.mxu1 %vm669_vm4, %v5212_v1  ;;  %v2836_v1 = vsel %vm7230_vm7, %v2834_v5, %v2835_v14  ;;  %v7443_v14 = vsel %vm7230_vm7, %v5464_v36, %v2888_v46  ;;  %v2890_v5 = vrot.slane %v2888_v46, 4  ;;  %v8943_v17 = vcombine.low %v7366_v19, %v7369_v16 }
  0xba   : > { %6180 = vmatmul.mubr.msk.bf16.gmra.mrb[8].mxu0 %vm669_vm4, %v5471_v47  ;;  %v7429_v18 = vsel %vm7230_vm7, %v2876_v26, %v2877_v23  ;;  %v7439_v47 = vsel %vm7230_vm7, %v2883_v11, %v2884_v50  ;;  %v5473_v38 = vcombine.low %v2833_v3, %v2836_v1  ;;  %v5459_v57 = vrot.slane %v5443_v4, 9  ;;  %v7476_v26 = vld [vmem:[%s6803_s23 + $0x70] sm:$0xf] }
  0xbb   : > { %6183 = vmatprep.mubr.msk.bf16.mxu0 %vm669_vm4, %v5472_v25  ;;  %v5479_v58 = vcombine.low %v7412_v33, %v7429_v18  ;;  %v5442_v25 = vld [vmem:[%s6803_s23 + $0x78] sm:$0xe]  ;;  %v5480_v30 = vcombine.low %v7416_v24, %v7439_v47  ;;  %v7458_v23 = vsel %vm7230_vm7, %v2890_v5, %v2891_v41  ;;  %v2855_v3 = vrot.slane %v2853_v8, 4  ;;  %v1180_v33 = vld [vmem:[%s6803_s23 + $0x3c] sm:$0xe] }
  0xbc   : > { %v5481_v59 = vcombine.low %v7443_v14, %v7458_v23  ;;  %v5458_v22 = vrot.slane %v5442_v25, 9  ;;  %v2856_v50 = vrot.slane %v7032_v32, 5  ;;  %v5215_v11 = vcombine.low %v6722_v42, %v7476_v26  ;;  %v6726_v25 = vld [vmem:[%s6803_s23 + $0x20] sm:$0x1]  ;;  %v6728_v42 = vld [vmem:[%s6803_s23 + $0x38] sm:$0x1] }
  0xbd   : > { %v2850_v19 = vsel %vm7230_vm7, %v2848_v62, %v2849_v45  ;;  %v5216_v36 = vcombine.low %v7010_v56, %v7013_v2  ;;  %v2854_v32 = vsel %vm7230_vm7, %v5459_v57, %v2853_v8  ;;  %v5217_v56 = vcombine.low %v7035_v37, %v7042_v48  ;;  %v6730_v14 = vld [vmem:[%s6803_s23 + $0x50] sm:$0x1] }
  0xbe   : > { %v2847_v52 = vsel %vm7230_vm7, %v5458_v22, %v2846_v60  ;;  %v2857_v46 = vsel %vm7230_vm7, %v2855_v3, %v2856_v50  ;;  %v5218_v2 = vcombine.low %v7066_v28, %v7072_v35  ;;  %v1228_v60 = vrot.slane %v7227_v61, 5  ;;  %v1176_v35 = vld [vmem:[%s6803_s23 + $0xc] sm:$0xe]  ;;  %v6724_v61 = vld [vmem:[%s6803_s23 + $0x8] sm:$0x1] }
  0xbf   : > { %v5475_v1 = vcombine.low %v2847_v52, %v2850_v19  ;;  %v5476_v41 = vcombine.low %v2854_v32, %v2857_v46  ;;  %v5219_v37 = vcombine.low %v7099_v31, %v7102_v39  ;;  %v1235_v48 = vrot.slane %v7266_v51, 5  ;;  %v6725_v31 = vld [vmem:[%s6803_s23 + $0x14] sm:$0x1]  ;;  %v1179_v22 = vld [vmem:[%s6803_s23 + $0x30] sm:$0xe] }
  0xc0   : > { %6048 = vmatmul.mubr.msk.bf16.gmra.mrb[12].mxu1 %vm669_vm4, %v8942_v27  ;;  %v5220_v28 = vcombine.low %v7130_v34, %v7134_v43  ;;  %v1231_v5 = vrot.slane %v6724_v61, 5  ;;  %v5238_v12 = vrot.slane %v1175_v13, 9  ;;  %v1230_v9 = vrot.slane %v1228_v60, 4  ;;  %v1178_v27 = vld [vmem:[%s6803_s23 + $0x24] sm:$0xe] }
  0xc1   : > { %6051 = vmatprep.mubr.msk.bf16.mxu1 %vm669_vm4, %v8943_v17  ;;  %v1238_v49 = vrot.slane %v6725_v31, 5  ;;  %v1237_v51 = vrot.slane %v1235_v48, 4  ;;  %v5240_v34 = vrot.slane %v1177_v0, 9  ;;  %v1245_v8 = vrot.slane %v6726_v25, 5  ;;  %v1181_v3 = vld [vmem:[%s6803_s23 + $0x48] sm:$0xe] }
  0xc2   : > { %6184 = vmatmul.mubr.msk.bf16.gmra.mrb[12].mxu0 %vm669_vm4, %v5473_v38  ;;  %v1229_v4 = vsel %vm7230_vm7, %v5238_v12, %v1228_v60  ;;  %v1232_v38 = vsel %vm7230_vm7, %v1230_v9, %v1231_v5  ;;  %v1256_v62 = vrot.slane %v7302_v7, 5  ;;  %v5221_v45 = vcombine.low %v7165_v54, %v7171_v53  ;;  %v1183_v60 = vld [vmem:[%s6803_s23 + $0x60] sm:$0xe]  ;;  %v1184_v5 = vld [vmem:[%s6803_s23 + $0x6c] sm:$0xe] }
  0xc3   : > { %6187 = vmatprep.mubr.msk.bf16.mxu0 %vm669_vm4, %v5474_v44  ;;  %v1249_v44 = vrot.slane %v7292_v15, 5  ;;  %v5255_v18 = vcombine.low %v1229_v4, %v1232_v38  ;;  %v5241_v24 = vrot.slane %v1178_v27, 9  ;;  %v5242_v57 = vrot.slane %v1179_v22, 9  ;;  %v1185_v4 = vld [vmem:[%s6803_s23 + $0x78] sm:$0xe] }
  0xc4   : > { %v1258_v50 = vrot.slane %v1256_v62, 4  ;;  %v5243_v52 = vrot.slane %v1180_v33, 9  ;;  %v1263_v19 = vrot.slane %v7326_v20, 5  ;;  %v1270_v46 = vrot.slane %v7331_v55, 5  ;;  %v1182_v20 = vld [vmem:[%s6803_s23 + $0x54] sm:$0xe] }
  0xc5   : > { %v1251_v54 = vrot.slane %v1249_v44, 4  ;;  %v7579_v55 = vsel %vm7230_vm7, %v5242_v57, %v1256_v62  ;;  %v1291_v12 = vrot.slane %v7476_v26, 5  ;;  %v1273_v23 = vrot.slane %v6730_v14, 5  ;;  %v6732_v26 = vld [vmem:[%s6803_s23 + $0x7c] sm:$0xf] }
  0xc6   : > { %v1265_v61 = vrot.slane %v1263_v19, 4  ;;  %v5246_v9 = vrot.slane %v1183_v60, 9  ;;  %v1796_v38 = vsel %vm718_vm0, %v7422_v40, 0  ;;  %v6734_v22 = vld [vmem:[%s6803_s23 + $0x74] sm:$0x1]  ;;  %v5248_v57 = vrot.slane %v1185_v4, 9 }
  0xc7   : > { %v1294_v62 = vrot.slane %v6734_v22, 5  ;;  %v5563_v14 = vld [vmem:[%s6803_s23 + $0x18] sm:$0xf]  ;;  %v8945_v4 = vld [vmem:[#allocation3_spill] sm:$0xff] }
  0xc8   : > { %6052 = vmatmul.mubr.msk.bf16.gmra.mrb[16].mxu1 %vm669_vm4, %v5215_v11  ;;  %v1259_v11 = vrot.slane %v6728_v42, 5  ;;  %v3598_v22 = vshll.u32 %v5563_v14, 16 }
  0xc9   : > { %6055 = vmatprep.mubr.msk.bf16.mxu1 %vm669_vm4, %v5216_v36  ;;  %v6660_v36 = vld [vmem:[%s6803_s23 + $0x18] sm:$0xff]  }
  0xca   : > { %6188 = vmatmul.mubr.msk.bf16.gmra.mrb[16].mxu0 %vm669_vm4, %v5475_v1 }
  0xcb   : > { %6191 = vmatprep.mubr.msk.bf16.mxu0 %vm669_vm4, %v5476_v41  ;;  %v7568_v41 = vsel %vm7230_vm7, %v5241_v24, %v1249_v44  ;;  %v1293_v44 = vrot.slane %v1291_v12, 4  ;;  %v1187_v24 = vld [vmem:[%s6803_s23 + $0x90] sm:$0xe] }
  0xd0   : > { %6056 = vmatmul.mubr.msk.bf16.gmra.mrb[20].mxu1 %vm669_vm4, %v5217_v56  ;;  %v5244_v56 = vrot.slane %v1181_v3, 9 }
  0xd1   : > { %6059 = vmatprep.mubr.msk.bf16.mxu1 %vm669_vm4, %v5218_v2  ;;  %v1277_v2 = vrot.slane %v7344_v6, 5  ;;  %v7589_v6 = vsel %vm7230_vm7, %v1258_v50, %v1259_v11  ;;  %v6737_v50 = vld [vmem:[%s6803_s23 + $0x80] sm:$0x1] }
  0xd2   : > { %6192 = vmatmul.mubr.msk.bf16.gmra.mrb[20].mxu0 %vm669_vm4, %v5477_v29  ;;  %v1242_v29 = vrot.slane %v7274_v63, 5  ;;  %v7601_v0 = vsel %vm7230_vm7, %v5244_v56, %v1270_v46  ;;  %v1301_v42 = vrot.slane %v6737_v50, 5  ;;  %v6738_v56 = vld [vmem:[%s6803_s23 + $0x8c] sm:$0x1]  ;;  %v1326_v50 = vrot.slane %v7134_v43, 5 }
  0xd3   : > { %6195 = vmatprep.mubr.msk.bf16.mxu0 %vm669_vm4, %v5478_v21  ;;  %v5239_v21 = vrot.slane %v1176_v35, 9  ;;  %v7593_v35 = vsel %vm7230_vm7, %v5243_v52, %v1263_v19  ;;  %v5572_v43 = vld [vmem:[%s6803_s23 + $0x3c] sm:$0xf] }
  0xd4   : > { %v1244_v63 = vrot.slane %v1242_v29, 4  ;;  %v7548_v7 = vsel %vm7230_vm7, %v5240_v34, %v1242_v29  ;;  %v1279_v29 = vrot.slane %v1277_v2, 4  ;;  %v6733_v34 = vld [vmem:[%s6803_s23 + $0x68] sm:$0x1] }
  0xd5   : > { %v7539_v15 = vsel %vm7230_vm7, %v5239_v21, %v1235_v48  ;;  %v6731_v21 = vld [vmem:[%s6803_s23 + $0x5c] sm:$0x1]  ;;  %v1287_v25 = vrot.slane %v6733_v34, 5 }
  0xd6   : > { %v7552_v47 = vsel %vm7230_vm7, %v1244_v63, %v1245_v8  ;;  %v1280_v31 = vrot.slane %v6731_v21, 5  ;;  %v5247_v8 = vrot.slane %v1184_v5, 9  ;;  %v6661_v63 = vld [vmem:[%s6803_s23 + $0x24] sm:$0xff]   ;;  %v1319_v5 = vrot.slane %v7102_v39, 5 }
  0xd7   : > { %v5257_v1 = vcombine.low %v7548_v7, %v7552_v47  ;;  %v6736_v47 = vld [vmem:[%s6803_s23 + $0x94] sm:$0xf] }
  0xd8   : > { %6060 = vmatmul.mubr.msk.bf16.gmra.mrb[24].mxu1 %vm669_vm4, %v5219_v37  ;;  %v6729_v37 = vld [vmem:[%s6803_s23 + $0x44] sm:$0x1]  ;;  %v7639_v11 = vsel %vm7230_vm7, %v1279_v29, %v1280_v31  ;;  %v7647_v19 = vsel %vm7230_vm7, %v5247_v8, %v1291_v12  ;;  %v5259_v12 = vcombine.low %v7579_v55, %v7589_v6  ;;  %v1321_v8 = vrot.slane %v1319_v5, 4 }
  0xd9   : > { %6063 = vmatprep.mubr.msk.bf16.mxu1 %vm669_vm4, %v5220_v28  ;;  %v1266_v48 = vrot.slane %v6729_v37, 5  ;;  %v1284_v28 = vrot.slane %v7369_v16, 5  ;;  %v1272_v16 = vrot.slane %v1270_v46, 4  ;;  %v7657_v46 = vsel %vm7230_vm7, %v1293_v44, %v1294_v62 }
  0xda   : > { %6196 = vmatmul.mubr.msk.bf16.gmra.mrb[24].mxu0 %vm669_vm4, %v5479_v58  ;;  %v7544_v58 = vsel %vm7230_vm7, %v1237_v51, %v1238_v49  ;;  %v1298_v49 = vrot.slane %v6732_v26, 5  ;;  %v7704_v26 = vld [vmem:[%s6803_s23 + $0xa8] sm:$0xe]  ;;  %v3595_v44 = vshrl.u32 %v5563_v14, 16 }
  0xdb   : > { %6199 = vmatprep.mubr.msk.bf16.mxu0 %vm669_vm4, %v5480_v30  ;;  %v6727_v30 = vld [vmem:[%s6803_s23 + $0x2c] sm:$0x1]  ;;  %v5256_v32 = vcombine.low %v7539_v15, %v7544_v58  ;;  %v1286_v51 = vrot.slane %v1284_v28, 4  ;;  %v7612_v27 = vsel %vm7230_vm7, %v1265_v61, %v1266_v48  ;;  %v6735_v15 = vld [vmem:[%s6803_s23 + $0x88] sm:$0xf]  ;;  %v7621_v58 = vsel %vm7230_vm7, %v1272_v16, %v1273_v23 }
  0xdc   : > { %v1252_v17 = vrot.slane %v6727_v30, 5  ;;  %v1305_v33 = vrot.slane %v6735_v15, 5  ;;  %v7629_v7 = vsel %vm7230_vm7, %v5246_v9, %v1284_v28  ;;  %v8944_v30 = vld [vmem:[#allocation6_spill] sm:$0xff]  ;;  %v1300_v3 = vrot.slane %v1298_v49, 4  ;;  %v6739_v48 = vld [vmem:[%s6803_s23 + $0x98] sm:$0x1] }
  0xdd   : > { %v7643_v52 = vsel %vm7230_vm7, %v1286_v51, %v1287_v25  ;;  %v1315_v28 = vrot.slane %v6739_v48, 5  ;;  %v1188_v61 = vld [vmem:[%s6803_s23 + $0x9c] sm:$0xe]  ;;  %v5260_v16 = vcombine.low %v7593_v35, %v7612_v27  ;;  %v5261_v39 = vcombine.low %v7601_v0, %v7621_v58  ;;  %v6664_v51 = vld [vmem:[%s6803_s23 + $0x48] sm:$0xff]   ;;  %v7719_v27 = vld [vmem:[%s6803_s23 + $0xb4] sm:$0xe] }
  0xde   : > { %v7575_v13 = vsel %vm7230_vm7, %v1251_v54, %v1252_v17  ;;  %v1312_v54 = vrot.slane %v6736_v47, 5  ;;  %v4077_v17 = vsel %vm718_vm0, %v8944_v30, 0  ;;  %v5263_v6 = vcombine.low %v7629_v7, %v7643_v52  ;;  %v5564_v23 = vld [vmem:[%s6803_s23 + $0x1c] sm:$0xf]  ;;  %v7773_v58 = vld [vmem:[%s6803_s23 + $0x38] sm:$0x1] }
  0xdf   : > { %v5258_v60 = vcombine.low %v7568_v41, %v7575_v13  ;;  %v7672_v41 = vsel %vm7230_vm7, %v5248_v57, %v1298_v49  ;;  %v7676_v13 = vsel %vm7230_vm7, %v1300_v3, %v1301_v42  ;;  %v5264_v35 = vcombine.low %v7647_v19, %v7657_v46  ;;  %v5566_v49 = vld [vmem:[%s6803_s23 + $0x24] sm:$0xf]  ;;  %v5569_v57 = vld [vmem:[%s6803_s23 + $0x30] sm:$0xf] }
  0xe0   : > { %6064 = vmatmul.mubr.msk.bf16.gmra.mrb[28].mxu1 %vm669_vm4, %v5221_v45  ;;  %v1186_v45 = vld [vmem:[%s6803_s23 + $0x84] sm:$0xe]  ;;  %v1314_v37 = vrot.slane %v1312_v54, 4  ;;  %v5251_v31 = vrot.slane %v1188_v61, 9  ;;  %v5265_v34 = vcombine.low %v7672_v41, %v7676_v13  ;;  %v3604_v62 = vshll.u32 %v5564_v23, 16  ;;  %v8946_v42 = vld [vmem:[#allocation4_spill] sm:$0xff] }
  0xe1   : > { %6069 = vmatprep.mubr.msk.bf16.mxu1 %vm669_vm4, %v5255_v18  ;;  %v6662_v18 = vld [vmem:[%s6803_s23 + $0x30] sm:$0xff]   ;;  %v3646_v14 = vshll.u32 %v5569_v57, 16 }
  0xe2   : > { %6200 = vmatmul.mubr.msk.bf16.gmra.mrb[28].mxu0 %vm669_vm4, %v5481_v59  ;;  %v5245_v59 = vrot.slane %v1182_v20, 9  ;;  %v1308_v20 = vrot.slane %v6738_v56, 5  ;;  %v7713_v25 = vsel %vm7230_vm7, %v1314_v37, %v1315_v28  ;;  %v7741_v56 = vld [vmem:[%s6803_s23 + $0x34] sm:$0xf]  ;;  %v3600_v37 = vrot.slane %v3598_v22, 5 }
  0xe3   : > { %6205 = vmatprep.mubr.msk.bf16.mxu0 %vm669_vm4, %v6660_v36  ;;  %v5249_v36 = vrot.slane %v1186_v45, 9  ;;  %v3608_v45 = vshrl.u32 %v5564_v23, 16  ;;  %v7747_v48 = vrot.slane %v3604_v62, 5  ;;  %v5568_v23 = vld [vmem:[%s6803_s23 + $0x2c] sm:$0x1] }
  0xe4   : > { %v7625_v40 = vsel %vm7230_vm7, %v5245_v59, %v1277_v2  ;;  %v5250_v2 = vrot.slane %v1187_v24, 9  ;;  %v6663_v59 = vld [vmem:[%s6803_s23 + $0x3c] sm:$0xff]   ;;  %v3622_v24 = vshll.u32 %v5566_v49, 16  ;;  %v7900_v13 = vld [vmem:[%s6803_s23 + $0x70] sm:$0xf] }
  0xe5   : > { %v5262_v55 = vcombine.low %v7625_v40, %v7639_v11  ;;  %v7693_v9 = vsel %vm7230_vm7, %v5249_v36, %v1305_v33  ;;  %v1329_v36 = vrot.slane %v8946_v42, 5  ;;  %v3610_v28 = vrot.slane %v3608_v45, 4 }
  0xe6   : > { %v7701_v21 = vsel %vm7230_vm7, %v5250_v2, %v1312_v54  ;;  %v7729_v54 = vsel %vm7230_vm7, %v5251_v31, %v1319_v5  ;;  %v7745_v2 = vld [vmem:[%s6803_s23 + $0x20] sm:$0x1]  ;;  %v3624_v5 = vrot.slane %v3622_v24, 5  ;;  %v3667_v45 = vshrl.u32 %v5572_v43, 16 }
  0xe7   : > { %8947 = vst [vmem:[#allocation6_spill] sm:$0xff] %v7745_v2  ;;  %v3638_v24 = vshll.u32 %v5568_v23, 16 }
  0xe8   : > { %6070 = vmatmul.mubr.msk.bf16.vlgmr.msra.gmra.mrb[0].mxu1 %vm669_vm4, %v5256_v32  ;;  %v7652_v32 = vld [vmem:[%s8909_s1 + $0x10] sm:$0x3] }
  0xe9   : > { %6073 = vmatprep.mubr.msk.bf16.mxu1 %vm669_vm4, %v5257_v1  ;;  %6102 = vmatpush3.bf16.msra.mxu1 %v1796_v38  ;;  %v1307_v1 = vrot.slane %v1305_v33, 4  ;;  %v1322_v38 = vrot.slane %v8945_v4, 5  ;;  %v5252_v33 = vrot.slane %v7704_v26, 9  ;;  %v3652_v26 = vshll.u32 %v7741_v56, 16 }
  0xea   : > { %6206 = vmatmul.mubr.msk.bf16.vlgmr.msra.gmra.mrb[0].mxu0 %vm669_vm4, %v6661_v63  ;;  %v5567_v63 = vld [vmem:[%s6803_s23 + $0x28] sm:$0xf]  ;;  %v1333_v4 = vrot.slane %v7171_v53, 5 }
  0xeb   : > { %6209 = vmatprep.mubr.msk.bf16.mxu0 %vm669_vm4, %v6662_v18  ;;  %6238 = vmatpush3.bf16.msra.mxu0 %v4077_v17  ;;  %v7697_v29 = vsel %vm7230_vm7, %v1307_v1, %v1308_v20  ;;  %v3619_v18 = vshrl.u32 %v5566_v49, 16  ;;  %v3628_v30 = vshll.u32 %v5567_v63, 16  ;;  %v3632_v17 = vshrl.u32 %v5567_v63, 16  ;;  %v6665_v20 = vld [vmem:[%s6803_s23 + $0x54] sm:$0xff]  }
  0xec   : > { %6633 = vmatprep.subr.msk.bf16.mxu0 %vm718_vm0, %v7652_v32  ;;  %v5266_v15 = vcombine.low %v7693_v9, %v7697_v29  ;;  %v7735_v3 = vsel %vm7230_vm7, %v1321_v8, %v1322_v38  ;;  %v5253_v1 = vrot.slane %v7719_v27, 9  ;;  %v3656_v49 = vshrl.u32 %v7741_v56, 16  ;;  %v8948_v38 = vld [vmem:[#allocation5_spill] sm:$0xff] }
  0xed   : > { %v3621_v61 = vrot.slane %v3619_v18, 4  ;;  %v3634_v31 = vrot.slane %v3632_v17, 4  ;;  %v1328_v8 = vrot.slane %v1326_v50, 4  ;;  %v1336_v63 = vrot.slane %v8948_v38, 5  ;;  %v7768_v17 = vld [vmem:[%s6803_s23 + $0x40] sm:$0xf] }
  0xee   : > { %v3611_v18 = vor.u32 %v3610_v28, %v7747_v48  ;;  %v3658_v42 = vrot.slane %v3656_v49, 4  ;;  %v6668_v38 = vld [vmem:[%s6803_s23 + $0x78] sm:$0xff]   ;;  %v8951_v9 = vcombine.low %v7701_v21, %v7713_v25 }
  0xf0   : > { %6074 = vmatmul.mubr.msk.bf16.gmra.mrb[4].mxu1 %vm669_vm4, %v5258_v60  ;;  %v3597_v60 = vrot.slane %v3595_v44, 4  ;;  %v3614_v44 = vshll.u32 %v7745_v2, 16  ;;  %v6672_v2 = vld [vmem:[%s6803_s23 + $0xa8] sm:$0xff]  }
  0xf1   : > { %6077 = vmatprep.mubr.msk.bf16.mxu1 %vm669_vm4, %v5259_v12  ;;  %v3643_v12 = vshrl.u32 %v5569_v57, 16  ;;  %v3625_v57 = vor.u32 %v3624_v5, %v3621_v61  ;;  %v3669_v61 = vrot.slane %v3667_v45, 4  ;;  %v7806_v45 = vld [vmem:[%s6803_s23 + $0x44] sm:$0x1] }
  0xf2   : > { %6210 = vmatmul.mubr.msk.bf16.gmra.mrb[4].mxu0 %vm669_vm4, %v6663_v59  ;;  %v7751_v59 = vrot.slane %v3628_v30, 5  ;;  %v3601_v62 = vor.u32 %v3600_v37, %v3597_v60  ;;  %v3648_v30 = vrot.slane %v3646_v14, 5  ;;  %v7780_v60 = vsel %vm7230_vm7, %v5252_v33, %v1326_v50  ;;  %v6667_v50 = vld [vmem:[%s6803_s23 + $0x6c] sm:$0xff]  }
  0xf3   : > { %6213 = vmatprep.mubr.msk.bf16.mxu0 %vm669_vm4, %v6664_v51  ;;  %v6666_v51 = vld [vmem:[%s6803_s23 + $0x60] sm:$0xff]   ;;  %v3645_v53 = vrot.slane %v3643_v12, 4  ;;  %v7784_v37 = vsel %vm7230_vm7, %v1328_v8, %v1329_v36  ;;  %v3616_v28 = vrot.slane %v3614_v44, 5  ;;  %v3676_v12 = vshll.u32 %v7768_v17, 16 }
  0xf4   : > { %v3635_v0 = vor.u32 %v3634_v31, %v7751_v59  ;;  %v3680_v14 = vshrl.u32 %v7768_v17, 16  ;;  %v3602_v23 = vrot.slane %v3601_v62, 4  ;;  %v3612_v31 = vrot.slane %v3611_v18, 4 }
  0xf5   : > { %v3662_v33 = vshll.u32 %v7773_v58, 16  ;;  %v3626_v49 = vrot.slane %v3625_v57, 4  ;;  %v7803_v62 = vsel %vm7230_vm7, %v5253_v1, %v1333_v4  ;;  %v7819_v1 = vld [vmem:[%s6803_s23 + $0x4c] sm:$0xf]  ;;  %v5578_v57 = vld [vmem:[%s6803_s23 + $0x54] sm:$0xf] }
  0xf6   : > { %v3636_v36 = vrot.slane %v3635_v0, 4  ;;  %v3682_v27 = vrot.slane %v3680_v14, 4  ;;  %v3617_v7 = vsel %vm6821_vm3, %v3612_v31, %v3616_v28  ;;  %v3704_v28 = vshrl.u32 %v7819_v1, 16 }
  0xf8   : > { %6078 = vmatmul.mubr.msk.bf16.gmra.mrb[8].mxu1 %vm669_vm4, %v5260_v16  ;;  %v3670_v16 = vshll.u32 %v5572_v43, 16  ;;  %v5575_v43 = vld [vmem:[%s6803_s23 + $0x48] sm:$0xf] }
  0xf9   : > { %6081 = vmatprep.mubr.msk.bf16.mxu1 %vm669_vm4, %v5261_v39  ;;  %v7775_v39 = vrot.slane %v3652_v26, 5  ;;  %v3649_v26 = vor.u32 %v3648_v30, %v3645_v53  ;;  %v3694_v18 = vshll.u32 %v5575_v43, 16 }
  0xfa   : > { %6214 = vmatmul.mubr.msk.bf16.gmra.mrb[8].mxu0 %vm669_vm4, %v6665_v20  ;;  %v1335_v20 = vrot.slane %v1333_v4, 4  ;;  %v3672_v5 = vrot.slane %v3670_v16, 5  ;;  %v3691_v16 = vshrl.u32 %v5575_v43, 16  ;;  %v7854_v43 = vld [vmem:[%s6803_s23 + $0x50] sm:$0x1] }
  0xfb   : > { %6217 = vmatprep.mubr.msk.bf16.mxu0 %vm669_vm4, %v6666_v51  ;;  %v3640_v51 = vrot.slane %v3638_v24, 5  ;;  %v3659_v8 = vor.u32 %v3658_v42, %v7775_v39  ;;  %v3607_v24 = vsel %vm6821_vm3, %v3602_v23, %v7747_v48  ;;  %v7826_v52 = vrot.slane %v3649_v26, 4 }
  0xfc   : > { %v7814_v40 = vsel %vm7230_vm7, %v1335_v20, %v1336_v63  ;;  %v3673_v11 = vor.u32 %v3672_v5, %v3669_v61  ;;  %v3631_v63 = vsel %vm6821_vm3, %v3626_v49, %v7751_v59  ;;  %v3686_v48 = vshll.u32 %v7806_v45, 16  ;;  %v7844_v61 = vld [vmem:[%s6803_s23 + $0x58] sm:$0xf]  ;;  %v6669_v49 = vld [vmem:[%s6803_s23 + $0x84] sm:$0xff]  }
  0xfd   : > { %v3641_v53 = vsel %vm6821_vm3, %v3636_v36, %v3640_v51  ;;  %v7836_v30 = vrot.slane %v3659_v8, 4  ;;  %v3693_v0 = vrot.slane %v3691_v16, 4  ;;  %v3696_v42 = vrot.slane %v3694_v18, 5  ;;  %v7873_v16 = vld [vmem:[%s6803_s23 + $0x64] sm:$0xf]  ;;  %v6670_v18 = vld [vmem:[%s6803_s23 + $0x90] sm:$0xff]  }
  0xfe   : > { %v3700_v20 = vshll.u32 %v7819_v1, 16  ;;  %v7848_v5 = vcombine.low %v3607_v24, %v3617_v7  ;;  %v7856_v23 = vcombine.low %v3631_v63, %v3641_v53  ;;  %v3715_v26 = vshrl.u32 %v5578_v57, 16  ;;  %v5584_v63 = vld [vmem:[%s6803_s23 + $0x6c] sm:$0xf]  ;;  %v5587_v59 = vld [vmem:[%s6803_s23 + $0x78] sm:$0xf] }
  0xff   : > { %v7868_v51 = vrot.slane %v3686_v48, 5  ;;  %v3724_v8 = vshll.u32 %v7844_v61, 16  ;;  %v3706_v24 = vrot.slane %v3704_v28, 4  ;;  %v3710_v7 = vshll.u32 %v7854_v43, 16  ;;  %v7919_v36 = vld [vmem:[%s6803_s23 + $0x68] sm:$0x1] }
 0x100   : > { %6082 = vmatmul.mubr.msk.bf16.gmra.mrb[12].mxu1 %vm669_vm4, %v5262_v55  ;;  %v7816_v55 = vrot.slane %v3676_v12, 5  ;;  %v7850_v12 = vrot.slane %v3673_v11, 4  ;;  %8950 = vst [vmem:[#allocation3_spill] sm:$0xff] %v7856_v23  ;;  %v3697_v11 = vor.u32 %v3696_v42, %v3693_v0  ;;  %v3748_v42 = vshll.u32 %v7873_v16, 16  ;;  %v7953_v23 = vld [vmem:[%s6803_s23 + $0x88] sm:$0xf] }
 0x101   : > { %6085 = vmatprep.mubr.msk.bf16.mxu1 %vm669_vm4, %v5263_v6  ;;  %v7828_v6 = vrot.slane %v3662_v33, 5  ;;  %v3718_v33 = vshll.u32 %v5578_v57, 16  ;;  %v3717_v57 = vrot.slane %v3715_v26, 4  ;;  %v3752_v41 = vshrl.u32 %v7873_v16, 16 }
 0x102   : > { %6218 = vmatmul.mubr.msk.bf16.gmra.mrb[12].mxu0 %vm669_vm4, %v6667_v50  ;;  %v3683_v14 = vor.u32 %v3682_v27, %v7816_v55  ;;  %v5581_v50 = vld [vmem:[%s6803_s23 + $0x60] sm:$0xf]  ;;  %v7880_v27 = vrot.slane %v3700_v20, 5  ;;  %v3763_v28 = vshrl.u32 %v5584_v63, 16  ;;  %v7907_v26 = vrot.slane %v3697_v11, 4 }
 0x103   : > { %6221 = vmatprep.mubr.msk.bf16.mxu0 %vm669_vm4, %v6668_v38  ;;  %v3728_v38 = vshrl.u32 %v7844_v61, 16  ;;  %v3739_v53 = vshrl.u32 %v5581_v50, 16  ;;  %v3742_v48 = vshll.u32 %v5581_v50, 16  ;;  %v3720_v0 = vrot.slane %v3718_v33, 5 }
 0x104   : > { %v7892_v46 = vrot.slane %v3683_v14, 4  ;;  %v3766_v14 = vshll.u32 %v5584_v63, 16  ;;  %v3707_v33 = vor.u32 %v3706_v24, %v7880_v27  ;;  %v7910_v50 = vrot.slane %v3710_v7, 5  ;;  %v7916_v63 = vld [vmem:[%s6803_s23 + $0x7c] sm:$0xf] }
 0x105   : > { %v3730_v20 = vrot.slane %v3728_v38, 4  ;;  %v3741_v31 = vrot.slane %v3739_v53, 4  ;;  %v3776_v38 = vshrl.u32 %v7900_v13, 16  ;;  %v3754_v11 = vrot.slane %v3752_v41, 4  ;;  %v6671_v7 = vld [vmem:[%s6803_s23 + $0x9c] sm:$0xff]  }
 0x106   : > { %v3787_v44 = vshrl.u32 %v5587_v59, 16  ;;  %v3790_v24 = vshll.u32 %v5587_v59, 16  ;;  %v3721_v22 = vor.u32 %v3720_v0, %v3717_v57  ;;  %v3765_v47 = vrot.slane %v3763_v28, 4 }
 0x107   : > { %v3689_v59 = vsel %vm6821_vm3, %v7892_v46, %v7868_v51  ;;  %v3703_v57 = vsel %vm6821_vm3, %v7907_v26, %v7880_v27  ;;  %v3796_v0 = vshll.u32 %v7916_v63, 16  ;;  %v3708_v29 = vrot.slane %v3707_v33, 4  ;;  %v5590_v46 = vld [vmem:[%s6803_s23 + $0x84] sm:$0xf]  ;;  %v7950_v27 = vld [vmem:[%s6803_s23 + $0x74] sm:$0x1] }
 0x108   : > { %6086 = vmatmul.mubr.msk.bf16.gmra.mrb[16].mxu1 %vm669_vm4, %v5264_v35  ;;  %v7895_v35 = vld [vmem:[%s6803_s23 + $0x5c] sm:$0x1]  ;;  %v3778_v51 = vrot.slane %v3776_v38, 4  ;;  %v3792_v26 = vrot.slane %v3790_v24, 5  ;;  %v3722_v21 = vrot.slane %v3721_v22, 4  ;;  %v3782_v24 = vshll.u32 %v7950_v27, 16 }
 0x109   : > { %6089 = vmatprep.mubr.msk.bf16.mxu1 %vm669_vm4, %v5265_v34  ;;  %v7903_v34 = vrot.slane %v3724_v8, 5  ;;  %v3734_v19 = vshll.u32 %v7895_v35, 16  ;;  %v3772_v8 = vshll.u32 %v7900_v13, 16  ;;  %v7957_v38 = vrot.slane %v3796_v0, 5 }
 0x10a   : > { %6222 = vmatmul.mubr.msk.bf16.gmra.mrb[16].mxu0 %vm669_vm4, %v6669_v49  ;;  %v3744_v49 = vrot.slane %v3742_v48, 5  ;;  %v3768_v48 = vrot.slane %v3766_v14, 5  ;;  %v3789_v14 = vrot.slane %v3787_v44, 4  ;;  %v3820_v22 = vshll.u32 %v7953_v23, 16 }
 0x10b   : > { %6225 = vmatprep.mubr.msk.bf16.mxu0 %vm669_vm4, %v6670_v18  ;;  %v7921_v18 = vrot.slane %v3748_v42, 5  ;;  %v3731_v53 = vor.u32 %v3730_v20, %v7903_v34  ;;  %v3800_v42 = vshrl.u32 %v7916_v63, 16  ;;  %v7945_v41 = vrot.slane %v3772_v8, 5 }
 0x10c   : > { %v3745_v20 = vor.u32 %v3744_v49, %v3741_v31  ;;  %v3736_v33 = vrot.slane %v3734_v19, 5  ;;  %v3769_v8 = vor.u32 %v3768_v48, %v3765_v47  ;;  %v3811_v49 = vshrl.u32 %v5590_v46, 16  ;;  %v6673_v48 = vld [vmem:[%s6803_s23 + $0xb4] sm:$0xff]  }
 0x10d   : > { %v3755_v28 = vor.u32 %v3754_v11, %v7921_v18  ;;  %v3732_v25 = vrot.slane %v3731_v53, 4  ;;  %v3802_v31 = vrot.slane %v3800_v42, 4  ;;  %v3814_v11 = vshll.u32 %v5590_v46, 16 }
 0x10e   : > { %v3779_v44 = vor.u32 %v3778_v51, %v7945_v41  ;;  %v3824_v19 = vshrl.u32 %v7953_v23, 16  ;;  %v3746_v47 = vrot.slane %v3745_v20, 4  ;;  %v3793_v53 = vor.u32 %v3792_v26, %v3789_v14 }
 0x10f   : > { %v3713_v0 = vsel %vm6821_vm3, %v3708_v29, %v7910_v50  ;;  %v3727_v42 = vsel %vm6821_vm3, %v3722_v21, %v7903_v34  ;;  %v3737_v51 = vsel %vm6821_vm3, %v3732_v25, %v3736_v33  ;;  %v7975_v46 = vrot.slane %v3769_v8, 4  ;;  %v7985_v29 = vld [vmem:[%s6803_s23 + $0x8c] sm:$0x1]  ;;  %v5593_v33 = vld [vmem:[%s6803_s23 + $0x90] sm:$0xf] }
 0x110   : > { %6090 = vmatmul.mubr.msk.bf16.gmra.mrb[20].mxu1 %vm669_vm4, %v5266_v15  ;;  %v3758_v15 = vshll.u32 %v7919_v36, 16  ;;  %v8952_v20 = vcombine.low %v7729_v54, %v7735_v3  ;;  %v3813_v14 = vrot.slane %v3811_v49, 4  ;;  %v3816_v26 = vrot.slane %v3814_v11, 5 }
 0x111   : > { %6093 = vmatprep.mubr.msk.bf16.mxu1 %vm669_vm4, %v8951_v9  ;;  %v7962_v9 = vld [vmem:[%s6803_s23 + $0x80] sm:$0x1]  ;;  %v8953_v34 = vcombine.low %v7780_v60, %v7784_v37  ;;  %v7991_v21 = vrot.slane %v3779_v44, 4  ;;  %v7993_v54 = vrot.slane %v3782_v24, 5  ;;  %v7995_v3 = vrot.slane %v3820_v22, 5 }
 0x112   : > { %6226 = vmatmul.mubr.msk.bf16.gmra.mrb[20].mxu0 %vm669_vm4, %v6671_v7  ;;  %v3756_v7 = vrot.slane %v3755_v28, 4  ;;  %v3803_v28 = vor.u32 %v3802_v31, %v7957_v38  ;;  %v3806_v50 = vshll.u32 %v7962_v9, 16  ;;  %v3826_v25 = vrot.slane %v3824_v19, 4  ;;  %v5646_v44 = vld [vmem:[%s6803_s23 + $0x30] sm:$0xe] }
 0x113   : > { %6229 = vmatprep.mubr.msk.bf16.mxu0 %vm669_vm4, %v6672_v2  ;;  %v3760_v2 = vrot.slane %v3758_v15, 5  ;;  %v6674_v15 = vld [vmem:[%s6803_s23 + $0xc0] sm:$0xff]   ;;  %v8954_v8 = vsel %vm6821_vm3, %v7836_v30, %v7828_v6  ;;  %v8955_v60 = vsel %vm6821_vm3, %v7826_v52, %v7775_v39  ;;  %v3751_v31 = vsel %vm6821_vm3, %v3746_v47, %v7921_v18  ;;  %v8037_v47 = vld [vmem:[%s6803_s23 + $0x94] sm:$0xf] }
 0x114   : > { %v8008_v37 = vcombine.low %v8955_v60, %v8954_v8  ;;  %v8015_v11 = vrot.slane %v3793_v53, 4  ;;  %v8956_v6 = vsel %vm6821_vm3, %v7850_v12, %v7816_v55  ;;  %v8025_v52 = vcombine.low %v3703_v57, %v3713_v0  ;;  %v6676_v12 = vld [vmem:[%s6803_s23 + $0xc] sm:$0xff]   ;;  %v5649_v60 = vld [vmem:[%s6803_s23 + $0x54] sm:$0xe] }
 0x115   : > { %v3761_v49 = vsel %vm6821_vm3, %v3756_v7, %v3760_v2  ;;  %v8023_v39 = vcombine.low %v8956_v6, %v3689_v59  ;;  %v8027_v30 = vcombine.low %v3727_v42, %v3737_v51  ;;  %v3830_v18 = vshll.u32 %v7985_v29, 16  ;;  %v6675_v53 = vld [vmem:[%s6803_s23 + $0xcc] sm:$0xff]  }
 0x116   : > { %v8032_v24 = vrot.slane %v3803_v28, 4  ;;  %v8034_v22 = vrot.slane %v3806_v50, 5  ;;  %v3817_v19 = vor.u32 %v3816_v26, %v3813_v14  ;;  %v3835_v55 = vshrl.u32 %v5593_v33, 16  ;;  %v5648_v26 = vld [vmem:[%s6803_s23 + $0x48] sm:$0xe] }
 0x117   : > { %v8040_v59 = vcombine.low %v3751_v31, %v3761_v49  ;;  %v3827_v2 = vor.u32 %v3826_v25, %v7995_v3  ;;  %v8058_v0 = vsel %vm718_vm0, %v7652_v32, 0  ;;  %v3838_v42 = vshll.u32 %v5593_v33, 16  ;;  %v8243_v32 = vld [vmem:[%s6803_s23 + $0xc4] sm:$0xf] }
 0x118   : > { %6094 = vmatmul.mubr.msk.bf16.gmra.mrb[24].mxu1 %vm669_vm4, %v8952_v20  ;;  %v5662_v51 = vrot.slane %v5646_v44, 9  ;;  %v5647_v20 = vld [vmem:[%s6803_s23 + $0x3c] sm:$0xe]  ;;  %v3844_v28 = vshll.u32 %v8037_v47, 16  ;;  %v4352_v50 = vrot.slane %v7741_v56, 5  ;;  %v4355_v14 = vrot.slane %v7773_v58, 5 }
 0x119   : > { %6097 = vmatprep.mubr.msk.bf16.mxu1 %vm669_vm4, %v8953_v34  ;;  %v8957_v34 = vcombine.low %v7803_v62, %v7814_v40  ;;  %v8075_v25 = vrot.slane %v3817_v19, 4  ;;  %v8077_v33 = vrot.slane %v3835_v55, 4  ;;  %v8081_v56 = vrot.slane %v3827_v2, 4  ;;  %v5650_v2 = vld [vmem:[%s6803_s23 + $0x60] sm:$0xe] }
 0x11a   : > { %6230 = vmatmul.mubr.msk.bf16.gmra.mrb[24].mxu0 %vm669_vm4, %v6673_v48  ;;  %v8085_v58 = vsel %vm7230_vm7, %v5662_v51, %v4352_v50  ;;  %v4354_v62 = vrot.slane %v4352_v50, 4  ;;  %v5663_v40 = vrot.slane %v5647_v20, 9  ;;  %v8088_v31 = vrot.slane %v3838_v42, 5  ;;  %v6678_v20 = vld [vmem:[%s6803_s23 + $0x24] sm:$0xff]   ;;  %v5651_v50 = vld [vmem:[%s6803_s23 + $0x6c] sm:$0xe] }
 0x11b   : > { %6233 = vmatprep.mubr.msk.bf16.mxu0 %vm669_vm4, %v6674_v15  ;;  %v8061_v15 = vrot.slane %v3830_v18, 5  ;;  %v4359_v49 = vrot.slane %v7768_v17, 5  ;;  %v4362_v6 = vrot.slane %v7806_v45, 5  ;;  %v5664_v18 = vrot.slane %v5648_v26, 9  ;;  %v6677_v17 = vld [vmem:[%s6803_s23 + $0x18] sm:$0xff]  }
 0x11c   : > { %v8093_v44 = vrot.slane %v3844_v28, 5  ;;  %v8097_v19 = vsel %vm7230_vm7, %v4354_v62, %v4355_v14  ;;  %v4366_v55 = vrot.slane %v7819_v1, 5  ;;  %v5665_v51 = vrot.slane %v5649_v60, 9  ;;  %v5658_v48 = vld [vmem:[%s6803_s23 + $0xc0] sm:$0xe] }
 0x11d   : > { %v4361_v42 = vrot.slane %v4359_v49, 4  ;;  %v4373_v28 = vrot.slane %v7844_v61, 5  ;;  %v5666_v26 = vrot.slane %v5650_v2, 9  ;;  %v4383_v62 = vrot.slane %v7919_v36, 5 }
 0x11e   : > { %v8114_v1 = vsel %vm7230_vm7, %v5664_v18, %v4366_v55  ;;  %v5667_v18 = vrot.slane %v5651_v50, 9  ;;  %v4387_v2 = vrot.slane %v7900_v13, 5  ;;  %v8958_v50 = vld [vmem:[#allocation3_spill] sm:$0xff]  ;;  %v8163_v13 = vld [vmem:[%s6803_s23 + $0x98] sm:$0x1] }
 0x11f   : > { %v8121_v14 = vsel %vm7230_vm7, %v4361_v42, %v4362_v6 }
 0x120   : > { %6098 = vmatmul.mubr.msk.bf16.gmra.mrb[28].mxu1 %vm669_vm4, %v8957_v34  ;;  %v4380_v34 = vrot.slane %v7873_v16, 5 }
 0x121   : > { %6103 = vmatprep.mubr.msk.bf16.mxu1 %vm669_vm4, %v6676_v12  ;;  %v4369_v12 = vrot.slane %v7854_v43, 5  ;;  %v4368_v43 = vrot.slane %v4366_v55, 4  ;;  %v5653_v55 = vld [vmem:[%s6803_s23 + $0x84] sm:$0xe] }
 0x122   : > { %6234 = vmatmul.mubr.msk.bf16.gmra.mrb[28].mxu0 %vm669_vm4, %v6675_v53  ;;  %v8109_v53 = vsel %vm7230_vm7, %v5663_v40, %v4359_v49  ;;  %v5652_v40 = vld [vmem:[%s6803_s23 + $0x78] sm:$0xe]  ;;  %v4375_v49 = vrot.slane %v4373_v28, 4  ;;  %v8141_v36 = vsel %vm7230_vm7, %v5666_v26, %v4380_v34  ;;  %v4382_v6 = vrot.slane %v4380_v34, 4 }
 0x123   : > { %6239 = vmatprep.mubr.msk.bf16.mxu0 %vm669_vm4, %v7848_v5  ;;  %v4376_v5 = vrot.slane %v7895_v35, 5  ;;  %v8130_v61 = vsel %vm7230_vm7, %v4368_v43, %v4369_v12  ;;  %v8134_v35 = vsel %vm7230_vm7, %v5665_v51, %v4373_v28  ;;  %v5668_v42 = vrot.slane %v5652_v40, 9 }
 0x124   : > { %v8155_v43 = vsel %vm7230_vm7, %v4382_v6, %v4383_v62  ;;  %v4394_v28 = vrot.slane %v7916_v63, 5  ;;  %v8169_v26 = vsel %vm7230_vm7, %v5667_v18, %v4387_v2  ;;  %v4389_v34 = vrot.slane %v4387_v2, 4  ;;  %v5655_v18 = vld [vmem:[%s6803_s23 + $0x9c] sm:$0xe] }
 0x125   : > { %v8147_v12 = vsel %vm7230_vm7, %v4375_v49, %v4376_v5  ;;  %v5654_v5 = vld [vmem:[%s6803_s23 + $0x90] sm:$0xe]  ;;  %v5669_v63 = vrot.slane %v5653_v55, 9  ;;  %v4401_v49 = vrot.slane %v7953_v23, 5  ;;  %v4404_v6 = vrot.slane %v7985_v29, 5  ;;  %v6680_v2 = vld [vmem:[%s6803_s23 + $0x3c] sm:$0xff]  }
 0x126   : > { %v8177_v62 = vsel %vm7230_vm7, %v5668_v42, %v4394_v28  ;;  %v4396_v40 = vrot.slane %v4394_v28, 4  ;;  %v4411_v42 = vrot.slane %v8163_v13, 5  ;;  %v5656_v28 = vld [vmem:[%s6803_s23 + $0xa8] sm:$0xe]  ;;  %v8194_v23 = vld [vmem:[%s6803_s23 + $0xa4] sm:$0x1]  ;;  %v8978_v10 = vcombine.low %v8134_v35, %v8147_v12 }
 0x127   : > { %8959 = vst [vmem:[#allocation4_spill] sm:$0xff] %v8177_v62  ;;  %v5671_v60 = vrot.slane %v5655_v18, 9  ;;  %v8231_v18 = vld [vmem:[%s6803_s23 + $0xbc] sm:$0x1] }
 0x128   : > { %6104 = vmatmul.mubr.msk.bf16.vlgmr.msra.gmra.mrb[0].mxu1 %vm669_vm4, %v6677_v17  ;;  %v4390_v17 = vrot.slane %v7950_v27, 5  ;;  %v8207_v27 = vld [vmem:[%s6803_s23 + $0xac] sm:$0xf] }
 0x129   : > { %6107 = vmatprep.mubr.msk.bf16.mxu1 %vm669_vm4, %v6678_v20  ;;  %v4397_v20 = vrot.slane %v7962_v9, 5  ;;  %v6679_v9 = vld [vmem:[%s6803_s23 + $0x30] sm:$0xff]  }
 0x12a   : > { %6240 = vmatmul.mubr.msk.bf16.vlgmr.msra.gmra.mrb[0].mxu0 %vm669_vm4, %v8958_v50  ;;  %v8185_v55 = vsel %vm7230_vm7, %v4389_v34, %v4390_v17  ;;  %v8191_v50 = vld [vmem:[%s6803_s23 + $0xa0] sm:$0xf]  ;;  %v4403_v34 = vrot.slane %v4401_v49, 4 }
 0x12b   : > { %6243 = vmatprep.mubr.msk.bf16.mxu0 %vm669_vm4, %v8008_v37  ;;  %6272 = vmatpush3.bf16.msra.mxu0 %v8058_v0  ;;  %8960 = vst [vmem:[#allocation5_spill] sm:$0xff] %v8185_v55  ;;  %v5670_v37 = vrot.slane %v5654_v5, 9  ;;  %v4408_v0 = vrot.slane %v8037_v47, 5  ;;  %v8200_v17 = vsel %vm7230_vm7, %v4396_v40, %v4397_v20  ;;  %v8204_v5 = vsel %vm7230_vm7, %v5669_v63, %v4401_v49  ;;  %v5657_v20 = vld [vmem:[%s6803_s23 + $0xb4] sm:$0xe] }
 0x12c   : > { %8961 = vst [vmem:[#allocation2_spill] sm:$0xff] %v8200_v17  ;;  %8962 = vst [vmem:[#allocation3_spill] sm:$0xff] %v8204_v5  ;;  %v8218_v63 = vld [vmem:[%s6803_s23 + $0xb0] sm:$0x1]  ;;  %v8221_v40 = vld [vmem:[%s6803_s23 + $0xb8] sm:$0xf]  ;;  %v8225_v49 = vsel %vm7230_vm7, %v4403_v34, %v4404_v6 }
 0x12d   : > { %v8213_v16 = vsel %vm7230_vm7, %v5670_v37, %v4408_v0  ;;  %v4410_v29 = vrot.slane %v4408_v0, 4  ;;  %8964 = vst [vmem:[#allocation8_spill] sm:$0xff] %v8225_v49  ;;  %v4415_v51 = vrot.slane %v8191_v50, 5  ;;  %v4418_v37 = vrot.slane %v8194_v23, 5 }
 0x12e   : > { %8963 = vst [vmem:[#allocation7_spill] sm:$0xff] %v8213_v16  ;;  %v5672_v0 = vrot.slane %v5656_v28, 9  ;;  %v4422_v6 = vrot.slane %v8207_v27, 5  ;;  %v4425_v34 = vrot.slane %v8218_v63, 5  ;;  %v8246_v28 = vld [vmem:[%s6803_s23 + $0xc8] sm:$0x1] }
 0x12f   : > { %v8237_v45 = vsel %vm7230_vm7, %v4410_v29, %v4411_v42  ;;  %v4417_v42 = vrot.slane %v4415_v51, 4  ;;  %v5673_v29 = vrot.slane %v5657_v20, 9  ;;  %v4429_v8 = vrot.slane %v8221_v40, 5  ;;  %v5596_v16 = vld [vmem:[%s6803_s23 + $0x9c] sm:$0xf] }
 0x130   : > { %6108 = vmatmul.mubr.msk.bf16.gmra.mrb[4].mxu1 %vm669_vm4, %v6679_v9  ;;  %8965 = vst [vmem:[#allocation9_spill] sm:$0xff] %v8237_v45  ;;  %v8252_v9 = vsel %vm7230_vm7, %v5671_v60, %v4415_v51  ;;  %v8258_v57 = vsel %vm7230_vm7, %v5672_v0, %v4422_v6  ;;  %v4424_v7 = vrot.slane %v4422_v6, 4  ;;  %v5659_v45 = vld [vmem:[%s6803_s23 + $0xcc] sm:$0xe]  ;;  %v4436_v20 = vrot.slane %v8243_v32, 5  ;;  %v6682_v6 = vld [vmem:[%s6803_s23 + $0x54] sm:$0xff]  }
 0x131   : > { %6111 = vmatprep.mubr.msk.bf16.mxu1 %vm669_vm4, %v6680_v2  ;;  %8966 = vst [vmem:[#allocation10_spill] sm:$0xff] %v8252_v9  ;;  %v4432_v2 = vrot.slane %v8231_v18, 5  ;;  %v6681_v60 = vld [vmem:[%s6803_s23 + $0x48] sm:$0xff]   ;;  %v8268_v51 = vsel %vm7230_vm7, %v4417_v42, %v4418_v37  ;;  %v4439_v0 = vrot.slane %v8246_v28, 5  ;;  %v4431_v37 = vrot.slane %v4429_v8, 4 }
 0x132   : > { %6244 = vmatmul.mubr.msk.bf16.gmra.mrb[4].mxu0 %vm669_vm4, %v8023_v39  ;;  %8967 = vst [vmem:[#allocation11_spill] sm:$0xff] %v8268_v51  ;;  %v5674_v39 = vrot.slane %v5658_v48, 9  ;;  %v8278_v5 = vsel %vm7230_vm7, %v4424_v7, %v4425_v34  ;;  %v8285_v48 = vld [vmem:[%s6803_s23 + $0xd0] sm:$0xf]  ;;  %v8288_v42 = vld [vmem:[%s6803_s23 + $0xd4] sm:$0x1] }
 0x133   : > { %6247 = vmatprep.mubr.msk.bf16.mxu0 %vm669_vm4, %v8025_v52  ;;  %8968 = vst [vmem:[#allocation12_spill] sm:$0xff] %v8278_v5  ;;  %v8282_v52 = vsel %vm7230_vm7, %v5673_v29, %v4429_v8  ;;  %v4438_v49 = vrot.slane %v4436_v20, 4  ;;  %v5675_v51 = vrot.slane %v5659_v45, 9  ;;  %v8969_v7 = vshrl.u32 %v8037_v47, 16  ;;  %v5599_v9 = vld [vmem:[%s6803_s23 + $0xa8] sm:$0xf] }
 0x134   : > { %v8294_v62 = vsel %vm7230_vm7, %v5674_v39, %v4436_v20  ;;  %v8301_v8 = vsel %vm7230_vm7, %v4431_v37, %v4432_v2  ;;  %v4443_v29 = vrot.slane %v8285_v48, 5  ;;  %v4446_v55 = vrot.slane %v8288_v42, 5 }
 0x135   : > { %v3850_v34 = vrot.slane %v8969_v7, 4  ;;  %v3859_v17 = vshrl.u32 %v5596_v16, 16  ;;  %v3862_v5 = vshll.u32 %v5596_v16, 16  ;;  %v5690_v39 = vcombine.low %v8282_v52, %v8301_v8  ;;  %v8988_v12 = vld [vmem:[#allocation7_spill] sm:$0xff] }
 0x136   : > { %v8310_v47 = vsel %vm7230_vm7, %v4438_v49, %v4439_v0  ;;  %v3854_v45 = vshll.u32 %v8163_v13, 16  ;;  %v4445_v16 = vrot.slane %v4443_v29, 4  ;;  %v3868_v20 = vshll.u32 %v8191_v50, 16 }
 0x137   : > { %v5691_v2 = vcombine.low %v8294_v62, %v8310_v47  ;;  %v3872_v37 = vshrl.u32 %v8191_v50, 16  ;;  %v3883_v49 = vshrl.u32 %v5599_v9, 16  ;;  %v3886_v0 = vshll.u32 %v5599_v9, 16  ;;  %v6683_v50 = vld [vmem:[%s6803_s23 + $0x60] sm:$0xff]  }
 0x138   : > { %6112 = vmatmul.mubr.msk.bf16.gmra.mrb[8].mxu1 %vm669_vm4, %v6681_v60  ;;  %v8318_v60 = vsel %vm7230_vm7, %v5675_v51, %v4443_v29  ;;  %v3841_v13 = vor.u32 %v8088_v31, %v8077_v33  ;;  %v3896_v7 = vshrl.u32 %v8207_v27, 16  ;;  %v8330_v51 = vsel %vm7230_vm7, %v4445_v16, %v4446_v55  ;;  %v6684_v55 = vld [vmem:[%s6803_s23 + $0x6c] sm:$0xff]  }
 0x139   : > { %6115 = vmatprep.mubr.msk.bf16.mxu1 %vm669_vm4, %v6682_v6  ;;  %v3892_v6 = vshll.u32 %v8207_v27, 16  ;;  %v3851_v9 = vor.u32 %v3850_v34, %v8093_v44  ;;  %v3861_v29 = vrot.slane %v3859_v17, 4  ;;  %v5692_v33 = vcombine.low %v8318_v60, %v8330_v51 }
 0x13a   : > { %6248 = vmatmul.mubr.msk.bf16.gmra.mrb[8].mxu0 %vm669_vm4, %v8027_v30  ;;  %v3864_v30 = vrot.slane %v3862_v5, 5  ;;  %v8970_v31 = vsel %vm6821_vm3, %v7991_v21, %v7993_v54  ;;  %v8971_v27 = vsel %vm6821_vm3, %v7975_v46, %v7945_v41  ;;  %v3823_v17 = vsel %vm6821_vm3, %v8075_v25, %v7995_v3 }
 0x13b   : > { %6251 = vmatprep.mubr.msk.bf16.mxu0 %vm669_vm4, %v8040_v59  ;;  %v5619_v59 = vcombine.low %v8971_v27, %v8970_v31  ;;  %v3833_v5 = vsel %vm6821_vm3, %v8081_v56, %v8061_v15  ;;  %v8357_v34 = vrot.slane %v3868_v20, 5  ;;  %v3874_v21 = vrot.slane %v3872_v37, 4  ;;  %v5602_v56 = vld [vmem:[%s6803_s23 + $0xb4] sm:$0xf] }
 0x13c   : > { %v3885_v54 = vrot.slane %v3883_v49, 4  ;;  %v3888_v16 = vrot.slane %v3886_v0, 5  ;;  %v8972_v41 = vsel %vm6821_vm3, %v8032_v24, %v8034_v22  ;;  %v8973_v46 = vsel %vm6821_vm3, %v8015_v11, %v7957_v38 }
 0x13d   : > { %v5620_v3 = vcombine.low %v8973_v46, %v8972_v41  ;;  %v3856_v25 = vrot.slane %v3854_v45, 5  ;;  %v8369_v31 = vrot.slane %v3892_v6, 5  ;;  %v3898_v15 = vrot.slane %v3896_v7, 4  ;;  %v5605_v6 = vld [vmem:[%s6803_s23 + $0xc0] sm:$0xf] }
 0x13e   : > { %v3842_v20 = vrot.slane %v3841_v13, 4  ;;  %v3852_v37 = vrot.slane %v3851_v9, 4  ;;  %v3865_v49 = vor.u32 %v3864_v30, %v3861_v29  ;;  %v3878_v24 = vshll.u32 %v8194_v23, 16  ;;  %v6685_v9 = vld [vmem:[%s6803_s23 + $0x78] sm:$0xff]  }
 0x13f   : > { %v5621_v22 = vcombine.low %v3823_v17, %v3833_v5  ;;  %v3875_v38 = vor.u32 %v3874_v21, %v8357_v34  ;;  %v3889_v11 = vor.u32 %v3888_v16, %v3885_v54  ;;  %v3902_v45 = vshll.u32 %v8218_v63, 16 }
 0x140   : > { %6116 = vmatmul.mubr.msk.bf16.gmra.mrb[12].mxu1 %vm669_vm4, %v6683_v50  ;;  %v3907_v0 = vshrl.u32 %v5602_v56, 16  ;;  %v3899_v13 = vor.u32 %v3898_v15, %v8369_v31  ;;  %v3910_v7 = vshll.u32 %v5602_v56, 16  ;;  %v3916_v50 = vshll.u32 %v8221_v40, 16 }
 0x141   : > { %6119 = vmatprep.mubr.msk.bf16.mxu1 %vm669_vm4, %v6684_v55  ;;  %v3920_v23 = vshrl.u32 %v8221_v40, 16  ;;  %v3847_v29 = vsel %vm6821_vm3, %v3842_v20, %v8093_v44  ;;  %v3857_v63 = vsel %vm6821_vm3, %v3852_v37, %v3856_v25  ;;  %v3866_v30 = vrot.slane %v3865_v49, 4 }
 0x142   : > { %6252 = vmatmul.mubr.msk.bf16.gmra.mrb[12].mxu0 %vm669_vm4, %v5619_v59  ;;  %v3880_v27 = vrot.slane %v3878_v24, 5  ;;  %v6686_v59 = vld [vmem:[%s6803_s23 + $0x84] sm:$0xff]   ;;  %v3931_v55 = vshrl.u32 %v5605_v6, 16  ;;  %v3934_v17 = vshll.u32 %v5605_v6, 16  ;;  %v3940_v5 = vshll.u32 %v8243_v32, 16 }
 0x143   : > { %6255 = vmatprep.mubr.msk.bf16.mxu0 %vm669_vm4, %v5620_v3  ;;  %v3944_v21 = vshrl.u32 %v8243_v32, 16  ;;  %v3876_v40 = vrot.slane %v3875_v38, 4  ;;  %v3890_v54 = vrot.slane %v3889_v11, 4  ;;  %v3904_v16 = vrot.slane %v3902_v45, 5  ;;  %v5608_v32 = vld [vmem:[%s6803_s23 + $0xcc] sm:$0xf] }
 0x144   : > { %v3909_v41 = vrot.slane %v3907_v0, 4  ;;  %v3900_v46 = vrot.slane %v3899_v13, 4  ;;  %v3912_v3 = vrot.slane %v3910_v7, 5  ;;  %v3918_v44 = vrot.slane %v3916_v50, 5  ;;  %v6687_v7 = vld [vmem:[%s6803_s23 + $0x90] sm:$0xff]  }
 0x145   : > { %v3922_v15 = vrot.slane %v3920_v23, 4  ;;  %v5622_v25 = vcombine.low %v3847_v29, %v3857_v63  ;;  %v3933_v56 = vrot.slane %v3931_v55, 4  ;;  %v3936_v20 = vrot.slane %v3934_v17, 5  ;;  %v6688_v29 = vld [vmem:[%s6803_s23 + $0x9c] sm:$0xff]  }
 0x146   : > { %v3942_v37 = vrot.slane %v3940_v5, 5  ;;  %v3946_v49 = vrot.slane %v3944_v21, 4  ;;  %v3871_v24 = vsel %vm6821_vm3, %v3866_v30, %v8357_v34  ;;  %v3881_v38 = vsel %vm6821_vm3, %v3876_v40, %v3880_v27 }
 0x147   : > { %v3895_v11 = vsel %vm6821_vm3, %v3890_v54, %v8369_v31  ;;  %v3905_v45 = vsel %vm6821_vm3, %v3900_v46, %v3904_v16  ;;  %v3913_v0 = vor.u32 %v3912_v3, %v3909_v41  ;;  %v3923_v6 = vor.u32 %v3922_v15, %v3918_v44  ;;  %v6689_v41 = vld [vmem:[%s6803_s23 + $0xa8] sm:$0xff]  }
 0x148   : > { %6120 = vmatmul.mubr.msk.bf16.gmra.mrb[16].mxu1 %vm669_vm4, %v6685_v9  ;;  %v3926_v13 = vshll.u32 %v8231_v18, 16  ;;  %v3955_v34 = vshrl.u32 %v5608_v32, 16  ;;  %v3958_v50 = vshll.u32 %v5608_v32, 16  ;;  %v3964_v23 = vshll.u32 %v8285_v48, 16  ;;  %v6740_v32 = vld [vmem:[%s6803_s23 + $0x1c] sm:$0xf] }
 0x149   : > { %6123 = vmatprep.mubr.msk.bf16.mxu1 %vm669_vm4, %v6686_v59  ;;  %v3968_v9 = vshrl.u32 %v8285_v48, 16  ;;  %v3937_v31 = vor.u32 %v3936_v20, %v3933_v56  ;;  %v3947_v63 = vor.u32 %v3946_v49, %v3942_v37  ;;  %v5623_v30 = vcombine.low %v3871_v24, %v3881_v38  ;;  %v6690_v56 = vld [vmem:[%s6803_s23 + $0xb4] sm:$0xff]  }
 0x14a   : > { %6256 = vmatmul.mubr.msk.bf16.gmra.mrb[16].mxu0 %vm669_vm4, %v5621_v22  ;;  %v3950_v22 = vshll.u32 %v8246_v28, 16  ;;  %v5624_v27 = vcombine.low %v3895_v11, %v3905_v45  ;;  %v3914_v59 = vrot.slane %v3913_v0, 4  ;;  %v3924_v55 = vrot.slane %v3923_v6, 4  ;;  %v5644_v24 = vld [vmem:[%s6803_s23 + $0x18] sm:$0xe] }
 0x14b   : > { %6259 = vmatprep.mubr.msk.bf16.mxu0 %vm669_vm4, %v5622_v25  ;;  %v3928_v18 = vrot.slane %v3926_v13, 5  ;;  %v3957_v17 = vrot.slane %v3955_v34, 4  ;;  %v3960_v5 = vrot.slane %v3958_v50, 5  ;;  %v3966_v21 = vrot.slane %v3964_v23, 5  ;;  %v8974_v13 = vld [vmem:[#allocation6_spill] sm:$0xff] }
 0x14c   : > { %v3970_v40 = vrot.slane %v3968_v9, 4  ;;  %v3938_v48 = vrot.slane %v3937_v31, 4  ;;  %v3948_v54 = vrot.slane %v3947_v63, 4  ;;  %v3952_v28 = vrot.slane %v3950_v22, 5  ;;  %v6691_v34 = vld [vmem:[%s6803_s23 + $0xc0] sm:$0xff]  }
 0x14d   : > { %v3919_v16 = vsel %vm6821_vm3, %v3914_v59, %v3918_v44  ;;  %v3929_v46 = vsel %vm6821_vm3, %v3924_v55, %v3928_v18  ;;  %v3961_v3 = vor.u32 %v3960_v5, %v3957_v17  ;;  %v3974_v25 = vshll.u32 %v8288_v42, 16  ;;  %v6741_v9 = vld [vmem:[%s6803_s23 + $0x28] sm:$0xf]  ;;  %v5645_v22 = vld [vmem:[%s6803_s23 + $0x24] sm:$0xe] }
 0x14e   : > { %v3971_v15 = vor.u32 %v3970_v40, %v3966_v21  ;;  %v3943_v20 = vsel %vm6821_vm3, %v3938_v48, %v3942_v37  ;;  %v3953_v49 = vsel %vm6821_vm3, %v3948_v54, %v3952_v28  ;;  %v4338_v44 = vrot.slane %v6740_v32, 5  ;;  %v6742_v18 = vld [vmem:[%s6803_s23 + $0x2c] sm:$0x1]  ;;  %v8983_v28 = vld [vmem:[#allocation2_spill] sm:$0xff] }
 0x14f   : > { %v5625_v38 = vcombine.low %v3919_v16, %v3929_v46  ;;  %v5626_v11 = vcombine.low %v3943_v20, %v3953_v49  ;;  %v3962_v45 = vrot.slane %v3961_v3, 4  ;;  %v3976_v42 = vrot.slane %v3974_v25, 5  ;;  %v8986_v16 = vld [vmem:[#allocation8_spill] sm:$0xff]  ;;  %v8992_v46 = vld [vmem:[#allocation11_spill] sm:$0xff] }
 0x150   : > { %6124 = vmatmul.mubr.msk.bf16.gmra.mrb[20].mxu1 %vm669_vm4, %v6687_v7  ;;  %v3972_v0 = vrot.slane %v3971_v15, 4  ;;  %v5660_v6 = vrot.slane %v5644_v24, 9  ;;  %v4340_v37 = vrot.slane %v4338_v44, 4  ;;  %v4341_v7 = vrot.slane %v8974_v13, 5  ;;  %v8994_v3 = vld [vmem:[#allocation12_spill] sm:$0xff] }
 0x151   : > { %6127 = vmatprep.mubr.msk.bf16.mxu1 %vm669_vm4, %v6688_v29  ;;  %v3967_v50 = vsel %vm6821_vm3, %v3962_v45, %v3966_v21  ;;  %v4345_v29 = vrot.slane %v6741_v9, 5  ;;  %v5661_v59 = vrot.slane %v5645_v22, 9  ;;  %v4348_v17 = vrot.slane %v6742_v18, 5 }
 0x152   : > { %6260 = vmatmul.mubr.msk.bf16.gmra.mrb[20].mxu0 %vm669_vm4, %v5623_v30  ;;  %v3977_v23 = vsel %vm6821_vm3, %v3972_v0, %v3976_v42  ;;  %v4339_v31 = vsel %vm7230_vm7, %v5660_v6, %v4338_v44  ;;  %v4342_v63 = vsel %vm7230_vm7, %v4340_v37, %v4341_v7  ;;  %v8975_v40 = vcombine.low %v8085_v58, %v8097_v19  ;;  %v8980_v19 = vld [vmem:[#allocation5_spill] sm:$0xff] }
 0x153   : > { %6263 = vmatprep.mubr.msk.bf16.mxu0 %vm669_vm4, %v5624_v27  ;;  %v5627_v30 = vcombine.low %v3967_v50, %v3977_v23  ;;  %v5677_v27 = vcombine.low %v4339_v31, %v4342_v63  ;;  %v4347_v55 = vrot.slane %v4345_v29, 4  ;;  %v4346_v4 = vsel %vm7230_vm7, %v5661_v59, %v4345_v29 }
 0x154   : > { %v8976_v48 = vcombine.low %v8109_v53, %v8121_v14  ;;  %v8977_v54 = vcombine.low %v8114_v1, %v8130_v61  ;;  %v8979_v58 = vcombine.low %v8141_v36, %v8155_v43  ;;  %v8981_v53 = vcombine.low %v8169_v26, %v8980_v19  ;;  %v8982_v14 = vld [vmem:[#allocation4_spill] sm:$0xff]  ;;  %v8985_v61 = vld [vmem:[#allocation3_spill] sm:$0xff]  ;;  %v8991_v43 = vld [vmem:[#allocation10_spill] sm:$0xff] }
 0x155   : > { %v4349_v5 = vsel %vm7230_vm7, %v4347_v55, %v4348_v17  ;;  %v8984_v1 = vcombine.low %v8982_v14, %v8983_v28  ;;  %v8987_v35 = vcombine.low %v8985_v61, %v8986_v16  ;;  %v8993_v26 = vcombine.low %v8991_v43, %v8992_v46 }
 0x156   : > { %v5678_v21 = vcombine.low %v4346_v4, %v4349_v5  ;;  %v8995_v15 = vcombine.low %v8258_v57, %v8994_v3  ;;  %v8929_v52 = vmov 1.0  }
 0x158   : > { %6128 = vmatmul.mubr.msk.bf16.gmra.mrb[24].mxu1 %vm669_vm4, %v6689_v41  ;;  %v8989_v41 = vld [vmem:[#allocation9_spill] sm:$0xff] }
 0x159   : > { %6131 = vmatprep.mubr.msk.bf16.mxu1 %vm669_vm4, %v6690_v56  ;;  %v8990_v36 = vcombine.low %v8988_v12, %v8989_v41 }
 0x15a   : > { %6264 = vmatmul.mubr.msk.bf16.gmra.mrb[24].mxu0 %vm669_vm4, %v5625_v38 }
 0x15b   : > { %6267 = vmatprep.mubr.msk.bf16.mxu0 %vm669_vm4, %v5626_v11 }
 0x160   : > { %6132 = vmatmul.mubr.msk.bf16.gmra.mrb[28].mxu1 %vm669_vm4, %v6691_v34 }
 0x161   : > { %4967 = vmatprep.mubr.f32.mxu1 %v8929_v52 }
 0x162   : > { %6268 = vmatmul.mubr.msk.bf16.gmra.mrb[28].mxu0 %vm669_vm4, %v5627_v30 }
 0x163   : > { %6273 = vmatprep.mubr.msk.bf16.mxu0 %vm669_vm4, %v5677_v27 }
 0x16a   : > { %6274 = vmatmul.mubr.msk.bf16.vlgmr.msra.gmra.mrb[0].mxu0 %vm669_vm4, %v5678_v21 }
 0x16b   : > { %6277 = vmatprep.mubr.msk.bf16.mxu0 %vm669_vm4, %v8975_v40 }
 0x172   : > { %6278 = vmatmul.mubr.msk.bf16.gmra.mrb[4].mxu0 %vm669_vm4, %v8976_v48 }
 0x173   : > { %6281 = vmatprep.mubr.msk.bf16.mxu0 %vm669_vm4, %v8977_v54 }
 0x17a   : > { %6282 = vmatmul.mubr.msk.bf16.gmra.mrb[8].mxu0 %vm669_vm4, %v8978_v10 }
 0x17b   : > { %6285 = vmatprep.mubr.msk.bf16.mxu0 %vm669_vm4, %v8979_v58 }
 0x182   : > { %6286 = vmatmul.mubr.msk.bf16.gmra.mrb[12].mxu0 %vm669_vm4, %v8981_v53 }
 0x183   : > { %6289 = vmatprep.mubr.msk.bf16.mxu0 %vm669_vm4, %v8984_v1 }
 0x18a   : > { %6290 = vmatmul.mubr.msk.bf16.gmra.mrb[16].mxu0 %vm669_vm4, %v8987_v35 }
 0x18b   : > { %6293 = vmatprep.mubr.msk.bf16.mxu0 %vm669_vm4, %v8990_v36 }
 0x192   : > { %6294 = vmatmul.mubr.msk.bf16.gmra.mrb[20].mxu0 %vm669_vm4, %v8993_v26 }
 0x193   : > { %6297 = vmatprep.mubr.msk.bf16.mxu0 %vm669_vm4, %v8995_v15 }
 0x19a   : > { %6298 = vmatmul.mubr.msk.bf16.gmra.mrb[24].mxu0 %vm669_vm4, %v5690_v39 }
 0x19b   : > { %6301 = vmatprep.mubr.msk.bf16.mxu0 %vm669_vm4, %v5691_v2 }
 0x1a2   : > { %6302 = vmatmul.mubr.msk.bf16.gmra.mrb[28].mxu0 %vm669_vm4, %v5692_v33 }
 0x1fb   : > { %v6105_v25 = vpop.f32.mrb[0].mxu1 }
 0x1fc   : > { %v1832_v56 = vpop.f32.mrb[1].mxu1 }
 0x1fd   : > { %v6106_v57 = vpop.f32.mrb[2].mxu1 }
 0x1fe   : > { %v1835_v20 = vpop.f32.mrb[3].mxu1 }
 0x203   : > { %v6109_v49 = vpop.f32.mrb[4].mxu1 }
 0x204   : > { %v1848_v32 = vpop.f32.mrb[5].mxu1 }
 0x205   : > { %v6110_v44 = vpop.f32.mrb[6].mxu1 }
 0x206   : > { %v1851_v8 = vpop.f32.mrb[7].mxu1 }
 0x20b   : > { %v8512_v39 = vpop.f32.mrb[8].mxu1 }
 0x20c   : > { %v8514_v62 = vpop.f32.mrb[9].mxu1 }
 0x20d   : > { %v8516_v47 = vpop.f32.mrb[10].mxu1 }
 0x20e   : > { %v8518_v2 = vpop.f32.mrb[11].mxu1 }
 0x213   : > { %v8520_v60 = vpop.f32.mrb[12].mxu1 }
 0x214   : > { %v8522_v51 = vpop.f32.mrb[13].mxu1 }
 0x215   : > { %v8524_v33 = vpop.f32.mrb[14].mxu1 }
 0x216   : > { %v8526_v24 = vpop.f32.mrb[15].mxu1 }
 0x21b   : > { %v8528_v38 = vpop.f32.mrb[16].mxu1 }
 0x21c   : > { %v8530_v11 = vpop.f32.mrb[17].mxu1 }
 0x21d   : > { %v8532_v45 = vpop.f32.mrb[18].mxu1 }
 0x21e   : > { %v8534_v0 = vpop.f32.mrb[19].mxu1 }
 0x223   : > { %v8536_v42 = vpop.f32.mrb[20].mxu1 }
 0x224   : > { %v8538_v6 = vpop.f32.mrb[21].mxu1 }
 0x225   : > { %v8540_v37 = vpop.f32.mrb[22].mxu1 }
 0x226   : > { %v8542_v13 = vpop.f32.mrb[23].mxu1 }
 0x22b   : > { %v8544_v7 = vpop.f32.mrb[24].mxu1 }
 0x22c   : > { %v8546_v34 = vpop.f32.mrb[25].mxu1 }
 0x22d   : > { %v8548_v50 = vpop.f32.mrb[26].mxu1 }
 0x22e   : > { %v8550_v23 = vpop.f32.mrb[27].mxu1 }
 0x233   : > { %v8552_v9 = vpop.f32.mrb[28].mxu1 }
 0x234   : > { %v8554_v29 = vpop.f32.mrb[29].mxu1 }
 0x235   : > { %v8556_v31 = vpop.f32.mrb[30].mxu1 }
 0x236   : > { %v8558_v63 = vpop.f32.mrb[31].mxu1 }
 0x23d   : > { %v6275_v22 = vpop.f32.mrb[0].mxu0 }
 0x23e   : > { %v8561_v30 = vadd.f32 %v6275_v22, %v6105_v25  ;;  %v4583_v27 = vpop.f32.mrb[1].mxu0 }
 0x23f   : > { %v8568_v59 = vadd.f32 %v4583_v27, %v1832_v56  ;;  %v6276_v55 = vpop.f32.mrb[2].mxu0 }
 0x240   : > { %v5746_v18 = vpack.c.bf16 %v8561_v30, %v8561_v30  ;;  %v8572_v17 = vadd.f32 %v6276_v55, %v6106_v57  ;;  %v4586_v4 = vpop.f32.mrb[3].mxu0  ;;  %v8582_v40 = vmul.f32 %v8561_v30, %v8561_v30 }
 0x241   : > { %v5744_v5 = vpack.c.bf16 %v8568_v59, %v8568_v59  ;;  %v8576_v21 = vadd.f32 %v4586_v4, %v1835_v20  ;;  %v8596_v58 = vmul.f32 %v8568_v59, %v8568_v59 }
 0x242   : > { %4873 = vst.msk [vmem:[%s8566_s14 + $0x8] sm:$0xf] %vm4870_vm8, %v5746_v18  ;;  %v5747_v48 = vpack.c.bf16 %v8572_v17, %v8572_v17  ;;  %v6311_v54 = vpack.c.bf16 %v8572_v17, %v8561_v30  ;;  %v8590_v10 = vmul.f32 %v8572_v17, %v8572_v17 }
 0x243   : > { %4871 = vst.msk [vmem:[%s8566_s14] sm:$0xf] %vm4870_vm8, %v5744_v5  ;;  %v5745_v19 = vpack.c.bf16 %v8576_v21, %v8576_v21  ;;  %v6307_v53 = vpack.c.bf16 %v8576_v21, %v8568_v59  ;;  %v8604_v14 = vmul.f32 %v8576_v21, %v8576_v21 }
 0x244   : > { %4874 = vst.msk [vmem:[%s8566_s14 + $0xc] sm:$0xf] %vm4870_vm8, %v5747_v48 }
 0x245   : > { %4872 = vst.msk [vmem:[%s8566_s14 + $0x4] sm:$0xf] %vm4870_vm8, %v5745_v19  ;;  %v6279_v61 = vpop.f32.mrb[4].mxu0 }
 0x246   : > { %v8614_v16 = vadd.f32 %v6279_v61, %v6109_v49  ;;  %v4599_v35 = vpop.f32.mrb[5].mxu0 }
 0x247   : > { %v8616_v12 = vadd.f32 %v4599_v35, %v1848_v32  ;;  %v6280_v41 = vpop.f32.mrb[6].mxu0 }
 0x248   : > { %v5750_v36 = vpack.c.bf16 %v8614_v16, %v8614_v16  ;;  %v8620_v43 = vadd.f32 %v6280_v41, %v6110_v44  ;;  %v4602_v46 = vpop.f32.mrb[7].mxu0  ;;  %v8630_v15 = vmul.f32 %v8614_v16, %v8614_v16 }
 0x249   : > { %v5748_v26 = vpack.c.bf16 %v8616_v12, %v8616_v12  ;;  %v8624_v3 = vadd.f32 %v4602_v46, %v1851_v8  ;;  %v8644_v20 = vmul.f32 %v8616_v12, %v8616_v12 }
 0x24a   : > { %4877 = vst.msk [vmem:[%s8566_s14 + $0x18] sm:$0xf] %vm4870_vm8, %v5750_v36  ;;  %v5751_v25 = vpack.c.bf16 %v8620_v43, %v8620_v43  ;;  %v8638_v57 = vmul.f32 %v8620_v43, %v8620_v43 }
 0x24b   : > { %4875 = vst.msk [vmem:[%s8566_s14 + $0x10] sm:$0xf] %vm4870_vm8, %v5748_v26  ;;  %v5749_v49 = vpack.c.bf16 %v8624_v3, %v8624_v3  ;;  %v6315_v32 = vpack.c.bf16 %v8624_v3, %v8616_v12  ;;  %v8652_v44 = vmul.f32 %v8624_v3, %v8624_v3  ;;  %v8996_v3 = vpack.c.bf16 %v8620_v43, %v8614_v16 }
 0x24c   : > { %4878 = vst.msk [vmem:[%s8566_s14 + $0x1c] sm:$0xf] %vm4870_vm8, %v5751_v25 }
 0x24d   : > { %4876 = vst.msk [vmem:[%s8566_s14 + $0x14] sm:$0xf] %vm4870_vm8, %v5749_v49  ;;  %v6283_v27 = vpop.f32.mrb[8].mxu0 }
 0x24e   : > { %v8663_v55 = vadd.f32 %v6283_v27, %v8512_v39  ;;  %v4615_v18 = vpop.f32.mrb[9].mxu0 }
 0x24f   : > { %v8666_v4 = vadd.f32 %v4615_v18, %v8514_v62  ;;  %v6284_v5 = vpop.f32.mrb[10].mxu0 }
 0x250   : > { %v5754_v48 = vpack.c.bf16 %v8663_v55, %v8663_v55  ;;  %v8671_v19 = vadd.f32 %v6284_v5, %v8516_v47  ;;  %v4618_v61 = vpop.f32.mrb[11].mxu0  ;;  %v8682_v62 = vmul.f32 %v8663_v55, %v8663_v55 }
 0x251   : > { %v5752_v35 = vpack.c.bf16 %v8666_v4, %v8666_v4  ;;  %v8676_v39 = vadd.f32 %v4618_v61, %v8518_v2  ;;  %v8696_v2 = vmul.f32 %v8666_v4, %v8666_v4 }
 0x252   : > { %4881 = vst.msk [vmem:[%s8566_s14 + $0x28] sm:$0xf] %vm4870_vm8, %v5754_v48  ;;  %v5755_v41 = vpack.c.bf16 %v8671_v19, %v8671_v19  ;;  %v8690_v36 = vmul.f32 %v8671_v19, %v8671_v19 }
 0x253   : > { %4879 = vst.msk [vmem:[%s8566_s14 + $0x20] sm:$0xf] %vm4870_vm8, %v5752_v35  ;;  %v5753_v46 = vpack.c.bf16 %v8676_v39, %v8676_v39  ;;  %v8704_v25 = vmul.f32 %v8676_v39, %v8676_v39  ;;  %v8997_v43 = vpack.c.bf16 %v8676_v39, %v8666_v4  ;;  %v8998_v39 = vpack.c.bf16 %v8671_v19, %v8663_v55 }
 0x254   : > { %4882 = vst.msk [vmem:[%s8566_s14 + $0x2c] sm:$0xf] %vm4870_vm8, %v5755_v41  ;;  %v9001_v19 = vmov 1.0  }
 0x255   : > { %4880 = vst.msk [vmem:[%s8566_s14 + $0x24] sm:$0xf] %vm4870_vm8, %v5753_v46  ;;  %v6287_v18 = vpop.f32.mrb[12].mxu0 }
 0x256   : > { %v8715_v5 = vadd.f32 %v6287_v18, %v8520_v60  ;;  %v4631_v48 = vpop.f32.mrb[13].mxu0 }
 0x257   : > { %v8718_v61 = vadd.f32 %v4631_v48, %v8522_v51  ;;  %v6288_v35 = vpop.f32.mrb[14].mxu0 }
 0x258   : > { %v5758_v41 = vpack.c.bf16 %v8715_v5, %v8715_v5  ;;  %v8723_v49 = vadd.f32 %v6288_v35, %v8524_v33  ;;  %v4634_v46 = vpop.f32.mrb[15].mxu0  ;;  %v8734_v51 = vmul.f32 %v8715_v5, %v8715_v5 }
 0x259   : > { %v5756_v27 = vpack.c.bf16 %v8718_v61, %v8718_v61  ;;  %v8728_v60 = vadd.f32 %v4634_v46, %v8526_v24  ;;  %v8748_v24 = vmul.f32 %v8718_v61, %v8718_v61 }
 0x25a   : > { %4885 = vst.msk [vmem:[%s8566_s14 + $0x38] sm:$0xf] %vm4870_vm8, %v5758_v41  ;;  %v5759_v18 = vpack.c.bf16 %v8723_v49, %v8723_v49  ;;  %v8742_v48 = vmul.f32 %v8723_v49, %v8723_v49  ;;  %v9000_v55 = vpack.c.bf16 %v8723_v49, %v8715_v5  ;;  %v9003_v49 = vpack.c.bf16 %v8590_v10, %v8582_v40 }
 0x25b   : > { %4883 = vst.msk [vmem:[%s8566_s14 + $0x30] sm:$0xf] %vm4870_vm8, %v5756_v27  ;;  %v5757_v35 = vpack.c.bf16 %v8728_v60, %v8728_v60  ;;  %v8756_v46 = vmul.f32 %v8728_v60, %v8728_v60  ;;  %v9004_v5 = vpack.c.bf16 %v8652_v44, %v8644_v20  ;;  %v9006_v40 = vpack.c.bf16 %v8704_v25, %v8696_v2 }
 0x25c   : > { %4886 = vst.msk [vmem:[%s8566_s14 + $0x3c] sm:$0xf] %vm4870_vm8, %v5759_v18  ;;  %v9007_v10 = vpack.c.bf16 %v8690_v36, %v8682_v62 }
 0x25d   : > { %4884 = vst.msk [vmem:[%s8566_s14 + $0x34] sm:$0xf] %vm4870_vm8, %v5757_v35  ;;  %v6291_v22 = vpop.f32.mrb[16].mxu0 }
 0x25e   : > { %v6385_v28 = vadd.f32 %v6291_v22, %v8528_v38  ;;  %v4647_v1 = vpop.f32.mrb[17].mxu0 }
 0x25f   : > { %v6386_v52 = vadd.f32 %v4647_v1, %v8530_v11  ;;  %v6292_v33 = vpop.f32.mrb[18].mxu0 }
 0x260   : > { %v5762_v41 = vpack.c.bf16 %v6385_v28, %v6385_v28  ;;  %v6387_v18 = vadd.f32 %v6292_v33, %v8532_v45  ;;  %v4650_v47 = vpop.f32.mrb[19].mxu0  ;;  %v8772_v8 = vmul.f32 %v6385_v28, %v6385_v28 }
 0x261   : > { %v5760_v27 = vpack.c.bf16 %v6386_v52, %v6386_v52  ;;  %v6388_v35 = vadd.f32 %v4650_v47, %v8534_v0  ;;  %v8778_v11 = vmul.f32 %v6386_v52, %v6386_v52 }
 0x262   : > { %4889 = vst.msk [vmem:[%s8566_s14 + $0x48] sm:$0xf] %vm4870_vm8, %v5762_v41  ;;  %v5763_v26 = vpack.c.bf16 %v6387_v18, %v6387_v18  ;;  %v8774_v56 = vmul.f32 %v6387_v18, %v6387_v18  ;;  %v6309_v38 = vpack.c.bf16 %v6387_v18, %v6385_v28 }
 0x263   : > { %4887 = vst.msk [vmem:[%s8566_s14 + $0x40] sm:$0xf] %vm4870_vm8, %v5760_v27  ;;  %v5761_v1 = vpack.c.bf16 %v6388_v35, %v6388_v35  ;;  %v8780_v22 = vmul.f32 %v6388_v35, %v6388_v35  ;;  %v6305_v45 = vpack.c.bf16 %v6388_v35, %v6386_v52 }
 0x264   : > { %4890 = vst.msk [vmem:[%s8566_s14 + $0x4c] sm:$0xf] %vm4870_vm8, %v5763_v26  ;;  %v6341_v0 = vpack.c.bf16 %v8774_v56, %v8772_v8 }
 0x265   : > { %4888 = vst.msk [vmem:[%s8566_s14 + $0x44] sm:$0xf] %vm4870_vm8, %v5761_v1  ;;  %v6295_v47 = vpop.f32.mrb[20].mxu0  ;;  %6306 = vmatprep.subr.bf16.mxu1 %v6305_v45  ;;  %v6337_v28 = vpack.c.bf16 %v8780_v22, %v8778_v11 }
 0x266   : > { %v6389_v33 = vadd.f32 %v6295_v47, %v8536_v42  ;;  %v4663_v41 = vpop.f32.mrb[21].mxu0  ;;  %6308 = vmatpush3.bf16.msra.mxu1 %v6307_v53 }
 0x267   : > { %v6390_v52 = vadd.f32 %v4663_v41, %v8538_v6  ;;  %v6296_v26 = vpop.f32.mrb[22].mxu0  ;;  %6310 = vmatprep.subr.bf16.mxu1 %v6309_v38 }
 0x268   : > { %v5766_v27 = vpack.c.bf16 %v6389_v33, %v6389_v33  ;;  %v6391_v18 = vadd.f32 %v6296_v26, %v8540_v37  ;;  %v4666_v35 = vpop.f32.mrb[23].mxu0  ;;  %v8799_v42 = vmul.f32 %v6389_v33, %v6389_v33 }
 0x269   : > { %v5764_v1 = vpack.c.bf16 %v6390_v52, %v6390_v52  ;;  %v6392_v45 = vadd.f32 %v4666_v35, %v8542_v13  ;;  %v8808_v37 = vmul.f32 %v6390_v52, %v6390_v52 }
 0x26a   : > { %4893 = vst.msk [vmem:[%s8566_s14 + $0x58] sm:$0xf] %vm4870_vm8, %v5766_v27  ;;  %v5767_v59 = vpack.c.bf16 %v6391_v18, %v6391_v18  ;;  %v8801_v21 = vmul.f32 %v6391_v18, %v6391_v18  ;;  %6312 = vmatpush3.bf16.msra.mxu1 %v6311_v54  ;;  %v6317_v6 = vpack.c.bf16 %v6391_v18, %v6389_v33 }
 0x26b   : > { %4891 = vst.msk [vmem:[%s8566_s14 + $0x50] sm:$0xf] %vm4870_vm8, %v5764_v1  ;;  %v5765_v53 = vpack.c.bf16 %v6392_v45, %v6392_v45  ;;  %v8810_v38 = vmul.f32 %v6392_v45, %v6392_v45  ;;  %v6313_v13 = vpack.c.bf16 %v6392_v45, %v6390_v52 }
 0x26c   : > { %4894 = vst.msk [vmem:[%s8566_s14 + $0x5c] sm:$0xf] %vm4870_vm8, %v5767_v59  ;;  %v6349_v47 = vpack.c.bf16 %v8801_v21, %v8799_v42 }
 0x26d   : > { %4892 = vst.msk [vmem:[%s8566_s14 + $0x54] sm:$0xf] %vm4870_vm8, %v5765_v53  ;;  %v6299_v41 = vpop.f32.mrb[24].mxu0  ;;  %6314 = vmatprep.subr.bf16.mxu1 %v6313_v13  ;;  %v6345_v30 = vpack.c.bf16 %v8810_v38, %v8808_v37 }
 0x26e   : > { %v6393_v17 = vadd.f32 %v6299_v41, %v8544_v7  ;;  %v4679_v54 = vpop.f32.mrb[25].mxu0  ;;  %6316 = vmatpush3.bf16.msra.mxu1 %v6315_v32 }
 0x26f   : > { %v6394_v33 = vadd.f32 %v4679_v54, %v8546_v34  ;;  %v6300_v52 = vpop.f32.mrb[26].mxu0  ;;  %6318 = vmatprep.subr.bf16.mxu1 %v6317_v6 }
 0x270   : > { %v5770_v26 = vpack.c.bf16 %v6393_v17, %v6393_v17  ;;  %v6395_v27 = vadd.f32 %v6300_v52, %v8548_v50  ;;  %v4682_v18 = vpop.f32.mrb[27].mxu0  ;;  %v5001_v7 = vmul.f32 %v6393_v17, %v6393_v17 }
 0x271   : > { %v5768_v35 = vpack.c.bf16 %v6394_v33, %v6394_v33  ;;  %v6396_v1 = vadd.f32 %v4682_v18, %v8550_v23  ;;  %v4999_v32 = vmul.f32 %v6394_v33, %v6394_v33 }
 0x272   : > { %4897 = vst.msk [vmem:[%s8566_s14 + $0x68] sm:$0xf] %vm4870_vm8, %v5770_v26  ;;  %v5771_v45 = vpack.c.bf16 %v6395_v27, %v6395_v27  ;;  %v5002_v12 = vmul.f32 %v6395_v27, %v6395_v27  ;;  %6320 = vmatpush3.bf16.msra.mxu1 %v8996_v3  ;;  %v6325_v34 = vpack.c.bf16 %v6395_v27, %v6393_v17 }
 0x273   : > { %4895 = vst.msk [vmem:[%s8566_s14 + $0x60] sm:$0xf] %vm4870_vm8, %v5768_v35  ;;  %v5769_v59 = vpack.c.bf16 %v6396_v1, %v6396_v1  ;;  %v5000_v50 = vmul.f32 %v6396_v1, %v6396_v1  ;;  %v6321_v6 = vpack.c.bf16 %v6396_v1, %v6394_v33  ;;  %v8999_v3 = vpack.c.bf16 %v8728_v60, %v8718_v61 }
 0x274   : > { %4898 = vst.msk [vmem:[%s8566_s14 + $0x6c] sm:$0xf] %vm4870_vm8, %v5771_v45  ;;  %v6357_v53 = vpack.c.bf16 %v5002_v12, %v5001_v7 }
 0x275   : > { %4896 = vst.msk [vmem:[%s8566_s14 + $0x64] sm:$0xf] %vm4870_vm8, %v5769_v59  ;;  %v6303_v23 = vpop.f32.mrb[28].mxu0  ;;  %6322 = vmatprep.subr.bf16.mxu1 %v6321_v6  ;;  %v6353_v13 = vpack.c.bf16 %v5000_v50, %v4999_v32 }
 0x276   : > { %v6397_v41 = vadd.f32 %v6303_v23, %v8552_v9  ;;  %v4695_v16 = vpop.f32.mrb[29].mxu0  ;;  %6324 = vmatpush3.bf16.msra.mxu1 %v8997_v43 }
 0x277   : > { %v6398_v17 = vadd.f32 %v4695_v16, %v8554_v29  ;;  %v6304_v54 = vpop.f32.mrb[30].mxu0  ;;  %6326 = vmatprep.subr.bf16.mxu1 %v6325_v34  ;;  %v9002_v34 = vpack.c.bf16 %v8604_v14, %v8596_v58  ;;  %v9005_v58 = vpack.c.bf16 %v8638_v57, %v8630_v15  ;;  %v9008_v14 = vpack.c.bf16 %v8756_v46, %v8748_v24 }
 0x278   : > { %v5774_v33 = vpack.c.bf16 %v6397_v41, %v6397_v41  ;;  %v6399_v52 = vadd.f32 %v6304_v54, %v8556_v31  ;;  %v4698_v26 = vpop.f32.mrb[31].mxu0  ;;  %v5005_v9 = vmul.f32 %v6397_v41, %v6397_v41  ;;  %v9009_v15 = vpack.c.bf16 %v8742_v48, %v8734_v51 }
 0x279   : > { %v5772_v27 = vpack.c.bf16 %v6398_v17, %v6398_v17  ;;  %v6400_v18 = vadd.f32 %v4698_v26, %v8558_v63  ;;  %v5003_v1 = vmul.f32 %v6398_v17, %v6398_v17 }
 0x27a   : > { %4901 = vst.msk [vmem:[%s8566_s14 + $0x78] sm:$0xf] %vm4870_vm8, %v5774_v33  ;;  %v5775_v35 = vpack.c.bf16 %v6399_v52, %v6399_v52  ;;  %v5006_v4 = vmul.f32 %v6399_v52, %v6399_v52  ;;  %6328 = vmatpush3.bf16.msra.mxu1 %v8998_v39  ;;  %v6333_v29 = vpack.c.bf16 %v6399_v52, %v6397_v41 }
 0x27b   : > { %4899 = vst.msk [vmem:[%s8566_s14 + $0x70] sm:$0xf] %vm4870_vm8, %v5772_v27  ;;  %v5773_v7 = vpack.c.bf16 %v6400_v18, %v6400_v18  ;;  %v5004_v31 = vmul.f32 %v6400_v18, %v6400_v18  ;;  %v6329_v45 = vpack.c.bf16 %v6400_v18, %v6398_v17 }
 0x27c   : > { %4902 = vst.msk [vmem:[%s8566_s14 + $0x7c] sm:$0xf] %vm4870_vm8, %v5775_v35  ;;  %v6365_v12 = vpack.c.bf16 %v5006_v4, %v5005_v9 }
 0x27d   : > { %4900 = vst.msk [vmem:[%s8566_s14 + $0x74] sm:$0xf] %vm4870_vm8, %v5773_v7  ;;  %6330 = vmatprep.subr.bf16.mxu1 %v6329_v45  ;;  %v6361_v63 = vpack.c.bf16 %v5004_v31, %v5003_v1 }
 0x27e   : > { %6332 = vmatpush3.bf16.msra.mxu1 %v8999_v3 }
 0x27f   : > { %6334 = vmatprep.subr.bf16.mxu1 %v6333_v29 }
 0x282   : > { %6336 = vmatpush3.bf16.msra.mxu1 %v9000_v55 }
 0x283   : > { %6338 = vmatprep.subr.bf16.mxu1 %v6337_v28 }
 0x285   : > { %4968 = vmatmul.mubr.f32.vlgmr.msra.gmra.mrb[32].mxu1 %v9001_v19 }
 0x286   : > { %6340 = vmatpush3.bf16.msra.mxu1 %v9002_v34  ;;  %5071 = vmatprep.mubr.f32.mxu1 %v9001_v19 }
 0x287   : > { %6342 = vmatprep.subr.bf16.mxu1 %v6341_v0 }
 0x28a   : > { %6344 = vmatpush3.bf16.msra.mxu1 %v9003_v49 }
 0x28b   : > { %6346 = vmatprep.subr.bf16.mxu1 %v6345_v30 }
 0x28e   : > { %6348 = vmatpush3.bf16.msra.mxu1 %v9004_v5 }
 0x28f   : > { %6350 = vmatprep.subr.bf16.mxu1 %v6349_v47 }
 0x292   : > { %6352 = vmatpush3.bf16.msra.mxu1 %v9005_v58 }
 0x293   : > { %6354 = vmatprep.subr.bf16.mxu1 %v6353_v13 }
 0x296   : > { %6356 = vmatpush3.bf16.msra.mxu1 %v9006_v40 }
 0x297   : > { %6358 = vmatprep.subr.bf16.mxu1 %v6357_v53 }
 0x29a   : > { %6360 = vmatpush3.bf16.msra.mxu1 %v9007_v10 }
 0x29b   : > { %6362 = vmatprep.subr.bf16.mxu1 %v6361_v63 }
 0x29e   : > { %6364 = vmatpush3.bf16.msra.mxu1 %v9008_v14 }
 0x29f   : > { %6366 = vmatprep.subr.bf16.mxu1 %v6365_v12 }
 0x2a2   : > { %6368 = vmatpush3.bf16.msra.mxu1 %v9009_v15 }
 0x2a5   : > { %5072 = vmatmul.mubr.f32.vlgmr.msra.gmra.mrb[34].mxu1 %v9001_v19 }
 0x358   : > { %v5961_v56 = vpop.f32.mrb[32].mxu1 }
 0x359   : > { %v5962_v57 = vpop.f32.mrb[33].mxu1 }
 0x35a   : > { %v5963_v20 = vadd.f32 %v5962_v57, %v5961_v56 }
 0x35c   : > { %4974 = vst.msk [vmem:[%s181_s18] sm:$0x1] %vm4973_vm9, %v5963_v20 }
 0x378   : > { %v5996_v44 = vpop.f32.mrb[34].mxu1 }
 0x379   : > { %v5997_v8 = vpop.f32.mrb[35].mxu1 }
 0x37a   : > { %v5998_v62 = vadd.f32 %v5997_v8, %v5996_v44 }
 0x37c   : > { %5077 = vst.msk [vmem:[%s181_s18 + $0x1] sm:$0x1] %vm4973_vm9, %v5998_v62 }
 0x37d PF: > { %s14_s12 = sadd.s32 1, %s6749_s12  }
 0x37e   : > { %p11_p4 = scmp.ge.s32.totalorder %s14_s12, 4  }
 0x380   :  { %13 = sbr.rel (!%p11_p4) target bundleno = 1 (0x1), region = 80 }

// kernel: unet_conv2_forward.4
= control target key start
LH: loop header
LB: loop body
LE: loop exit
PB: predicated region body
PF: predicated region fallthrough
CT: control target
= control target key end

     0   :  { %s6772_s12 = smov 0   ;;  %s8908_s0 = inlined_call_operand.vmem [shape: bf16[2,18,18,8], index: 0, kind: input, shape index: {}]   ;;  %s8909_s1 = inlined_call_operand.vmem [shape: bf16[9,8,8], index: 1, kind: input, shape index: {}]   ;;  %s8910_s2 = inlined_call_operand.vmem [shape: bf16[2,256,8], index: 2, kind: output, shape index: {0}]   ;;  %s8911_s3 = inlined_call_operand.vmem [shape: f32[2,2,8], index: 3, kind: output, shape index: {1}]  }
   0x1 LB: > { %s5164_s13 = sadd.s32 4294967295, %s6749_s12   ;;  %p5168_p0 = scmp.ge.s32.totalorder %s6749_s12, 1  ;;  %s6749_s12 = sphi %s6772_s12, %s14_s12  }
   0x2   : > { %p140_p1 = scmp.lt.s32.totalorder %s6749_s12, 3 }
   0x4   : > { %p141_p2 = pnand %p5168_p0, %p140_p1 }
   0x6   : > { %144 = sbr.rel (%p141_p2) target bundleno = 893 (0x37d), region = 28 }
   0xd   : > { %v5173_v0 = vld [vmem:[%s8909_s1 + $0x4] sm:$0xf]  ;;  %vm718_vm0 = vcmask 1043456   ;;  %v5400_v1 = vld [vmem:[%s8909_s1 + $0x10] sm:$0xf]  ;;  %p168_p3 = scmp.lt.s32.totalorder %s5164_s13, 1 }
   0xe   : > { %6625 = vmatprep.subr.msk.bf16.mxu1 %vm718_vm0, %v5173_v0  ;;  %6629 = vmatprep.subr.msk.bf16.mxu0 %vm718_vm0, %v5400_v1  ;;  %v720_v2 = vsel %vm718_vm0, %v5173_v0, 0  ;;  %v2522_v3 = vsel %vm718_vm0, %v5400_v1, 0  ;;  %v6795_v4 = vld [vmem:[%s8909_s1 + $0x14] sm:$0xf]  ;;  %vm232_vm1 = vsmask.f32 3328 }
   0xf   : > { %6000 = vmatpush3.bf16.msra.mxu1 %v720_v2  ;;  %6136 = vmatpush3.bf16.msra.mxu0 %v2522_v3  ;;  %s9011_s13 = smov (!%p168_p3, %s5164_s13), 1  ;;  %vm233_vm2 = vsmask.f32 7440  ;;  %v8931_v29 = vmov 0  ;;  %vm669_vm4 = vcmask 64512   ;;  %v6844_v60 = vsel %vm718_vm0, %v6795_v4, 0 }
  0x10   : > { %6630 = vmatprep.subr.msk.bf16.mxu0 %vm718_vm0, %v6795_v4  ;;  %s6634_s20 = smul.u32 216, %s9011_s13  ;;  %vm6821_vm3 = vmor %vm232_vm1, %vm233_vm2  ;;  %vm1223_vm5 = vcmask 1042432   ;;  %vm1224_vm6 = vcmask 1046532   ;;  %s5743_s9 = sshll.u32 %s9011_s13, 7  ;;  %vm4870_vm8 = vcmask 60416   ;;  %vm4973_vm9 = vcmask 57344  }
  0x11   : > { %v8932_v29 = vsel %vm6821_vm3, 4294967295, %v8931_v29  ;;  %vm7230_vm7 = vmor %vm1223_vm5, %vm1224_vm6  ;;  %s8566_s14 = scalar_lea.vmem %s8910_s2, %s5743_s9  ;;  %s5172_s15 = sshll.u32 %s9011_s13, 1 }
  0x12   : > { %s6803_s23 = scalar_lea.vmem %s8908_s0, %s6634_s20  ;;  %8933 = vst [vmem:[#allocation2_spill] sm:$0xff] %v8932_v29  ;;  %s181_s18 = scalar_lea.vmem %s8911_s3, %s5172_s15 }
  0x13   : > { %v183_v5 = vld [vmem:[%s6803_s23] sm:$0xf]  ;;  %v184_v6 = vld [vmem:[%s6803_s23 + $0x4] sm:$0xf]  ;;  %v216_v7 = vld [vmem:[%s6803_s23 + $0x8] sm:$0x1] }
  0x14   : > { %v236_v8 = vshrl.u32 %v183_v5, 16  ;;  %v239_v9 = vshll.u32 %v183_v5, 16  ;;  %v245_v10 = vshll.u32 %v184_v6, 16  ;;  %v249_v11 = vshrl.u32 %v184_v6, 16  ;;  %v5352_v12 = vld [vmem:[%s6803_s23 + $0xc] sm:$0xf] }
  0x15   : > { %v255_v13 = vshll.u32 %v216_v7, 16  ;;  %v6810_v14 = vld [vmem:[%s6803_s23 + $0x10] sm:$0xf]  ;;  %v6813_v15 = vld [vmem:[%s6803_s23 + $0x14] sm:$0x1]  ;;  %v2040_v21 = vshrl.u32 %v5352_v12, 16 }
  0x16   : > { %v238_v16 = vrot.slane %v236_v8, 4  ;;  %v241_v17 = vrot.slane %v239_v9, 5  ;;  %v247_v18 = vrot.slane %v245_v10, 5  ;;  %v251_v19 = vrot.slane %v249_v11, 4  ;;  %v185_v28 = vld [vmem:[%s6803_s23 + $0xc] sm:$0xf] }
  0x17   : > { %v257_v20 = vrot.slane %v255_v13, 5  ;;  %v2043_v22 = vshll.u32 %v5352_v12, 16  ;;  %v2049_v23 = vshll.u32 %v6810_v14, 16  ;;  %v2053_v26 = vshrl.u32 %v6810_v14, 16  ;;  %v186_v33 = vld [vmem:[%s6803_s23 + $0x10] sm:$0xf] }
  0x18   : > { %v242_v24 = vor.u32 %v241_v17, %v238_v16  ;;  %v252_v25 = vor.u32 %v251_v19, %v247_v18  ;;  %v2059_v27 = vshll.u32 %v6813_v15, 16  ;;  %v2042_v30 = vrot.slane %v2040_v21, 4  ;;  %v217_v39 = vld [vmem:[%s6803_s23 + $0x14] sm:$0x1]  ;;  %v5355_v50 = vld [vmem:[%s6803_s23 + $0x18] sm:$0xf] }
  0x19   : > { %v2045_v31 = vrot.slane %v2043_v22, 5  ;;  %v2051_v32 = vrot.slane %v2049_v23, 5  ;;  %v2055_v36 = vrot.slane %v2053_v26, 4  ;;  %v260_v40 = vshrl.u32 %v185_v28, 16  ;;  %v6833_v55 = vld [vmem:[%s6803_s23 + $0x1c] sm:$0xf] }
  0x1a   : > { %v243_v34 = vrot.slane %v242_v24, 4  ;;  %v253_v35 = vrot.slane %v252_v25, 4  ;;  %v2061_v38 = vrot.slane %v2059_v27, 5  ;;  %v263_v41 = vshll.u32 %v185_v28, 16  ;;  %v6840_v59 = vld [vmem:[%s6803_s23 + $0x20] sm:$0x1] }
  0x1b   : > { %v2046_v37 = vor.u32 %v2045_v31, %v2042_v30  ;;  %v2056_v44 = vor.u32 %v2055_v36, %v2051_v32  ;;  %v269_v45 = vshll.u32 %v186_v33, 16  ;;  %v262_v48 = vrot.slane %v260_v40, 4  ;;  %v187_v9 = vld [vmem:[%s6803_s23 + $0x18] sm:$0xf]  ;;  %v188_v16 = vld [vmem:[%s6803_s23 + $0x1c] sm:$0xf] }
  0x1c   : > { %v248_v42 = vsel %vm6821_vm3, %v243_v34, %v247_v18  ;;  %v258_v43 = vsel %vm6821_vm3, %v253_v35, %v257_v20  ;;  %v265_v49 = vrot.slane %v263_v41, 5  ;;  %v273_v53 = vshrl.u32 %v186_v33, 16  ;;  %v218_v23 = vld [vmem:[%s6803_s23 + $0x20] sm:$0x1]  ;;  %v5358_v31 = vld [vmem:[%s6803_s23 + $0x24] sm:$0xf] }
  0x1d   : > { %v5174_v46 = vcombine.low %v248_v42, %v258_v43  ;;  %v2047_v47 = vrot.slane %v2046_v37, 4  ;;  %v2057_v51 = vrot.slane %v2056_v44, 4  ;;  %v271_v52 = vrot.slane %v269_v45, 5  ;;  %v5359_v36 = vld [vmem:[%s6803_s23 + $0x28] sm:$0xf] }
  0x1e   : > { %v279_v54 = vshll.u32 %v217_v39, 16  ;;  %v2783_v57 = vrot.slane %v6810_v14, 5  ;;  %v266_v58 = vor.u32 %v265_v49, %v262_v48  ;;  %v275_v62 = vrot.slane %v273_v53, 4  ;;  %v5360_v43 = vld [vmem:[%s6803_s23 + $0x2c] sm:$0x1] }
  0x1f   : > { %6001 = vmatprep.mubr.msk.bf16.mxu1 %vm669_vm4, %v5174_v46  ;;  %v2052_v56 = vsel %vm6821_vm3, %v2047_v47, %v2051_v32  ;;  %v2062_v61 = vsel %vm6821_vm3, %v2057_v51, %v2061_v38  ;;  %v2064_v0 = vshrl.u32 %v5355_v50, 16  ;;  %v2067_v3 = vshll.u32 %v5355_v50, 16  ;;  %v189_v50 = vld [vmem:[%s6803_s23 + $0x24] sm:$0xf] }
  0x20   : > { %v281_v63 = vrot.slane %v279_v54, 5  ;;  %v5401_v1 = vcombine.low %v2052_v56, %v2062_v61  ;;  %v267_v2 = vrot.slane %v266_v58, 4  ;;  %v2073_v5 = vshll.u32 %v6833_v55, 16  ;;  %v190_v56 = vld [vmem:[%s6803_s23 + $0x28] sm:$0xf] }
  0x21   : > { %v276_v6 = vor.u32 %v275_v62, %v271_v52  ;;  %v2066_v7 = vrot.slane %v2064_v0, 4  ;;  %v2077_v8 = vshrl.u32 %v6833_v55, 16  ;;  %v2083_v4 = vshll.u32 %v6840_v59, 16 }
  0x22   : > { %6137 = vmatprep.mubr.msk.bf16.mxu0 %vm669_vm4, %v5401_v1  ;;  %v272_v11 = vsel %vm6821_vm3, %v267_v2, %v271_v52  ;;  %v2069_v12 = vrot.slane %v2067_v3, 5  ;;  %v2075_v13 = vrot.slane %v2073_v5, 5  ;;  %v2790_v20 = vrot.slane %v6833_v55, 5  ;;  %v219_v2 = vld [vmem:[%s6803_s23 + $0x2c] sm:$0x1] }
  0x23   : > { %v277_v17 = vrot.slane %v276_v6, 4  ;;  %v2079_v18 = vrot.slane %v2077_v8, 4  ;;  %v2085_v19 = vrot.slane %v2083_v4, 5  ;;  %v284_v24 = vshrl.u32 %v187_v9, 16 }
  0x24   : > { %v2070_v21 = vor.u32 %v2069_v12, %v2066_v7  ;;  %v287_v25 = vshll.u32 %v187_v9, 16  ;;  %v293_v28 = vshll.u32 %v188_v16, 16  ;;  %v297_v30 = vshrl.u32 %v188_v16, 16  ;;  %v5361_v9 = vld [vmem:[%s6803_s23 + $0x30] sm:$0xf] }
  0x25   : > { %v282_v26 = vsel %vm6821_vm3, %v277_v17, %v281_v63  ;;  %v2080_v27 = vor.u32 %v2079_v18, %v2075_v13  ;;  %v286_v34 = vrot.slane %v284_v24, 4  ;;  %v303_v40 = vshll.u32 %v218_v23, 16  ;;  %v5362_v17 = vld [vmem:[%s6803_s23 + $0x34] sm:$0xf] }
  0x26   : > { %v5175_v32 = vcombine.low %v272_v11, %v282_v26  ;;  %v2071_v33 = vrot.slane %v2070_v21, 4  ;;  %v289_v35 = vrot.slane %v287_v25, 5  ;;  %v295_v38 = vrot.slane %v293_v28, 5  ;;  %v5363_v26 = vld [vmem:[%s6803_s23 + $0x38] sm:$0x1] }
  0x27   : > { %v2081_v37 = vrot.slane %v2080_v27, 4  ;;  %v299_v39 = vrot.slane %v297_v30, 4  ;;  %v2088_v44 = vshrl.u32 %v5358_v31, 16  ;;  %v2091_v45 = vshll.u32 %v5358_v31, 16 }
  0x28   : > { %6002 = vmatmul.mubr.msk.bf16.vlgmr.msra.gmra.mrb[0].mxu1 %vm669_vm4, %v5175_v32  ;;  %v2076_v41 = vsel %vm6821_vm3, %v2071_v33, %v2075_v13  ;;  %v290_v42 = vor.u32 %v289_v35, %v286_v34  ;;  %v305_v48 = vrot.slane %v303_v40, 5  ;;  %v2097_v49 = vshll.u32 %v5359_v36, 16 }
  0x29   : > { %v2086_v46 = vsel %vm6821_vm3, %v2081_v37, %v2085_v19  ;;  %v300_v47 = vor.u32 %v299_v39, %v295_v38  ;;  %v2090_v53 = vrot.slane %v2088_v44, 4  ;;  %v2093_v54 = vrot.slane %v2091_v45, 5  ;;  %v191_v37 = vld [vmem:[%s6803_s23 + $0x30] sm:$0xf] }
  0x2a   : > { %v5402_v51 = vcombine.low %v2076_v41, %v2086_v46  ;;  %v291_v52 = vrot.slane %v290_v42, 4  ;;  %v2099_v61 = vrot.slane %v2097_v49, 5  ;;  %v2101_v62 = vshrl.u32 %v5359_v36, 16  ;;  %v192_v42 = vld [vmem:[%s6803_s23 + $0x34] sm:$0xf] }
  0x2b   : > { %v301_v58 = vrot.slane %v300_v47, 4  ;;  %v2107_v63 = vshll.u32 %v5360_v43, 16  ;;  %v2094_v1 = vor.u32 %v2093_v54, %v2090_v53  ;;  %v308_v3 = vshrl.u32 %v189_v50, 16  ;;  %v220_v47 = vld [vmem:[%s6803_s23 + $0x38] sm:$0x1] }
  0x2c   : > { %6138 = vmatmul.mubr.msk.bf16.vlgmr.msra.gmra.mrb[0].mxu0 %vm669_vm4, %v5402_v51  ;;  %v296_v0 = vsel %vm6821_vm3, %v291_v52, %v295_v38  ;;  %v311_v5 = vshll.u32 %v189_v50, 16  ;;  %v2103_v7 = vrot.slane %v2101_v62, 4  ;;  %v317_v4 = vshll.u32 %v190_v56, 16 }
  0x2d   : > { %v306_v6 = vsel %vm6821_vm3, %v301_v58, %v305_v48  ;;  %v2109_v8 = vrot.slane %v2107_v63, 5  ;;  %6170 = vmatpush3.bf16.msra.mxu0 %v6844_v60  ;;  %v2095_v12 = vrot.slane %v2094_v1, 4  ;;  %v310_v13 = vrot.slane %v308_v3, 4  ;;  %v5364_v58 = vld [vmem:[%s6803_s23 + $0x3c] sm:$0xf] }
  0x2e   : > { %v5176_v11 = vcombine.low %v296_v0, %v306_v6  ;;  %v313_v16 = vrot.slane %v311_v5, 5  ;;  %v2104_v18 = vor.u32 %v2103_v7, %v2099_v61  ;;  %v319_v19 = vrot.slane %v317_v4, 5  ;;  %v5365_v1 = vld [vmem:[%s6803_s23 + $0x40] sm:$0xf] }
  0x2f   : > { %v321_v21 = vshrl.u32 %v190_v56, 16  ;;  %v327_v23 = vshll.u32 %v219_v2, 16  ;;  %v2100_v24 = vsel %vm6821_vm3, %v2095_v12, %v2099_v61  ;;  %v2112_v27 = vshrl.u32 %v5361_v9, 16 }
  0x30   : > { %6005 = vmatprep.mubr.msk.bf16.mxu1 %vm669_vm4, %v5176_v11  ;;  %v314_v25 = vor.u32 %v313_v16, %v310_v13  ;;  %v2115_v60 = vshll.u32 %v5361_v9, 16  ;;  %v2105_v28 = vrot.slane %v2104_v18, 4  ;;  %v2121_v32 = vshll.u32 %v5362_v17, 16  ;;  %v5366_v9 = vld [vmem:[%s6803_s23 + $0x44] sm:$0x1] }
  0x31   : > { %v323_v30 = vrot.slane %v321_v21, 4  ;;  %v329_v31 = vrot.slane %v327_v23, 5  ;;  %v2114_v34 = vrot.slane %v2112_v27, 4  ;;  %v2125_v36 = vshrl.u32 %v5362_v17, 16  ;;  %v193_v18 = vld [vmem:[%s6803_s23 + $0x3c] sm:$0xf] }
  0x32   : > { %v315_v33 = vrot.slane %v314_v25, 4  ;;  %v2117_v35 = vrot.slane %v2115_v60, 5  ;;  %v2110_v38 = vsel %vm6821_vm3, %v2105_v28, %v2109_v8  ;;  %v2123_v40 = vrot.slane %v2121_v32, 5  ;;  %v194_v25 = vld [vmem:[%s6803_s23 + $0x40] sm:$0xf] }
  0x33   : > { %v324_v39 = vor.u32 %v323_v30, %v319_v19  ;;  %v2131_v41 = vshll.u32 %v5363_v26, 16  ;;  %v5403_v43 = vcombine.low %v2100_v24, %v2110_v38  ;;  %v2127_v46 = vrot.slane %v2125_v36, 4 }
  0x34   : > { %v320_v44 = vsel %vm6821_vm3, %v315_v33, %v319_v19  ;;  %v2118_v45 = vor.u32 %v2117_v35, %v2114_v34  ;;  %v332_v50 = vshrl.u32 %v191_v37, 16  ;;  %v335_v51 = vshll.u32 %v191_v37, 16  ;;  %v221_v37 = vld [vmem:[%s6803_s23 + $0x44] sm:$0x1] }
  0x35   : > { %v325_v48 = vrot.slane %v324_v39, 4  ;;  %v2133_v49 = vrot.slane %v2131_v41, 5  ;;  %6141 = vmatprep.mubr.msk.bf16.mxu0 %vm669_vm4, %v5403_v43  ;;  %v2128_v53 = vor.u32 %v2127_v46, %v2123_v40  ;;  %v341_v54 = vshll.u32 %v192_v42, 16  ;;  %v5367_v39 = vld [vmem:[%s6803_s23 + $0x48] sm:$0xf] }
  0x36   : > { %v2119_v52 = vrot.slane %v2118_v45, 4  ;;  %v345_v56 = vshrl.u32 %v192_v42, 16  ;;  %v334_v62 = vrot.slane %v332_v50, 4  ;;  %v337_v63 = vrot.slane %v335_v51, 5 }
  0x37   : > { %v330_v61 = vsel %vm6821_vm3, %v325_v48, %v329_v31  ;;  %v351_v0 = vshll.u32 %v220_v47, 16  ;;  %v2129_v5 = vrot.slane %v2128_v53, 4  ;;  %v343_v6 = vrot.slane %v341_v54, 5 }
  0x38   : > { %v5177_v2 = vcombine.low %v320_v44, %v330_v61  ;;  %v2124_v3 = vsel %vm6821_vm3, %v2119_v52, %v2123_v40  ;;  %v338_v7 = vor.u32 %v337_v63, %v334_v62  ;;  %v347_v8 = vrot.slane %v345_v56, 4  ;;  %v5368_v44 = vld [vmem:[%s6803_s23 + $0x4c] sm:$0xf]  ;;  %v5369_v56 = vld [vmem:[%s6803_s23 + $0x50] sm:$0x1] }
  0x39   : > { %v353_v4 = vrot.slane %v351_v0, 5  ;;  %v2136_v11 = vshrl.u32 %v5364_v58, 16  ;;  %v2134_v12 = vsel %vm6821_vm3, %v2129_v5, %v2133_v49  ;;  %v2139_v13 = vshll.u32 %v5364_v58, 16  ;;  %v195_v62 = vld [vmem:[%s6803_s23 + $0x48] sm:$0xf] }
  0x3a   : > { %6006 = vmatmul.mubr.msk.bf16.gmra.mrb[4].mxu1 %vm669_vm4, %v5177_v2  ;;  %v2145_v16 = vshll.u32 %v5365_v1, 16  ;;  %v2149_v17 = vshrl.u32 %v5365_v1, 16  ;;  %v5404_v19 = vcombine.low %v2124_v3, %v2134_v12  ;;  %v339_v21 = vrot.slane %v338_v7, 4  ;;  %v196_v3 = vld [vmem:[%s6803_s23 + $0x4c] sm:$0xf] }
  0x3b   : > { %v348_v23 = vor.u32 %v347_v8, %v343_v6  ;;  %v2138_v24 = vrot.slane %v2136_v11, 4  ;;  %v2141_v26 = vrot.slane %v2139_v13, 5  ;;  %v2155_v28 = vshll.u32 %v5366_v9, 16  ;;  %v222_v12 = vld [vmem:[%s6803_s23 + $0x50] sm:$0x1] }
  0x3c   : > { %v2147_v27 = vrot.slane %v2145_v16, 5  ;;  %v2151_v60 = vrot.slane %v2149_v17, 4  ;;  %6142 = vmatmul.mubr.msk.bf16.gmra.mrb[4].mxu0 %vm669_vm4, %v5404_v19  ;;  %v344_v30 = vsel %vm6821_vm3, %v339_v21, %v343_v6  ;;  %v356_v32 = vshrl.u32 %v193_v18, 16  ;;  %v5370_v21 = vld [vmem:[%s6803_s23 + $0x54] sm:$0xf] }
  0x3d   : > { %v349_v31 = vrot.slane %v348_v23, 4  ;;  %v359_v33 = vshll.u32 %v193_v18, 16  ;;  %v2142_v34 = vor.u32 %v2141_v26, %v2138_v24  ;;  %v2157_v36 = vrot.slane %v2155_v28, 5 }
  0x3e   : > { %v2152_v35 = vor.u32 %v2151_v60, %v2147_v27  ;;  %v365_v38 = vshll.u32 %v194_v25, 16  ;;  %v358_v41 = vrot.slane %v356_v32, 4  ;;  %v369_v43 = vshrl.u32 %v194_v25, 16 }
  0x3f   : > { %v354_v40 = vsel %vm6821_vm3, %v349_v31, %v353_v4  ;;  %v361_v42 = vrot.slane %v359_v33, 5  ;;  %v2143_v46 = vrot.slane %v2142_v34, 4  ;;  %v375_v51 = vshll.u32 %v221_v37, 16  ;;  %v5371_v31 = vld [vmem:[%s6803_s23 + $0x58] sm:$0xf] }
  0x40   : > { %v5178_v45 = vcombine.low %v344_v30, %v354_v40  ;;  %v2153_v47 = vrot.slane %v2152_v35, 4  ;;  %v367_v48 = vrot.slane %v365_v38, 5  ;;  %v371_v50 = vrot.slane %v369_v43, 4 }
  0x41   : > { %v362_v49 = vor.u32 %v361_v42, %v358_v41  ;;  %v2160_v52 = vshrl.u32 %v5367_v39, 16  ;;  %v2148_v53 = vsel %vm6821_vm3, %v2143_v46, %v2147_v27  ;;  %v2163_v58 = vshll.u32 %v5367_v39, 16  ;;  %v5372_v39 = vld [vmem:[%s6803_s23 + $0x5c] sm:$0x1] }
  0x42   : > { %6009 = vmatprep.mubr.msk.bf16.mxu1 %vm669_vm4, %v5178_v45  ;;  %v2158_v54 = vsel %vm6821_vm3, %v2153_v47, %v2157_v36  ;;  %v2169_v61 = vshll.u32 %v5368_v44, 16  ;;  %v372_v1 = vor.u32 %v371_v50, %v367_v48  ;;  %v377_v2 = vrot.slane %v375_v51, 5  ;;  %v197_v45 = vld [vmem:[%s6803_s23 + $0x54] sm:$0xf]  ;;  %v198_v50 = vld [vmem:[%s6803_s23 + $0x58] sm:$0xf] }
  0x43   : > { %v5405_v63 = vcombine.low %v2148_v53, %v2158_v54  ;;  %v363_v0 = vrot.slane %v362_v49, 4  ;;  %v2162_v5 = vrot.slane %v2160_v52, 4  ;;  %v2165_v6 = vrot.slane %v2163_v58, 5 }
  0x44   : > { %v2171_v7 = vrot.slane %v2169_v61, 5  ;;  %v2173_v8 = vshrl.u32 %v5368_v44, 16  ;;  %v373_v9 = vrot.slane %v372_v1, 4  ;;  %v2179_v11 = vshll.u32 %v5369_v56, 16 }
  0x45   : > { %6145 = vmatprep.mubr.msk.bf16.mxu0 %vm669_vm4, %v5405_v63  ;;  %v368_v4 = vsel %vm6821_vm3, %v363_v0, %v367_v48  ;;  %v380_v13 = vshrl.u32 %v195_v62, 16  ;;  %v2166_v16 = vor.u32 %v2165_v6, %v2162_v5  ;;  %v383_v18 = vshll.u32 %v195_v62, 16  ;;  %v223_v62 = vld [vmem:[%s6803_s23 + $0x5c] sm:$0x1]  ;;  %v5373_v5 = vld [vmem:[%s6803_s23 + $0x60] sm:$0xf] }
  0x46   : > { %v2175_v17 = vrot.slane %v2173_v8, 4  ;;  %v389_v19 = vshll.u32 %v196_v3, 16  ;;  %v378_v23 = vsel %vm6821_vm3, %v373_v9, %v377_v2  ;;  %v2181_v24 = vrot.slane %v2179_v11, 5  ;;  %v5374_v9 = vld [vmem:[%s6803_s23 + $0x64] sm:$0xf] }
  0x47   : > { %v382_v25 = vrot.slane %v380_v13, 4  ;;  %v393_v26 = vshrl.u32 %v196_v3, 16  ;;  %v5179_v27 = vcombine.low %v368_v4, %v378_v23  ;;  %v2167_v60 = vrot.slane %v2166_v16, 4 }
  0x48   : > { %v2176_v28 = vor.u32 %v2175_v17, %v2171_v7  ;;  %v385_v30 = vrot.slane %v383_v18, 5  ;;  %v391_v32 = vrot.slane %v389_v19, 5  ;;  %v399_v34 = vshll.u32 %v222_v12, 16  ;;  %v5375_v19 = vld [vmem:[%s6803_s23 + $0x68] sm:$0x1] }
  0x49   : > { %v395_v33 = vrot.slane %v393_v26, 4  ;;  %v2184_v35 = vshrl.u32 %v5370_v21, 16  ;;  %6010 = vmatmul.mubr.msk.bf16.gmra.mrb[8].mxu1 %vm669_vm4, %v5179_v27  ;;  %v2172_v36 = vsel %vm6821_vm3, %v2167_v60, %v2171_v7  ;;  %v2187_v40 = vshll.u32 %v5370_v21, 16  ;;  %v199_v60 = vld [vmem:[%s6803_s23 + $0x60] sm:$0xf] }
  0x4a   : > { %v2177_v37 = vrot.slane %v2176_v28, 4  ;;  %v386_v38 = vor.u32 %v385_v30, %v382_v25  ;;  %v401_v42 = vrot.slane %v399_v34, 5  ;;  %v2193_v44 = vshll.u32 %v5371_v31, 16 }
  0x4b   : > { %v396_v41 = vor.u32 %v395_v33, %v391_v32  ;;  %v2186_v43 = vrot.slane %v2184_v35, 4  ;;  %v2189_v48 = vrot.slane %v2187_v40, 5  ;;  %v2197_v49 = vshrl.u32 %v5371_v31, 16  ;;  %v200_v33 = vld [vmem:[%s6803_s23 + $0x64] sm:$0xf] }
  0x4c   : > { %v2182_v46 = vsel %vm6821_vm3, %v2177_v37, %v2181_v24  ;;  %v387_v47 = vrot.slane %v386_v38, 4  ;;  %v2195_v53 = vrot.slane %v2193_v44, 5  ;;  %v2203_v54 = vshll.u32 %v5372_v39, 16  ;;  %v224_v44 = vld [vmem:[%s6803_s23 + $0x68] sm:$0x1] }
  0x4d   : > { %v5406_v51 = vcombine.low %v2172_v36, %v2182_v46  ;;  %v397_v52 = vrot.slane %v396_v41, 4  ;;  %v2190_v58 = vor.u32 %v2189_v48, %v2186_v43  ;;  %v2199_v61 = vrot.slane %v2197_v49, 4 }
  0x4e   : > { %v392_v56 = vsel %vm6821_vm3, %v387_v47, %v391_v32  ;;  %v404_v63 = vshrl.u32 %v197_v45, 16  ;;  %v2205_v1 = vrot.slane %v2203_v54, 5  ;;  %v407_v2 = vshll.u32 %v197_v45, 16 }
  0x4f   : > { %6146 = vmatmul.mubr.msk.bf16.gmra.mrb[8].mxu0 %vm669_vm4, %v5406_v51  ;;  %v402_v0 = vsel %vm6821_vm3, %v397_v52, %v401_v42  ;;  %v413_v3 = vshll.u32 %v198_v50, 16  ;;  %v2191_v7 = vrot.slane %v2190_v58, 4  ;;  %v2200_v8 = vor.u32 %v2199_v61, %v2195_v53  ;;  %v5376_v51 = vld [vmem:[%s6803_s23 + $0x6c] sm:$0xf]  ;;  %v6961_v58 = vld [vmem:[%s6803_s23 + $0x70] sm:$0xf] }
  0x50   : > { %v5180_v6 = vcombine.low %v392_v56, %v402_v0  ;;  %v406_v4 = vrot.slane %v404_v63, 4  ;;  %v409_v11 = vrot.slane %v407_v2, 5  ;;  %v417_v13 = vshrl.u32 %v198_v50, 16 }
  0x51   : > { %v415_v12 = vrot.slane %v413_v3, 5  ;;  %v423_v16 = vshll.u32 %v223_v62, 16  ;;  %v2196_v17 = vsel %vm6821_vm3, %v2191_v7, %v2195_v53  ;;  %v2201_v18 = vrot.slane %v2200_v8, 4 }
  0x52   : > { %6013 = vmatprep.mubr.msk.bf16.mxu1 %vm669_vm4, %v5180_v6  ;;  %v2208_v21 = vshrl.u32 %v5373_v5, 16  ;;  %v2211_v23 = vshll.u32 %v5373_v5, 16  ;;  %v410_v24 = vor.u32 %v409_v11, %v406_v4  ;;  %v419_v25 = vrot.slane %v417_v13, 4  ;;  %v6971_v5 = vld [vmem:[%s6803_s23 + $0x74] sm:$0x1] }
  0x53   : > { %v425_v26 = vrot.slane %v423_v16, 5  ;;  %v2217_v27 = vshll.u32 %v5374_v9, 16  ;;  %v2206_v28 = vsel %vm6821_vm3, %v2201_v18, %v2205_v1  ;;  %v2221_v32 = vshrl.u32 %v5374_v9, 16  ;;  %v6968_v1 = vld [vmem:[%s8909_s1] sm:$0xf] }
  0x54   : > { %v2210_v30 = vrot.slane %v2208_v21, 4  ;;  %v2213_v31 = vrot.slane %v2211_v23, 5  ;;  %v5407_v34 = vcombine.low %v2196_v17, %v2206_v28  ;;  %v411_v35 = vrot.slane %v410_v24, 4  ;;  %6626 = vmatprep.subr.msk.bf16.mxu1 %vm718_vm0, %v6968_v1 }
  0x55   : > { %v420_v36 = vor.u32 %v419_v25, %v415_v12  ;;  %v2219_v37 = vrot.slane %v2217_v27, 5  ;;  %v2223_v39 = vrot.slane %v2221_v32, 4  ;;  %v2227_v40 = vshll.u32 %v5375_v19, 16  ;;  %v202_v19 = vld [vmem:[%s6803_s23 + $0x70] sm:$0xf] }
  0x56   : > { %v2214_v38 = vor.u32 %v2213_v31, %v2210_v30  ;;  %v428_v41 = vshrl.u32 %v199_v60, 16  ;;  %6149 = vmatprep.mubr.msk.bf16.mxu0 %vm669_vm4, %v5407_v34  ;;  %v416_v42 = vsel %vm6821_vm3, %v411_v35, %v415_v12  ;;  %v431_v45 = vshll.u32 %v199_v60, 16  ;;  %v201_v12 = vld [vmem:[%s6803_s23 + $0x6c] sm:$0xf]  ;;  %v5379_v35 = vld [vmem:[%s6803_s23 + $0x78] sm:$0xf] }
  0x57   : > { %v421_v43 = vrot.slane %v420_v36, 4  ;;  %v437_v46 = vshll.u32 %v200_v33, 16  ;;  %v2224_v48 = vor.u32 %v2223_v39, %v2219_v37  ;;  %v2229_v49 = vrot.slane %v2227_v40, 5  ;;  %v6991_v40 = vld [vmem:[%s6803_s23 + $0x7c] sm:$0xf] }
  0x58   : > { %v2215_v47 = vrot.slane %v2214_v38, 4  ;;  %v430_v50 = vrot.slane %v428_v41, 4  ;;  %v433_v53 = vrot.slane %v431_v45, 5  ;;  %v441_v56 = vshrl.u32 %v200_v33, 16  ;;  %v225_v33 = vld [vmem:[%s6803_s23 + $0x74] sm:$0x1] }
  0x59   : > { %v426_v52 = vsel %vm6821_vm3, %v421_v43, %v425_v26  ;;  %v439_v54 = vrot.slane %v437_v46, 5  ;;  %v2225_v63 = vrot.slane %v2224_v48, 4  ;;  %v447_v0 = vshll.u32 %v224_v44, 16  ;;  %v6996_v45 = vld [vmem:[%s8909_s1 + $0x18] sm:$0xf] }
  0x5a   : > { %v5181_v61 = vcombine.low %v416_v42, %v426_v52  ;;  %v2220_v62 = vsel %vm6821_vm3, %v2215_v47, %v2219_v37  ;;  %v434_v2 = vor.u32 %v433_v53, %v430_v50  ;;  %v443_v3 = vrot.slane %v441_v56, 4  ;;  %6631 = vmatprep.subr.msk.bf16.mxu0 %vm718_vm0, %v6996_v45  ;;  %v7006_v52 = vld [vmem:[%s6803_s23 + $0x80] sm:$0x1]  ;;  %v7010_v56 = vld [vmem:[%s6803_s23 + $0x78] sm:$0xf] }
  0x5b   : > { %v2232_v6 = vshrl.u32 %v5376_v51, 16  ;;  %v2235_v7 = vshll.u32 %v5376_v51, 16  ;;  %v2230_v8 = vsel %vm6821_vm3, %v2225_v63, %v2229_v49  ;;  %v449_v4 = vrot.slane %v447_v0, 5 }
  0x5c   : > { %6014 = vmatmul.mubr.msk.bf16.gmra.mrb[12].mxu1 %vm669_vm4, %v5181_v61  ;;  %v2241_v9 = vshll.u32 %v6961_v58, 16  ;;  %v2245_v11 = vshrl.u32 %v6961_v58, 16  ;;  %v5408_v13 = vcombine.low %v2220_v62, %v2230_v8  ;;  %v435_v16 = vrot.slane %v434_v2, 4  ;;  %v7013_v2 = vld [vmem:[%s6803_s23 + $0x7c] sm:$0xf] }
  0x5d   : > { %v444_v17 = vor.u32 %v443_v3, %v439_v54  ;;  %v2234_v18 = vrot.slane %v2232_v6, 4  ;;  %v2237_v21 = vrot.slane %v2235_v7, 5  ;;  %v2251_v25 = vshll.u32 %v6971_v5, 16 }
  0x5e   : > { %v2243_v23 = vrot.slane %v2241_v9, 5  ;;  %v2247_v24 = vrot.slane %v2245_v11, 4  ;;  %6150 = vmatmul.mubr.msk.bf16.gmra.mrb[12].mxu0 %vm669_vm4, %v5408_v13  ;;  %v440_v26 = vsel %vm6821_vm3, %v435_v16, %v439_v54  ;;  %v452_v60 = vshrl.u32 %v201_v12, 16 }
  0x5f   : > { %v445_v27 = vrot.slane %v444_v17, 4  ;;  %v455_v28 = vshll.u32 %v201_v12, 16  ;;  %v2238_v30 = vor.u32 %v2237_v21, %v2234_v18  ;;  %v2253_v32 = vrot.slane %v2251_v25, 5  ;;  %v226_v12 = vld [vmem:[%s6803_s23 + $0x80] sm:$0x1] }
  0x60   : > { %v2248_v31 = vor.u32 %v2247_v24, %v2243_v23  ;;  %v461_v34 = vshll.u32 %v202_v19, 16  ;;  %v454_v37 = vrot.slane %v452_v60, 4  ;;  %v465_v39 = vshrl.u32 %v202_v19, 16  ;;  %v5382_v21 = vld [vmem:[%s6803_s23 + $0x84] sm:$0xf] }
  0x61   : > { %v450_v36 = vsel %vm6821_vm3, %v445_v27, %v449_v4  ;;  %v457_v38 = vrot.slane %v455_v28, 5  ;;  %v2239_v42 = vrot.slane %v2238_v30, 4  ;;  %v471_v48 = vshll.u32 %v225_v33, 16  ;;  %v7029_v27 = vld [vmem:[%s6803_s23 + $0x88] sm:$0xf] }
  0x62   : > { %v5182_v41 = vcombine.low %v440_v26, %v450_v36  ;;  %v2249_v43 = vrot.slane %v2248_v31, 4  ;;  %v463_v44 = vrot.slane %v461_v34, 5  ;;  %v467_v47 = vrot.slane %v465_v39, 4 }
  0x63   : > { %v458_v46 = vor.u32 %v457_v38, %v454_v37  ;;  %v2256_v49 = vshrl.u32 %v5379_v35, 16  ;;  %v2244_v50 = vsel %vm6821_vm3, %v2239_v42, %v2243_v23  ;;  %v2259_v53 = vshll.u32 %v5379_v35, 16  ;;  %v7035_v37 = vld [vmem:[%s6803_s23 + $0x84] sm:$0xf] }
  0x64   : > { %6017 = vmatprep.mubr.msk.bf16.mxu1 %vm669_vm4, %v5182_v41  ;;  %v2254_v51 = vsel %vm6821_vm3, %v2249_v43, %v2253_v32  ;;  %v2265_v54 = vshll.u32 %v6991_v40, 16  ;;  %v468_v63 = vor.u32 %v467_v47, %v463_v44  ;;  %v473_v0 = vrot.slane %v471_v48, 5  ;;  %v7032_v32 = vld [vmem:[%s6803_s23 + $0x8c] sm:$0x1]  ;;  %v7042_v48 = vld [vmem:[%s6803_s23 + $0x88] sm:$0xf] }
  0x65   : > { %v5409_v61 = vcombine.low %v2244_v50, %v2254_v51  ;;  %v459_v62 = vrot.slane %v458_v46, 4  ;;  %v2258_v3 = vrot.slane %v2256_v49, 4  ;;  %v2261_v6 = vrot.slane %v2259_v53, 5 }
  0x66   : > { %v2267_v7 = vrot.slane %v2265_v54, 5  ;;  %v2269_v8 = vshrl.u32 %v6991_v40, 16  ;;  %v469_v9 = vrot.slane %v468_v63, 4  ;;  %v2275_v11 = vshll.u32 %v7006_v52, 16  ;;  %v227_v54 = vld [vmem:[%s6803_s23 + $0x8c] sm:$0x1] }
  0x67   : > { %6153 = vmatprep.mubr.msk.bf16.mxu0 %vm669_vm4, %v5409_v61  ;;  %v464_v4 = vsel %vm6821_vm3, %v459_v62, %v463_v44  ;;  %v476_v13 = vshrl.u32 %v7010_v56, 16  ;;  %v2262_v16 = vor.u32 %v2261_v6, %v2258_v3  ;;  %v479_v18 = vshll.u32 %v7010_v56, 16  ;;  %v5385_v3 = vld [vmem:[%s6803_s23 + $0x90] sm:$0xf] }
  0x68   : > { %v2271_v17 = vrot.slane %v2269_v8, 4  ;;  %v485_v19 = vshll.u32 %v7013_v2, 16  ;;  %v474_v23 = vsel %vm6821_vm3, %v469_v9, %v473_v0  ;;  %v2277_v24 = vrot.slane %v2275_v11, 5  ;;  %v7054_v9 = vld [vmem:[%s6803_s23 + $0x94] sm:$0xf] }
  0x69   : > { %v478_v25 = vrot.slane %v476_v13, 4  ;;  %v489_v26 = vshrl.u32 %v7013_v2, 16  ;;  %v5183_v60 = vcombine.low %v464_v4, %v474_v23  ;;  %v2263_v28 = vrot.slane %v2262_v16, 4 }
  0x6a   : > { %v2272_v30 = vor.u32 %v2271_v17, %v2267_v7  ;;  %v481_v31 = vrot.slane %v479_v18, 5  ;;  %v487_v33 = vrot.slane %v485_v19, 5  ;;  %v495_v35 = vshll.u32 %v226_v12, 16 }
  0x6b   : > { %v491_v34 = vrot.slane %v489_v26, 4  ;;  %v2280_v36 = vshrl.u32 %v5382_v21, 16  ;;  %6018 = vmatmul.mubr.msk.bf16.gmra.mrb[16].mxu1 %vm669_vm4, %v5183_v60  ;;  %v2268_v38 = vsel %vm6821_vm3, %v2263_v28, %v2267_v7  ;;  %v2283_v42 = vshll.u32 %v5382_v21, 16  ;;  %v7063_v60 = vld [vmem:[%s6803_s23 + $0x98] sm:$0x1] }
  0x6c   : > { %v2273_v39 = vrot.slane %v2272_v30, 4  ;;  %v482_v41 = vor.u32 %v481_v31, %v478_v25  ;;  %v497_v44 = vrot.slane %v495_v35, 5  ;;  %v2289_v47 = vshll.u32 %v7029_v27, 16  ;;  %v7066_v28 = vld [vmem:[%s6803_s23 + $0x90] sm:$0xf] }
  0x6d   : > { %v492_v43 = vor.u32 %v491_v34, %v487_v33  ;;  %v2282_v46 = vrot.slane %v2280_v36, 4  ;;  %v2285_v51 = vrot.slane %v2283_v42, 5  ;;  %v2293_v53 = vshrl.u32 %v7029_v27, 16  ;;  %v7072_v35 = vld [vmem:[%s6803_s23 + $0x94] sm:$0xf] }
  0x6e   : > { %v2278_v49 = vsel %vm6821_vm3, %v2273_v39, %v2277_v24  ;;  %v483_v50 = vrot.slane %v482_v41, 4  ;;  %v2291_v63 = vrot.slane %v2289_v47, 5  ;;  %v2299_v0 = vshll.u32 %v7032_v32, 16 }
  0x6f   : > { %v5410_v61 = vcombine.low %v2268_v38, %v2278_v49  ;;  %v493_v62 = vrot.slane %v492_v43, 4  ;;  %v2286_v7 = vor.u32 %v2285_v51, %v2282_v46  ;;  %v2295_v8 = vrot.slane %v2293_v53, 4  ;;  %v228_v53 = vld [vmem:[%s6803_s23 + $0x98] sm:$0x1] }
  0x70   : > { %v488_v6 = vsel %vm6821_vm3, %v483_v50, %v487_v33  ;;  %v500_v4 = vshrl.u32 %v7035_v37, 16  ;;  %v2301_v12 = vrot.slane %v2299_v0, 5  ;;  %v503_v13 = vshll.u32 %v7035_v37, 16  ;;  %v5388_v0 = vld [vmem:[%s6803_s23 + $0x9c] sm:$0xf] }
  0x71   : > { %6154 = vmatmul.mubr.msk.bf16.gmra.mrb[16].mxu0 %vm669_vm4, %v5410_v61  ;;  %v498_v11 = vsel %vm6821_vm3, %v493_v62, %v497_v44  ;;  %v509_v16 = vshll.u32 %v7042_v48, 16  ;;  %v2287_v18 = vrot.slane %v2286_v7, 4  ;;  %v2296_v19 = vor.u32 %v2295_v8, %v2291_v63 }
  0x72   : > { %v5184_v17 = vcombine.low %v488_v6, %v498_v11  ;;  %v502_v21 = vrot.slane %v500_v4, 4  ;;  %v505_v23 = vrot.slane %v503_v13, 5  ;;  %v513_v25 = vshrl.u32 %v7042_v48, 16  ;;  %v7088_v4 = vld [vmem:[%s6803_s23 + $0xa0] sm:$0xf] }
  0x73   : > { %v511_v24 = vrot.slane %v509_v16, 5  ;;  %v519_v26 = vshll.u32 %v227_v54, 16  ;;  %v2292_v30 = vsel %vm6821_vm3, %v2287_v18, %v2291_v63  ;;  %v2297_v31 = vrot.slane %v2296_v19, 4 }
  0x74   : > { %6021 = vmatprep.mubr.msk.bf16.mxu1 %vm669_vm4, %v5184_v17  ;;  %v2304_v33 = vshrl.u32 %v5385_v3, 16  ;;  %v2307_v34 = vshll.u32 %v5385_v3, 16  ;;  %v506_v36 = vor.u32 %v505_v23, %v502_v21  ;;  %v515_v38 = vrot.slane %v513_v25, 4  ;;  %v7094_v23 = vld [vmem:[%s6803_s23 + $0xa4] sm:$0x1] }
  0x75   : > { %v521_v39 = vrot.slane %v519_v26, 5  ;;  %v2313_v41 = vshll.u32 %v7054_v9, 16  ;;  %v2302_v42 = vsel %vm6821_vm3, %v2297_v31, %v2301_v12  ;;  %v2317_v46 = vshrl.u32 %v7054_v9, 16  ;;  %v7099_v31 = vld [vmem:[%s6803_s23 + $0x9c] sm:$0xf] }
  0x76   : > { %v2306_v43 = vrot.slane %v2304_v33, 4  ;;  %v2309_v44 = vrot.slane %v2307_v34, 5  ;;  %v5411_v47 = vcombine.low %v2292_v30, %v2302_v42  ;;  %v507_v49 = vrot.slane %v506_v36, 4 }
  0x77   : > { %v516_v50 = vor.u32 %v515_v38, %v511_v24  ;;  %v2315_v51 = vrot.slane %v2313_v41, 5  ;;  %v2319_v61 = vrot.slane %v2317_v46, 4  ;;  %v2323_v62 = vshll.u32 %v7063_v60, 16 }
  0x78   : > { %v2310_v54 = vor.u32 %v2309_v44, %v2306_v43  ;;  %v524_v63 = vshrl.u32 %v7066_v28, 16  ;;  %6157 = vmatprep.mubr.msk.bf16.mxu0 %vm669_vm4, %v5411_v47  ;;  %v512_v3 = vsel %vm6821_vm3, %v507_v49, %v511_v24  ;;  %v527_v7 = vshll.u32 %v7066_v28, 16 }
  0x79   : > { %v517_v6 = vrot.slane %v516_v50, 4  ;;  %v533_v8 = vshll.u32 %v7072_v35, 16  ;;  %v2320_v12 = vor.u32 %v2319_v61, %v2315_v51  ;;  %v2325_v13 = vrot.slane %v2323_v62, 5  ;;  %v7111_v62 = vld [vmem:[%s6803_s23 + $0xa4] sm:$0x1] }
  0x7a   : > { %v2311_v11 = vrot.slane %v2310_v54, 4  ;;  %v526_v16 = vrot.slane %v524_v63, 4  ;;  %v529_v18 = vrot.slane %v527_v7, 5  ;;  %v537_v21 = vshrl.u32 %v7072_v35, 16  ;;  %8934 = vst [vmem:[#allocation3_spill] sm:$0xff] %v7111_v62 }
  0x7b   : > { %v522_v17 = vsel %vm6821_vm3, %v517_v6, %v521_v39  ;;  %v535_v19 = vrot.slane %v533_v8, 5  ;;  %v2321_v26 = vrot.slane %v2320_v12, 4  ;;  %v543_v30 = vshll.u32 %v228_v53, 16  ;;  %v7102_v39 = vld [vmem:[%s6803_s23 + $0xa0] sm:$0xf] }
  0x7c   : > { %v5185_v24 = vcombine.low %v512_v3, %v522_v17  ;;  %v2316_v25 = vsel %vm6821_vm3, %v2311_v11, %v2315_v51  ;;  %v530_v33 = vor.u32 %v529_v18, %v526_v16  ;;  %v539_v34 = vrot.slane %v537_v21, 4  ;;  %v5391_v63 = vld [vmem:[%s6803_s23 + $0xa8] sm:$0xf]  ;;  %v7124_v21 = vld [vmem:[%s6803_s23 + $0xac] sm:$0xf] }
  0x7d   : > { %v2328_v36 = vshrl.u32 %v5388_v0, 16  ;;  %v2331_v38 = vshll.u32 %v5388_v0, 16  ;;  %v2326_v41 = vsel %vm6821_vm3, %v2321_v26, %v2325_v13  ;;  %v545_v42 = vrot.slane %v543_v30, 5 }
  0x7e   : > { %6022 = vmatmul.mubr.msk.bf16.gmra.mrb[20].mxu1 %vm669_vm4, %v5185_v24  ;;  %v2337_v43 = vshll.u32 %v7088_v4, 16  ;;  %v2341_v44 = vshrl.u32 %v7088_v4, 16  ;;  %v5412_v46 = vcombine.low %v2316_v25, %v2326_v41  ;;  %v531_v47 = vrot.slane %v530_v33, 4  ;;  %v7127_v33 = vld [vmem:[%s6803_s23 + $0xb0] sm:$0x1] }
  0x7f   : > { %v540_v49 = vor.u32 %v539_v34, %v535_v19  ;;  %v2330_v50 = vrot.slane %v2328_v36, 4  ;;  %v2333_v51 = vrot.slane %v2331_v38, 5  ;;  %v2347_v61 = vshll.u32 %v7094_v23, 16  ;;  %v7130_v34 = vld [vmem:[%s6803_s23 + $0xa8] sm:$0xf] }
  0x80   : > { %v2339_v53 = vrot.slane %v2337_v43, 5  ;;  %v2343_v54 = vrot.slane %v2341_v44, 4  ;;  %6158 = vmatmul.mubr.msk.bf16.gmra.mrb[20].mxu0 %vm669_vm4, %v5412_v46  ;;  %v536_v0 = vsel %vm6821_vm3, %v531_v47, %v535_v19  ;;  %v548_v6 = vshrl.u32 %v7099_v31, 16  ;;  %v7134_v43 = vld [vmem:[%s6803_s23 + $0xac] sm:$0xf] }
  0x81   : > { %v541_v3 = vrot.slane %v540_v49, 4  ;;  %v551_v7 = vshll.u32 %v7099_v31, 16  ;;  %v2334_v8 = vor.u32 %v2333_v51, %v2330_v50  ;;  %v2349_v12 = vrot.slane %v2347_v61, 5 }
  0x82   : > { %v2344_v11 = vor.u32 %v2343_v54, %v2339_v53  ;;  %v557_v13 = vshll.u32 %v7102_v39, 16  ;;  %v550_v17 = vrot.slane %v548_v6, 4  ;;  %v561_v19 = vshrl.u32 %v7102_v39, 16 }
  0x83   : > { %v546_v16 = vsel %vm6821_vm3, %v541_v3, %v545_v42  ;;  %v553_v18 = vrot.slane %v551_v7, 5  ;;  %v2335_v25 = vrot.slane %v2334_v8, 4  ;;  %v567_v41 = vshll.u32 %v7111_v62, 16  ;;  %v7144_v8 = vld [vmem:[%s6803_s23 + $0xb0] sm:$0x1] }
  0x84   : > { %v5186_v24 = vcombine.low %v536_v0, %v546_v16  ;;  %v2345_v26 = vrot.slane %v2344_v11, 4  ;;  %v559_v30 = vrot.slane %v557_v13, 5  ;;  %v563_v38 = vrot.slane %v561_v19, 4  ;;  %8935 = vst [vmem:[#allocation4_spill] sm:$0xff] %v7144_v8  ;;  %v5394_v11 = vld [vmem:[%s6803_s23 + $0xb4] sm:$0xf] }
  0x85   : > { %v554_v36 = vor.u32 %v553_v18, %v550_v17  ;;  %v2352_v42 = vshrl.u32 %v5391_v63, 16  ;;  %v2340_v44 = vsel %vm6821_vm3, %v2335_v25, %v2339_v53  ;;  %v2355_v47 = vshll.u32 %v5391_v63, 16  ;;  %v5446_v62 = vld [vmem:[%s6803_s23 + $0xa8] sm:$0xe] }
  0x86   : > { %6025 = vmatprep.mubr.msk.bf16.mxu1 %vm669_vm4, %v5186_v24  ;;  %v2350_v46 = vsel %vm6821_vm3, %v2345_v26, %v2349_v12  ;;  %v2361_v49 = vshll.u32 %v7124_v21, 16  ;;  %v564_v54 = vor.u32 %v563_v38, %v559_v30  ;;  %v569_v61 = vrot.slane %v567_v41, 5 }
  0x87   : > { %v5413_v50 = vcombine.low %v2340_v44, %v2350_v46  ;;  %v555_v51 = vrot.slane %v554_v36, 4  ;;  %v2354_v0 = vrot.slane %v2352_v42, 4  ;;  %v2357_v3 = vrot.slane %v2355_v47, 5  ;;  %v7158_v36 = vld [vmem:[%s6803_s23 + $0xb8] sm:$0xf] }
  0x88   : > { %v2363_v6 = vrot.slane %v2361_v49, 5  ;;  %v2365_v7 = vshrl.u32 %v7124_v21, 16  ;;  %v565_v63 = vrot.slane %v564_v54, 4  ;;  %v2371_v12 = vshll.u32 %v7127_v33, 16  ;;  %v7161_v46 = vld [vmem:[%s6803_s23 + $0xbc] sm:$0x1] }
  0x89   : > { %6161 = vmatprep.mubr.msk.bf16.mxu0 %vm669_vm4, %v5413_v50  ;;  %v560_v53 = vsel %vm6821_vm3, %v555_v51, %v559_v30  ;;  %v572_v13 = vshrl.u32 %v7130_v34, 16  ;;  %v2358_v16 = vor.u32 %v2357_v3, %v2354_v0  ;;  %v575_v18 = vshll.u32 %v7130_v34, 16  ;;  %v7165_v54 = vld [vmem:[%s6803_s23 + $0xb4] sm:$0xf] }
  0x8a   : > { %v2367_v17 = vrot.slane %v2365_v7, 4  ;;  %v581_v19 = vshll.u32 %v7134_v43, 16  ;;  %v570_v24 = vsel %vm6821_vm3, %v565_v63, %v569_v61  ;;  %v2373_v25 = vrot.slane %v2371_v12, 5 }
  0x8b   : > { %v574_v26 = vrot.slane %v572_v13, 4  ;;  %v585_v30 = vshrl.u32 %v7134_v43, 16  ;;  %v5187_v38 = vcombine.low %v560_v53, %v570_v24  ;;  %v2359_v41 = vrot.slane %v2358_v16, 4  ;;  %v7171_v53 = vld [vmem:[%s6803_s23 + $0xb8] sm:$0xf] }
  0x8c   : > { %v2368_v42 = vor.u32 %v2367_v17, %v2363_v6  ;;  %v577_v44 = vrot.slane %v575_v18, 5  ;;  %v583_v47 = vrot.slane %v581_v19, 5  ;;  %v591_v50 = vshll.u32 %v7144_v8, 16 }
  0x8d   : > { %v587_v49 = vrot.slane %v585_v30, 4  ;;  %v2376_v51 = vshrl.u32 %v5394_v11, 16  ;;  %6026 = vmatmul.mubr.msk.bf16.gmra.mrb[24].mxu1 %vm669_vm4, %v5187_v38  ;;  %v2364_v61 = vsel %vm6821_vm3, %v2359_v41, %v2363_v6  ;;  %v2379_v7 = vshll.u32 %v5394_v11, 16  ;;  %v7178_v30 = vld [vmem:[%s6803_s23 + $0xbc] sm:$0x1] }
  0x8e   : > { %v2369_v0 = vrot.slane %v2368_v42, 4  ;;  %v578_v3 = vor.u32 %v577_v44, %v574_v26  ;;  %v593_v12 = vrot.slane %v591_v50, 5  ;;  %v2385_v16 = vshll.u32 %v7158_v36, 16  ;;  %8936 = vst [vmem:[#allocation5_spill] sm:$0xff] %v7178_v30 }
  0x8f   : > { %v588_v63 = vor.u32 %v587_v49, %v583_v47  ;;  %v2378_v13 = vrot.slane %v2376_v51, 4  ;;  %v2381_v19 = vrot.slane %v2379_v7, 5  ;;  %v2389_v24 = vshrl.u32 %v7158_v36, 16 }
  0x90   : > { %v2374_v17 = vsel %vm6821_vm3, %v2369_v0, %v2373_v25  ;;  %v579_v18 = vrot.slane %v578_v3, 4  ;;  %v2387_v11 = vrot.slane %v2385_v16, 5  ;;  %v2395_v38 = vshll.u32 %v7161_v46, 16  ;;  %v5397_v0 = vld [vmem:[%s6803_s23 + $0xc0] sm:$0xf] }
  0x91   : > { %v5414_v6 = vcombine.low %v2364_v61, %v2374_v17  ;;  %v589_v26 = vrot.slane %v588_v63, 4  ;;  %v2382_v42 = vor.u32 %v2381_v19, %v2378_v13  ;;  %v2391_v44 = vrot.slane %v2389_v24, 4  ;;  %v7191_v13 = vld [vmem:[%s6803_s23 + $0xc4] sm:$0xf] }
  0x92   : > { %v584_v41 = vsel %vm6821_vm3, %v579_v18, %v583_v47  ;;  %v596_v25 = vshrl.u32 %v7165_v54, 16  ;;  %v2397_v50 = vrot.slane %v2395_v38, 5  ;;  %v599_v51 = vshll.u32 %v7165_v54, 16 }
  0x93   : > { %6162 = vmatmul.mubr.msk.bf16.gmra.mrb[24].mxu0 %vm669_vm4, %v5414_v6  ;;  %v594_v49 = vsel %vm6821_vm3, %v589_v26, %v593_v12  ;;  %v605_v61 = vshll.u32 %v7171_v53, 16  ;;  %v2383_v7 = vrot.slane %v2382_v42, 4  ;;  %v2392_v63 = vor.u32 %v2391_v44, %v2387_v11  ;;  %v7196_v12 = vld [vmem:[%s6803_s23 + $0xc8] sm:$0x1] }
  0x94   : > { %v5188_v3 = vcombine.low %v584_v41, %v594_v49  ;;  %v598_v47 = vrot.slane %v596_v25, 4  ;;  %v601_v16 = vrot.slane %v599_v51, 5  ;;  %v609_v18 = vshrl.u32 %v7171_v53, 16  ;;  %v7205_v49 = vld [vmem:[%s8909_s1 + $0x8] sm:$0xf] }
  0x95   : > { %v607_v17 = vrot.slane %v605_v61, 5  ;;  %v615_v19 = vshll.u32 %v7178_v30, 16  ;;  %v2388_v24 = vsel %vm6821_vm3, %v2383_v7, %v2387_v11  ;;  %v2393_v6 = vrot.slane %v2392_v63, 4  ;;  %v5433_v7 = vld [vmem:[%s6803_s23 + $0xc] sm:$0xe] }
  0x96   : > { %6029 = vmatprep.mubr.msk.bf16.mxu1 %vm669_vm4, %v5188_v3  ;;  %v2400_v26 = vshrl.u32 %v5397_v0, 16  ;;  %v2403_v38 = vshll.u32 %v5397_v0, 16  ;;  %v602_v41 = vor.u32 %v601_v16, %v598_v47  ;;  %v611_v42 = vrot.slane %v609_v18, 4  ;;  %v5445_v30 = vld [vmem:[%s6803_s23 + $0x9c] sm:$0xe] }
  0x97   : > { %v617_v44 = vrot.slane %v615_v19, 5  ;;  %v2409_v25 = vshll.u32 %v7191_v13, 16  ;;  %v2398_v51 = vsel %vm6821_vm3, %v2393_v6, %v2397_v50  ;;  %v2413_v11 = vshrl.u32 %v7191_v13, 16 }
  0x98   : > { %v2402_v61 = vrot.slane %v2400_v26, 4  ;;  %v2405_v3 = vrot.slane %v2403_v38, 5  ;;  %v5415_v0 = vcombine.low %v2388_v24, %v2398_v51  ;;  %v603_v63 = vrot.slane %v602_v41, 4  ;;  %v5434_v26 = vld [vmem:[%s6803_s23 + $0x18] sm:$0xe] }
  0x99   : > { %v612_v47 = vor.u32 %v611_v42, %v607_v17  ;;  %v2411_v16 = vrot.slane %v2409_v25, 5  ;;  %v2415_v19 = vrot.slane %v2413_v11, 4  ;;  %v2419_v22 = vshll.u32 %v7196_v12, 16  ;;  %v5435_v25 = vld [vmem:[%s6803_s23 + $0x24] sm:$0xe] }
  0x9a   : > { %v2406_v18 = vor.u32 %v2405_v3, %v2402_v61  ;;  %v1012_v10 = vsel %vm718_vm0, %v6968_v1, 0  ;;  %v2792_v50 = vrot.slane %v2790_v20, 4  ;;  %6165 = vmatprep.mubr.msk.bf16.mxu0 %vm669_vm4, %v5415_v0  ;;  %v608_v24 = vsel %vm6821_vm3, %v603_v63, %v607_v17  ;;  %v6692_v51 = vld [vmem:[%s6803_s23] sm:$0xf]  ;;  %v7227_v61 = vld [vmem:[%s6803_s23 + $0x4] sm:$0xf] }
  0x9b   : > { %v613_v6 = vrot.slane %v612_v47, 4  ;;  %6034 = vmatpush3.bf16.msra.mxu1 %v1012_v10  ;;  %v2416_v41 = vor.u32 %v2415_v19, %v2411_v16  ;;  %v2421_v42 = vrot.slane %v2419_v22, 5  ;;  %v5206_v17 = vcombine.low %v6692_v51, %v7227_v61  ;;  %v7266_v51 = vld [vmem:[%s6803_s23 + $0x10] sm:$0xf] }
  0x9c   : > { %v2407_v38 = vrot.slane %v2406_v18, 4  ;;  %6627 = vmatprep.subr.msk.bf16.mxu1 %vm718_vm0, %v7205_v49  ;;  %v5449_v3 = vrot.slane %v5433_v7, 9  ;;  %v2785_v22 = vrot.slane %v2783_v57, 4  ;;  %v5450_v63 = vrot.slane %v5434_v26, 9 }
  0x9d   : > { %v618_v1 = vsel %vm6821_vm3, %v613_v6, %v617_v44  ;;  %v2417_v44 = vrot.slane %v2416_v41, 4  ;;  %v8939_v18 = vrot.slane %v6813_v15, 5  ;;  %v8940_v19 = vrot.slane %v6840_v59, 5  ;;  %v6694_v6 = vld [vmem:[%s6803_s23 + $0x28] sm:$0xf] }
  0x9e   : > { %v5189_v11 = vcombine.low %v608_v24, %v618_v1  ;;  %v2412_v0 = vsel %vm6821_vm3, %v2407_v38, %v2411_v16  ;;  %v2784_v47 = vsel %vm7230_vm7, %v5449_v3, %v2783_v57  ;;  %v2791_v15 = vsel %vm7230_vm7, %v5450_v63, %v2790_v20  ;;  %v6695_v38 = vld [vmem:[%s6803_s23 + $0x2c] sm:$0x1]  ;;  %v6696_v20 = vld [vmem:[%s6803_s23 + $0x34] sm:$0xf]  ;;  %v5437_v3 = vld [vmem:[%s6803_s23 + $0x3c] sm:$0xe] }
  0x9f   : > { %v2787_v7 = vsel %vm7230_vm7, %v2785_v22, %v8939_v18  ;;  %v2794_v24 = vsel %vm7230_vm7, %v2792_v50, %v8940_v19  ;;  %v2422_v14 = vsel %vm6821_vm3, %v2417_v44, %v2421_v42  ;;  %v5451_v57 = vrot.slane %v5435_v25, 9  ;;  %v5436_v42 = vld [vmem:[%s6803_s23 + $0x30] sm:$0xe]  ;;  %v6697_v1 = vld [vmem:[%s6803_s23 + $0xc] sm:$0xf] }
  0xa0   : > { %6030 = vmatmul.mubr.msk.bf16.gmra.mrb[28].mxu1 %vm669_vm4, %v5189_v11  ;;  %v5466_v16 = vcombine.low %v2784_v47, %v2787_v7  ;;  %v5416_v59 = vcombine.low %v2412_v0, %v2422_v14  ;;  %v5467_v50 = vcombine.low %v2791_v15, %v2794_v24  ;;  %v2797_v26 = vrot.slane %v6694_v6, 5  ;;  %v6699_v22 = vld [vmem:[%s6803_s23 + $0x40] sm:$0xf]  ;;  %v5438_v0 = vld [vmem:[%s6803_s23 + $0x48] sm:$0xe] }
  0xa1   : > { %6035 = vmatprep.mubr.msk.bf16.mxu1 %vm669_vm4, %v5206_v17  ;;  %v2800_v41 = vrot.slane %v6695_v38, 5  ;;  %v2804_v25 = vrot.slane %v6696_v20, 5  ;;  %v5207_v17 = vcombine.low %v6697_v1, %v7266_v51  ;;  %v2811_v11 = vrot.slane %v6699_v22, 5  ;;  %v6700_v44 = vld [vmem:[%s6803_s23 + $0x18] sm:$0xf] }
  0xa2   : > { %6166 = vmatmul.mubr.msk.bf16.gmra.mrb[28].mxu0 %vm669_vm4, %v5416_v59  ;;  %v2799_v55 = vrot.slane %v2797_v26, 4  ;;  %v7274_v63 = vld [vmem:[%s6803_s23 + $0x1c] sm:$0xf]  ;;  %v2798_v18 = vsel %vm7230_vm7, %v5451_v57, %v2797_v26  ;;  %v6702_v19 = vld [vmem:[%s6803_s23 + $0x4c] sm:$0xf]  ;;  %v5452_v14 = vrot.slane %v5436_v42, 9 }
  0xa3   : > { %6171 = vmatprep.mubr.msk.bf16.mxu0 %vm669_vm4, %v5466_v16  ;;  %v5208_v47 = vcombine.low %v6700_v44, %v7274_v63  ;;  %v2818_v24 = vrot.slane %v6702_v19, 5  ;;  %v2806_v16 = vrot.slane %v2804_v25, 4  ;;  %v6703_v15 = vld [vmem:[%s6803_s23 + $0x38] sm:$0x1]  ;;  %v5453_v6 = vrot.slane %v5437_v3, 9 }
  0xa4   : > { %v2801_v7 = vsel %vm7230_vm7, %v2799_v55, %v2800_v41  ;;  %v2807_v59 = vrot.slane %v6703_v15, 5  ;;  %v6704_v38 = vld [vmem:[%s6803_s23 + $0x44] sm:$0x1]  ;;  %v2813_v26 = vrot.slane %v2811_v11, 4  ;;  %v5454_v41 = vrot.slane %v5438_v0, 9 }
  0xa5   : > { %v2814_v20 = vrot.slane %v6704_v38, 5  ;;  %v5468_v57 = vcombine.low %v2798_v18, %v2801_v7  ;;  %v2820_v55 = vrot.slane %v2818_v24, 4  ;;  %v6705_v42 = vld [vmem:[%s6803_s23 + $0x50] sm:$0x1]  ;;  %v5439_v22 = vld [vmem:[%s6803_s23 + $0x54] sm:$0xe]  ;;  %v2805_v0 = vsel %vm7230_vm7, %v5452_v14, %v2804_v25 }
  0xa6   : > { %v2821_v1 = vrot.slane %v6705_v42, 5  ;;  %v6706_v44 = vld [vmem:[%s6803_s23 + $0x58] sm:$0xf]  ;;  %v6707_v3 = vld [vmem:[%s6803_s23 + $0x24] sm:$0xf]  ;;  %v2812_v38 = vsel %vm7230_vm7, %v5453_v6, %v2811_v11  ;;  %v7311_v25 = vsel %vm7230_vm7, %v5454_v41, %v2818_v24  ;;  %v2860_v8 = vrot.slane %v7054_v9, 5 }
  0xa7   : > { %v2825_v19 = vrot.slane %v6706_v44, 5  ;;  %v7292_v15 = vld [vmem:[%s6803_s23 + $0x28] sm:$0xf]  ;;  %v6709_v18 = vld [vmem:[%s6803_s23 + $0x30] sm:$0xf] }
  0xa8   : > { %6036 = vmatmul.mubr.msk.bf16.vlgmr.msra.gmra.mrb[0].mxu1 %vm669_vm4, %v5207_v17  ;;  %v5209_v17 = vcombine.low %v6707_v3, %v7292_v15  ;;  %v7302_v7 = vld [vmem:[%s6803_s23 + $0x34] sm:$0xf]  ;;  %v7315_v14 = vsel %vm7230_vm7, %v2820_v55, %v2821_v1  ;;  %v6711_v42 = vld [vmem:[%s6803_s23 + $0x5c] sm:$0x1]  ;;  %v5440_v3 = vld [vmem:[%s6803_s23 + $0x60] sm:$0xe] }
  0xa9   : > { %6039 = vmatprep.mubr.msk.bf16.mxu1 %vm669_vm4, %v5208_v47  ;;  %v2808_v47 = vsel %vm7230_vm7, %v2806_v16, %v2807_v59  ;;  %v5455_v16 = vrot.slane %v5439_v22, 9  ;;  %v2827_v59 = vrot.slane %v2825_v19, 4  ;;  %v2828_v44 = vrot.slane %v6711_v42, 5  ;;  %v7322_v11 = vld [vmem:[%s8909_s1 + $0x1c] sm:$0xf] }
  0xaa   : > { %6172 = vmatmul.mubr.msk.bf16.vlgmr.msra.gmra.mrb[0].mxu0 %vm669_vm4, %v5467_v50  ;;  %v5210_v50 = vcombine.low %v6709_v18, %v7302_v7  ;;  %8941 = vst [vmem:[#allocation6_spill] sm:$0xff] %v7322_v11  ;;  %v5469_v24 = vcombine.low %v2805_v0, %v2808_v47  ;;  %v6712_v6 = vld [vmem:[%s6803_s23 + $0x3c] sm:$0xf]  ;;  %v6714_v41 = vld [vmem:[%s6803_s23 + $0x48] sm:$0xf]  ;;  %v3351_v22 = vsel %vm718_vm0, %v6996_v45, 0  ;;  %v5471_v47 = vcombine.low %v7311_v25, %v7315_v14 }
  0xab   : > { %6175 = vmatprep.mubr.msk.bf16.mxu0 %vm669_vm4, %v5468_v57  ;;  %v2815_v57 = vsel %vm7230_vm7, %v2813_v26, %v2814_v20  ;;  %v7326_v20 = vld [vmem:[%s6803_s23 + $0x40] sm:$0xf]  ;;  %v7331_v55 = vld [vmem:[%s6803_s23 + $0x4c] sm:$0xf]  ;;  %v5444_v18 = vld [vmem:[%s6803_s23 + $0x90] sm:$0xe]  ;;  %6204 = vmatpush3.bf16.msra.mxu0 %v3351_v22  ;;  %v2826_v45 = vsel %vm7230_vm7, %v5455_v16, %v2825_v19  ;;  %v2829_v29 = vsel %vm7230_vm7, %v2827_v59, %v2828_v44 }
  0xac   : > { %v5211_v26 = vcombine.low %v6712_v6, %v7326_v20  ;;  %v5212_v1 = vcombine.low %v6714_v41, %v7331_v55  ;;  %v5470_v0 = vcombine.low %v2812_v38, %v2815_v57  ;;  %v7341_v42 = vld [vmem:[%s6803_s23 + $0x54] sm:$0xf]  ;;  %v7344_v6 = vld [vmem:[%s6803_s23 + $0x58] sm:$0xf]  ;;  %v7349_v41 = vld [vmem:[%s6803_s23 + $0x6c] sm:$0xe]  ;;  %6632 = vmatprep.subr.msk.bf16.mxu0 %vm718_vm0, %v7322_v11 }
  0xad   : > { %v6718_v38 = vld [vmem:[%s6803_s23 + $0x64] sm:$0xf]  ;;  %v6719_v25 = vld [vmem:[%s6803_s23 + $0x68] sm:$0x1]  ;;  %v5460_v22 = vrot.slane %v5444_v18, 9  ;;  %v2839_v59 = vrot.slane %v6961_v58, 5 }
  0xae   : > { %v2832_v57 = vrot.slane %v6718_v38, 5  ;;  %v2835_v14 = vrot.slane %v6719_v25, 5  ;;  %v7366_v19 = vld [vmem:[%s6803_s23 + $0x60] sm:$0xf]  ;;  %v7369_v16 = vld [vmem:[%s6803_s23 + $0x64] sm:$0xf]  ;;  %v5472_v25 = vcombine.low %v2826_v45, %v2829_v29 }
  0xaf   : > { %v5457_v38 = vrot.slane %v7349_v41, 9  ;;  %v2842_v44 = vrot.slane %v6971_v5, 5  ;;  %v7379_v9 = vsel %vm7230_vm7, %v5460_v22, %v2860_v8  ;;  %v2867_v18 = vrot.slane %v7088_v4, 5  ;;  %v5447_v11 = vld [vmem:[%s6803_s23 + $0xb4] sm:$0xe] }
  0xb0   : > { %6040 = vmatmul.mubr.msk.bf16.gmra.mrb[4].mxu1 %vm669_vm4, %v5209_v17  ;;  %v5456_v17 = vrot.slane %v5440_v3, 9  ;;  %v2870_v41 = vrot.slane %v7094_v23, 5  ;;  %v5462_v58 = vrot.slane %v5446_v62, 9  ;;  %v2834_v5 = vrot.slane %v2832_v57, 4  ;;  %v5448_v62 = vld [vmem:[%s6803_s23 + $0xc0] sm:$0xe] }
  0xb1   : > { %6043 = vmatprep.mubr.msk.bf16.mxu1 %vm669_vm4, %v5210_v50  ;;  %v2863_v50 = vrot.slane %v7063_v60, 5  ;;  %v2862_v60 = vrot.slane %v2860_v8, 4  ;;  %v2841_v22 = vrot.slane %v2839_v59, 4  ;;  %v2874_v4 = vrot.slane %v7124_v21, 5 }
  0xb2   : > { %6176 = vmatmul.mubr.msk.bf16.gmra.mrb[4].mxu0 %vm669_vm4, %v5469_v24  ;;  %v5461_v24 = vrot.slane %v5445_v30, 9  ;;  %v2833_v3 = vsel %vm7230_vm7, %v5456_v17, %v2832_v57  ;;  %v2869_v30 = vrot.slane %v2867_v18, 4  ;;  %v2877_v23 = vrot.slane %v7127_v33, 5 }
  0xb3   : > { %6179 = vmatprep.mubr.msk.bf16.mxu0 %vm669_vm4, %v5470_v0  ;;  %v7388_v0 = vsel %vm7230_vm7, %v2862_v60, %v2863_v50  ;;  %v5463_v17 = vrot.slane %v5447_v11, 9  ;;  %v2881_v57 = vrot.slane %v7158_v36, 5  ;;  %v2884_v50 = vrot.slane %v7161_v46, 5 }
  0xb4   : > { %v7392_v8 = vsel %vm7230_vm7, %v5461_v24, %v2867_v18  ;;  %v5477_v29 = vcombine.low %v7379_v9, %v7388_v0  ;;  %v7402_v45 = vsel %vm7230_vm7, %v2869_v30, %v2870_v41  ;;  %v2846_v60 = vrot.slane %v6991_v40, 5  ;;  %v7422_v40 = vld [vmem:[%s8909_s1 + $0xc] sm:$0xf]  ;;  %v1177_v0 = vld [vmem:[%s6803_s23 + $0x18] sm:$0xe] }
  0xb5   : > { %v5478_v21 = vcombine.low %v7392_v8, %v7402_v45  ;;  %v7412_v33 = vsel %vm7230_vm7, %v5462_v58, %v2874_v4  ;;  %v7416_v24 = vsel %vm7230_vm7, %v5463_v17, %v2881_v57  ;;  %v2883_v11 = vrot.slane %v2881_v57, 4 }
  0xb6   : > { %v5464_v36 = vrot.slane %v5448_v62, 9  ;;  %v2888_v46 = vrot.slane %v7191_v13, 5  ;;  %v2891_v41 = vrot.slane %v7196_v12, 5  ;;  %v1437_v13 = vsel %vm718_vm0, %v7205_v49, 0 }
  0xb7   : > { %6068 = vmatpush3.bf16.msra.mxu1 %v1437_v13  ;;  %v2840_v12 = vsel %vm7230_vm7, %v5457_v38, %v2839_v59  ;;  %v2843_v49 = vsel %vm7230_vm7, %v2841_v22, %v2842_v44  ;;  %v2853_v8 = vrot.slane %v7029_v27, 5  ;;  %v8942_v27 = vcombine.low %v7341_v42, %v7344_v6  ;;  %v6722_v42 = vld [vmem:[%s6803_s23 + $0x6c] sm:$0xf]  ;;  %v1175_v13 = vld [vmem:[%s6803_s23] sm:$0xe] }
  0xb8   : > { %6044 = vmatmul.mubr.msk.bf16.gmra.mrb[8].mxu1 %vm669_vm4, %v5211_v26  ;;  %v2876_v26 = vrot.slane %v2874_v4, 4  ;;  %6628 = vmatprep.subr.msk.bf16.mxu1 %vm718_vm0, %v7422_v40  ;;  %v5443_v4 = vld [vmem:[%s6803_s23 + $0x84] sm:$0xe]  ;;  %v5474_v44 = vcombine.low %v2840_v12, %v2843_v49  ;;  %v2848_v62 = vrot.slane %v2846_v60, 4  ;;  %v2849_v45 = vrot.slane %v7006_v52, 5 }
  0xb9   : > { %6047 = vmatprep.mubr.msk.bf16.mxu1 %vm669_vm4, %v5212_v1  ;;  %v2836_v1 = vsel %vm7230_vm7, %v2834_v5, %v2835_v14  ;;  %v7443_v14 = vsel %vm7230_vm7, %v5464_v36, %v2888_v46  ;;  %v2890_v5 = vrot.slane %v2888_v46, 4  ;;  %v8943_v17 = vcombine.low %v7366_v19, %v7369_v16 }
  0xba   : > { %6180 = vmatmul.mubr.msk.bf16.gmra.mrb[8].mxu0 %vm669_vm4, %v5471_v47  ;;  %v7429_v18 = vsel %vm7230_vm7, %v2876_v26, %v2877_v23  ;;  %v7439_v47 = vsel %vm7230_vm7, %v2883_v11, %v2884_v50  ;;  %v5473_v38 = vcombine.low %v2833_v3, %v2836_v1  ;;  %v5459_v57 = vrot.slane %v5443_v4, 9  ;;  %v7476_v26 = vld [vmem:[%s6803_s23 + $0x70] sm:$0xf] }
  0xbb   : > { %6183 = vmatprep.mubr.msk.bf16.mxu0 %vm669_vm4, %v5472_v25  ;;  %v5479_v58 = vcombine.low %v7412_v33, %v7429_v18  ;;  %v5442_v25 = vld [vmem:[%s6803_s23 + $0x78] sm:$0xe]  ;;  %v5480_v30 = vcombine.low %v7416_v24, %v7439_v47  ;;  %v7458_v23 = vsel %vm7230_vm7, %v2890_v5, %v2891_v41  ;;  %v2855_v3 = vrot.slane %v2853_v8, 4  ;;  %v1180_v33 = vld [vmem:[%s6803_s23 + $0x3c] sm:$0xe] }
  0xbc   : > { %v5481_v59 = vcombine.low %v7443_v14, %v7458_v23  ;;  %v5458_v22 = vrot.slane %v5442_v25, 9  ;;  %v2856_v50 = vrot.slane %v7032_v32, 5  ;;  %v5215_v11 = vcombine.low %v6722_v42, %v7476_v26  ;;  %v6726_v25 = vld [vmem:[%s6803_s23 + $0x20] sm:$0x1]  ;;  %v6728_v42 = vld [vmem:[%s6803_s23 + $0x38] sm:$0x1] }
  0xbd   : > { %v2850_v19 = vsel %vm7230_vm7, %v2848_v62, %v2849_v45  ;;  %v5216_v36 = vcombine.low %v7010_v56, %v7013_v2  ;;  %v2854_v32 = vsel %vm7230_vm7, %v5459_v57, %v2853_v8  ;;  %v5217_v56 = vcombine.low %v7035_v37, %v7042_v48  ;;  %v6730_v14 = vld [vmem:[%s6803_s23 + $0x50] sm:$0x1] }
  0xbe   : > { %v2847_v52 = vsel %vm7230_vm7, %v5458_v22, %v2846_v60  ;;  %v2857_v46 = vsel %vm7230_vm7, %v2855_v3, %v2856_v50  ;;  %v5218_v2 = vcombine.low %v7066_v28, %v7072_v35  ;;  %v1228_v60 = vrot.slane %v7227_v61, 5  ;;  %v1176_v35 = vld [vmem:[%s6803_s23 + $0xc] sm:$0xe]  ;;  %v6724_v61 = vld [vmem:[%s6803_s23 + $0x8] sm:$0x1] }
  0xbf   : > { %v5475_v1 = vcombine.low %v2847_v52, %v2850_v19  ;;  %v5476_v41 = vcombine.low %v2854_v32, %v2857_v46  ;;  %v5219_v37 = vcombine.low %v7099_v31, %v7102_v39  ;;  %v1235_v48 = vrot.slane %v7266_v51, 5  ;;  %v6725_v31 = vld [vmem:[%s6803_s23 + $0x14] sm:$0x1]  ;;  %v1179_v22 = vld [vmem:[%s6803_s23 + $0x30] sm:$0xe] }
  0xc0   : > { %6048 = vmatmul.mubr.msk.bf16.gmra.mrb[12].mxu1 %vm669_vm4, %v8942_v27  ;;  %v5220_v28 = vcombine.low %v7130_v34, %v7134_v43  ;;  %v1231_v5 = vrot.slane %v6724_v61, 5  ;;  %v5238_v12 = vrot.slane %v1175_v13, 9  ;;  %v1230_v9 = vrot.slane %v1228_v60, 4  ;;  %v1178_v27 = vld [vmem:[%s6803_s23 + $0x24] sm:$0xe] }
  0xc1   : > { %6051 = vmatprep.mubr.msk.bf16.mxu1 %vm669_vm4, %v8943_v17  ;;  %v1238_v49 = vrot.slane %v6725_v31, 5  ;;  %v1237_v51 = vrot.slane %v1235_v48, 4  ;;  %v5240_v34 = vrot.slane %v1177_v0, 9  ;;  %v1245_v8 = vrot.slane %v6726_v25, 5  ;;  %v1181_v3 = vld [vmem:[%s6803_s23 + $0x48] sm:$0xe] }
  0xc2   : > { %6184 = vmatmul.mubr.msk.bf16.gmra.mrb[12].mxu0 %vm669_vm4, %v5473_v38  ;;  %v1229_v4 = vsel %vm7230_vm7, %v5238_v12, %v1228_v60  ;;  %v1232_v38 = vsel %vm7230_vm7, %v1230_v9, %v1231_v5  ;;  %v1256_v62 = vrot.slane %v7302_v7, 5  ;;  %v5221_v45 = vcombine.low %v7165_v54, %v7171_v53  ;;  %v1183_v60 = vld [vmem:[%s6803_s23 + $0x60] sm:$0xe]  ;;  %v1184_v5 = vld [vmem:[%s6803_s23 + $0x6c] sm:$0xe] }
  0xc3   : > { %6187 = vmatprep.mubr.msk.bf16.mxu0 %vm669_vm4, %v5474_v44  ;;  %v1249_v44 = vrot.slane %v7292_v15, 5  ;;  %v5255_v18 = vcombine.low %v1229_v4, %v1232_v38  ;;  %v5241_v24 = vrot.slane %v1178_v27, 9  ;;  %v5242_v57 = vrot.slane %v1179_v22, 9  ;;  %v1185_v4 = vld [vmem:[%s6803_s23 + $0x78] sm:$0xe] }
  0xc4   : > { %v1258_v50 = vrot.slane %v1256_v62, 4  ;;  %v5243_v52 = vrot.slane %v1180_v33, 9  ;;  %v1263_v19 = vrot.slane %v7326_v20, 5  ;;  %v1270_v46 = vrot.slane %v7331_v55, 5  ;;  %v1182_v20 = vld [vmem:[%s6803_s23 + $0x54] sm:$0xe] }
  0xc5   : > { %v1251_v54 = vrot.slane %v1249_v44, 4  ;;  %v7579_v55 = vsel %vm7230_vm7, %v5242_v57, %v1256_v62  ;;  %v1291_v12 = vrot.slane %v7476_v26, 5  ;;  %v1273_v23 = vrot.slane %v6730_v14, 5  ;;  %v6732_v26 = vld [vmem:[%s6803_s23 + $0x7c] sm:$0xf] }
  0xc6   : > { %v1265_v61 = vrot.slane %v1263_v19, 4  ;;  %v5246_v9 = vrot.slane %v1183_v60, 9  ;;  %v1796_v38 = vsel %vm718_vm0, %v7422_v40, 0  ;;  %v6734_v22 = vld [vmem:[%s6803_s23 + $0x74] sm:$0x1]  ;;  %v5248_v57 = vrot.slane %v1185_v4, 9 }
  0xc7   : > { %v1294_v62 = vrot.slane %v6734_v22, 5  ;;  %v5563_v14 = vld [vmem:[%s6803_s23 + $0x18] sm:$0xf]  ;;  %v8945_v4 = vld [vmem:[#allocation3_spill] sm:$0xff] }
  0xc8   : > { %6052 = vmatmul.mubr.msk.bf16.gmra.mrb[16].mxu1 %vm669_vm4, %v5215_v11  ;;  %v1259_v11 = vrot.slane %v6728_v42, 5  ;;  %v3598_v22 = vshll.u32 %v5563_v14, 16 }
  0xc9   : > { %6055 = vmatprep.mubr.msk.bf16.mxu1 %vm669_vm4, %v5216_v36  ;;  %v6660_v36 = vld [vmem:[%s6803_s23 + $0x18] sm:$0xff]  }
  0xca   : > { %6188 = vmatmul.mubr.msk.bf16.gmra.mrb[16].mxu0 %vm669_vm4, %v5475_v1 }
  0xcb   : > { %6191 = vmatprep.mubr.msk.bf16.mxu0 %vm669_vm4, %v5476_v41  ;;  %v7568_v41 = vsel %vm7230_vm7, %v5241_v24, %v1249_v44  ;;  %v1293_v44 = vrot.slane %v1291_v12, 4  ;;  %v1187_v24 = vld [vmem:[%s6803_s23 + $0x90] sm:$0xe] }
  0xd0   : > { %6056 = vmatmul.mubr.msk.bf16.gmra.mrb[20].mxu1 %vm669_vm4, %v5217_v56  ;;  %v5244_v56 = vrot.slane %v1181_v3, 9 }
  0xd1   : > { %6059 = vmatprep.mubr.msk.bf16.mxu1 %vm669_vm4, %v5218_v2  ;;  %v1277_v2 = vrot.slane %v7344_v6, 5  ;;  %v7589_v6 = vsel %vm7230_vm7, %v1258_v50, %v1259_v11  ;;  %v6737_v50 = vld [vmem:[%s6803_s23 + $0x80] sm:$0x1] }
  0xd2   : > { %6192 = vmatmul.mubr.msk.bf16.gmra.mrb[20].mxu0 %vm669_vm4, %v5477_v29  ;;  %v1242_v29 = vrot.slane %v7274_v63, 5  ;;  %v7601_v0 = vsel %vm7230_vm7, %v5244_v56, %v1270_v46  ;;  %v1301_v42 = vrot.slane %v6737_v50, 5  ;;  %v6738_v56 = vld [vmem:[%s6803_s23 + $0x8c] sm:$0x1]  ;;  %v1326_v50 = vrot.slane %v7134_v43, 5 }
  0xd3   : > { %6195 = vmatprep.mubr.msk.bf16.mxu0 %vm669_vm4, %v5478_v21  ;;  %v5239_v21 = vrot.slane %v1176_v35, 9  ;;  %v7593_v35 = vsel %vm7230_vm7, %v5243_v52, %v1263_v19  ;;  %v5572_v43 = vld [vmem:[%s6803_s23 + $0x3c] sm:$0xf] }
  0xd4   : > { %v1244_v63 = vrot.slane %v1242_v29, 4  ;;  %v7548_v7 = vsel %vm7230_vm7, %v5240_v34, %v1242_v29  ;;  %v1279_v29 = vrot.slane %v1277_v2, 4  ;;  %v6733_v34 = vld [vmem:[%s6803_s23 + $0x68] sm:$0x1] }
  0xd5   : > { %v7539_v15 = vsel %vm7230_vm7, %v5239_v21, %v1235_v48  ;;  %v6731_v21 = vld [vmem:[%s6803_s23 + $0x5c] sm:$0x1]  ;;  %v1287_v25 = vrot.slane %v6733_v34, 5 }
  0xd6   : > { %v7552_v47 = vsel %vm7230_vm7, %v1244_v63, %v1245_v8  ;;  %v1280_v31 = vrot.slane %v6731_v21, 5  ;;  %v5247_v8 = vrot.slane %v1184_v5, 9  ;;  %v6661_v63 = vld [vmem:[%s6803_s23 + $0x24] sm:$0xff]   ;;  %v1319_v5 = vrot.slane %v7102_v39, 5 }
  0xd7   : > { %v5257_v1 = vcombine.low %v7548_v7, %v7552_v47  ;;  %v6736_v47 = vld [vmem:[%s6803_s23 + $0x94] sm:$0xf] }
  0xd8   : > { %6060 = vmatmul.mubr.msk.bf16.gmra.mrb[24].mxu1 %vm669_vm4, %v5219_v37  ;;  %v6729_v37 = vld [vmem:[%s6803_s23 + $0x44] sm:$0x1]  ;;  %v7639_v11 = vsel %vm7230_vm7, %v1279_v29, %v1280_v31  ;;  %v7647_v19 = vsel %vm7230_vm7, %v5247_v8, %v1291_v12  ;;  %v5259_v12 = vcombine.low %v7579_v55, %v7589_v6  ;;  %v1321_v8 = vrot.slane %v1319_v5, 4 }
  0xd9   : > { %6063 = vmatprep.mubr.msk.bf16.mxu1 %vm669_vm4, %v5220_v28  ;;  %v1266_v48 = vrot.slane %v6729_v37, 5  ;;  %v1284_v28 = vrot.slane %v7369_v16, 5  ;;  %v1272_v16 = vrot.slane %v1270_v46, 4  ;;  %v7657_v46 = vsel %vm7230_vm7, %v1293_v44, %v1294_v62 }
  0xda   : > { %6196 = vmatmul.mubr.msk.bf16.gmra.mrb[24].mxu0 %vm669_vm4, %v5479_v58  ;;  %v7544_v58 = vsel %vm7230_vm7, %v1237_v51, %v1238_v49  ;;  %v1298_v49 = vrot.slane %v6732_v26, 5  ;;  %v7704_v26 = vld [vmem:[%s6803_s23 + $0xa8] sm:$0xe]  ;;  %v3595_v44 = vshrl.u32 %v5563_v14, 16 }
  0xdb   : > { %6199 = vmatprep.mubr.msk.bf16.mxu0 %vm669_vm4, %v5480_v30  ;;  %v6727_v30 = vld [vmem:[%s6803_s23 + $0x2c] sm:$0x1]  ;;  %v5256_v32 = vcombine.low %v7539_v15, %v7544_v58  ;;  %v1286_v51 = vrot.slane %v1284_v28, 4  ;;  %v7612_v27 = vsel %vm7230_vm7, %v1265_v61, %v1266_v48  ;;  %v6735_v15 = vld [vmem:[%s6803_s23 + $0x88] sm:$0xf]  ;;  %v7621_v58 = vsel %vm7230_vm7, %v1272_v16, %v1273_v23 }
  0xdc   : > { %v1252_v17 = vrot.slane %v6727_v30, 5  ;;  %v1305_v33 = vrot.slane %v6735_v15, 5  ;;  %v7629_v7 = vsel %vm7230_vm7, %v5246_v9, %v1284_v28  ;;  %v8944_v30 = vld [vmem:[#allocation6_spill] sm:$0xff]  ;;  %v1300_v3 = vrot.slane %v1298_v49, 4  ;;  %v6739_v48 = vld [vmem:[%s6803_s23 + $0x98] sm:$0x1] }
  0xdd   : > { %v7643_v52 = vsel %vm7230_vm7, %v1286_v51, %v1287_v25  ;;  %v1315_v28 = vrot.slane %v6739_v48, 5  ;;  %v1188_v61 = vld [vmem:[%s6803_s23 + $0x9c] sm:$0xe]  ;;  %v5260_v16 = vcombine.low %v7593_v35, %v7612_v27  ;;  %v5261_v39 = vcombine.low %v7601_v0, %v7621_v58  ;;  %v6664_v51 = vld [vmem:[%s6803_s23 + $0x48] sm:$0xff]   ;;  %v7719_v27 = vld [vmem:[%s6803_s23 + $0xb4] sm:$0xe] }
  0xde   : > { %v7575_v13 = vsel %vm7230_vm7, %v1251_v54, %v1252_v17  ;;  %v1312_v54 = vrot.slane %v6736_v47, 5  ;;  %v4077_v17 = vsel %vm718_vm0, %v8944_v30, 0  ;;  %v5263_v6 = vcombine.low %v7629_v7, %v7643_v52  ;;  %v5564_v23 = vld [vmem:[%s6803_s23 + $0x1c] sm:$0xf]  ;;  %v7773_v58 = vld [vmem:[%s6803_s23 + $0x38] sm:$0x1] }
  0xdf   : > { %v5258_v60 = vcombine.low %v7568_v41, %v7575_v13  ;;  %v7672_v41 = vsel %vm7230_vm7, %v5248_v57, %v1298_v49  ;;  %v7676_v13 = vsel %vm7230_vm7, %v1300_v3, %v1301_v42  ;;  %v5264_v35 = vcombine.low %v7647_v19, %v7657_v46  ;;  %v5566_v49 = vld [vmem:[%s6803_s23 + $0x24] sm:$0xf]  ;;  %v5569_v57 = vld [vmem:[%s6803_s23 + $0x30] sm:$0xf] }
  0xe0   : > { %6064 = vmatmul.mubr.msk.bf16.gmra.mrb[28].mxu1 %vm669_vm4, %v5221_v45  ;;  %v1186_v45 = vld [vmem:[%s6803_s23 + $0x84] sm:$0xe]  ;;  %v1314_v37 = vrot.slane %v1312_v54, 4  ;;  %v5251_v31 = vrot.slane %v1188_v61, 9  ;;  %v5265_v34 = vcombine.low %v7672_v41, %v7676_v13  ;;  %v3604_v62 = vshll.u32 %v5564_v23, 16  ;;  %v8946_v42 = vld [vmem:[#allocation4_spill] sm:$0xff] }
  0xe1   : > { %6069 = vmatprep.mubr.msk.bf16.mxu1 %vm669_vm4, %v5255_v18  ;;  %v6662_v18 = vld [vmem:[%s6803_s23 + $0x30] sm:$0xff]   ;;  %v3646_v14 = vshll.u32 %v5569_v57, 16 }
  0xe2   : > { %6200 = vmatmul.mubr.msk.bf16.gmra.mrb[28].mxu0 %vm669_vm4, %v5481_v59  ;;  %v5245_v59 = vrot.slane %v1182_v20, 9  ;;  %v1308_v20 = vrot.slane %v6738_v56, 5  ;;  %v7713_v25 = vsel %vm7230_vm7, %v1314_v37, %v1315_v28  ;;  %v7741_v56 = vld [vmem:[%s6803_s23 + $0x34] sm:$0xf]  ;;  %v3600_v37 = vrot.slane %v3598_v22, 5 }
  0xe3   : > { %6205 = vmatprep.mubr.msk.bf16.mxu0 %vm669_vm4, %v6660_v36  ;;  %v5249_v36 = vrot.slane %v1186_v45, 9  ;;  %v3608_v45 = vshrl.u32 %v5564_v23, 16  ;;  %v7747_v48 = vrot.slane %v3604_v62, 5  ;;  %v5568_v23 = vld [vmem:[%s6803_s23 + $0x2c] sm:$0x1] }
  0xe4   : > { %v7625_v40 = vsel %vm7230_vm7, %v5245_v59, %v1277_v2  ;;  %v5250_v2 = vrot.slane %v1187_v24, 9  ;;  %v6663_v59 = vld [vmem:[%s6803_s23 + $0x3c] sm:$0xff]   ;;  %v3622_v24 = vshll.u32 %v5566_v49, 16  ;;  %v7900_v13 = vld [vmem:[%s6803_s23 + $0x70] sm:$0xf] }
  0xe5   : > { %v5262_v55 = vcombine.low %v7625_v40, %v7639_v11  ;;  %v7693_v9 = vsel %vm7230_vm7, %v5249_v36, %v1305_v33  ;;  %v1329_v36 = vrot.slane %v8946_v42, 5  ;;  %v3610_v28 = vrot.slane %v3608_v45, 4 }
  0xe6   : > { %v7701_v21 = vsel %vm7230_vm7, %v5250_v2, %v1312_v54  ;;  %v7729_v54 = vsel %vm7230_vm7, %v5251_v31, %v1319_v5  ;;  %v7745_v2 = vld [vmem:[%s6803_s23 + $0x20] sm:$0x1]  ;;  %v3624_v5 = vrot.slane %v3622_v24, 5  ;;  %v3667_v45 = vshrl.u32 %v5572_v43, 16 }
  0xe7   : > { %8947 = vst [vmem:[#allocation6_spill] sm:$0xff] %v7745_v2  ;;  %v3638_v24 = vshll.u32 %v5568_v23, 16 }
  0xe8   : > { %6070 = vmatmul.mubr.msk.bf16.vlgmr.msra.gmra.mrb[0].mxu1 %vm669_vm4, %v5256_v32  ;;  %v7652_v32 = vld [vmem:[%s8909_s1 + $0x20] sm:$0xf] }
  0xe9   : > { %6073 = vmatprep.mubr.msk.bf16.mxu1 %vm669_vm4, %v5257_v1  ;;  %6102 = vmatpush3.bf16.msra.mxu1 %v1796_v38  ;;  %v1307_v1 = vrot.slane %v1305_v33, 4  ;;  %v1322_v38 = vrot.slane %v8945_v4, 5  ;;  %v5252_v33 = vrot.slane %v7704_v26, 9  ;;  %v3652_v26 = vshll.u32 %v7741_v56, 16 }
  0xea   : > { %6206 = vmatmul.mubr.msk.bf16.vlgmr.msra.gmra.mrb[0].mxu0 %vm669_vm4, %v6661_v63  ;;  %v5567_v63 = vld [vmem:[%s6803_s23 + $0x28] sm:$0xf]  ;;  %v1333_v4 = vrot.slane %v7171_v53, 5 }
  0xeb   : > { %6209 = vmatprep.mubr.msk.bf16.mxu0 %vm669_vm4, %v6662_v18  ;;  %6238 = vmatpush3.bf16.msra.mxu0 %v4077_v17  ;;  %v7697_v29 = vsel %vm7230_vm7, %v1307_v1, %v1308_v20  ;;  %v3619_v18 = vshrl.u32 %v5566_v49, 16  ;;  %v3628_v30 = vshll.u32 %v5567_v63, 16  ;;  %v3632_v17 = vshrl.u32 %v5567_v63, 16  ;;  %v6665_v20 = vld [vmem:[%s6803_s23 + $0x54] sm:$0xff]  }
  0xec   : > { %6633 = vmatprep.subr.msk.bf16.mxu0 %vm718_vm0, %v7652_v32  ;;  %v5266_v15 = vcombine.low %v7693_v9, %v7697_v29  ;;  %v7735_v3 = vsel %vm7230_vm7, %v1321_v8, %v1322_v38  ;;  %v5253_v1 = vrot.slane %v7719_v27, 9  ;;  %v3656_v49 = vshrl.u32 %v7741_v56, 16  ;;  %v8948_v38 = vld [vmem:[#allocation5_spill] sm:$0xff] }
  0xed   : > { %v3621_v61 = vrot.slane %v3619_v18, 4  ;;  %v3634_v31 = vrot.slane %v3632_v17, 4  ;;  %v1328_v8 = vrot.slane %v1326_v50, 4  ;;  %v1336_v63 = vrot.slane %v8948_v38, 5  ;;  %v7768_v17 = vld [vmem:[%s6803_s23 + $0x40] sm:$0xf] }
  0xee   : > { %v3611_v18 = vor.u32 %v3610_v28, %v7747_v48  ;;  %v3658_v42 = vrot.slane %v3656_v49, 4  ;;  %v6668_v38 = vld [vmem:[%s6803_s23 + $0x78] sm:$0xff]   ;;  %v8951_v9 = vcombine.low %v7701_v21, %v7713_v25 }
  0xf0   : > { %6074 = vmatmul.mubr.msk.bf16.gmra.mrb[4].mxu1 %vm669_vm4, %v5258_v60  ;;  %v3597_v60 = vrot.slane %v3595_v44, 4  ;;  %v3614_v44 = vshll.u32 %v7745_v2, 16  ;;  %v6672_v2 = vld [vmem:[%s6803_s23 + $0xa8] sm:$0xff]  }
  0xf1   : > { %6077 = vmatprep.mubr.msk.bf16.mxu1 %vm669_vm4, %v5259_v12  ;;  %v3643_v12 = vshrl.u32 %v5569_v57, 16  ;;  %v3625_v57 = vor.u32 %v3624_v5, %v3621_v61  ;;  %v3669_v61 = vrot.slane %v3667_v45, 4  ;;  %v7806_v45 = vld [vmem:[%s6803_s23 + $0x44] sm:$0x1] }
  0xf2   : > { %6210 = vmatmul.mubr.msk.bf16.gmra.mrb[4].mxu0 %vm669_vm4, %v6663_v59  ;;  %v7751_v59 = vrot.slane %v3628_v30, 5  ;;  %v3601_v62 = vor.u32 %v3600_v37, %v3597_v60  ;;  %v3648_v30 = vrot.slane %v3646_v14, 5  ;;  %v7780_v60 = vsel %vm7230_vm7, %v5252_v33, %v1326_v50  ;;  %v6667_v50 = vld [vmem:[%s6803_s23 + $0x6c] sm:$0xff]  }
  0xf3   : > { %6213 = vmatprep.mubr.msk.bf16.mxu0 %vm669_vm4, %v6664_v51  ;;  %v6666_v51 = vld [vmem:[%s6803_s23 + $0x60] sm:$0xff]   ;;  %v3645_v53 = vrot.slane %v3643_v12, 4  ;;  %v7784_v37 = vsel %vm7230_vm7, %v1328_v8, %v1329_v36  ;;  %v3616_v28 = vrot.slane %v3614_v44, 5  ;;  %v3676_v12 = vshll.u32 %v7768_v17, 16 }
  0xf4   : > { %v3635_v0 = vor.u32 %v3634_v31, %v7751_v59  ;;  %v3680_v14 = vshrl.u32 %v7768_v17, 16  ;;  %v3602_v23 = vrot.slane %v3601_v62, 4  ;;  %v3612_v31 = vrot.slane %v3611_v18, 4 }
  0xf5   : > { %v3662_v33 = vshll.u32 %v7773_v58, 16  ;;  %v3626_v49 = vrot.slane %v3625_v57, 4  ;;  %v7803_v62 = vsel %vm7230_vm7, %v5253_v1, %v1333_v4  ;;  %v7819_v1 = vld [vmem:[%s6803_s23 + $0x4c] sm:$0xf]  ;;  %v5578_v57 = vld [vmem:[%s6803_s23 + $0x54] sm:$0xf] }
  0xf6   : > { %v3636_v36 = vrot.slane %v3635_v0, 4  ;;  %v3682_v27 = vrot.slane %v3680_v14, 4  ;;  %v3617_v7 = vsel %vm6821_vm3, %v3612_v31, %v3616_v28  ;;  %v3704_v28 = vshrl.u32 %v7819_v1, 16 }
  0xf8   : > { %6078 = vmatmul.mubr.msk.bf16.gmra.mrb[8].mxu1 %vm669_vm4, %v5260_v16  ;;  %v3670_v16 = vshll.u32 %v5572_v43, 16  ;;  %v5575_v43 = vld [vmem:[%s6803_s23 + $0x48] sm:$0xf] }
  0xf9   : > { %6081 = vmatprep.mubr.msk.bf16.mxu1 %vm669_vm4, %v5261_v39  ;;  %v7775_v39 = vrot.slane %v3652_v26, 5  ;;  %v3649_v26 = vor.u32 %v3648_v30, %v3645_v53  ;;  %v3694_v18 = vshll.u32 %v5575_v43, 16 }
  0xfa   : > { %6214 = vmatmul.mubr.msk.bf16.gmra.mrb[8].mxu0 %vm669_vm4, %v6665_v20  ;;  %v1335_v20 = vrot.slane %v1333_v4, 4  ;;  %v3672_v5 = vrot.slane %v3670_v16, 5  ;;  %v3691_v16 = vshrl.u32 %v5575_v43, 16  ;;  %v7854_v43 = vld [vmem:[%s6803_s23 + $0x50] sm:$0x1] }
  0xfb   : > { %6217 = vmatprep.mubr.msk.bf16.mxu0 %vm669_vm4, %v6666_v51  ;;  %v3640_v51 = vrot.slane %v3638_v24, 5  ;;  %v3659_v8 = vor.u32 %v3658_v42, %v7775_v39  ;;  %v3607_v24 = vsel %vm6821_vm3, %v3602_v23, %v7747_v48  ;;  %v7826_v52 = vrot.slane %v3649_v26, 4 }
  0xfc   : > { %v7814_v40 = vsel %vm7230_vm7, %v1335_v20, %v1336_v63  ;;  %v3673_v11 = vor.u32 %v3672_v5, %v3669_v61  ;;  %v3631_v63 = vsel %vm6821_vm3, %v3626_v49, %v7751_v59  ;;  %v3686_v48 = vshll.u32 %v7806_v45, 16  ;;  %v7844_v61 = vld [vmem:[%s6803_s23 + $0x58] sm:$0xf]  ;;  %v6669_v49 = vld [vmem:[%s6803_s23 + $0x84] sm:$0xff]  }
  0xfd   : > { %v3641_v53 = vsel %vm6821_vm3, %v3636_v36, %v3640_v51  ;;  %v7836_v30 = vrot.slane %v3659_v8, 4  ;;  %v3693_v0 = vrot.slane %v3691_v16, 4  ;;  %v3696_v42 = vrot.slane %v3694_v18, 5  ;;  %v7873_v16 = vld [vmem:[%s6803_s23 + $0x64] sm:$0xf]  ;;  %v6670_v18 = vld [vmem:[%s6803_s23 + $0x90] sm:$0xff]  }
  0xfe   : > { %v3700_v20 = vshll.u32 %v7819_v1, 16  ;;  %v7848_v5 = vcombine.low %v3607_v24, %v3617_v7  ;;  %v7856_v23 = vcombine.low %v3631_v63, %v3641_v53  ;;  %v3715_v26 = vshrl.u32 %v5578_v57, 16  ;;  %v5584_v63 = vld [vmem:[%s6803_s23 + $0x6c] sm:$0xf]  ;;  %v5587_v59 = vld [vmem:[%s6803_s23 + $0x78] sm:$0xf] }
  0xff   : > { %v7868_v51 = vrot.slane %v3686_v48, 5  ;;  %v3724_v8 = vshll.u32 %v7844_v61, 16  ;;  %v3706_v24 = vrot.slane %v3704_v28, 4  ;;  %v3710_v7 = vshll.u32 %v7854_v43, 16  ;;  %v7919_v36 = vld [vmem:[%s6803_s23 + $0x68] sm:$0x1] }
 0x100   : > { %6082 = vmatmul.mubr.msk.bf16.gmra.mrb[12].mxu1 %vm669_vm4, %v5262_v55  ;;  %v7816_v55 = vrot.slane %v3676_v12, 5  ;;  %v7850_v12 = vrot.slane %v3673_v11, 4  ;;  %8950 = vst [vmem:[#allocation3_spill] sm:$0xff] %v7856_v23  ;;  %v3697_v11 = vor.u32 %v3696_v42, %v3693_v0  ;;  %v3748_v42 = vshll.u32 %v7873_v16, 16  ;;  %v7953_v23 = vld [vmem:[%s6803_s23 + $0x88] sm:$0xf] }
 0x101   : > { %6085 = vmatprep.mubr.msk.bf16.mxu1 %vm669_vm4, %v5263_v6  ;;  %v7828_v6 = vrot.slane %v3662_v33, 5  ;;  %v3718_v33 = vshll.u32 %v5578_v57, 16  ;;  %v3717_v57 = vrot.slane %v3715_v26, 4  ;;  %v3752_v41 = vshrl.u32 %v7873_v16, 16 }
 0x102   : > { %6218 = vmatmul.mubr.msk.bf16.gmra.mrb[12].mxu0 %vm669_vm4, %v6667_v50  ;;  %v3683_v14 = vor.u32 %v3682_v27, %v7816_v55  ;;  %v5581_v50 = vld [vmem:[%s6803_s23 + $0x60] sm:$0xf]  ;;  %v7880_v27 = vrot.slane %v3700_v20, 5  ;;  %v3763_v28 = vshrl.u32 %v5584_v63, 16  ;;  %v7907_v26 = vrot.slane %v3697_v11, 4 }
 0x103   : > { %6221 = vmatprep.mubr.msk.bf16.mxu0 %vm669_vm4, %v6668_v38  ;;  %v3728_v38 = vshrl.u32 %v7844_v61, 16  ;;  %v3739_v53 = vshrl.u32 %v5581_v50, 16  ;;  %v3742_v48 = vshll.u32 %v5581_v50, 16  ;;  %v3720_v0 = vrot.slane %v3718_v33, 5 }
 0x104   : > { %v7892_v46 = vrot.slane %v3683_v14, 4  ;;  %v3766_v14 = vshll.u32 %v5584_v63, 16  ;;  %v3707_v33 = vor.u32 %v3706_v24, %v7880_v27  ;;  %v7910_v50 = vrot.slane %v3710_v7, 5  ;;  %v7916_v63 = vld [vmem:[%s6803_s23 + $0x7c] sm:$0xf] }
 0x105   : > { %v3730_v20 = vrot.slane %v3728_v38, 4  ;;  %v3741_v31 = vrot.slane %v3739_v53, 4  ;;  %v3776_v38 = vshrl.u32 %v7900_v13, 16  ;;  %v3754_v11 = vrot.slane %v3752_v41, 4  ;;  %v6671_v7 = vld [vmem:[%s6803_s23 + $0x9c] sm:$0xff]  }
 0x106   : > { %v3787_v44 = vshrl.u32 %v5587_v59, 16  ;;  %v3790_v24 = vshll.u32 %v5587_v59, 16  ;;  %v3721_v22 = vor.u32 %v3720_v0, %v3717_v57  ;;  %v3765_v47 = vrot.slane %v3763_v28, 4 }
 0x107   : > { %v3689_v59 = vsel %vm6821_vm3, %v7892_v46, %v7868_v51  ;;  %v3703_v57 = vsel %vm6821_vm3, %v7907_v26, %v7880_v27  ;;  %v3796_v0 = vshll.u32 %v7916_v63, 16  ;;  %v3708_v29 = vrot.slane %v3707_v33, 4  ;;  %v5590_v46 = vld [vmem:[%s6803_s23 + $0x84] sm:$0xf]  ;;  %v7950_v27 = vld [vmem:[%s6803_s23 + $0x74] sm:$0x1] }
 0x108   : > { %6086 = vmatmul.mubr.msk.bf16.gmra.mrb[16].mxu1 %vm669_vm4, %v5264_v35  ;;  %v7895_v35 = vld [vmem:[%s6803_s23 + $0x5c] sm:$0x1]  ;;  %v3778_v51 = vrot.slane %v3776_v38, 4  ;;  %v3792_v26 = vrot.slane %v3790_v24, 5  ;;  %v3722_v21 = vrot.slane %v3721_v22, 4  ;;  %v3782_v24 = vshll.u32 %v7950_v27, 16 }
 0x109   : > { %6089 = vmatprep.mubr.msk.bf16.mxu1 %vm669_vm4, %v5265_v34  ;;  %v7903_v34 = vrot.slane %v3724_v8, 5  ;;  %v3734_v19 = vshll.u32 %v7895_v35, 16  ;;  %v3772_v8 = vshll.u32 %v7900_v13, 16  ;;  %v7957_v38 = vrot.slane %v3796_v0, 5 }
 0x10a   : > { %6222 = vmatmul.mubr.msk.bf16.gmra.mrb[16].mxu0 %vm669_vm4, %v6669_v49  ;;  %v3744_v49 = vrot.slane %v3742_v48, 5  ;;  %v3768_v48 = vrot.slane %v3766_v14, 5  ;;  %v3789_v14 = vrot.slane %v3787_v44, 4  ;;  %v3820_v22 = vshll.u32 %v7953_v23, 16 }
 0x10b   : > { %6225 = vmatprep.mubr.msk.bf16.mxu0 %vm669_vm4, %v6670_v18  ;;  %v7921_v18 = vrot.slane %v3748_v42, 5  ;;  %v3731_v53 = vor.u32 %v3730_v20, %v7903_v34  ;;  %v3800_v42 = vshrl.u32 %v7916_v63, 16  ;;  %v7945_v41 = vrot.slane %v3772_v8, 5 }
 0x10c   : > { %v3745_v20 = vor.u32 %v3744_v49, %v3741_v31  ;;  %v3736_v33 = vrot.slane %v3734_v19, 5  ;;  %v3769_v8 = vor.u32 %v3768_v48, %v3765_v47  ;;  %v3811_v49 = vshrl.u32 %v5590_v46, 16  ;;  %v6673_v48 = vld [vmem:[%s6803_s23 + $0xb4] sm:$0xff]  }
 0x10d   : > { %v3755_v28 = vor.u32 %v3754_v11, %v7921_v18  ;;  %v3732_v25 = vrot.slane %v3731_v53, 4  ;;  %v3802_v31 = vrot.slane %v3800_v42, 4  ;;  %v3814_v11 = vshll.u32 %v5590_v46, 16 }
 0x10e   : > { %v3779_v44 = vor.u32 %v3778_v51, %v7945_v41  ;;  %v3824_v19 = vshrl.u32 %v7953_v23, 16  ;;  %v3746_v47 = vrot.slane %v3745_v20, 4  ;;  %v3793_v53 = vor.u32 %v3792_v26, %v3789_v14 }
 0x10f   : > { %v3713_v0 = vsel %vm6821_vm3, %v3708_v29, %v7910_v50  ;;  %v3727_v42 = vsel %vm6821_vm3, %v3722_v21, %v7903_v34  ;;  %v3737_v51 = vsel %vm6821_vm3, %v3732_v25, %v3736_v33  ;;  %v7975_v46 = vrot.slane %v3769_v8, 4  ;;  %v7985_v29 = vld [vmem:[%s6803_s23 + $0x8c] sm:$0x1]  ;;  %v5593_v33 = vld [vmem:[%s6803_s23 + $0x90] sm:$0xf] }
 0x110   : > { %6090 = vmatmul.mubr.msk.bf16.gmra.mrb[20].mxu1 %vm669_vm4, %v5266_v15  ;;  %v3758_v15 = vshll.u32 %v7919_v36, 16  ;;  %v8952_v20 = vcombine.low %v7729_v54, %v7735_v3  ;;  %v3813_v14 = vrot.slane %v3811_v49, 4  ;;  %v3816_v26 = vrot.slane %v3814_v11, 5 }
 0x111   : > { %6093 = vmatprep.mubr.msk.bf16.mxu1 %vm669_vm4, %v8951_v9  ;;  %v7962_v9 = vld [vmem:[%s6803_s23 + $0x80] sm:$0x1]  ;;  %v8953_v34 = vcombine.low %v7780_v60, %v7784_v37  ;;  %v7991_v21 = vrot.slane %v3779_v44, 4  ;;  %v7993_v54 = vrot.slane %v3782_v24, 5  ;;  %v7995_v3 = vrot.slane %v3820_v22, 5 }
 0x112   : > { %6226 = vmatmul.mubr.msk.bf16.gmra.mrb[20].mxu0 %vm669_vm4, %v6671_v7  ;;  %v3756_v7 = vrot.slane %v3755_v28, 4  ;;  %v3803_v28 = vor.u32 %v3802_v31, %v7957_v38  ;;  %v3806_v50 = vshll.u32 %v7962_v9, 16  ;;  %v3826_v25 = vrot.slane %v3824_v19, 4  ;;  %v5646_v44 = vld [vmem:[%s6803_s23 + $0x30] sm:$0xe] }
 0x113   : > { %6229 = vmatprep.mubr.msk.bf16.mxu0 %vm669_vm4, %v6672_v2  ;;  %v3760_v2 = vrot.slane %v3758_v15, 5  ;;  %v6674_v15 = vld [vmem:[%s6803_s23 + $0xc0] sm:$0xff]   ;;  %v8954_v8 = vsel %vm6821_vm3, %v7836_v30, %v7828_v6  ;;  %v8955_v60 = vsel %vm6821_vm3, %v7826_v52, %v7775_v39  ;;  %v3751_v31 = vsel %vm6821_vm3, %v3746_v47, %v7921_v18  ;;  %v8037_v47 = vld [vmem:[%s6803_s23 + $0x94] sm:$0xf] }
 0x114   : > { %v8008_v37 = vcombine.low %v8955_v60, %v8954_v8  ;;  %v8015_v11 = vrot.slane %v3793_v53, 4  ;;  %v8956_v6 = vsel %vm6821_vm3, %v7850_v12, %v7816_v55  ;;  %v8025_v52 = vcombine.low %v3703_v57, %v3713_v0  ;;  %v6676_v12 = vld [vmem:[%s6803_s23 + $0xc] sm:$0xff]   ;;  %v5649_v60 = vld [vmem:[%s6803_s23 + $0x54] sm:$0xe] }
 0x115   : > { %v3761_v49 = vsel %vm6821_vm3, %v3756_v7, %v3760_v2  ;;  %v8023_v39 = vcombine.low %v8956_v6, %v3689_v59  ;;  %v8027_v30 = vcombine.low %v3727_v42, %v3737_v51  ;;  %v3830_v18 = vshll.u32 %v7985_v29, 16  ;;  %v6675_v53 = vld [vmem:[%s6803_s23 + $0xcc] sm:$0xff]  }
 0x116   : > { %v8032_v24 = vrot.slane %v3803_v28, 4  ;;  %v8034_v22 = vrot.slane %v3806_v50, 5  ;;  %v3817_v19 = vor.u32 %v3816_v26, %v3813_v14  ;;  %v3835_v55 = vshrl.u32 %v5593_v33, 16  ;;  %v5648_v26 = vld [vmem:[%s6803_s23 + $0x48] sm:$0xe] }
 0x117   : > { %v8040_v59 = vcombine.low %v3751_v31, %v3761_v49  ;;  %v3827_v2 = vor.u32 %v3826_v25, %v7995_v3  ;;  %v8058_v0 = vsel %vm718_vm0, %v7652_v32, 0  ;;  %v3838_v42 = vshll.u32 %v5593_v33, 16  ;;  %v8243_v32 = vld [vmem:[%s6803_s23 + $0xc4] sm:$0xf] }
 0x118   : > { %6094 = vmatmul.mubr.msk.bf16.gmra.mrb[24].mxu1 %vm669_vm4, %v8952_v20  ;;  %v5662_v51 = vrot.slane %v5646_v44, 9  ;;  %v5647_v20 = vld [vmem:[%s6803_s23 + $0x3c] sm:$0xe]  ;;  %v3844_v28 = vshll.u32 %v8037_v47, 16  ;;  %v4352_v50 = vrot.slane %v7741_v56, 5  ;;  %v4355_v14 = vrot.slane %v7773_v58, 5 }
 0x119   : > { %6097 = vmatprep.mubr.msk.bf16.mxu1 %vm669_vm4, %v8953_v34  ;;  %v8957_v34 = vcombine.low %v7803_v62, %v7814_v40  ;;  %v8075_v25 = vrot.slane %v3817_v19, 4  ;;  %v8077_v33 = vrot.slane %v3835_v55, 4  ;;  %v8081_v56 = vrot.slane %v3827_v2, 4  ;;  %v5650_v2 = vld [vmem:[%s6803_s23 + $0x60] sm:$0xe] }
 0x11a   : > { %6230 = vmatmul.mubr.msk.bf16.gmra.mrb[24].mxu0 %vm669_vm4, %v6673_v48  ;;  %v8085_v58 = vsel %vm7230_vm7, %v5662_v51, %v4352_v50  ;;  %v4354_v62 = vrot.slane %v4352_v50, 4  ;;  %v5663_v40 = vrot.slane %v5647_v20, 9  ;;  %v8088_v31 = vrot.slane %v3838_v42, 5  ;;  %v6678_v20 = vld [vmem:[%s6803_s23 + $0x24] sm:$0xff]   ;;  %v5651_v50 = vld [vmem:[%s6803_s23 + $0x6c] sm:$0xe] }
 0x11b   : > { %6233 = vmatprep.mubr.msk.bf16.mxu0 %vm669_vm4, %v6674_v15  ;;  %v8061_v15 = vrot.slane %v3830_v18, 5  ;;  %v4359_v49 = vrot.slane %v7768_v17, 5  ;;  %v4362_v6 = vrot.slane %v7806_v45, 5  ;;  %v5664_v18 = vrot.slane %v5648_v26, 9  ;;  %v6677_v17 = vld [vmem:[%s6803_s23 + $0x18] sm:$0xff]  }
 0x11c   : > { %v8093_v44 = vrot.slane %v3844_v28, 5  ;;  %v8097_v19 = vsel %vm7230_vm7, %v4354_v62, %v4355_v14  ;;  %v4366_v55 = vrot.slane %v7819_v1, 5  ;;  %v5665_v51 = vrot.slane %v5649_v60, 9  ;;  %v5658_v48 = vld [vmem:[%s6803_s23 + $0xc0] sm:$0xe] }
 0x11d   : > { %v4361_v42 = vrot.slane %v4359_v49, 4  ;;  %v4373_v28 = vrot.slane %v7844_v61, 5  ;;  %v5666_v26 = vrot.slane %v5650_v2, 9  ;;  %v4383_v62 = vrot.slane %v7919_v36, 5 }
 0x11e   : > { %v8114_v1 = vsel %vm7230_vm7, %v5664_v18, %v4366_v55  ;;  %v5667_v18 = vrot.slane %v5651_v50, 9  ;;  %v4387_v2 = vrot.slane %v7900_v13, 5  ;;  %v8958_v50 = vld [vmem:[#allocation3_spill] sm:$0xff]  ;;  %v8163_v13 = vld [vmem:[%s6803_s23 + $0x98] sm:$0x1] }
 0x11f   : > { %v8121_v14 = vsel %vm7230_vm7, %v4361_v42, %v4362_v6 }
 0x120   : > { %6098 = vmatmul.mubr.msk.bf16.gmra.mrb[28].mxu1 %vm669_vm4, %v8957_v34  ;;  %v4380_v34 = vrot.slane %v7873_v16, 5 }
 0x121   : > { %6103 = vmatprep.mubr.msk.bf16.mxu1 %vm669_vm4, %v6676_v12  ;;  %v4369_v12 = vrot.slane %v7854_v43, 5  ;;  %v4368_v43 = vrot.slane %v4366_v55, 4  ;;  %v5653_v55 = vld [vmem:[%s6803_s23 + $0x84] sm:$0xe] }
 0x122   : > { %6234 = vmatmul.mubr.msk.bf16.gmra.mrb[28].mxu0 %vm669_vm4, %v6675_v53  ;;  %v8109_v53 = vsel %vm7230_vm7, %v5663_v40, %v4359_v49  ;;  %v5652_v40 = vld [vmem:[%s6803_s23 + $0x78] sm:$0xe]  ;;  %v4375_v49 = vrot.slane %v4373_v28, 4  ;;  %v8141_v36 = vsel %vm7230_vm7, %v5666_v26, %v4380_v34  ;;  %v4382_v6 = vrot.slane %v4380_v34, 4 }
 0x123   : > { %6239 = vmatprep.mubr.msk.bf16.mxu0 %vm669_vm4, %v7848_v5  ;;  %v4376_v5 = vrot.slane %v7895_v35, 5  ;;  %v8130_v61 = vsel %vm7230_vm7, %v4368_v43, %v4369_v12  ;;  %v8134_v35 = vsel %vm7230_vm7, %v5665_v51, %v4373_v28  ;;  %v5668_v42 = vrot.slane %v5652_v40, 9 }
 0x124   : > { %v8155_v43 = vsel %vm7230_vm7, %v4382_v6, %v4383_v62  ;;  %v4394_v28 = vrot.slane %v7916_v63, 5  ;;  %v8169_v26 = vsel %vm7230_vm7, %v5667_v18, %v4387_v2  ;;  %v4389_v34 = vrot.slane %v4387_v2, 4  ;;  %v5655_v18 = vld [vmem:[%s6803_s23 + $0x9c] sm:$0xe] }
 0x125   : > { %v8147_v12 = vsel %vm7230_vm7, %v4375_v49, %v4376_v5  ;;  %v5654_v5 = vld [vmem:[%s6803_s23 + $0x90] sm:$0xe]  ;;  %v5669_v63 = vrot.slane %v5653_v55, 9  ;;  %v4401_v49 = vrot.slane %v7953_v23, 5  ;;  %v4404_v6 = vrot.slane %v7985_v29, 5  ;;  %v6680_v2 = vld [vmem:[%s6803_s23 + $0x3c] sm:$0xff]  }
 0x126   : > { %v8177_v62 = vsel %vm7230_vm7, %v5668_v42, %v4394_v28  ;;  %v4396_v40 = vrot.slane %v4394_v28, 4  ;;  %v4411_v42 = vrot.slane %v8163_v13, 5  ;;  %v5656_v28 = vld [vmem:[%s6803_s23 + $0xa8] sm:$0xe]  ;;  %v8194_v23 = vld [vmem:[%s6803_s23 + $0xa4] sm:$0x1]  ;;  %v8978_v10 = vcombine.low %v8134_v35, %v8147_v12 }
 0x127   : > { %8959 = vst [vmem:[#allocation4_spill] sm:$0xff] %v8177_v62  ;;  %v5671_v60 = vrot.slane %v5655_v18, 9  ;;  %v8231_v18 = vld [vmem:[%s6803_s23 + $0xbc] sm:$0x1] }
 0x128   : > { %6104 = vmatmul.mubr.msk.bf16.vlgmr.msra.gmra.mrb[0].mxu1 %vm669_vm4, %v6677_v17  ;;  %v4390_v17 = vrot.slane %v7950_v27, 5  ;;  %v8207_v27 = vld [vmem:[%s6803_s23 + $0xac] sm:$0xf] }
 0x129   : > { %6107 = vmatprep.mubr.msk.bf16.mxu1 %vm669_vm4, %v6678_v20  ;;  %v4397_v20 = vrot.slane %v7962_v9, 5  ;;  %v6679_v9 = vld [vmem:[%s6803_s23 + $0x30] sm:$0xff]  }
 0x12a   : > { %6240 = vmatmul.mubr.msk.bf16.vlgmr.msra.gmra.mrb[0].mxu0 %vm669_vm4, %v8958_v50  ;;  %v8185_v55 = vsel %vm7230_vm7, %v4389_v34, %v4390_v17  ;;  %v8191_v50 = vld [vmem:[%s6803_s23 + $0xa0] sm:$0xf]  ;;  %v4403_v34 = vrot.slane %v4401_v49, 4 }
 0x12b   : > { %6243 = vmatprep.mubr.msk.bf16.mxu0 %vm669_vm4, %v8008_v37  ;;  %6272 = vmatpush3.bf16.msra.mxu0 %v8058_v0  ;;  %8960 = vst [vmem:[#allocation5_spill] sm:$0xff] %v8185_v55  ;;  %v5670_v37 = vrot.slane %v5654_v5, 9  ;;  %v4408_v0 = vrot.slane %v8037_v47, 5  ;;  %v8200_v17 = vsel %vm7230_vm7, %v4396_v40, %v4397_v20  ;;  %v8204_v5 = vsel %vm7230_vm7, %v5669_v63, %v4401_v49  ;;  %v5657_v20 = vld [vmem:[%s6803_s23 + $0xb4] sm:$0xe] }
 0x12c   : > { %8961 = vst [vmem:[#allocation2_spill] sm:$0xff] %v8200_v17  ;;  %8962 = vst [vmem:[#allocation3_spill] sm:$0xff] %v8204_v5  ;;  %v8218_v63 = vld [vmem:[%s6803_s23 + $0xb0] sm:$0x1]  ;;  %v8221_v40 = vld [vmem:[%s6803_s23 + $0xb8] sm:$0xf]  ;;  %v8225_v49 = vsel %vm7230_vm7, %v4403_v34, %v4404_v6 }
 0x12d   : > { %v8213_v16 = vsel %vm7230_vm7, %v5670_v37, %v4408_v0  ;;  %v4410_v29 = vrot.slane %v4408_v0, 4  ;;  %8964 = vst [vmem:[#allocation8_spill] sm:$0xff] %v8225_v49  ;;  %v4415_v51 = vrot.slane %v8191_v50, 5  ;;  %v4418_v37 = vrot.slane %v8194_v23, 5 }
 0x12e   : > { %8963 = vst [vmem:[#allocation7_spill] sm:$0xff] %v8213_v16  ;;  %v5672_v0 = vrot.slane %v5656_v28, 9  ;;  %v4422_v6 = vrot.slane %v8207_v27, 5  ;;  %v4425_v34 = vrot.slane %v8218_v63, 5  ;;  %v8246_v28 = vld [vmem:[%s6803_s23 + $0xc8] sm:$0x1] }
 0x12f   : > { %v8237_v45 = vsel %vm7230_vm7, %v4410_v29, %v4411_v42  ;;  %v4417_v42 = vrot.slane %v4415_v51, 4  ;;  %v5673_v29 = vrot.slane %v5657_v20, 9  ;;  %v4429_v8 = vrot.slane %v8221_v40, 5  ;;  %v5596_v16 = vld [vmem:[%s6803_s23 + $0x9c] sm:$0xf] }
 0x130   : > { %6108 = vmatmul.mubr.msk.bf16.gmra.mrb[4].mxu1 %vm669_vm4, %v6679_v9  ;;  %8965 = vst [vmem:[#allocation9_spill] sm:$0xff] %v8237_v45  ;;  %v8252_v9 = vsel %vm7230_vm7, %v5671_v60, %v4415_v51  ;;  %v8258_v57 = vsel %vm7230_vm7, %v5672_v0, %v4422_v6  ;;  %v4424_v7 = vrot.slane %v4422_v6, 4  ;;  %v5659_v45 = vld [vmem:[%s6803_s23 + $0xcc] sm:$0xe]  ;;  %v4436_v20 = vrot.slane %v8243_v32, 5  ;;  %v6682_v6 = vld [vmem:[%s6803_s23 + $0x54] sm:$0xff]  }
 0x131   : > { %6111 = vmatprep.mubr.msk.bf16.mxu1 %vm669_vm4, %v6680_v2  ;;  %8966 = vst [vmem:[#allocation10_spill] sm:$0xff] %v8252_v9  ;;  %v4432_v2 = vrot.slane %v8231_v18, 5  ;;  %v6681_v60 = vld [vmem:[%s6803_s23 + $0x48] sm:$0xff]   ;;  %v8268_v51 = vsel %vm7230_vm7, %v4417_v42, %v4418_v37  ;;  %v4439_v0 = vrot.slane %v8246_v28, 5  ;;  %v4431_v37 = vrot.slane %v4429_v8, 4 }
 0x132   : > { %6244 = vmatmul.mubr.msk.bf16.gmra.mrb[4].mxu0 %vm669_vm4, %v8023_v39  ;;  %8967 = vst [vmem:[#allocation11_spill] sm:$0xff] %v8268_v51  ;;  %v5674_v39 = vrot.slane %v5658_v48, 9  ;;  %v8278_v5 = vsel %vm7230_vm7, %v4424_v7, %v4425_v34  ;;  %v8285_v48 = vld [vmem:[%s6803_s23 + $0xd0] sm:$0xf]  ;;  %v8288_v42 = vld [vmem:[%s6803_s23 + $0xd4] sm:$0x1] }
 0x133   : > { %6247 = vmatprep.mubr.msk.bf16.mxu0 %vm669_vm4, %v8025_v52  ;;  %8968 = vst [vmem:[#allocation12_spill] sm:$0xff] %v8278_v5  ;;  %v8282_v52 = vsel %vm7230_vm7, %v5673_v29, %v4429_v8  ;;  %v4438_v49 = vrot.slane %v4436_v20, 4  ;;  %v5675_v51 = vrot.slane %v5659_v45, 9  ;;  %v8969_v7 = vshrl.u32 %v8037_v47, 16  ;;  %v5599_v9 = vld [vmem:[%s6803_s23 + $0xa8] sm:$0xf] }
 0x134   : > { %v8294_v62 = vsel %vm7230_vm7, %v5674_v39, %v4436_v20  ;;  %v8301_v8 = vsel %vm7230_vm7, %v4431_v37, %v4432_v2  ;;  %v4443_v29 = vrot.slane %v8285_v48, 5  ;;  %v4446_v55 = vrot.slane %v8288_v42, 5 }
 0x135   : > { %v3850_v34 = vrot.slane %v8969_v7, 4  ;;  %v3859_v17 = vshrl.u32 %v5596_v16, 16  ;;  %v3862_v5 = vshll.u32 %v5596_v16, 16  ;;  %v5690_v39 = vcombine.low %v8282_v52, %v8301_v8  ;;  %v8988_v12 = vld [vmem:[#allocation7_spill] sm:$0xff] }
 0x136   : > { %v8310_v47 = vsel %vm7230_vm7, %v4438_v49, %v4439_v0  ;;  %v3854_v45 = vshll.u32 %v8163_v13, 16  ;;  %v4445_v16 = vrot.slane %v4443_v29, 4  ;;  %v3868_v20 = vshll.u32 %v8191_v50, 16 }
 0x137   : > { %v5691_v2 = vcombine.low %v8294_v62, %v8310_v47  ;;  %v3872_v37 = vshrl.u32 %v8191_v50, 16  ;;  %v3883_v49 = vshrl.u32 %v5599_v9, 16  ;;  %v3886_v0 = vshll.u32 %v5599_v9, 16  ;;  %v6683_v50 = vld [vmem:[%s6803_s23 + $0x60] sm:$0xff]  }
 0x138   : > { %6112 = vmatmul.mubr.msk.bf16.gmra.mrb[8].mxu1 %vm669_vm4, %v6681_v60  ;;  %v8318_v60 = vsel %vm7230_vm7, %v5675_v51, %v4443_v29  ;;  %v3841_v13 = vor.u32 %v8088_v31, %v8077_v33  ;;  %v3896_v7 = vshrl.u32 %v8207_v27, 16  ;;  %v8330_v51 = vsel %vm7230_vm7, %v4445_v16, %v4446_v55  ;;  %v6684_v55 = vld [vmem:[%s6803_s23 + $0x6c] sm:$0xff]  }
 0x139   : > { %6115 = vmatprep.mubr.msk.bf16.mxu1 %vm669_vm4, %v6682_v6  ;;  %v3892_v6 = vshll.u32 %v8207_v27, 16  ;;  %v3851_v9 = vor.u32 %v3850_v34, %v8093_v44  ;;  %v3861_v29 = vrot.slane %v3859_v17, 4  ;;  %v5692_v33 = vcombine.low %v8318_v60, %v8330_v51 }
 0x13a   : > { %6248 = vmatmul.mubr.msk.bf16.gmra.mrb[8].mxu0 %vm669_vm4, %v8027_v30  ;;  %v3864_v30 = vrot.slane %v3862_v5, 5  ;;  %v8970_v31 = vsel %vm6821_vm3, %v7991_v21, %v7993_v54  ;;  %v8971_v27 = vsel %vm6821_vm3, %v7975_v46, %v7945_v41  ;;  %v3823_v17 = vsel %vm6821_vm3, %v8075_v25, %v7995_v3 }
 0x13b   : > { %6251 = vmatprep.mubr.msk.bf16.mxu0 %vm669_vm4, %v8040_v59  ;;  %v5619_v59 = vcombine.low %v8971_v27, %v8970_v31  ;;  %v3833_v5 = vsel %vm6821_vm3, %v8081_v56, %v8061_v15  ;;  %v8357_v34 = vrot.slane %v3868_v20, 5  ;;  %v3874_v21 = vrot.slane %v3872_v37, 4  ;;  %v5602_v56 = vld [vmem:[%s6803_s23 + $0xb4] sm:$0xf] }
 0x13c   : > { %v3885_v54 = vrot.slane %v3883_v49, 4  ;;  %v3888_v16 = vrot.slane %v3886_v0, 5  ;;  %v8972_v41 = vsel %vm6821_vm3, %v8032_v24, %v8034_v22  ;;  %v8973_v46 = vsel %vm6821_vm3, %v8015_v11, %v7957_v38 }
 0x13d   : > { %v5620_v3 = vcombine.low %v8973_v46, %v8972_v41  ;;  %v3856_v25 = vrot.slane %v3854_v45, 5  ;;  %v8369_v31 = vrot.slane %v3892_v6, 5  ;;  %v3898_v15 = vrot.slane %v3896_v7, 4  ;;  %v5605_v6 = vld [vmem:[%s6803_s23 + $0xc0] sm:$0xf] }
 0x13e   : > { %v3842_v20 = vrot.slane %v3841_v13, 4  ;;  %v3852_v37 = vrot.slane %v3851_v9, 4  ;;  %v3865_v49 = vor.u32 %v3864_v30, %v3861_v29  ;;  %v3878_v24 = vshll.u32 %v8194_v23, 16  ;;  %v6685_v9 = vld [vmem:[%s6803_s23 + $0x78] sm:$0xff]  }
 0x13f   : > { %v5621_v22 = vcombine.low %v3823_v17, %v3833_v5  ;;  %v3875_v38 = vor.u32 %v3874_v21, %v8357_v34  ;;  %v3889_v11 = vor.u32 %v3888_v16, %v3885_v54  ;;  %v3902_v45 = vshll.u32 %v8218_v63, 16 }
 0x140   : > { %6116 = vmatmul.mubr.msk.bf16.gmra.mrb[12].mxu1 %vm669_vm4, %v6683_v50  ;;  %v3907_v0 = vshrl.u32 %v5602_v56, 16  ;;  %v3899_v13 = vor.u32 %v3898_v15, %v8369_v31  ;;  %v3910_v7 = vshll.u32 %v5602_v56, 16  ;;  %v3916_v50 = vshll.u32 %v8221_v40, 16 }
 0x141   : > { %6119 = vmatprep.mubr.msk.bf16.mxu1 %vm669_vm4, %v6684_v55  ;;  %v3920_v23 = vshrl.u32 %v8221_v40, 16  ;;  %v3847_v29 = vsel %vm6821_vm3, %v3842_v20, %v8093_v44  ;;  %v3857_v63 = vsel %vm6821_vm3, %v3852_v37, %v3856_v25  ;;  %v3866_v30 = vrot.slane %v3865_v49, 4 }
 0x142   : > { %6252 = vmatmul.mubr.msk.bf16.gmra.mrb[12].mxu0 %vm669_vm4, %v5619_v59  ;;  %v3880_v27 = vrot.slane %v3878_v24, 5  ;;  %v6686_v59 = vld [vmem:[%s6803_s23 + $0x84] sm:$0xff]   ;;  %v3931_v55 = vshrl.u32 %v5605_v6, 16  ;;  %v3934_v17 = vshll.u32 %v5605_v6, 16  ;;  %v3940_v5 = vshll.u32 %v8243_v32, 16 }
 0x143   : > { %6255 = vmatprep.mubr.msk.bf16.mxu0 %vm669_vm4, %v5620_v3  ;;  %v3944_v21 = vshrl.u32 %v8243_v32, 16  ;;  %v3876_v40 = vrot.slane %v3875_v38, 4  ;;  %v3890_v54 = vrot.slane %v3889_v11, 4  ;;  %v3904_v16 = vrot.slane %v3902_v45, 5  ;;  %v5608_v32 = vld [vmem:[%s6803_s23 + $0xcc] sm:$0xf] }
 0x144   : > { %v3909_v41 = vrot.slane %v3907_v0, 4  ;;  %v3900_v46 = vrot.slane %v3899_v13, 4  ;;  %v3912_v3 = vrot.slane %v3910_v7, 5  ;;  %v3918_v44 = vrot.slane %v3916_v50, 5  ;;  %v6687_v7 = vld [vmem:[%s6803_s23 + $0x90] sm:$0xff]  }
 0x145   : > { %v3922_v15 = vrot.slane %v3920_v23, 4  ;;  %v5622_v25 = vcombine.low %v3847_v29, %v3857_v63  ;;  %v3933_v56 = vrot.slane %v3931_v55, 4  ;;  %v3936_v20 = vrot.slane %v3934_v17, 5  ;;  %v6688_v29 = vld [vmem:[%s6803_s23 + $0x9c] sm:$0xff]  }
 0x146   : > { %v3942_v37 = vrot.slane %v3940_v5, 5  ;;  %v3946_v49 = vrot.slane %v3944_v21, 4  ;;  %v3871_v24 = vsel %vm6821_vm3, %v3866_v30, %v8357_v34  ;;  %v3881_v38 = vsel %vm6821_vm3, %v3876_v40, %v3880_v27 }
 0x147   : > { %v3895_v11 = vsel %vm6821_vm3, %v3890_v54, %v8369_v31  ;;  %v3905_v45 = vsel %vm6821_vm3, %v3900_v46, %v3904_v16  ;;  %v3913_v0 = vor.u32 %v3912_v3, %v3909_v41  ;;  %v3923_v6 = vor.u32 %v3922_v15, %v3918_v44  ;;  %v6689_v41 = vld [vmem:[%s6803_s23 + $0xa8] sm:$0xff]  }
 0x148   : > { %6120 = vmatmul.mubr.msk.bf16.gmra.mrb[16].mxu1 %vm669_vm4, %v6685_v9  ;;  %v3926_v13 = vshll.u32 %v8231_v18, 16  ;;  %v3955_v34 = vshrl.u32 %v5608_v32, 16  ;;  %v3958_v50 = vshll.u32 %v5608_v32, 16  ;;  %v3964_v23 = vshll.u32 %v8285_v48, 16  ;;  %v6740_v32 = vld [vmem:[%s6803_s23 + $0x1c] sm:$0xf] }
 0x149   : > { %6123 = vmatprep.mubr.msk.bf16.mxu1 %vm669_vm4, %v6686_v59  ;;  %v3968_v9 = vshrl.u32 %v8285_v48, 16  ;;  %v3937_v31 = vor.u32 %v3936_v20, %v3933_v56  ;;  %v3947_v63 = vor.u32 %v3946_v49, %v3942_v37  ;;  %v5623_v30 = vcombine.low %v3871_v24, %v3881_v38  ;;  %v6690_v56 = vld [vmem:[%s6803_s23 + $0xb4] sm:$0xff]  }
 0x14a   : > { %6256 = vmatmul.mubr.msk.bf16.gmra.mrb[16].mxu0 %vm669_vm4, %v5621_v22  ;;  %v3950_v22 = vshll.u32 %v8246_v28, 16  ;;  %v5624_v27 = vcombine.low %v3895_v11, %v3905_v45  ;;  %v3914_v59 = vrot.slane %v3913_v0, 4  ;;  %v3924_v55 = vrot.slane %v3923_v6, 4  ;;  %v5644_v24 = vld [vmem:[%s6803_s23 + $0x18] sm:$0xe] }
 0x14b   : > { %6259 = vmatprep.mubr.msk.bf16.mxu0 %vm669_vm4, %v5622_v25  ;;  %v3928_v18 = vrot.slane %v3926_v13, 5  ;;  %v3957_v17 = vrot.slane %v3955_v34, 4  ;;  %v3960_v5 = vrot.slane %v3958_v50, 5  ;;  %v3966_v21 = vrot.slane %v3964_v23, 5  ;;  %v8974_v13 = vld [vmem:[#allocation6_spill] sm:$0xff] }
 0x14c   : > { %v3970_v40 = vrot.slane %v3968_v9, 4  ;;  %v3938_v48 = vrot.slane %v3937_v31, 4  ;;  %v3948_v54 = vrot.slane %v3947_v63, 4  ;;  %v3952_v28 = vrot.slane %v3950_v22, 5  ;;  %v6691_v34 = vld [vmem:[%s6803_s23 + $0xc0] sm:$0xff]  }
 0x14d   : > { %v3919_v16 = vsel %vm6821_vm3, %v3914_v59, %v3918_v44  ;;  %v3929_v46 = vsel %vm6821_vm3, %v3924_v55, %v3928_v18  ;;  %v3961_v3 = vor.u32 %v3960_v5, %v3957_v17  ;;  %v3974_v25 = vshll.u32 %v8288_v42, 16  ;;  %v6741_v9 = vld [vmem:[%s6803_s23 + $0x28] sm:$0xf]  ;;  %v5645_v22 = vld [vmem:[%s6803_s23 + $0x24] sm:$0xe] }
 0x14e   : > { %v3971_v15 = vor.u32 %v3970_v40, %v3966_v21  ;;  %v3943_v20 = vsel %vm6821_vm3, %v3938_v48, %v3942_v37  ;;  %v3953_v49 = vsel %vm6821_vm3, %v3948_v54, %v3952_v28  ;;  %v4338_v44 = vrot.slane %v6740_v32, 5  ;;  %v6742_v18 = vld [vmem:[%s6803_s23 + $0x2c] sm:$0x1]  ;;  %v8983_v28 = vld [vmem:[#allocation2_spill] sm:$0xff] }
 0x14f   : > { %v5625_v38 = vcombine.low %v3919_v16, %v3929_v46  ;;  %v5626_v11 = vcombine.low %v3943_v20, %v3953_v49  ;;  %v3962_v45 = vrot.slane %v3961_v3, 4  ;;  %v3976_v42 = vrot.slane %v3974_v25, 5  ;;  %v8986_v16 = vld [vmem:[#allocation8_spill] sm:$0xff]  ;;  %v8992_v46 = vld [vmem:[#allocation11_spill] sm:$0xff] }
 0x150   : > { %6124 = vmatmul.mubr.msk.bf16.gmra.mrb[20].mxu1 %vm669_vm4, %v6687_v7  ;;  %v3972_v0 = vrot.slane %v3971_v15, 4  ;;  %v5660_v6 = vrot.slane %v5644_v24, 9  ;;  %v4340_v37 = vrot.slane %v4338_v44, 4  ;;  %v4341_v7 = vrot.slane %v8974_v13, 5  ;;  %v8994_v3 = vld [vmem:[#allocation12_spill] sm:$0xff] }
 0x151   : > { %6127 = vmatprep.mubr.msk.bf16.mxu1 %vm669_vm4, %v6688_v29  ;;  %v3967_v50 = vsel %vm6821_vm3, %v3962_v45, %v3966_v21  ;;  %v4345_v29 = vrot.slane %v6741_v9, 5  ;;  %v5661_v59 = vrot.slane %v5645_v22, 9  ;;  %v4348_v17 = vrot.slane %v6742_v18, 5 }
 0x152   : > { %6260 = vmatmul.mubr.msk.bf16.gmra.mrb[20].mxu0 %vm669_vm4, %v5623_v30  ;;  %v3977_v23 = vsel %vm6821_vm3, %v3972_v0, %v3976_v42  ;;  %v4339_v31 = vsel %vm7230_vm7, %v5660_v6, %v4338_v44  ;;  %v4342_v63 = vsel %vm7230_vm7, %v4340_v37, %v4341_v7  ;;  %v8975_v40 = vcombine.low %v8085_v58, %v8097_v19  ;;  %v8980_v19 = vld [vmem:[#allocation5_spill] sm:$0xff] }
 0x153   : > { %6263 = vmatprep.mubr.msk.bf16.mxu0 %vm669_vm4, %v5624_v27  ;;  %v5627_v30 = vcombine.low %v3967_v50, %v3977_v23  ;;  %v5677_v27 = vcombine.low %v4339_v31, %v4342_v63  ;;  %v4347_v55 = vrot.slane %v4345_v29, 4  ;;  %v4346_v4 = vsel %vm7230_vm7, %v5661_v59, %v4345_v29 }
 0x154   : > { %v8976_v48 = vcombine.low %v8109_v53, %v8121_v14  ;;  %v8977_v54 = vcombine.low %v8114_v1, %v8130_v61  ;;  %v8979_v58 = vcombine.low %v8141_v36, %v8155_v43  ;;  %v8981_v53 = vcombine.low %v8169_v26, %v8980_v19  ;;  %v8982_v14 = vld [vmem:[#allocation4_spill] sm:$0xff]  ;;  %v8985_v61 = vld [vmem:[#allocation3_spill] sm:$0xff]  ;;  %v8991_v43 = vld [vmem:[#allocation10_spill] sm:$0xff] }
 0x155   : > { %v4349_v5 = vsel %vm7230_vm7, %v4347_v55, %v4348_v17  ;;  %v8984_v1 = vcombine.low %v8982_v14, %v8983_v28  ;;  %v8987_v35 = vcombine.low %v8985_v61, %v8986_v16  ;;  %v8993_v26 = vcombine.low %v8991_v43, %v8992_v46 }
 0x156   : > { %v5678_v21 = vcombine.low %v4346_v4, %v4349_v5  ;;  %v8995_v15 = vcombine.low %v8258_v57, %v8994_v3  ;;  %v8929_v52 = vmov 1.0  }
 0x158   : > { %6128 = vmatmul.mubr.msk.bf16.gmra.mrb[24].mxu1 %vm669_vm4, %v6689_v41  ;;  %v8989_v41 = vld [vmem:[#allocation9_spill] sm:$0xff] }
 0x159   : > { %6131 = vmatprep.mubr.msk.bf16.mxu1 %vm669_vm4, %v6690_v56  ;;  %v8990_v36 = vcombine.low %v8988_v12, %v8989_v41 }
 0x15a   : > { %6264 = vmatmul.mubr.msk.bf16.gmra.mrb[24].mxu0 %vm669_vm4, %v5625_v38 }
 0x15b   : > { %6267 = vmatprep.mubr.msk.bf16.mxu0 %vm669_vm4, %v5626_v11 }
 0x160   : > { %6132 = vmatmul.mubr.msk.bf16.gmra.mrb[28].mxu1 %vm669_vm4, %v6691_v34 }
 0x161   : > { %4967 = vmatprep.mubr.f32.mxu1 %v8929_v52 }
 0x162   : > { %6268 = vmatmul.mubr.msk.bf16.gmra.mrb[28].mxu0 %vm669_vm4, %v5627_v30 }
 0x163   : > { %6273 = vmatprep.mubr.msk.bf16.mxu0 %vm669_vm4, %v5677_v27 }
 0x16a   : > { %6274 = vmatmul.mubr.msk.bf16.vlgmr.msra.gmra.mrb[0].mxu0 %vm669_vm4, %v5678_v21 }
 0x16b   : > { %6277 = vmatprep.mubr.msk.bf16.mxu0 %vm669_vm4, %v8975_v40 }
 0x172   : > { %6278 = vmatmul.mubr.msk.bf16.gmra.mrb[4].mxu0 %vm669_vm4, %v8976_v48 }
 0x173   : > { %6281 = vmatprep.mubr.msk.bf16.mxu0 %vm669_vm4, %v8977_v54 }
 0x17a   : > { %6282 = vmatmul.mubr.msk.bf16.gmra.mrb[8].mxu0 %vm669_vm4, %v8978_v10 }
 0x17b   : > { %6285 = vmatprep.mubr.msk.bf16.mxu0 %vm669_vm4, %v8979_v58 }
 0x182   : > { %6286 = vmatmul.mubr.msk.bf16.gmra.mrb[12].mxu0 %vm669_vm4, %v8981_v53 }
 0x183   : > { %6289 = vmatprep.mubr.msk.bf16.mxu0 %vm669_vm4, %v8984_v1 }
 0x18a   : > { %6290 = vmatmul.mubr.msk.bf16.gmra.mrb[16].mxu0 %vm669_vm4, %v8987_v35 }
 0x18b   : > { %6293 = vmatprep.mubr.msk.bf16.mxu0 %vm669_vm4, %v8990_v36 }
 0x192   : > { %6294 = vmatmul.mubr.msk.bf16.gmra.mrb[20].mxu0 %vm669_vm4, %v8993_v26 }
 0x193   : > { %6297 = vmatprep.mubr.msk.bf16.mxu0 %vm669_vm4, %v8995_v15 }
 0x19a   : > { %6298 = vmatmul.mubr.msk.bf16.gmra.mrb[24].mxu0 %vm669_vm4, %v5690_v39 }
 0x19b   : > { %6301 = vmatprep.mubr.msk.bf16.mxu0 %vm669_vm4, %v5691_v2 }
 0x1a2   : > { %6302 = vmatmul.mubr.msk.bf16.gmra.mrb[28].mxu0 %vm669_vm4, %v5692_v33 }
 0x1fb   : > { %v6105_v25 = vpop.f32.mrb[0].mxu1 }
 0x1fc   : > { %v1832_v56 = vpop.f32.mrb[1].mxu1 }
 0x1fd   : > { %v6106_v57 = vpop.f32.mrb[2].mxu1 }
 0x1fe   : > { %v1835_v20 = vpop.f32.mrb[3].mxu1 }
 0x203   : > { %v6109_v49 = vpop.f32.mrb[4].mxu1 }
 0x204   : > { %v1848_v32 = vpop.f32.mrb[5].mxu1 }
 0x205   : > { %v6110_v44 = vpop.f32.mrb[6].mxu1 }
 0x206   : > { %v1851_v8 = vpop.f32.mrb[7].mxu1 }
 0x20b   : > { %v8512_v39 = vpop.f32.mrb[8].mxu1 }
 0x20c   : > { %v8514_v62 = vpop.f32.mrb[9].mxu1 }
 0x20d   : > { %v8516_v47 = vpop.f32.mrb[10].mxu1 }
 0x20e   : > { %v8518_v2 = vpop.f32.mrb[11].mxu1 }
 0x213   : > { %v8520_v60 = vpop.f32.mrb[12].mxu1 }
 0x214   : > { %v8522_v51 = vpop.f32.mrb[13].mxu1 }
 0x215   : > { %v8524_v33 = vpop.f32.mrb[14].mxu1 }
 0x216   : > { %v8526_v24 = vpop.f32.mrb[15].mxu1 }
 0x21b   : > { %v8528_v38 = vpop.f32.mrb[16].mxu1 }
 0x21c   : > { %v8530_v11 = vpop.f32.mrb[17].mxu1 }
 0x21d   : > { %v8532_v45 = vpop.f32.mrb[18].mxu1 }
 0x21e   : > { %v8534_v0 = vpop.f32.mrb[19].mxu1 }
 0x223   : > { %v8536_v42 = vpop.f32.mrb[20].mxu1 }
 0x224   : > { %v8538_v6 = vpop.f32.mrb[21].mxu1 }
 0x225   : > { %v8540_v37 = vpop.f32.mrb[22].mxu1 }
 0x226   : > { %v8542_v13 = vpop.f32.mrb[23].mxu1 }
 0x22b   : > { %v8544_v7 = vpop.f32.mrb[24].mxu1 }
 0x22c   : > { %v8546_v34 = vpop.f32.mrb[25].mxu1 }
 0x22d   : > { %v8548_v50 = vpop.f32.mrb[26].mxu1 }
 0x22e   : > { %v8550_v23 = vpop.f32.mrb[27].mxu1 }
 0x233   : > { %v8552_v9 = vpop.f32.mrb[28].mxu1 }
 0x234   : > { %v8554_v29 = vpop.f32.mrb[29].mxu1 }
 0x235   : > { %v8556_v31 = vpop.f32.mrb[30].mxu1 }
 0x236   : > { %v8558_v63 = vpop.f32.mrb[31].mxu1 }
 0x23d   : > { %v6275_v22 = vpop.f32.mrb[0].mxu0 }
 0x23e   : > { %v8561_v30 = vadd.f32 %v6275_v22, %v6105_v25  ;;  %v4583_v27 = vpop.f32.mrb[1].mxu0 }
 0x23f   : > { %v8568_v59 = vadd.f32 %v4583_v27, %v1832_v56  ;;  %v6276_v55 = vpop.f32.mrb[2].mxu0 }
 0x240   : > { %v5746_v18 = vpack.c.bf16 %v8561_v30, %v8561_v30  ;;  %v8572_v17 = vadd.f32 %v6276_v55, %v6106_v57  ;;  %v4586_v4 = vpop.f32.mrb[3].mxu0  ;;  %v8582_v40 = vmul.f32 %v8561_v30, %v8561_v30 }
 0x241   : > { %v5744_v5 = vpack.c.bf16 %v8568_v59, %v8568_v59  ;;  %v8576_v21 = vadd.f32 %v4586_v4, %v1835_v20  ;;  %v8596_v58 = vmul.f32 %v8568_v59, %v8568_v59 }
 0x242   : > { %4873 = vst.msk [vmem:[%s8566_s14 + $0x8] sm:$0xf] %vm4870_vm8, %v5746_v18  ;;  %v5747_v48 = vpack.c.bf16 %v8572_v17, %v8572_v17  ;;  %v6311_v54 = vpack.c.bf16 %v8572_v17, %v8561_v30  ;;  %v8590_v10 = vmul.f32 %v8572_v17, %v8572_v17 }
 0x243   : > { %4871 = vst.msk [vmem:[%s8566_s14] sm:$0xf] %vm4870_vm8, %v5744_v5  ;;  %v5745_v19 = vpack.c.bf16 %v8576_v21, %v8576_v21  ;;  %v6307_v53 = vpack.c.bf16 %v8576_v21, %v8568_v59  ;;  %v8604_v14 = vmul.f32 %v8576_v21, %v8576_v21 }
 0x244   : > { %4874 = vst.msk [vmem:[%s8566_s14 + $0xc] sm:$0xf] %vm4870_vm8, %v5747_v48 }
 0x245   : > { %4872 = vst.msk [vmem:[%s8566_s14 + $0x4] sm:$0xf] %vm4870_vm8, %v5745_v19  ;;  %v6279_v61 = vpop.f32.mrb[4].mxu0 }
 0x246   : > { %v8614_v16 = vadd.f32 %v6279_v61, %v6109_v49  ;;  %v4599_v35 = vpop.f32.mrb[5].mxu0 }
 0x247   : > { %v8616_v12 = vadd.f32 %v4599_v35, %v1848_v32  ;;  %v6280_v41 = vpop.f32.mrb[6].mxu0 }
 0x248   : > { %v5750_v36 = vpack.c.bf16 %v8614_v16, %v8614_v16  ;;  %v8620_v43 = vadd.f32 %v6280_v41, %v6110_v44  ;;  %v4602_v46 = vpop.f32.mrb[7].mxu0  ;;  %v8630_v15 = vmul.f32 %v8614_v16, %v8614_v16 }
 0x249   : > { %v5748_v26 = vpack.c.bf16 %v8616_v12, %v8616_v12  ;;  %v8624_v3 = vadd.f32 %v4602_v46, %v1851_v8  ;;  %v8644_v20 = vmul.f32 %v8616_v12, %v8616_v12 }
 0x24a   : > { %4877 = vst.msk [vmem:[%s8566_s14 + $0x18] sm:$0xf] %vm4870_vm8, %v5750_v36  ;;  %v5751_v25 = vpack.c.bf16 %v8620_v43, %v8620_v43  ;;  %v8638_v57 = vmul.f32 %v8620_v43, %v8620_v43 }
 0x24b   : > { %4875 = vst.msk [vmem:[%s8566_s14 + $0x10] sm:$0xf] %vm4870_vm8, %v5748_v26  ;;  %v5749_v49 = vpack.c.bf16 %v8624_v3, %v8624_v3  ;;  %v6315_v32 = vpack.c.bf16 %v8624_v3, %v8616_v12  ;;  %v8652_v44 = vmul.f32 %v8624_v3, %v8624_v3  ;;  %v8996_v3 = vpack.c.bf16 %v8620_v43, %v8614_v16 }
 0x24c   : > { %4878 = vst.msk [vmem:[%s8566_s14 + $0x1c] sm:$0xf] %vm4870_vm8, %v5751_v25 }
 0x24d   : > { %4876 = vst.msk [vmem:[%s8566_s14 + $0x14] sm:$0xf] %vm4870_vm8, %v5749_v49  ;;  %v6283_v27 = vpop.f32.mrb[8].mxu0 }
 0x24e   : > { %v8663_v55 = vadd.f32 %v6283_v27, %v8512_v39  ;;  %v4615_v18 = vpop.f32.mrb[9].mxu0 }
 0x24f   : > { %v8666_v4 = vadd.f32 %v4615_v18, %v8514_v62  ;;  %v6284_v5 = vpop.f32.mrb[10].mxu0 }
 0x250   : > { %v5754_v48 = vpack.c.bf16 %v8663_v55, %v8663_v55  ;;  %v8671_v19 = vadd.f32 %v6284_v5, %v8516_v47  ;;  %v4618_v61 = vpop.f32.mrb[11].mxu0  ;;  %v8682_v62 = vmul.f32 %v8663_v55, %v8663_v55 }
 0x251   : > { %v5752_v35 = vpack.c.bf16 %v8666_v4, %v8666_v4  ;;  %v8676_v39 = vadd.f32 %v4618_v61, %v8518_v2  ;;  %v8696_v2 = vmul.f32 %v8666_v4, %v8666_v4 }
 0x252   : > { %4881 = vst.msk [vmem:[%s8566_s14 + $0x28] sm:$0xf] %vm4870_vm8, %v5754_v48  ;;  %v5755_v41 = vpack.c.bf16 %v8671_v19, %v8671_v19  ;;  %v8690_v36 = vmul.f32 %v8671_v19, %v8671_v19 }
 0x253   : > { %4879 = vst.msk [vmem:[%s8566_s14 + $0x20] sm:$0xf] %vm4870_vm8, %v5752_v35  ;;  %v5753_v46 = vpack.c.bf16 %v8676_v39, %v8676_v39  ;;  %v8704_v25 = vmul.f32 %v8676_v39, %v8676_v39  ;;  %v8997_v43 = vpack.c.bf16 %v8676_v39, %v8666_v4  ;;  %v8998_v39 = vpack.c.bf16 %v8671_v19, %v8663_v55 }
 0x254   : > { %4882 = vst.msk [vmem:[%s8566_s14 + $0x2c] sm:$0xf] %vm4870_vm8, %v5755_v41  ;;  %v9001_v19 = vmov 1.0  }
 0x255   : > { %4880 = vst.msk [vmem:[%s8566_s14 + $0x24] sm:$0xf] %vm4870_vm8, %v5753_v46  ;;  %v6287_v18 = vpop.f32.mrb[12].mxu0 }
 0x256   : > { %v8715_v5 = vadd.f32 %v6287_v18, %v8520_v60  ;;  %v4631_v48 = vpop.f32.mrb[13].mxu0 }
 0x257   : > { %v8718_v61 = vadd.f32 %v4631_v48, %v8522_v51  ;;  %v6288_v35 = vpop.f32.mrb[14].mxu0 }
 0x258   : > { %v5758_v41 = vpack.c.bf16 %v8715_v5, %v8715_v5  ;;  %v8723_v49 = vadd.f32 %v6288_v35, %v8524_v33  ;;  %v4634_v46 = vpop.f32.mrb[15].mxu0  ;;  %v8734_v51 = vmul.f32 %v8715_v5, %v8715_v5 }
 0x259   : > { %v5756_v27 = vpack.c.bf16 %v8718_v61, %v8718_v61  ;;  %v8728_v60 = vadd.f32 %v4634_v46, %v8526_v24  ;;  %v8748_v24 = vmul.f32 %v8718_v61, %v8718_v61 }
 0x25a   : > { %4885 = vst.msk [vmem:[%s8566_s14 + $0x38] sm:$0xf] %vm4870_vm8, %v5758_v41  ;;  %v5759_v18 = vpack.c.bf16 %v8723_v49, %v8723_v49  ;;  %v8742_v48 = vmul.f32 %v8723_v49, %v8723_v49  ;;  %v9000_v55 = vpack.c.bf16 %v8723_v49, %v8715_v5  ;;  %v9003_v49 = vpack.c.bf16 %v8590_v10, %v8582_v40 }
 0x25b   : > { %4883 = vst.msk [vmem:[%s8566_s14 + $0x30] sm:$0xf] %vm4870_vm8, %v5756_v27  ;;  %v5757_v35 = vpack.c.bf16 %v8728_v60, %v8728_v60  ;;  %v8756_v46 = vmul.f32 %v8728_v60, %v8728_v60  ;;  %v9004_v5 = vpack.c.bf16 %v8652_v44, %v8644_v20  ;;  %v9006_v40 = vpack.c.bf16 %v8704_v25, %v8696_v2 }
 0x25c   : > { %4886 = vst.msk [vmem:[%s8566_s14 + $0x3c] sm:$0xf] %vm4870_vm8, %v5759_v18  ;;  %v9007_v10 = vpack.c.bf16 %v8690_v36, %v8682_v62 }
 0x25d   : > { %4884 = vst.msk [vmem:[%s8566_s14 + $0x34] sm:$0xf] %vm4870_vm8, %v5757_v35  ;;  %v6291_v22 = vpop.f32.mrb[16].mxu0 }
 0x25e   : > { %v6385_v28 = vadd.f32 %v6291_v22, %v8528_v38  ;;  %v4647_v1 = vpop.f32.mrb[17].mxu0 }
 0x25f   : > { %v6386_v52 = vadd.f32 %v4647_v1, %v8530_v11  ;;  %v6292_v33 = vpop.f32.mrb[18].mxu0 }
 0x260   : > { %v5762_v41 = vpack.c.bf16 %v6385_v28, %v6385_v28  ;;  %v6387_v18 = vadd.f32 %v6292_v33, %v8532_v45  ;;  %v4650_v47 = vpop.f32.mrb[19].mxu0  ;;  %v8772_v8 = vmul.f32 %v6385_v28, %v6385_v28 }
 0x261   : > { %v5760_v27 = vpack.c.bf16 %v6386_v52, %v6386_v52  ;;  %v6388_v35 = vadd.f32 %v4650_v47, %v8534_v0  ;;  %v8778_v11 = vmul.f32 %v6386_v52, %v6386_v52 }
 0x262   : > { %4889 = vst.msk [vmem:[%s8566_s14 + $0x48] sm:$0xf] %vm4870_vm8, %v5762_v41  ;;  %v5763_v26 = vpack.c.bf16 %v6387_v18, %v6387_v18  ;;  %v8774_v56 = vmul.f32 %v6387_v18, %v6387_v18  ;;  %v6309_v38 = vpack.c.bf16 %v6387_v18, %v6385_v28 }
 0x263   : > { %4887 = vst.msk [vmem:[%s8566_s14 + $0x40] sm:$0xf] %vm4870_vm8, %v5760_v27  ;;  %v5761_v1 = vpack.c.bf16 %v6388_v35, %v6388_v35  ;;  %v8780_v22 = vmul.f32 %v6388_v35, %v6388_v35  ;;  %v6305_v45 = vpack.c.bf16 %v6388_v35, %v6386_v52 }
 0x264   : > { %4890 = vst.msk [vmem:[%s8566_s14 + $0x4c] sm:$0xf] %vm4870_vm8, %v5763_v26  ;;  %v6341_v0 = vpack.c.bf16 %v8774_v56, %v8772_v8 }
 0x265   : > { %4888 = vst.msk [vmem:[%s8566_s14 + $0x44] sm:$0xf] %vm4870_vm8, %v5761_v1  ;;  %v6295_v47 = vpop.f32.mrb[20].mxu0  ;;  %6306 = vmatprep.subr.bf16.mxu1 %v6305_v45  ;;  %v6337_v28 = vpack.c.bf16 %v8780_v22, %v8778_v11 }
 0x266   : > { %v6389_v33 = vadd.f32 %v6295_v47, %v8536_v42  ;;  %v4663_v41 = vpop.f32.mrb[21].mxu0  ;;  %6308 = vmatpush3.bf16.msra.mxu1 %v6307_v53 }
 0x267   : > { %v6390_v52 = vadd.f32 %v4663_v41, %v8538_v6  ;;  %v6296_v26 = vpop.f32.mrb[22].mxu0  ;;  %6310 = vmatprep.subr.bf16.mxu1 %v6309_v38 }
 0x268   : > { %v5766_v27 = vpack.c.bf16 %v6389_v33, %v6389_v33  ;;  %v6391_v18 = vadd.f32 %v6296_v26, %v8540_v37  ;;  %v4666_v35 = vpop.f32.mrb[23].mxu0  ;;  %v8799_v42 = vmul.f32 %v6389_v33, %v6389_v33 }
 0x269   : > { %v5764_v1 = vpack.c.bf16 %v6390_v52, %v6390_v52  ;;  %v6392_v45 = vadd.f32 %v4666_v35, %v8542_v13  ;;  %v8808_v37 = vmul.f32 %v6390_v52, %v6390_v52 }
 0x26a   : > { %4893 = vst.msk [vmem:[%s8566_s14 + $0x58] sm:$0xf] %vm4870_vm8, %v5766_v27  ;;  %v5767_v59 = vpack.c.bf16 %v6391_v18, %v6391_v18  ;;  %v8801_v21 = vmul.f32 %v6391_v18, %v6391_v18  ;;  %6312 = vmatpush3.bf16.msra.mxu1 %v6311_v54  ;;  %v6317_v6 = vpack.c.bf16 %v6391_v18, %v6389_v33 }
 0x26b   : > { %4891 = vst.msk [vmem:[%s8566_s14 + $0x50] sm:$0xf] %vm4870_vm8, %v5764_v1  ;;  %v5765_v53 = vpack.c.bf16 %v6392_v45, %v6392_v45  ;;  %v8810_v38 = vmul.f32 %v6392_v45, %v6392_v45  ;;  %v6313_v13 = vpack.c.bf16 %v6392_v45, %v6390_v52 }
 0x26c   : > { %4894 = vst.msk [vmem:[%s8566_s14 + $0x5c] sm:$0xf] %vm4870_vm8, %v5767_v59  ;;  %v6349_v47 = vpack.c.bf16 %v8801_v21, %v8799_v42 }
 0x26d   : > { %4892 = vst.msk [vmem:[%s8566_s14 + $0x54] sm:$0xf] %vm4870_vm8, %v5765_v53  ;;  %v6299_v41 = vpop.f32.mrb[24].mxu0  ;;  %6314 = vmatprep.subr.bf16.mxu1 %v6313_v13  ;;  %v6345_v30 = vpack.c.bf16 %v8810_v38, %v8808_v37 }
 0x26e   : > { %v6393_v17 = vadd.f32 %v6299_v41, %v8544_v7  ;;  %v4679_v54 = vpop.f32.mrb[25].mxu0  ;;  %6316 = vmatpush3.bf16.msra.mxu1 %v6315_v32 }
 0x26f   : > { %v6394_v33 = vadd.f32 %v4679_v54, %v8546_v34  ;;  %v6300_v52 = vpop.f32.mrb[26].mxu0  ;;  %6318 = vmatprep.subr.bf16.mxu1 %v6317_v6 }
 0x270   : > { %v5770_v26 = vpack.c.bf16 %v6393_v17, %v6393_v17  ;;  %v6395_v27 = vadd.f32 %v6300_v52, %v8548_v50  ;;  %v4682_v18 = vpop.f32.mrb[27].mxu0  ;;  %v5001_v7 = vmul.f32 %v6393_v17, %v6393_v17 }
 0x271   : > { %v5768_v35 = vpack.c.bf16 %v6394_v33, %v6394_v33  ;;  %v6396_v1 = vadd.f32 %v4682_v18, %v8550_v23  ;;  %v4999_v32 = vmul.f32 %v6394_v33, %v6394_v33 }
 0x272   : > { %4897 = vst.msk [vmem:[%s8566_s14 + $0x68] sm:$0xf] %vm4870_vm8, %v5770_v26  ;;  %v5771_v45 = vpack.c.bf16 %v6395_v27, %v6395_v27  ;;  %v5002_v12 = vmul.f32 %v6395_v27, %v6395_v27  ;;  %6320 = vmatpush3.bf16.msra.mxu1 %v8996_v3  ;;  %v6325_v34 = vpack.c.bf16 %v6395_v27, %v6393_v17 }
 0x273   : > { %4895 = vst.msk [vmem:[%s8566_s14 + $0x60] sm:$0xf] %vm4870_vm8, %v5768_v35  ;;  %v5769_v59 = vpack.c.bf16 %v6396_v1, %v6396_v1  ;;  %v5000_v50 = vmul.f32 %v6396_v1, %v6396_v1  ;;  %v6321_v6 = vpack.c.bf16 %v6396_v1, %v6394_v33  ;;  %v8999_v3 = vpack.c.bf16 %v8728_v60, %v8718_v61 }
 0x274   : > { %4898 = vst.msk [vmem:[%s8566_s14 + $0x6c] sm:$0xf] %vm4870_vm8, %v5771_v45  ;;  %v6357_v53 = vpack.c.bf16 %v5002_v12, %v5001_v7 }
 0x275   : > { %4896 = vst.msk [vmem:[%s8566_s14 + $0x64] sm:$0xf] %vm4870_vm8, %v5769_v59  ;;  %v6303_v23 = vpop.f32.mrb[28].mxu0  ;;  %6322 = vmatprep.subr.bf16.mxu1 %v6321_v6  ;;  %v6353_v13 = vpack.c.bf16 %v5000_v50, %v4999_v32 }
 0x276   : > { %v6397_v41 = vadd.f32 %v6303_v23, %v8552_v9  ;;  %v4695_v16 = vpop.f32.mrb[29].mxu0  ;;  %6324 = vmatpush3.bf16.msra.mxu1 %v8997_v43 }
 0x277   : > { %v6398_v17 = vadd.f32 %v4695_v16, %v8554_v29  ;;  %v6304_v54 = vpop.f32.mrb[30].mxu0  ;;  %6326 = vmatprep.subr.bf16.mxu1 %v6325_v34  ;;  %v9002_v34 = vpack.c.bf16 %v8604_v14, %v8596_v58  ;;  %v9005_v58 = vpack.c.bf16 %v8638_v57, %v8630_v15  ;;  %v9008_v14 = vpack.c.bf16 %v8756_v46, %v8748_v24 }
 0x278   : > { %v5774_v33 = vpack.c.bf16 %v6397_v41, %v6397_v41  ;;  %v6399_v52 = vadd.f32 %v6304_v54, %v8556_v31  ;;  %v4698_v26 = vpop.f32.mrb[31].mxu0  ;;  %v5005_v9 = vmul.f32 %v6397_v41, %v6397_v41  ;;  %v9009_v15 = vpack.c.bf16 %v8742_v48, %v8734_v51 }
 0x279   : > { %v5772_v27 = vpack.c.bf16 %v6398_v17, %v6398_v17  ;;  %v6400_v18 = vadd.f32 %v4698_v26, %v8558_v63  ;;  %v5003_v1 = vmul.f32 %v6398_v17, %v6398_v17 }
 0x27a   : > { %4901 = vst.msk [vmem:[%s8566_s14 + $0x78] sm:$0xf] %vm4870_vm8, %v5774_v33  ;;  %v5775_v35 = vpack.c.bf16 %v6399_v52, %v6399_v52  ;;  %v5006_v4 = vmul.f32 %v6399_v52, %v6399_v52  ;;  %6328 = vmatpush3.bf16.msra.mxu1 %v8998_v39  ;;  %v6333_v29 = vpack.c.bf16 %v6399_v52, %v6397_v41 }
 0x27b   : > { %4899 = vst.msk [vmem:[%s8566_s14 + $0x70] sm:$0xf] %vm4870_vm8, %v5772_v27  ;;  %v5773_v7 = vpack.c.bf16 %v6400_v18, %v6400_v18  ;;  %v5004_v31 = vmul.f32 %v6400_v18, %v6400_v18  ;;  %v6329_v45 = vpack.c.bf16 %v6400_v18, %v6398_v17 }
 0x27c   : > { %4902 = vst.msk [vmem:[%s8566_s14 + $0x7c] sm:$0xf] %vm4870_vm8, %v5775_v35  ;;  %v6365_v12 = vpack.c.bf16 %v5006_v4, %v5005_v9 }
 0x27d   : > { %4900 = vst.msk [vmem:[%s8566_s14 + $0x74] sm:$0xf] %vm4870_vm8, %v5773_v7  ;;  %6330 = vmatprep.subr.bf16.mxu1 %v6329_v45  ;;  %v6361_v63 = vpack.c.bf16 %v5004_v31, %v5003_v1 }
 0x27e   : > { %6332 = vmatpush3.bf16.msra.mxu1 %v8999_v3 }
 0x27f   : > { %6334 = vmatprep.subr.bf16.mxu1 %v6333_v29 }
 0x282   : > { %6336 = vmatpush3.bf16.msra.mxu1 %v9000_v55 }
 0x283   : > { %6338 = vmatprep.subr.bf16.mxu1 %v6337_v28 }
 0x285   : > { %4968 = vmatmul.mubr.f32.vlgmr.msra.gmra.mrb[32].mxu1 %v9001_v19 }
 0x286   : > { %6340 = vmatpush3.bf16.msra.mxu1 %v9002_v34  ;;  %5071 = vmatprep.mubr.f32.mxu1 %v9001_v19 }
 0x287   : > { %6342 = vmatprep.subr.bf16.mxu1 %v6341_v0 }
 0x28a   : > { %6344 = vmatpush3.bf16.msra.mxu1 %v9003_v49 }
 0x28b   : > { %6346 = vmatprep.subr.bf16.mxu1 %v6345_v30 }
 0x28e   : > { %6348 = vmatpush3.bf16.msra.mxu1 %v9004_v5 }
 0x28f   : > { %6350 = vmatprep.subr.bf16.mxu1 %v6349_v47 }
 0x292   : > { %6352 = vmatpush3.bf16.msra.mxu1 %v9005_v58 }
 0x293   : > { %6354 = vmatprep.subr.bf16.mxu1 %v6353_v13 }
 0x296   : > { %6356 = vmatpush3.bf16.msra.mxu1 %v9006_v40 }
 0x297   : > { %6358 = vmatprep.subr.bf16.mxu1 %v6357_v53 }
 0x29a   : > { %6360 = vmatpush3.bf16.msra.mxu1 %v9007_v10 }
 0x29b   : > { %6362 = vmatprep.subr.bf16.mxu1 %v6361_v63 }
 0x29e   : > { %6364 = vmatpush3.bf16.msra.mxu1 %v9008_v14 }
 0x29f   : > { %6366 = vmatprep.subr.bf16.mxu1 %v6365_v12 }
 0x2a2   : > { %6368 = vmatpush3.bf16.msra.mxu1 %v9009_v15 }
 0x2a5   : > { %5072 = vmatmul.mubr.f32.vlgmr.msra.gmra.mrb[34].mxu1 %v9001_v19 }
 0x358   : > { %v5961_v56 = vpop.f32.mrb[32].mxu1 }
 0x359   : > { %v5962_v57 = vpop.f32.mrb[33].mxu1 }
 0x35a   : > { %v5963_v20 = vadd.f32 %v5962_v57, %v5961_v56 }
 0x35c   : > { %4974 = vst.msk [vmem:[%s181_s18] sm:$0x1] %vm4973_vm9, %v5963_v20 }
 0x378   : > { %v5996_v44 = vpop.f32.mrb[34].mxu1 }
 0x379   : > { %v5997_v8 = vpop.f32.mrb[35].mxu1 }
 0x37a   : > { %v5998_v62 = vadd.f32 %v5997_v8, %v5996_v44 }
 0x37c   : > { %5077 = vst.msk [vmem:[%s181_s18 + $0x1] sm:$0x1] %vm4973_vm9, %v5998_v62 }
 0x37d PF: > { %s14_s12 = sadd.s32 1, %s6749_s12  }
 0x37e   : > { %p11_p4 = scmp.ge.s32.totalorder %s14_s12, 4  }
 0x380   :  { %13 = sbr.rel (!%p11_p4) target bundleno = 1 (0x1), region = 80 }

</bundles_post_ra>
